<compile_context>
chip_gen: v7x
topology: tpu7x:2x2x1
jax: 0.10.0
libtpu: 0.0.40
codegen_flags: <defaults>
</compile_context>

<pallas_src>
import functools

import jax
import jax.numpy as jnp
from jax.experimental import pallas as pl
from jax.experimental.pallas import tpu as pltpu


def _net_kernel(w_ref, b_ref, pos_ref, out_ref, *, nr_classes, point_chunk):
    """One grid step: TB point clouds -> TB rows of class log-probabilities.

    w_ref:   VMEM (3, C_pad)      linear weight (class-padded with zeros), MXU RHS
    b_ref:   VMEM (1, C_pad)      bias, zero-padded to the lane width
    pos_ref: VMEM (TB, P, 3)      natural-layout point block (points on sublanes)
    out_ref: VMEM (TB, C_pad)     log-probabilities (padded lanes written as 0)
    """
    tb, p, _ = pos_ref.shape
    c_pad = out_ref.shape[1]
    n_chunks = p // point_chunk

    w = w_ref[...]  # (3, C_pad) — loaded once, reused for every point chunk.

    def body(t, acc):
        # acc: (TB, C_pad) running max — literally one f32 vreg for TB=8.
        start = pl.multiple_of(t * point_chunk, point_chunk)
        chunk = pos_ref[:, pl.ds(start, point_chunk), :]          # (TB, IC, 3)
        # K=3 contraction on the MXU; points stay on sublanes, classes on lanes.
        scores = jnp.einsum("sik,kc->sic", chunk, w,
                            preferred_element_type=jnp.float32)   # (TB, IC, C_pad)
        # Max over the chunk's points (vmax across vregs + one small sublane
        # reduce), then fold into the running max with a plain elementwise vmax.
        return jnp.maximum(acc, jnp.max(scores, axis=1))

    acc0 = jnp.full((tb, c_pad), -jnp.inf, dtype=jnp.float32)
    acc = jax.lax.fori_loop(0, n_chunks, body, acc0, unroll=(n_chunks <= 8))

    # Bias after the max (equivalent to bias-before-max), then ReLU.
    r = jnp.maximum(acc + b_ref[...], 0.0)                        # (TB, C_pad)

    # Log-softmax over the real class lanes only (mask the lane padding).
    lane = jax.lax.broadcasted_iota(jnp.int32, (tb, c_pad), 1)
    valid = lane < nr_classes
    rm = jnp.max(jnp.where(valid, r, -jnp.inf), axis=1, keepdims=True)
    es = jnp.where(valid, jnp.exp(r - rm), 0.0)
    lse = jnp.log(jnp.sum(es, axis=1, keepdims=True)) + rm
    out_ref[...] = jnp.where(valid, r - lse, 0.0)


def net_forward(pos, weight, bias, *, nr_points, block_b=8, point_chunk=128):
    """pos: (B*nr_points, 3) f32; weight: (3, C) f32; bias: (C,) f32 -> (B, C) f32."""
    n, d = pos.shape
    assert d == 3 and n % nr_points == 0
    assert block_b % 8 == 0
    p = nr_points
    assert p % 8 == 0
    b = n // nr_points
    c = weight.shape[1]
    c_pad = ((c + 127) // 128) * 128
    b_pad = ((b + block_b - 1) // block_b) * block_b
    ic = min(point_chunk, p)
    assert p % ic == 0

    # Free, contiguous reshape — NO HBM relayout / transpose in the wrapper.
    pos_bp3 = pos.reshape(b, p, 3)
    if b_pad != b:
        pos_bp3 = jnp.pad(pos_bp3, ((0, b_pad - b), (0, 0), (0, 0)))
    w_pad = jnp.pad(weight, ((0, 0), (0, c_pad - c)))              # (3, C_pad)
    bias_pad = jnp.pad(bias, (0, c_pad - c)).reshape(1, c_pad)     # (1, C_pad)

    kernel = functools.partial(_net_kernel, nr_classes=c, point_chunk=ic)

    out = pl.pallas_call(
        kernel,
        out_shape=jax.ShapeDtypeStruct((b_pad, c_pad), jnp.float32),
        grid_spec=pltpu.PrefetchScalarGridSpec(
            num_scalar_prefetch=0,
            grid=(b_pad // block_b,),
            in_specs=[
                pl.BlockSpec((3, c_pad), lambda i: (0, 0)),          # weight (replicated)
                pl.BlockSpec((1, c_pad), lambda i: (0, 0)),          # bias (replicated)
                pl.BlockSpec((block_b, p, 3), lambda i: (i, 0, 0)),  # TB point clouds
            ],
            out_specs=pl.BlockSpec((block_b, c_pad), lambda i: (i, 0)),
        ),
        compiler_params=pltpu.CompilerParams(
            dimension_semantics=("parallel",)),
    )(w_pad, bias_pad, pos_bp3)

    return out[:b, :c]


def reference_forward(pos, weight, bias, *, nr_points):
    """Pure-JAX reference mirroring the PyTorch forward."""
    b = pos.shape[0] // nr_points
    c = weight.shape[1]
    y1 = pos @ weight + bias                      # nn1(pos)
    y1 = y1.reshape(b, -1, c)                     # view(real_batch_size, -1, C)
    y1 = jnp.max(y1, axis=1)                      # torch.max(..., dim=1)[0]
    y1 = jnp.maximum(y1, 0.0)                     # relu
    return jax.nn.log_softmax(y1, axis=1)         # LogSoftmax(dim=1)


if __name__ == "__main__":
    NR_POINTS = 1024          # the module hard-codes nr_points = 1024
    BATCH = 2                 # small real batch size
    NR_CLASSES = 40           # ModelNet40 branch

    key = jax.random.PRNGKey(0)
    k_pos, k_w, k_b = jax.random.split(key, 3)

    # Deterministic init (matches torch.nn.Linear's U(-1/sqrt(3), 1/sqrt(3)) scale).
    bound = 1.0 / jnp.sqrt(3.0)
    weight = jax.random.uniform(k_w, (3, NR_CLASSES), jnp.float32, -bound, bound)
    bias = jax.random.uniform(k_b, (NR_CLASSES,), jnp.float32, -bound, bound)

    # data.pos: (B * nr_points, 3) point-cloud coordinates.
    pos = jax.random.normal(k_pos, (BATCH * NR_POINTS, 3), jnp.float32)
    # data.edge_index / data.batch are unused by this forward pass.

    out = net_forward(pos, weight, bias, nr_points=NR_POINTS)
    out = jax.block_until_ready(out)

    ref = reference_forward(pos, weight, bias, nr_points=NR_POINTS)
    assert out.shape == (BATCH, NR_CLASSES)
    assert jnp.allclose(out, ref, atol=1e-5, rtol=1e-5), "mismatch vs reference"

    # NOTE: at B=2 the op is launch-overhead bound; benchmark with xprof min-of-N
    # at realistic batch sizes (grid >= 2 steps also lets v7x use both TCs).
    print("KERNEL_OK")
</pallas_src>

<mosaic_0001>
module attributes {stable_mosaic.version = 11 : i64} {
  func.func @_net_kernel(%arg0: i32, %arg1: memref<3x128xf32, #tpu.memory_space<vmem>>, %arg2: memref<1x128xf32, #tpu.memory_space<vmem>>, %arg3: memref<8x1024x3xf32, #tpu.memory_space<vmem>>, %arg4: memref<8x128xf32, #tpu.memory_space<vmem>>) attributes {dimension_semantics = [#tpu.dimension_semantics<parallel>], iteration_bounds = array<i64: 1>, scalar_prefetch = 0 : i64, scratch_operands = 0 : i64, tpu.core_type = #tpu.core_type<tc>, window_params = [{pipeline_mode = #tpu.pipeline_mode<synchronous>, transform_indices = @transform_0, window_bounds = array<i64: 3, 128>}, {pipeline_mode = #tpu.pipeline_mode<synchronous>, transform_indices = @transform_1, window_bounds = array<i64: 1, 128>}, {transform_indices = @transform_2, window_bounds = array<i64: 8, 1024, 3>}, {transform_indices = @transform_3, window_bounds = array<i64: 8, 128>}]} {
    %c0 = arith.constant 0 : index
    %c0_0 = arith.constant 0 : index
    %0 = vector.load %arg1[%c0, %c0_0] : memref<3x128xf32, #tpu.memory_space<vmem>>, vector<3x128xf32>
    %cst = arith.constant 0xFF800000 : f32
    %1 = vector.broadcast %cst : f32 to vector<8x128xf32>
    %c0_i32 = arith.constant 0 : i32
    %c128_i32 = arith.constant 128 : i32
    %2 = arith.muli %c0_i32, %c128_i32 : i32
    %3 = tpu.assume_multiple %2, 128 : i32
    %c0_1 = arith.constant 0 : index
    %4 = arith.index_cast %3 : i32 to index
    %c0_2 = arith.constant 0 : index
    %5 = vector.load %arg3[%c0_1, %4, %c0_2] : memref<8x1024x3xf32, #tpu.memory_space<vmem>>, vector<8x128x3xf32>
    "tpu.trace_start"() <{level = 10 : i32, message = "sik,kc->sic"}> : () -> ()
    %cst_3 = arith.constant dense<0.000000e+00> : vector<8x128x128xf32>
    %6 = tpu.matmul %5, %0, %cst_3 {dimension_numbers = #tpu.dot_dimension_numbers<[2], [0], [0, 1], [1], [0, 0, 0, 1, 1, 1], [], []>} : vector<8x128x3xf32>, vector<3x128xf32>, vector<8x128x128xf32> -> vector<8x128x128xf32>
    "tpu.trace_stop"() : () -> ()
    %cst_4 = arith.constant dense<0xFF800000> : vector<8x128xf32>
    %7 = vector.multi_reduction <maximumf>, %6, %cst_4 [1] : vector<8x128x128xf32> to vector<8x128xf32>
    %8 = arith.maximumf %1, %7 : vector<8x128xf32>
    %c1_i32 = arith.constant 1 : i32
    %c128_i32_5 = arith.constant 128 : i32
    %9 = arith.muli %c1_i32, %c128_i32_5 : i32
    %10 = tpu.assume_multiple %9, 128 : i32
    %c0_6 = arith.constant 0 : index
    %11 = arith.index_cast %10 : i32 to index
    %c0_7 = arith.constant 0 : index
    %12 = vector.load %arg3[%c0_6, %11, %c0_7] : memref<8x1024x3xf32, #tpu.memory_space<vmem>>, vector<8x128x3xf32>
    "tpu.trace_start"() <{level = 10 : i32, message = "sik,kc->sic"}> : () -> ()
    %cst_8 = arith.constant dense<0.000000e+00> : vector<8x128x128xf32>
    %13 = tpu.matmul %12, %0, %cst_8 {dimension_numbers = #tpu.dot_dimension_numbers<[2], [0], [0, 1], [1], [0, 0, 0, 1, 1, 1], [], []>} : vector<8x128x3xf32>, vector<3x128xf32>, vector<8x128x128xf32> -> vector<8x128x128xf32>
    "tpu.trace_stop"() : () -> ()
    %cst_9 = arith.constant dense<0xFF800000> : vector<8x128xf32>
    %14 = vector.multi_reduction <maximumf>, %13, %cst_9 [1] : vector<8x128x128xf32> to vector<8x128xf32>
    %15 = arith.maximumf %8, %14 : vector<8x128xf32>
    %c2_i32 = arith.constant 2 : i32
    %c128_i32_10 = arith.constant 128 : i32
    %16 = arith.muli %c2_i32, %c128_i32_10 : i32
    %17 = tpu.assume_multiple %16, 128 : i32
    %c0_11 = arith.constant 0 : index
    %18 = arith.index_cast %17 : i32 to index
    %c0_12 = arith.constant 0 : index
    %19 = vector.load %arg3[%c0_11, %18, %c0_12] : memref<8x1024x3xf32, #tpu.memory_space<vmem>>, vector<8x128x3xf32>
    "tpu.trace_start"() <{level = 10 : i32, message = "sik,kc->sic"}> : () -> ()
    %cst_13 = arith.constant dense<0.000000e+00> : vector<8x128x128xf32>
    %20 = tpu.matmul %19, %0, %cst_13 {dimension_numbers = #tpu.dot_dimension_numbers<[2], [0], [0, 1], [1], [0, 0, 0, 1, 1, 1], [], []>} : vector<8x128x3xf32>, vector<3x128xf32>, vector<8x128x128xf32> -> vector<8x128x128xf32>
    "tpu.trace_stop"() : () -> ()
    %cst_14 = arith.constant dense<0xFF800000> : vector<8x128xf32>
    %21 = vector.multi_reduction <maximumf>, %20, %cst_14 [1] : vector<8x128x128xf32> to vector<8x128xf32>
    %22 = arith.maximumf %15, %21 : vector<8x128xf32>
    %c3_i32 = arith.constant 3 : i32
    %c128_i32_15 = arith.constant 128 : i32
    %23 = arith.muli %c3_i32, %c128_i32_15 : i32
    %24 = tpu.assume_multiple %23, 128 : i32
    %c0_16 = arith.constant 0 : index
    %25 = arith.index_cast %24 : i32 to index
    %c0_17 = arith.constant 0 : index
    %26 = vector.load %arg3[%c0_16, %25, %c0_17] : memref<8x1024x3xf32, #tpu.memory_space<vmem>>, vector<8x128x3xf32>
    "tpu.trace_start"() <{level = 10 : i32, message = "sik,kc->sic"}> : () -> ()
    %cst_18 = arith.constant dense<0.000000e+00> : vector<8x128x128xf32>
    %27 = tpu.matmul %26, %0, %cst_18 {dimension_numbers = #tpu.dot_dimension_numbers<[2], [0], [0, 1], [1], [0, 0, 0, 1, 1, 1], [], []>} : vector<8x128x3xf32>, vector<3x128xf32>, vector<8x128x128xf32> -> vector<8x128x128xf32>
    "tpu.trace_stop"() : () -> ()
    %cst_19 = arith.constant dense<0xFF800000> : vector<8x128xf32>
    %28 = vector.multi_reduction <maximumf>, %27, %cst_19 [1] : vector<8x128x128xf32> to vector<8x128xf32>
    %29 = arith.maximumf %22, %28 : vector<8x128xf32>
    %c4_i32 = arith.constant 4 : i32
    %c128_i32_20 = arith.constant 128 : i32
    %30 = arith.muli %c4_i32, %c128_i32_20 : i32
    %31 = tpu.assume_multiple %30, 128 : i32
    %c0_21 = arith.constant 0 : index
    %32 = arith.index_cast %31 : i32 to index
    %c0_22 = arith.constant 0 : index
    %33 = vector.load %arg3[%c0_21, %32, %c0_22] : memref<8x1024x3xf32, #tpu.memory_space<vmem>>, vector<8x128x3xf32>
    "tpu.trace_start"() <{level = 10 : i32, message = "sik,kc->sic"}> : () -> ()
    %cst_23 = arith.constant dense<0.000000e+00> : vector<8x128x128xf32>
    %34 = tpu.matmul %33, %0, %cst_23 {dimension_numbers = #tpu.dot_dimension_numbers<[2], [0], [0, 1], [1], [0, 0, 0, 1, 1, 1], [], []>} : vector<8x128x3xf32>, vector<3x128xf32>, vector<8x128x128xf32> -> vector<8x128x128xf32>
    "tpu.trace_stop"() : () -> ()
    %cst_24 = arith.constant dense<0xFF800000> : vector<8x128xf32>
    %35 = vector.multi_reduction <maximumf>, %34, %cst_24 [1] : vector<8x128x128xf32> to vector<8x128xf32>
    %36 = arith.maximumf %29, %35 : vector<8x128xf32>
    %c5_i32 = arith.constant 5 : i32
    %c128_i32_25 = arith.constant 128 : i32
    %37 = arith.muli %c5_i32, %c128_i32_25 : i32
    %38 = tpu.assume_multiple %37, 128 : i32
    %c0_26 = arith.constant 0 : index
    %39 = arith.index_cast %38 : i32 to index
    %c0_27 = arith.constant 0 : index
    %40 = vector.load %arg3[%c0_26, %39, %c0_27] : memref<8x1024x3xf32, #tpu.memory_space<vmem>>, vector<8x128x3xf32>
    "tpu.trace_start"() <{level = 10 : i32, message = "sik,kc->sic"}> : () -> ()
    %cst_28 = arith.constant dense<0.000000e+00> : vector<8x128x128xf32>
    %41 = tpu.matmul %40, %0, %cst_28 {dimension_numbers = #tpu.dot_dimension_numbers<[2], [0], [0, 1], [1], [0, 0, 0, 1, 1, 1], [], []>} : vector<8x128x3xf32>, vector<3x128xf32>, vector<8x128x128xf32> -> vector<8x128x128xf32>
    "tpu.trace_stop"() : () -> ()
    %cst_29 = arith.constant dense<0xFF800000> : vector<8x128xf32>
    %42 = vector.multi_reduction <maximumf>, %41, %cst_29 [1] : vector<8x128x128xf32> to vector<8x128xf32>
    %43 = arith.maximumf %36, %42 : vector<8x128xf32>
    %c6_i32 = arith.constant 6 : i32
    %c128_i32_30 = arith.constant 128 : i32
    %44 = arith.muli %c6_i32, %c128_i32_30 : i32
    %45 = tpu.assume_multiple %44, 128 : i32
    %c0_31 = arith.constant 0 : index
    %46 = arith.index_cast %45 : i32 to index
    %c0_32 = arith.constant 0 : index
    %47 = vector.load %arg3[%c0_31, %46, %c0_32] : memref<8x1024x3xf32, #tpu.memory_space<vmem>>, vector<8x128x3xf32>
    "tpu.trace_start"() <{level = 10 : i32, message = "sik,kc->sic"}> : () -> ()
    %cst_33 = arith.constant dense<0.000000e+00> : vector<8x128x128xf32>
    %48 = tpu.matmul %47, %0, %cst_33 {dimension_numbers = #tpu.dot_dimension_numbers<[2], [0], [0, 1], [1], [0, 0, 0, 1, 1, 1], [], []>} : vector<8x128x3xf32>, vector<3x128xf32>, vector<8x128x128xf32> -> vector<8x128x128xf32>
    "tpu.trace_stop"() : () -> ()
    %cst_34 = arith.constant dense<0xFF800000> : vector<8x128xf32>
    %49 = vector.multi_reduction <maximumf>, %48, %cst_34 [1] : vector<8x128x128xf32> to vector<8x128xf32>
    %50 = arith.maximumf %43, %49 : vector<8x128xf32>
    %c7_i32 = arith.constant 7 : i32
    %c128_i32_35 = arith.constant 128 : i32
    %51 = arith.muli %c7_i32, %c128_i32_35 : i32
    %52 = tpu.assume_multiple %51, 128 : i32
    %c0_36 = arith.constant 0 : index
    %53 = arith.index_cast %52 : i32 to index
    %c0_37 = arith.constant 0 : index
    %54 = vector.load %arg3[%c0_36, %53, %c0_37] : memref<8x1024x3xf32, #tpu.memory_space<vmem>>, vector<8x128x3xf32>
    "tpu.trace_start"() <{level = 10 : i32, message = "sik,kc->sic"}> : () -> ()
    %cst_38 = arith.constant dense<0.000000e+00> : vector<8x128x128xf32>
    %55 = tpu.matmul %54, %0, %cst_38 {dimension_numbers = #tpu.dot_dimension_numbers<[2], [0], [0, 1], [1], [0, 0, 0, 1, 1, 1], [], []>} : vector<8x128x3xf32>, vector<3x128xf32>, vector<8x128x128xf32> -> vector<8x128x128xf32>
    "tpu.trace_stop"() : () -> ()
    %cst_39 = arith.constant dense<0xFF800000> : vector<8x128xf32>
    %56 = vector.multi_reduction <maximumf>, %55, %cst_39 [1] : vector<8x128x128xf32> to vector<8x128xf32>
    %57 = arith.maximumf %50, %56 : vector<8x128xf32>
    %c8_i32 = arith.constant 8 : i32
    %c0_40 = arith.constant 0 : index
    %c0_41 = arith.constant 0 : index
    %58 = vector.load %arg2[%c0_40, %c0_41] : memref<1x128xf32, #tpu.memory_space<vmem>>, vector<1x128xf32>
    %59 = vector.broadcast %58 : vector<1x128xf32> to vector<8x128xf32>
    %60 = arith.addf %57, %59 : vector<8x128xf32>
    %cst_42 = arith.constant 0.000000e+00 : f32
    %61 = vector.broadcast %cst_42 : f32 to vector<8x128xf32>
    %62 = arith.maximumf %60, %61 : vector<8x128xf32>
    %63 = tpu.iota {dimensions = array<i32: 1>} : vector<8x128xi32>
    %c40_i32 = arith.constant 40 : i32
    %64 = vector.broadcast %c40_i32 : i32 to vector<8x128xi32>
    %65 = arith.cmpi slt, %63, %64 : vector<8x128xi32>
    %cst_43 = arith.constant 0xFF800000 : f32
    %66 = vector.broadcast %cst_43 : f32 to vector<8x128xf32>
    %67 = arith.select %65, %62, %66 : vector<8x128xi1>, vector<8x128xf32>
    %cst_44 = arith.constant dense<0xFF800000> : vector<8xf32>
    %68 = vector.multi_reduction <maximumf>, %67, %cst_44 [1] : vector<8x128xf32> to vector<8xf32>
    %69 = vector.shape_cast %68 : vector<8xf32> to vector<8x1xf32>
    %70 = vector.broadcast %69 : vector<8x1xf32> to vector<8x128xf32>
    %71 = arith.subf %62, %70 : vector<8x128xf32>
    %72 = math.exp %71 : vector<8x128xf32>
    %cst_45 = arith.constant 0.000000e+00 : f32
    %73 = vector.broadcast %cst_45 : f32 to vector<8x128xf32>
    %74 = arith.select %65, %72, %73 : vector<8x128xi1>, vector<8x128xf32>
    %cst_46 = arith.constant dense<0.000000e+00> : vector<8xf32>
    %75 = vector.multi_reduction <add>, %74, %cst_46 [1] : vector<8x128xf32> to vector<8xf32>
    %76 = vector.shape_cast %75 : vector<8xf32> to vector<8x1xf32>
    %77 = math.log %76 : vector<8x1xf32>
    %78 = arith.addf %77, %69 : vector<8x1xf32>
    %79 = vector.broadcast %78 : vector<8x1xf32> to vector<8x128xf32>
    %80 = arith.subf %62, %79 : vector<8x128xf32>
    %cst_47 = arith.constant 0.000000e+00 : f32
    %81 = vector.broadcast %cst_47 : f32 to vector<8x128xf32>
    %82 = arith.select %65, %80, %81 : vector<8x128xi1>, vector<8x128xf32>
    %c0_48 = arith.constant 0 : index
    %c0_49 = arith.constant 0 : index
    %83 = vector.load %arg4[%c0_48, %c0_49] : memref<8x128xf32, #tpu.memory_space<vmem>>, vector<8x128xf32>
    tpu.vector_store %arg4[%c0_48, %c0_49], %82 {strides = array<i32>} : memref<8x128xf32, #tpu.memory_space<vmem>>, vector<8x128xf32>,
    return
  }
  func.func @transform_0(%arg0: i32) -> (i32, i32) {
    %c0_i32 = arith.constant 0 : i32
    %c0_i32_0 = arith.constant 0 : i32
    %c0_i32_1 = arith.constant 0 : i32
    return %c0_i32, %c0_i32_0 : i32, i32
  }
  func.func @transform_1(%arg0: i32) -> (i32, i32) {
    %c0_i32 = arith.constant 0 : i32
    %c0_i32_0 = arith.constant 0 : i32
    %c0_i32_1 = arith.constant 0 : i32
    return %c0_i32, %c0_i32_0 : i32, i32
  }
  func.func @transform_2(%arg0: i32) -> (i32, i32, i32) {
    %c0_i32 = arith.constant 0 : i32
    %c0_i32_0 = arith.constant 0 : i32
    %c0_i32_1 = arith.constant 0 : i32
    return %arg0, %c0_i32, %c0_i32_0 : i32, i32, i32
  }
  func.func @transform_3(%arg0: i32) -> (i32, i32) {
    %c0_i32 = arith.constant 0 : i32
    %c0_i32_0 = arith.constant 0 : i32
    return %arg0, %c0_i32 : i32, i32
  }
}

</mosaic_0001>

<bundles_post_ra>
// kernel: tpu_custom_call.1
= control target key start
LH: loop header
LB: loop body
LE: loop exit
PB: predicated region body
PF: predicated region fallthrough
CT: control target
= control target key end

     0   :  { %vm529_vm0 = vcmask 1042432   ;;  %vm144_vm1 = vcmask 23552   ;;  %s20410_s0 = inlined_call_operand.vmem [shape: f32[3,128], index: 0, kind: input, shape index: {}]   ;;  %s20411_s1 = inlined_call_operand.vmem [shape: f32[1,128], index: 1, kind: input, shape index: {}]   ;;  %s20412_s2 = inlined_call_operand.vmem [shape: f32[8,1024,3], index: 2, kind: input, shape index: {}]   ;;  %s20413_s3 = inlined_call_operand.hbm [shape: f32[8,128], index: 3, kind: output, shape index: {}]  }
   0x1   :  { %v15_v0 = vld [vmem:[%s20410_s0] sm:$0x7]  ;;  %v17_v3 = vld [vmem:[%s20412_s2 + $0x8] sm:$0xff]  ;;  %v18_v5 = vld [vmem:[%s20412_s2 + $0x10] sm:$0xff] }
   0x2   :  { %v16_v1 = vld [vmem:[%s20412_s2] sm:$0xff]  ;;  %14316 = vmatprep.subr.msk.mxu0 %vm529_vm0, %v15_v0  ;;  %14510 = vmatprep.subr.msk.mxu1 %vm529_vm0, %v15_v0  ;;  %v11485_v4 = vld [vmem:[%s20412_s2 + $0x88] sm:$0xff]  ;;  %v11486_v6 = vld [vmem:[%s20412_s2 + $0x90] sm:$0xff] }
   0x3   :  { %v11484_v2 = vld [vmem:[%s20412_s2 + $0x80] sm:$0xff]  ;;  %14317 = vmatpush3.msk.msra.mxu0 %vm529_vm0, %v15_v0  ;;  %14318 = vmatprep.mubr.msk.f32.mxu0 %vm144_vm1, %v16_v1  ;;  %v19_v7 = vld [vmem:[%s20412_s2 + $0x18] sm:$0xff]  ;;  %v21_v11 = vld [vmem:[%s20412_s2 + $0x28] sm:$0xff] }
   0x4   :  { %14511 = vmatpush3.msk.msra.mxu1 %vm529_vm0, %v15_v0  ;;  %14512 = vmatprep.mubr.msk.f32.mxu1 %vm144_vm1, %v11484_v2  ;;  %v11487_v8 = vld [vmem:[%s20412_s2 + $0x98] sm:$0xff]  ;;  %v20_v9 = vld [vmem:[%s20412_s2 + $0x20] sm:$0xff]  ;;  %v11489_v12 = vld [vmem:[%s20412_s2 + $0xa8] sm:$0xff] }
   0x5   :  { %14319 = vmatmul.mubr.msk.f32.vlgmr.msra.gmra.mrb[0].mxu0 %vm144_vm1, %v17_v3  ;;  %14513 = vmatmul.mubr.msk.f32.vlgmr.msra.gmra.mrb[0].mxu1 %vm144_vm1, %v11485_v4  ;;  %v11488_v10 = vld [vmem:[%s20412_s2 + $0xa0] sm:$0xff]  ;;  %v22_v13 = vld [vmem:[%s20412_s2 + $0x30] sm:$0xff]  ;;  %v23_v15 = vld [vmem:[%s20412_s2 + $0x38] sm:$0xff] }
   0x6   :  { %14704 = vmatprep.subr.msk.mxu0 %vm529_vm0, %v15_v0  ;;  %14898 = vmatprep.subr.msk.mxu1 %vm529_vm0, %v15_v0  ;;  %v11490_v14 = vld [vmem:[%s20412_s2 + $0xb0] sm:$0xff]  ;;  %v11491_v16 = vld [vmem:[%s20412_s2 + $0xb8] sm:$0xff]  ;;  %v24_v17 = vld [vmem:[%s20412_s2 + $0x40] sm:$0xff] }
   0x7   :  { %14705 = vmatpush3.msk.msra.mxu0 %vm529_vm0, %v15_v0  ;;  %14321 = vmatprep.mubr.msk.f32.mxu0 %vm144_vm1, %v18_v5  ;;  %v11492_v18 = vld [vmem:[%s20412_s2 + $0xc0] sm:$0xff]  ;;  %v25_v19 = vld [vmem:[%s20412_s2 + $0x48] sm:$0xff]  ;;  %v26_v21 = vld [vmem:[%s20412_s2 + $0x50] sm:$0xff] }
   0x8   :  { %14515 = vmatprep.mubr.msk.f32.mxu1 %vm144_vm1, %v11486_v6  ;;  %14899 = vmatpush3.msk.msra.mxu1 %vm529_vm0, %v15_v0  ;;  %v11493_v20 = vld [vmem:[%s20412_s2 + $0xc8] sm:$0xff]  ;;  %v11494_v22 = vld [vmem:[%s20412_s2 + $0xd0] sm:$0xff]  ;;  %v27_v23 = vld [vmem:[%s20412_s2 + $0x58] sm:$0xff] }
   0x9   :  { %14322 = vmatmul.mubr.msk.f32.gmra.mrb[2].mxu0 %vm144_vm1, %v19_v7  ;;  %14516 = vmatmul.mubr.msk.f32.gmra.mrb[2].mxu1 %vm144_vm1, %v11487_v8  ;;  %v11495_v24 = vld [vmem:[%s20412_s2 + $0xd8] sm:$0xff]  ;;  %v28_v25 = vld [vmem:[%s20412_s2 + $0x60] sm:$0xff]  ;;  %v29_v27 = vld [vmem:[%s20412_s2 + $0x68] sm:$0xff] }
   0xa   :  { %14324 = vmatprep.mubr.msk.f32.mxu0 %vm144_vm1, %v20_v9  ;;  %14518 = vmatprep.mubr.msk.f32.mxu1 %vm144_vm1, %v11488_v10  ;;  %v11496_v26 = vld [vmem:[%s20412_s2 + $0xe0] sm:$0xff]  ;;  %v11497_v28 = vld [vmem:[%s20412_s2 + $0xe8] sm:$0xff]  ;;  %v30_v29 = vld [vmem:[%s20412_s2 + $0x70] sm:$0xff] }
   0xb   :  { %15092 = vmatprep.subr.msk.mxu0 %vm529_vm0, %v15_v0  ;;  %15286 = vmatprep.subr.msk.mxu1 %vm529_vm0, %v15_v0  ;;  %v11498_v30 = vld [vmem:[%s20412_s2 + $0xf0] sm:$0xff]  ;;  %v31_v31 = vld [vmem:[%s20412_s2 + $0x78] sm:$0xff]  ;;  %v32_v33 = vld [vmem:[%s20412_s2 + $0x400] sm:$0xff] }
   0xc   :  { %v11499_v32 = vld [vmem:[%s20412_s2 + $0xf8] sm:$0xff]  ;;  %v11500_v34 = vld [vmem:[%s20412_s2 + $0x480] sm:$0xff]  ;;  %v33_v35 = vld [vmem:[%s20412_s2 + $0x408] sm:$0xff] }
   0xd   :  { %14325 = vmatmul.mubr.msk.f32.gmra.mrb[4].mxu0 %vm144_vm1, %v21_v11  ;;  %14519 = vmatmul.mubr.msk.f32.gmra.mrb[4].mxu1 %vm144_vm1, %v11489_v12  ;;  %v11501_v36 = vld [vmem:[%s20412_s2 + $0x488] sm:$0xff]  ;;  %v34_v37 = vld [vmem:[%s20412_s2 + $0x410] sm:$0xff]  ;;  %v35_v39 = vld [vmem:[%s20412_s2 + $0x418] sm:$0xff] }
   0xe   :  { %14327 = vmatprep.mubr.msk.f32.mxu0 %vm144_vm1, %v22_v13  ;;  %14521 = vmatprep.mubr.msk.f32.mxu1 %vm144_vm1, %v11490_v14  ;;  %v11502_v38 = vld [vmem:[%s20412_s2 + $0x490] sm:$0xff]  ;;  %v11503_v40 = vld [vmem:[%s20412_s2 + $0x498] sm:$0xff]  ;;  %v36_v41 = vld [vmem:[%s20412_s2 + $0x420] sm:$0xff] }
   0xf   :  { %v11504_v42 = vld [vmem:[%s20412_s2 + $0x4a0] sm:$0xff]  ;;  %v37_v43 = vld [vmem:[%s20412_s2 + $0x428] sm:$0xff]  ;;  %v38_v45 = vld [vmem:[%s20412_s2 + $0x430] sm:$0xff] }
  0x10   :  { %v11505_v44 = vld [vmem:[%s20412_s2 + $0x4a8] sm:$0xff]  ;;  %v11506_v46 = vld [vmem:[%s20412_s2 + $0x4b0] sm:$0xff]  ;;  %v39_v47 = vld [vmem:[%s20412_s2 + $0x438] sm:$0xff] }
  0x11   :  { %14328 = vmatmul.mubr.msk.f32.gmra.mrb[6].mxu0 %vm144_vm1, %v23_v15  ;;  %14522 = vmatmul.mubr.msk.f32.gmra.mrb[6].mxu1 %vm144_vm1, %v11491_v16  ;;  %v11507_v48 = vld [vmem:[%s20412_s2 + $0x4b8] sm:$0xff]  ;;  %v40_v49 = vld [vmem:[%s20412_s2 + $0x440] sm:$0xff]  ;;  %v41_v51 = vld [vmem:[%s20412_s2 + $0x448] sm:$0xff] }
  0x12   :  { %14330 = vmatprep.mubr.msk.f32.mxu0 %vm144_vm1, %v24_v17  ;;  %14524 = vmatprep.mubr.msk.f32.mxu1 %vm144_vm1, %v11492_v18  ;;  %v11508_v50 = vld [vmem:[%s20412_s2 + $0x4c0] sm:$0xff]  ;;  %v11509_v52 = vld [vmem:[%s20412_s2 + $0x4c8] sm:$0xff]  ;;  %v42_v53 = vld [vmem:[%s20412_s2 + $0x450] sm:$0xff] }
  0x13   :  { %v11510_v54 = vld [vmem:[%s20412_s2 + $0x4d0] sm:$0xff]  ;;  %v43_v55 = vld [vmem:[%s20412_s2 + $0x458] sm:$0xff]  ;;  %v44_v57 = vld [vmem:[%s20412_s2 + $0x460] sm:$0xff] }
  0x14   :  { %v11511_v56 = vld [vmem:[%s20412_s2 + $0x4d8] sm:$0xff]  ;;  %v11512_v58 = vld [vmem:[%s20412_s2 + $0x4e0] sm:$0xff]  ;;  %v45_v59 = vld [vmem:[%s20412_s2 + $0x468] sm:$0xff] }
  0x15   :  { %14331 = vmatmul.mubr.msk.f32.gmra.mrb[8].mxu0 %vm144_vm1, %v25_v19  ;;  %14525 = vmatmul.mubr.msk.f32.gmra.mrb[8].mxu1 %vm144_vm1, %v11493_v20  ;;  %v11513_v60 = vld [vmem:[%s20412_s2 + $0x4e8] sm:$0xff]  ;;  %v46_v61 = vld [vmem:[%s20412_s2 + $0x470] sm:$0xff]  ;;  %v47_v63 = vld [vmem:[%s20412_s2 + $0x478] sm:$0xff] }
  0x16   :  { %14333 = vmatprep.mubr.msk.f32.mxu0 %vm144_vm1, %v26_v21  ;;  %14527 = vmatprep.mubr.msk.f32.mxu1 %vm144_vm1, %v11494_v22  ;;  %v11514_v62 = vld [vmem:[%s20412_s2 + $0x4f0] sm:$0xff]  ;;  %v11515_v0 = vld [vmem:[%s20412_s2 + $0x4f8] sm:$0xff]  ;;  %v48_v1 = vld [vmem:[%s20412_s2 + $0x800] sm:$0xff] }
  0x17   :  { %v11516_v2 = vld [vmem:[%s20412_s2 + $0x880] sm:$0xff] }
  0x19   :  { %14334 = vmatmul.mubr.msk.f32.gmra.mrb[10].mxu0 %vm144_vm1, %v27_v23  ;;  %14528 = vmatmul.mubr.msk.f32.gmra.mrb[10].mxu1 %vm144_vm1, %v11495_v24 }
  0x1a   :  { %14336 = vmatprep.mubr.msk.f32.mxu0 %vm144_vm1, %v28_v25  ;;  %14530 = vmatprep.mubr.msk.f32.mxu1 %vm144_vm1, %v11496_v26 }
  0x1d   :  { %14337 = vmatmul.mubr.msk.f32.gmra.mrb[12].mxu0 %vm144_vm1, %v29_v27  ;;  %14531 = vmatmul.mubr.msk.f32.gmra.mrb[12].mxu1 %vm144_vm1, %v11497_v28 }
  0x1e   :  { %14339 = vmatprep.mubr.msk.f32.mxu0 %vm144_vm1, %v30_v29  ;;  %14533 = vmatprep.mubr.msk.f32.mxu1 %vm144_vm1, %v11498_v30 }
  0x21   :  { %14340 = vmatmul.mubr.msk.f32.gmra.mrb[14].mxu0 %vm144_vm1, %v31_v31  ;;  %14534 = vmatmul.mubr.msk.f32.gmra.mrb[14].mxu1 %vm144_vm1, %v11499_v32 }
  0x22   :  { %14342 = vmatprep.mubr.msk.f32.mxu0 %vm144_vm1, %v32_v33  ;;  %14536 = vmatprep.mubr.msk.f32.mxu1 %vm144_vm1, %v11500_v34 }
  0x25   :  { %14343 = vmatmul.mubr.msk.f32.gmra.mrb[16].mxu0 %vm144_vm1, %v33_v35  ;;  %14537 = vmatmul.mubr.msk.f32.gmra.mrb[16].mxu1 %vm144_vm1, %v11501_v36 }
  0x26   :  { %14345 = vmatprep.mubr.msk.f32.mxu0 %vm144_vm1, %v34_v37  ;;  %14539 = vmatprep.mubr.msk.f32.mxu1 %vm144_vm1, %v11502_v38 }
  0x29   :  { %14346 = vmatmul.mubr.msk.f32.gmra.mrb[18].mxu0 %vm144_vm1, %v35_v39  ;;  %14540 = vmatmul.mubr.msk.f32.gmra.mrb[18].mxu1 %vm144_vm1, %v11503_v40 }
  0x2a   :  { %14348 = vmatprep.mubr.msk.f32.mxu0 %vm144_vm1, %v36_v41  ;;  %14542 = vmatprep.mubr.msk.f32.mxu1 %vm144_vm1, %v11504_v42 }
  0x2d   :  { %14349 = vmatmul.mubr.msk.f32.gmra.mrb[20].mxu0 %vm144_vm1, %v37_v43  ;;  %14543 = vmatmul.mubr.msk.f32.gmra.mrb[20].mxu1 %vm144_vm1, %v11505_v44 }
  0x2e   :  { %14351 = vmatprep.mubr.msk.f32.mxu0 %vm144_vm1, %v38_v45  ;;  %14545 = vmatprep.mubr.msk.f32.mxu1 %vm144_vm1, %v11506_v46 }
  0x31   :  { %14352 = vmatmul.mubr.msk.f32.gmra.mrb[22].mxu0 %vm144_vm1, %v39_v47  ;;  %14546 = vmatmul.mubr.msk.f32.gmra.mrb[22].mxu1 %vm144_vm1, %v11507_v48 }
  0x32   :  { %14354 = vmatprep.mubr.msk.f32.mxu0 %vm144_vm1, %v40_v49  ;;  %14548 = vmatprep.mubr.msk.f32.mxu1 %vm144_vm1, %v11508_v50 }
  0x35   :  { %14355 = vmatmul.mubr.msk.f32.gmra.mrb[24].mxu0 %vm144_vm1, %v41_v51  ;;  %14549 = vmatmul.mubr.msk.f32.gmra.mrb[24].mxu1 %vm144_vm1, %v11509_v52 }
  0x36   :  { %14357 = vmatprep.mubr.msk.f32.mxu0 %vm144_vm1, %v42_v53  ;;  %14551 = vmatprep.mubr.msk.f32.mxu1 %vm144_vm1, %v11510_v54 }
  0x39   :  { %14358 = vmatmul.mubr.msk.f32.gmra.mrb[26].mxu0 %vm144_vm1, %v43_v55  ;;  %14552 = vmatmul.mubr.msk.f32.gmra.mrb[26].mxu1 %vm144_vm1, %v11511_v56 }
  0x3a   :  { %14360 = vmatprep.mubr.msk.f32.mxu0 %vm144_vm1, %v44_v57  ;;  %14554 = vmatprep.mubr.msk.f32.mxu1 %vm144_vm1, %v11512_v58 }
  0x3d   :  { %14361 = vmatmul.mubr.msk.f32.gmra.mrb[28].mxu0 %vm144_vm1, %v45_v59  ;;  %14555 = vmatmul.mubr.msk.f32.gmra.mrb[28].mxu1 %vm144_vm1, %v11513_v60 }
  0x3e   :  { %14363 = vmatprep.mubr.msk.f32.mxu0 %vm144_vm1, %v46_v61  ;;  %14557 = vmatprep.mubr.msk.f32.mxu1 %vm144_vm1, %v11514_v62 }
  0x41   :  { %14364 = vmatmul.mubr.msk.f32.gmra.mrb[30].mxu0 %vm144_vm1, %v47_v63  ;;  %14558 = vmatmul.mubr.msk.f32.gmra.mrb[30].mxu1 %vm144_vm1, %v11515_v0 }
  0x42   :  { %8 = vsyncpa [#allocation3], 0  ;;  %14366 = vmatprep.mubr.msk.f32.mxu0 %vm144_vm1, %v48_v1  ;;  %14560 = vmatprep.mubr.msk.f32.mxu1 %vm144_vm1, %v11516_v2  ;;  %v49_v3 = vld [vmem:[%s20412_s2 + $0x808] sm:$0xff]  ;;  %v50_v5 = vld [vmem:[%s20412_s2 + $0x810] sm:$0xff]  ;;  %vm11199_vm2 = vcmask 1041409   ;;  %vm11202_vm3 = vcmask 1042434  }
  0x43   :  { %v11517_v4 = vld [vmem:[%s20412_s2 + $0x888] sm:$0xff]  ;;  %v11518_v6 = vld [vmem:[%s20412_s2 + $0x890] sm:$0xff]  ;;  %v51_v7 = vld [vmem:[%s20412_s2 + $0x818] sm:$0xff]  ;;  %vm11205_vm4 = vcmask 1043459   ;;  %vm11208_vm5 = vcmask 1044484   ;;  %vm11211_vm6 = vcmask 1045509  }
  0x44   :  { %v11519_v8 = vld [vmem:[%s20412_s2 + $0x898] sm:$0xff]  ;;  %v52_v9 = vld [vmem:[%s20412_s2 + $0x820] sm:$0xff]  ;;  %v53_v11 = vld [vmem:[%s20412_s2 + $0x828] sm:$0xff]  ;;  %vm11214_vm7 = vcmask 1046534   ;;  %vm11217_vm8 = vcmask 1047559  }
  0x45   :  { %14367 = vmatmul.mubr.msk.f32.gmra.mrb[32].mxu0 %vm144_vm1, %v49_v3  ;;  %14561 = vmatmul.mubr.msk.f32.gmra.mrb[32].mxu1 %vm144_vm1, %v11517_v4  ;;  %v11520_v10 = vld [vmem:[%s20412_s2 + $0x8a0] sm:$0xff]  ;;  %v11521_v12 = vld [vmem:[%s20412_s2 + $0x8a8] sm:$0xff]  ;;  %v54_v13 = vld [vmem:[%s20412_s2 + $0x830] sm:$0xff] }
  0x46   :  { %14369 = vmatprep.mubr.msk.f32.mxu0 %vm144_vm1, %v50_v5  ;;  %14563 = vmatprep.mubr.msk.f32.mxu1 %vm144_vm1, %v11518_v6  ;;  %v11522_v14 = vld [vmem:[%s20412_s2 + $0x8b0] sm:$0xff]  ;;  %v55_v15 = vld [vmem:[%s20412_s2 + $0x838] sm:$0xff]  ;;  %v56_v17 = vld [vmem:[%s20412_s2 + $0x840] sm:$0xff] }
  0x47   :  { %v11523_v16 = vld [vmem:[%s20412_s2 + $0x8b8] sm:$0xff]  ;;  %v11524_v18 = vld [vmem:[%s20412_s2 + $0x8c0] sm:$0xff]  ;;  %v57_v19 = vld [vmem:[%s20412_s2 + $0x848] sm:$0xff] }
  0x48   :  { %v11525_v20 = vld [vmem:[%s20412_s2 + $0x8c8] sm:$0xff]  ;;  %v58_v21 = vld [vmem:[%s20412_s2 + $0x850] sm:$0xff]  ;;  %v59_v23 = vld [vmem:[%s20412_s2 + $0x858] sm:$0xff] }
  0x49   :  { %14370 = vmatmul.mubr.msk.f32.gmra.mrb[34].mxu0 %vm144_vm1, %v51_v7  ;;  %14564 = vmatmul.mubr.msk.f32.gmra.mrb[34].mxu1 %vm144_vm1, %v11519_v8  ;;  %v11526_v22 = vld [vmem:[%s20412_s2 + $0x8d0] sm:$0xff]  ;;  %v11527_v24 = vld [vmem:[%s20412_s2 + $0x8d8] sm:$0xff]  ;;  %v60_v25 = vld [vmem:[%s20412_s2 + $0x860] sm:$0xff] }
  0x4a   :  { %14372 = vmatprep.mubr.msk.f32.mxu0 %vm144_vm1, %v52_v9  ;;  %14566 = vmatprep.mubr.msk.f32.mxu1 %vm144_vm1, %v11520_v10  ;;  %v11528_v26 = vld [vmem:[%s20412_s2 + $0x8e0] sm:$0xff]  ;;  %v61_v27 = vld [vmem:[%s20412_s2 + $0x868] sm:$0xff]  ;;  %v62_v29 = vld [vmem:[%s20412_s2 + $0x870] sm:$0xff] }
  0x4b   :  { %v11529_v28 = vld [vmem:[%s20412_s2 + $0x8e8] sm:$0xff]  ;;  %v11530_v30 = vld [vmem:[%s20412_s2 + $0x8f0] sm:$0xff]  ;;  %v63_v31 = vld [vmem:[%s20412_s2 + $0x878] sm:$0xff] }
  0x4c   :  { %v11531_v32 = vld [vmem:[%s20412_s2 + $0x8f8] sm:$0xff]  ;;  %v64_v33 = vld [vmem:[%s20412_s2 + $0xc00] sm:$0xff]  ;;  %v65_v35 = vld [vmem:[%s20412_s2 + $0xc08] sm:$0xff] }
  0x4d   :  { %14373 = vmatmul.mubr.msk.f32.gmra.mrb[36].mxu0 %vm144_vm1, %v53_v11  ;;  %14567 = vmatmul.mubr.msk.f32.gmra.mrb[36].mxu1 %vm144_vm1, %v11521_v12  ;;  %v11532_v34 = vld [vmem:[%s20412_s2 + $0xc80] sm:$0xff]  ;;  %v11533_v36 = vld [vmem:[%s20412_s2 + $0xc88] sm:$0xff]  ;;  %v66_v37 = vld [vmem:[%s20412_s2 + $0xc10] sm:$0xff] }
  0x4e   :  { %14375 = vmatprep.mubr.msk.f32.mxu0 %vm144_vm1, %v54_v13  ;;  %14569 = vmatprep.mubr.msk.f32.mxu1 %vm144_vm1, %v11522_v14  ;;  %v11534_v38 = vld [vmem:[%s20412_s2 + $0xc90] sm:$0xff]  ;;  %v67_v39 = vld [vmem:[%s20412_s2 + $0xc18] sm:$0xff]  ;;  %v68_v41 = vld [vmem:[%s20412_s2 + $0xc20] sm:$0xff] }
  0x4f   :  { %v11535_v40 = vld [vmem:[%s20412_s2 + $0xc98] sm:$0xff]  ;;  %v11536_v42 = vld [vmem:[%s20412_s2 + $0xca0] sm:$0xff]  ;;  %v69_v43 = vld [vmem:[%s20412_s2 + $0xc28] sm:$0xff] }
  0x50   :  { %v11537_v44 = vld [vmem:[%s20412_s2 + $0xca8] sm:$0xff]  ;;  %v70_v45 = vld [vmem:[%s20412_s2 + $0xc30] sm:$0xff]  ;;  %v71_v47 = vld [vmem:[%s20412_s2 + $0xc38] sm:$0xff] }
  0x51   :  { %14376 = vmatmul.mubr.msk.f32.gmra.mrb[38].mxu0 %vm144_vm1, %v55_v15  ;;  %14570 = vmatmul.mubr.msk.f32.gmra.mrb[38].mxu1 %vm144_vm1, %v11523_v16  ;;  %v11538_v46 = vld [vmem:[%s20412_s2 + $0xcb0] sm:$0xff]  ;;  %v11539_v48 = vld [vmem:[%s20412_s2 + $0xcb8] sm:$0xff]  ;;  %v72_v49 = vld [vmem:[%s20412_s2 + $0xc40] sm:$0xff] }
  0x52   :  { %14378 = vmatprep.mubr.msk.f32.mxu0 %vm144_vm1, %v56_v17  ;;  %14572 = vmatprep.mubr.msk.f32.mxu1 %vm144_vm1, %v11524_v18  ;;  %v11540_v50 = vld [vmem:[%s20412_s2 + $0xcc0] sm:$0xff]  ;;  %v73_v51 = vld [vmem:[%s20412_s2 + $0xc48] sm:$0xff]  ;;  %v74_v53 = vld [vmem:[%s20412_s2 + $0xc50] sm:$0xff] }
  0x53   :  { %v11541_v52 = vld [vmem:[%s20412_s2 + $0xcc8] sm:$0xff]  ;;  %v11542_v54 = vld [vmem:[%s20412_s2 + $0xcd0] sm:$0xff]  ;;  %v75_v55 = vld [vmem:[%s20412_s2 + $0xc58] sm:$0xff] }
  0x54   :  { %v11543_v56 = vld [vmem:[%s20412_s2 + $0xcd8] sm:$0xff]  ;;  %v76_v57 = vld [vmem:[%s20412_s2 + $0xc60] sm:$0xff]  ;;  %v77_v59 = vld [vmem:[%s20412_s2 + $0xc68] sm:$0xff] }
  0x55   :  { %14379 = vmatmul.mubr.msk.f32.gmra.mrb[40].mxu0 %vm144_vm1, %v57_v19  ;;  %14573 = vmatmul.mubr.msk.f32.gmra.mrb[40].mxu1 %vm144_vm1, %v11525_v20  ;;  %v11544_v58 = vld [vmem:[%s20412_s2 + $0xce0] sm:$0xff]  ;;  %v11545_v60 = vld [vmem:[%s20412_s2 + $0xce8] sm:$0xff]  ;;  %v78_v61 = vld [vmem:[%s20412_s2 + $0xc70] sm:$0xff] }
  0x56   :  { %14381 = vmatprep.mubr.msk.f32.mxu0 %vm144_vm1, %v58_v21  ;;  %14575 = vmatprep.mubr.msk.f32.mxu1 %vm144_vm1, %v11526_v22  ;;  %v11546_v62 = vld [vmem:[%s20412_s2 + $0xcf0] sm:$0xff]  ;;  %v79_v63 = vld [vmem:[%s20412_s2 + $0xc78] sm:$0xff]  ;;  %v80_v1 = vld [vmem:[%s20412_s2 + $0x1000] sm:$0xff] }
  0x57   :  { %v11547_v0 = vld [vmem:[%s20412_s2 + $0xcf8] sm:$0xff]  ;;  %v11548_v2 = vld [vmem:[%s20412_s2 + $0x1080] sm:$0xff]  ;;  %v81_v3 = vld [vmem:[%s20412_s2 + $0x1008] sm:$0xff] }
  0x58   :  { %v11549_v4 = vld [vmem:[%s20412_s2 + $0x1088] sm:$0xff]  ;;  %v82_v5 = vld [vmem:[%s20412_s2 + $0x1010] sm:$0xff]  ;;  %v83_v7 = vld [vmem:[%s20412_s2 + $0x1018] sm:$0xff] }
  0x59   :  { %14382 = vmatmul.mubr.msk.f32.gmra.mrb[42].mxu0 %vm144_vm1, %v59_v23  ;;  %14576 = vmatmul.mubr.msk.f32.gmra.mrb[42].mxu1 %vm144_vm1, %v11527_v24  ;;  %v11550_v6 = vld [vmem:[%s20412_s2 + $0x1090] sm:$0xff]  ;;  %v11551_v8 = vld [vmem:[%s20412_s2 + $0x1098] sm:$0xff]  ;;  %v84_v9 = vld [vmem:[%s20412_s2 + $0x1020] sm:$0xff] }
  0x5a   :  { %14384 = vmatprep.mubr.msk.f32.mxu0 %vm144_vm1, %v60_v25  ;;  %14578 = vmatprep.mubr.msk.f32.mxu1 %vm144_vm1, %v11528_v26  ;;  %v11552_v10 = vld [vmem:[%s20412_s2 + $0x10a0] sm:$0xff]  ;;  %v85_v11 = vld [vmem:[%s20412_s2 + $0x1028] sm:$0xff]  ;;  %v86_v13 = vld [vmem:[%s20412_s2 + $0x1030] sm:$0xff] }
  0x5b   :  { %v11553_v12 = vld [vmem:[%s20412_s2 + $0x10a8] sm:$0xff]  ;;  %v11554_v14 = vld [vmem:[%s20412_s2 + $0x10b0] sm:$0xff]  ;;  %v87_v15 = vld [vmem:[%s20412_s2 + $0x1038] sm:$0xff] }
  0x5c   :  { %v11555_v16 = vld [vmem:[%s20412_s2 + $0x10b8] sm:$0xff]  ;;  %v88_v17 = vld [vmem:[%s20412_s2 + $0x1040] sm:$0xff]  ;;  %v89_v19 = vld [vmem:[%s20412_s2 + $0x1048] sm:$0xff] }
  0x5d   :  { %14385 = vmatmul.mubr.msk.f32.gmra.mrb[44].mxu0 %vm144_vm1, %v61_v27  ;;  %14579 = vmatmul.mubr.msk.f32.gmra.mrb[44].mxu1 %vm144_vm1, %v11529_v28  ;;  %v11556_v18 = vld [vmem:[%s20412_s2 + $0x10c0] sm:$0xff]  ;;  %v11557_v20 = vld [vmem:[%s20412_s2 + $0x10c8] sm:$0xff]  ;;  %v90_v21 = vld [vmem:[%s20412_s2 + $0x1050] sm:$0xff] }
  0x5e   :  { %14387 = vmatprep.mubr.msk.f32.mxu0 %vm144_vm1, %v62_v29  ;;  %14581 = vmatprep.mubr.msk.f32.mxu1 %vm144_vm1, %v11530_v30  ;;  %v11558_v22 = vld [vmem:[%s20412_s2 + $0x10d0] sm:$0xff]  ;;  %v91_v23 = vld [vmem:[%s20412_s2 + $0x1058] sm:$0xff]  ;;  %v92_v25 = vld [vmem:[%s20412_s2 + $0x1060] sm:$0xff] }
  0x5f   :  { %v11559_v24 = vld [vmem:[%s20412_s2 + $0x10d8] sm:$0xff]  ;;  %v11560_v26 = vld [vmem:[%s20412_s2 + $0x10e0] sm:$0xff]  ;;  %v93_v27 = vld [vmem:[%s20412_s2 + $0x1068] sm:$0xff] }
  0x60   :  { %v11561_v28 = vld [vmem:[%s20412_s2 + $0x10e8] sm:$0xff]  ;;  %v94_v29 = vld [vmem:[%s20412_s2 + $0x1070] sm:$0xff] }
  0x61   :  { %14388 = vmatmul.mubr.msk.f32.gmra.mrb[46].mxu0 %vm144_vm1, %v63_v31  ;;  %14582 = vmatmul.mubr.msk.f32.gmra.mrb[46].mxu1 %vm144_vm1, %v11531_v32  ;;  %v11562_v30 = vld [vmem:[%s20412_s2 + $0x10f0] sm:$0xff]  ;;  %v95_v31 = vld [vmem:[%s20412_s2 + $0x1078] sm:$0xff] }
  0x62   :  { %14390 = vmatprep.mubr.msk.f32.mxu0 %vm144_vm1, %v64_v33  ;;  %14584 = vmatprep.mubr.msk.f32.mxu1 %vm144_vm1, %v11532_v34  ;;  %v11563_v32 = vld [vmem:[%s20412_s2 + $0x10f8] sm:$0xff]  ;;  %v96_v33 = vld [vmem:[%s20412_s2 + $0x1400] sm:$0xff] }
  0x63   :  { %v11564_v34 = vld [vmem:[%s20412_s2 + $0x1480] sm:$0xff] }
  0x65   :  { %14391 = vmatmul.mubr.msk.f32.gmra.mrb[48].mxu0 %vm144_vm1, %v65_v35  ;;  %14585 = vmatmul.mubr.msk.f32.gmra.mrb[48].mxu1 %vm144_vm1, %v11533_v36  ;;  %v97_v35 = vld [vmem:[%s20412_s2 + $0x1408] sm:$0xff] }
  0x66   :  { %14393 = vmatprep.mubr.msk.f32.mxu0 %vm144_vm1, %v66_v37  ;;  %14587 = vmatprep.mubr.msk.f32.mxu1 %vm144_vm1, %v11534_v38  ;;  %v11565_v36 = vld [vmem:[%s20412_s2 + $0x1488] sm:$0xff]  ;;  %v98_v37 = vld [vmem:[%s20412_s2 + $0x1410] sm:$0xff] }
  0x67   :  { %v11566_v38 = vld [vmem:[%s20412_s2 + $0x1490] sm:$0xff] }
  0x69   :  { %14394 = vmatmul.mubr.msk.f32.gmra.mrb[50].mxu0 %vm144_vm1, %v67_v39  ;;  %14588 = vmatmul.mubr.msk.f32.gmra.mrb[50].mxu1 %vm144_vm1, %v11535_v40  ;;  %v99_v39 = vld [vmem:[%s20412_s2 + $0x1418] sm:$0xff] }
  0x6a   :  { %14396 = vmatprep.mubr.msk.f32.mxu0 %vm144_vm1, %v68_v41  ;;  %14590 = vmatprep.mubr.msk.f32.mxu1 %vm144_vm1, %v11536_v42  ;;  %v11567_v40 = vld [vmem:[%s20412_s2 + $0x1498] sm:$0xff]  ;;  %v100_v41 = vld [vmem:[%s20412_s2 + $0x1420] sm:$0xff] }
  0x6b   :  { %v11568_v42 = vld [vmem:[%s20412_s2 + $0x14a0] sm:$0xff] }
  0x6d   :  { %14397 = vmatmul.mubr.msk.f32.gmra.mrb[52].mxu0 %vm144_vm1, %v69_v43  ;;  %14591 = vmatmul.mubr.msk.f32.gmra.mrb[52].mxu1 %vm144_vm1, %v11537_v44  ;;  %v101_v43 = vld [vmem:[%s20412_s2 + $0x1428] sm:$0xff] }
  0x6e   :  { %14399 = vmatprep.mubr.msk.f32.mxu0 %vm144_vm1, %v70_v45  ;;  %14593 = vmatprep.mubr.msk.f32.mxu1 %vm144_vm1, %v11538_v46  ;;  %v11569_v44 = vld [vmem:[%s20412_s2 + $0x14a8] sm:$0xff]  ;;  %v102_v45 = vld [vmem:[%s20412_s2 + $0x1430] sm:$0xff] }
  0x6f   :  { %v11570_v46 = vld [vmem:[%s20412_s2 + $0x14b0] sm:$0xff] }
  0x71   :  { %14400 = vmatmul.mubr.msk.f32.gmra.mrb[54].mxu0 %vm144_vm1, %v71_v47  ;;  %14594 = vmatmul.mubr.msk.f32.gmra.mrb[54].mxu1 %vm144_vm1, %v11539_v48  ;;  %v103_v47 = vld [vmem:[%s20412_s2 + $0x1438] sm:$0xff] }
  0x72   :  { %14402 = vmatprep.mubr.msk.f32.mxu0 %vm144_vm1, %v72_v49  ;;  %14596 = vmatprep.mubr.msk.f32.mxu1 %vm144_vm1, %v11540_v50  ;;  %v11571_v48 = vld [vmem:[%s20412_s2 + $0x14b8] sm:$0xff]  ;;  %v104_v49 = vld [vmem:[%s20412_s2 + $0x1440] sm:$0xff] }
  0x73   :  { %v11572_v50 = vld [vmem:[%s20412_s2 + $0x14c0] sm:$0xff] }
  0x75   :  { %14403 = vmatmul.mubr.msk.f32.gmra.mrb[56].mxu0 %vm144_vm1, %v73_v51  ;;  %14597 = vmatmul.mubr.msk.f32.gmra.mrb[56].mxu1 %vm144_vm1, %v11541_v52  ;;  %v105_v51 = vld [vmem:[%s20412_s2 + $0x1448] sm:$0xff] }
  0x76   :  { %14405 = vmatprep.mubr.msk.f32.mxu0 %vm144_vm1, %v74_v53  ;;  %14599 = vmatprep.mubr.msk.f32.mxu1 %vm144_vm1, %v11542_v54  ;;  %v11573_v52 = vld [vmem:[%s20412_s2 + $0x14c8] sm:$0xff]  ;;  %v106_v53 = vld [vmem:[%s20412_s2 + $0x1450] sm:$0xff] }
  0x77   :  { %v11574_v54 = vld [vmem:[%s20412_s2 + $0x14d0] sm:$0xff] }
  0x79   :  { %14406 = vmatmul.mubr.msk.f32.gmra.mrb[58].mxu0 %vm144_vm1, %v75_v55  ;;  %14600 = vmatmul.mubr.msk.f32.gmra.mrb[58].mxu1 %vm144_vm1, %v11543_v56  ;;  %v107_v55 = vld [vmem:[%s20412_s2 + $0x1458] sm:$0xff] }
  0x7a   :  { %14408 = vmatprep.mubr.msk.f32.mxu0 %vm144_vm1, %v76_v57  ;;  %14602 = vmatprep.mubr.msk.f32.mxu1 %vm144_vm1, %v11544_v58  ;;  %v11575_v56 = vld [vmem:[%s20412_s2 + $0x14d8] sm:$0xff]  ;;  %v108_v57 = vld [vmem:[%s20412_s2 + $0x1460] sm:$0xff] }
  0x7b   :  { %v11576_v58 = vld [vmem:[%s20412_s2 + $0x14e0] sm:$0xff] }
  0x7d   :  { %14409 = vmatmul.mubr.msk.f32.gmra.mrb[60].mxu0 %vm144_vm1, %v77_v59  ;;  %14603 = vmatmul.mubr.msk.f32.gmra.mrb[60].mxu1 %vm144_vm1, %v11545_v60  ;;  %v109_v59 = vld [vmem:[%s20412_s2 + $0x1468] sm:$0xff] }
  0x7e   :  { %14411 = vmatprep.mubr.msk.f32.mxu0 %vm144_vm1, %v78_v61  ;;  %14605 = vmatprep.mubr.msk.f32.mxu1 %vm144_vm1, %v11546_v62  ;;  %v11577_v60 = vld [vmem:[%s20412_s2 + $0x14e8] sm:$0xff]  ;;  %v110_v61 = vld [vmem:[%s20412_s2 + $0x1470] sm:$0xff] }
  0x7f   :  { %v11578_v62 = vld [vmem:[%s20412_s2 + $0x14f0] sm:$0xff] }
  0x81   :  { %14412 = vmatmul.mubr.msk.f32.gmra.mrb[62].mxu0 %vm144_vm1, %v79_v63  ;;  %14606 = vmatmul.mubr.msk.f32.gmra.mrb[62].mxu1 %vm144_vm1, %v11547_v0  ;;  %v111_v63 = vld [vmem:[%s20412_s2 + $0x1478] sm:$0xff] }
  0x82   :  { %14414 = vmatprep.mubr.msk.f32.mxu0 %vm144_vm1, %v80_v1  ;;  %14608 = vmatprep.mubr.msk.f32.mxu1 %vm144_vm1, %v11548_v2  ;;  %v11579_v0 = vld [vmem:[%s20412_s2 + $0x14f8] sm:$0xff]  ;;  %v112_v1 = vld [vmem:[%s20412_s2 + $0x1800] sm:$0xff] }
  0x83   :  { %v11580_v2 = vld [vmem:[%s20412_s2 + $0x1880] sm:$0xff] }
  0x85   :  { %14415 = vmatmul.mubr.msk.f32.gmra.mrb[64].mxu0 %vm144_vm1, %v81_v3  ;;  %14609 = vmatmul.mubr.msk.f32.gmra.mrb[64].mxu1 %vm144_vm1, %v11549_v4  ;;  %v113_v3 = vld [vmem:[%s20412_s2 + $0x1808] sm:$0xff] }
  0x86   :  { %14417 = vmatprep.mubr.msk.f32.mxu0 %vm144_vm1, %v82_v5  ;;  %14611 = vmatprep.mubr.msk.f32.mxu1 %vm144_vm1, %v11550_v6  ;;  %v11581_v4 = vld [vmem:[%s20412_s2 + $0x1888] sm:$0xff]  ;;  %v114_v5 = vld [vmem:[%s20412_s2 + $0x1810] sm:$0xff] }
  0x87   :  { %v11582_v6 = vld [vmem:[%s20412_s2 + $0x1890] sm:$0xff] }
  0x89   :  { %14418 = vmatmul.mubr.msk.f32.gmra.mrb[66].mxu0 %vm144_vm1, %v83_v7  ;;  %14612 = vmatmul.mubr.msk.f32.gmra.mrb[66].mxu1 %vm144_vm1, %v11551_v8  ;;  %v115_v7 = vld [vmem:[%s20412_s2 + $0x1818] sm:$0xff] }
  0x8a   :  { %14420 = vmatprep.mubr.msk.f32.mxu0 %vm144_vm1, %v84_v9  ;;  %14614 = vmatprep.mubr.msk.f32.mxu1 %vm144_vm1, %v11552_v10  ;;  %v11583_v8 = vld [vmem:[%s20412_s2 + $0x1898] sm:$0xff]  ;;  %v116_v9 = vld [vmem:[%s20412_s2 + $0x1820] sm:$0xff] }
  0x8b   :  { %v11584_v10 = vld [vmem:[%s20412_s2 + $0x18a0] sm:$0xff] }
  0x8d   :  { %14421 = vmatmul.mubr.msk.f32.gmra.mrb[68].mxu0 %vm144_vm1, %v85_v11  ;;  %14615 = vmatmul.mubr.msk.f32.gmra.mrb[68].mxu1 %vm144_vm1, %v11553_v12  ;;  %v117_v11 = vld [vmem:[%s20412_s2 + $0x1828] sm:$0xff] }
  0x8e   :  { %14423 = vmatprep.mubr.msk.f32.mxu0 %vm144_vm1, %v86_v13  ;;  %14617 = vmatprep.mubr.msk.f32.mxu1 %vm144_vm1, %v11554_v14  ;;  %v11585_v12 = vld [vmem:[%s20412_s2 + $0x18a8] sm:$0xff]  ;;  %v118_v13 = vld [vmem:[%s20412_s2 + $0x1830] sm:$0xff] }
  0x8f   :  { %v11586_v14 = vld [vmem:[%s20412_s2 + $0x18b0] sm:$0xff] }
  0x91   :  { %14424 = vmatmul.mubr.msk.f32.gmra.mrb[70].mxu0 %vm144_vm1, %v87_v15  ;;  %14618 = vmatmul.mubr.msk.f32.gmra.mrb[70].mxu1 %vm144_vm1, %v11555_v16  ;;  %v119_v15 = vld [vmem:[%s20412_s2 + $0x1838] sm:$0xff] }
  0x92   :  { %14426 = vmatprep.mubr.msk.f32.mxu0 %vm144_vm1, %v88_v17  ;;  %14620 = vmatprep.mubr.msk.f32.mxu1 %vm144_vm1, %v11556_v18  ;;  %v11587_v16 = vld [vmem:[%s20412_s2 + $0x18b8] sm:$0xff]  ;;  %v120_v17 = vld [vmem:[%s20412_s2 + $0x1840] sm:$0xff] }
  0x93   :  { %v11588_v18 = vld [vmem:[%s20412_s2 + $0x18c0] sm:$0xff] }
  0x95   :  { %14427 = vmatmul.mubr.msk.f32.gmra.mrb[72].mxu0 %vm144_vm1, %v89_v19  ;;  %14621 = vmatmul.mubr.msk.f32.gmra.mrb[72].mxu1 %vm144_vm1, %v11557_v20  ;;  %v121_v19 = vld [vmem:[%s20412_s2 + $0x1848] sm:$0xff] }
  0x96   :  { %14429 = vmatprep.mubr.msk.f32.mxu0 %vm144_vm1, %v90_v21  ;;  %14623 = vmatprep.mubr.msk.f32.mxu1 %vm144_vm1, %v11558_v22  ;;  %v11589_v20 = vld [vmem:[%s20412_s2 + $0x18c8] sm:$0xff]  ;;  %v122_v21 = vld [vmem:[%s20412_s2 + $0x1850] sm:$0xff] }
  0x97   :  { %v11590_v22 = vld [vmem:[%s20412_s2 + $0x18d0] sm:$0xff] }
  0x99   :  { %14430 = vmatmul.mubr.msk.f32.gmra.mrb[74].mxu0 %vm144_vm1, %v91_v23  ;;  %14624 = vmatmul.mubr.msk.f32.gmra.mrb[74].mxu1 %vm144_vm1, %v11559_v24  ;;  %v123_v23 = vld [vmem:[%s20412_s2 + $0x1858] sm:$0xff] }
  0x9a   :  { %14432 = vmatprep.mubr.msk.f32.mxu0 %vm144_vm1, %v92_v25  ;;  %14626 = vmatprep.mubr.msk.f32.mxu1 %vm144_vm1, %v11560_v26  ;;  %v11591_v24 = vld [vmem:[%s20412_s2 + $0x18d8] sm:$0xff]  ;;  %v124_v25 = vld [vmem:[%s20412_s2 + $0x1860] sm:$0xff] }
  0x9b   :  { %v11592_v26 = vld [vmem:[%s20412_s2 + $0x18e0] sm:$0xff] }
  0x9d   :  { %14433 = vmatmul.mubr.msk.f32.gmra.mrb[76].mxu0 %vm144_vm1, %v93_v27  ;;  %14627 = vmatmul.mubr.msk.f32.gmra.mrb[76].mxu1 %vm144_vm1, %v11561_v28 }
  0x9e   :  { %14435 = vmatprep.mubr.msk.f32.mxu0 %vm144_vm1, %v94_v29  ;;  %14629 = vmatprep.mubr.msk.f32.mxu1 %vm144_vm1, %v11562_v30 }
  0xa1   :  { %14436 = vmatmul.mubr.msk.f32.gmra.mrb[78].mxu0 %vm144_vm1, %v95_v31  ;;  %14630 = vmatmul.mubr.msk.f32.gmra.mrb[78].mxu1 %vm144_vm1, %v11563_v32 }
  0xa2   :  { %14438 = vmatprep.mubr.msk.f32.mxu0 %vm144_vm1, %v96_v33  ;;  %14632 = vmatprep.mubr.msk.f32.mxu1 %vm144_vm1, %v11564_v34  ;;  %v125_v33 = vld [vmem:[%s20412_s2 + $0x1868] sm:$0xff] }
  0xa3   :  { %v11593_v34 = vld [vmem:[%s20412_s2 + $0x18e8] sm:$0xff] }
  0xa5   :  { %14439 = vmatmul.mubr.msk.f32.gmra.mrb[80].mxu0 %vm144_vm1, %v97_v35  ;;  %14633 = vmatmul.mubr.msk.f32.gmra.mrb[80].mxu1 %vm144_vm1, %v11565_v36  ;;  %v126_v35 = vld [vmem:[%s20412_s2 + $0x1870] sm:$0xff] }
  0xa6   :  { %14441 = vmatprep.mubr.msk.f32.mxu0 %vm144_vm1, %v98_v37  ;;  %14635 = vmatprep.mubr.msk.f32.mxu1 %vm144_vm1, %v11566_v38  ;;  %v11594_v36 = vld [vmem:[%s20412_s2 + $0x18f0] sm:$0xff] }
  0xa9   :  { %14442 = vmatmul.mubr.msk.f32.gmra.mrb[82].mxu0 %vm144_vm1, %v99_v39  ;;  %14636 = vmatmul.mubr.msk.f32.gmra.mrb[82].mxu1 %vm144_vm1, %v11567_v40 }
  0xaa   :  { %14444 = vmatprep.mubr.msk.f32.mxu0 %vm144_vm1, %v100_v41  ;;  %14638 = vmatprep.mubr.msk.f32.mxu1 %vm144_vm1, %v11568_v42 }
  0xad   :  { %14445 = vmatmul.mubr.msk.f32.gmra.mrb[84].mxu0 %vm144_vm1, %v101_v43  ;;  %14639 = vmatmul.mubr.msk.f32.gmra.mrb[84].mxu1 %vm144_vm1, %v11569_v44  ;;  %v127_v43 = vld [vmem:[%s20412_s2 + $0x1878] sm:$0xff] }
  0xae   :  { %14447 = vmatprep.mubr.msk.f32.mxu0 %vm144_vm1, %v102_v45  ;;  %14641 = vmatprep.mubr.msk.f32.mxu1 %vm144_vm1, %v11570_v46  ;;  %v11595_v44 = vld [vmem:[%s20412_s2 + $0x18f8] sm:$0xff]  ;;  %v128_v45 = vld [vmem:[%s20412_s2 + $0x1c00] sm:$0xff] }
  0xaf   :  { %v11596_v46 = vld [vmem:[%s20412_s2 + $0x1c80] sm:$0xff] }
  0xb1   :  { %14448 = vmatmul.mubr.msk.f32.gmra.mrb[86].mxu0 %vm144_vm1, %v103_v47  ;;  %14642 = vmatmul.mubr.msk.f32.gmra.mrb[86].mxu1 %vm144_vm1, %v11571_v48 }
  0xb2   :  { %14450 = vmatprep.mubr.msk.f32.mxu0 %vm144_vm1, %v104_v49  ;;  %14644 = vmatprep.mubr.msk.f32.mxu1 %vm144_vm1, %v11572_v50 }
  0xb5   :  { %14451 = vmatmul.mubr.msk.f32.gmra.mrb[88].mxu0 %vm144_vm1, %v105_v51  ;;  %14645 = vmatmul.mubr.msk.f32.gmra.mrb[88].mxu1 %vm144_vm1, %v11573_v52 }
  0xb6   :  { %14453 = vmatprep.mubr.msk.f32.mxu0 %vm144_vm1, %v106_v53  ;;  %14647 = vmatprep.mubr.msk.f32.mxu1 %vm144_vm1, %v11574_v54 }
  0xb9   :  { %14454 = vmatmul.mubr.msk.f32.gmra.mrb[90].mxu0 %vm144_vm1, %v107_v55  ;;  %14648 = vmatmul.mubr.msk.f32.gmra.mrb[90].mxu1 %vm144_vm1, %v11575_v56  ;;  %v129_v55 = vld [vmem:[%s20412_s2 + $0x1c08] sm:$0xff] }
  0xba   :  { %14456 = vmatprep.mubr.msk.f32.mxu0 %vm144_vm1, %v108_v57  ;;  %14650 = vmatprep.mubr.msk.f32.mxu1 %vm144_vm1, %v11576_v58  ;;  %v11597_v56 = vld [vmem:[%s20412_s2 + $0x1c88] sm:$0xff]  ;;  %v130_v57 = vld [vmem:[%s20412_s2 + $0x1c10] sm:$0xff] }
  0xbb   :  { %v11598_v58 = vld [vmem:[%s20412_s2 + $0x1c90] sm:$0xff] }
  0xbd   :  { %14457 = vmatmul.mubr.msk.f32.gmra.mrb[92].mxu0 %vm144_vm1, %v109_v59  ;;  %14651 = vmatmul.mubr.msk.f32.gmra.mrb[92].mxu1 %vm144_vm1, %v11577_v60 }
  0xbe   :  { %14459 = vmatprep.mubr.msk.f32.mxu0 %vm144_vm1, %v110_v61  ;;  %14653 = vmatprep.mubr.msk.f32.mxu1 %vm144_vm1, %v11578_v62 }
  0xc1   :  { %14460 = vmatmul.mubr.msk.f32.gmra.mrb[94].mxu0 %vm144_vm1, %v111_v63  ;;  %14654 = vmatmul.mubr.msk.f32.gmra.mrb[94].mxu1 %vm144_vm1, %v11579_v0 }
  0xc2   :  { %14462 = vmatprep.mubr.msk.f32.mxu0 %vm144_vm1, %v112_v1  ;;  %14656 = vmatprep.mubr.msk.f32.mxu1 %vm144_vm1, %v11580_v2 }
  0xc5   :  { %14463 = vmatmul.mubr.msk.f32.gmra.mrb[96].mxu0 %vm144_vm1, %v113_v3  ;;  %14657 = vmatmul.mubr.msk.f32.gmra.mrb[96].mxu1 %vm144_vm1, %v11581_v4  ;;  %v131_v3 = vld [vmem:[%s20412_s2 + $0x1c18] sm:$0xff] }
  0xc6   :  { %14465 = vmatprep.mubr.msk.f32.mxu0 %vm144_vm1, %v114_v5  ;;  %14659 = vmatprep.mubr.msk.f32.mxu1 %vm144_vm1, %v11582_v6  ;;  %v11599_v4 = vld [vmem:[%s20412_s2 + $0x1c98] sm:$0xff]  ;;  %v132_v5 = vld [vmem:[%s20412_s2 + $0x1c20] sm:$0xff] }
  0xc7   :  { %v11600_v6 = vld [vmem:[%s20412_s2 + $0x1ca0] sm:$0xff] }
  0xc9   :  { %14466 = vmatmul.mubr.msk.f32.gmra.mrb[98].mxu0 %vm144_vm1, %v115_v7  ;;  %14660 = vmatmul.mubr.msk.f32.gmra.mrb[98].mxu1 %vm144_vm1, %v11583_v8 }
  0xca   :  { %14468 = vmatprep.mubr.msk.f32.mxu0 %vm144_vm1, %v116_v9  ;;  %14662 = vmatprep.mubr.msk.f32.mxu1 %vm144_vm1, %v11584_v10 }
  0xcd   :  { %14469 = vmatmul.mubr.msk.f32.gmra.mrb[100].mxu0 %vm144_vm1, %v117_v11  ;;  %14663 = vmatmul.mubr.msk.f32.gmra.mrb[100].mxu1 %vm144_vm1, %v11585_v12 }
  0xce   :  { %14471 = vmatprep.mubr.msk.f32.mxu0 %vm144_vm1, %v118_v13  ;;  %14665 = vmatprep.mubr.msk.f32.mxu1 %vm144_vm1, %v11586_v14 }
  0xd1   :  { %14472 = vmatmul.mubr.msk.f32.gmra.mrb[102].mxu0 %vm144_vm1, %v119_v15  ;;  %14666 = vmatmul.mubr.msk.f32.gmra.mrb[102].mxu1 %vm144_vm1, %v11587_v16  ;;  %v133_v15 = vld [vmem:[%s20412_s2 + $0x1c28] sm:$0xff] }
  0xd2   :  { %14474 = vmatprep.mubr.msk.f32.mxu0 %vm144_vm1, %v120_v17  ;;  %14668 = vmatprep.mubr.msk.f32.mxu1 %vm144_vm1, %v11588_v18  ;;  %v11601_v16 = vld [vmem:[%s20412_s2 + $0x1ca8] sm:$0xff]  ;;  %v134_v17 = vld [vmem:[%s20412_s2 + $0x1c30] sm:$0xff] }
  0xd3   :  { %v11602_v18 = vld [vmem:[%s20412_s2 + $0x1cb0] sm:$0xff] }
  0xd5   :  { %14475 = vmatmul.mubr.msk.f32.gmra.mrb[104].mxu0 %vm144_vm1, %v121_v19  ;;  %14669 = vmatmul.mubr.msk.f32.gmra.mrb[104].mxu1 %vm144_vm1, %v11589_v20 }
  0xd6   :  { %14477 = vmatprep.mubr.msk.f32.mxu0 %vm144_vm1, %v122_v21  ;;  %14671 = vmatprep.mubr.msk.f32.mxu1 %vm144_vm1, %v11590_v22 }
  0xd8   :  { %v14320_v27 = vpop.f32.mrb[0].mxu0  ;;  %v14514_v28 = vpop.f32.mrb[0].mxu1 }
  0xd9   :  { %v599_v29 = vpop.f32.mrb[1].mxu0  ;;  %14478 = vmatmul.mubr.msk.f32.gmra.mrb[106].mxu0 %vm144_vm1, %v123_v23  ;;  %14672 = vmatmul.mubr.msk.f32.gmra.mrb[106].mxu1 %vm144_vm1, %v11591_v24  ;;  %v1985_v30 = vpop.f32.mrb[1].mxu1 }
  0xda   :  { %v1238_v31 = vmax.f32 %v599_v29, %v14320_v27  ;;  %v2624_v32 = vmax.f32 %v1985_v30, %v14514_v28  ;;  %14480 = vmatprep.mubr.msk.f32.mxu0 %vm144_vm1, %v124_v25  ;;  %14674 = vmatprep.mubr.msk.f32.mxu1 %vm144_vm1, %v11592_v26  ;;  %v135_v27 = vld [vmem:[%s20412_s2 + $0x1c38] sm:$0xff]  ;;  %v136_v29 = vld [vmem:[%s20412_s2 + $0x1c40] sm:$0xff] }
  0xdb   :  { %v11603_v28 = vld [vmem:[%s20412_s2 + $0x1cb8] sm:$0xff]  ;;  %v11604_v30 = vld [vmem:[%s20412_s2 + $0x1cc0] sm:$0xff] }
  0xdc   :  { %v14323_v37 = vpop.f32.mrb[2].mxu0  ;;  %v14517_v38 = vpop.f32.mrb[2].mxu1 }
  0xdd   :  { %v609_v39 = vpop.f32.mrb[3].mxu0  ;;  %14481 = vmatmul.mubr.msk.f32.gmra.mrb[108].mxu0 %vm144_vm1, %v125_v33  ;;  %v1995_v40 = vpop.f32.mrb[3].mxu1  ;;  %14675 = vmatmul.mubr.msk.f32.gmra.mrb[108].mxu1 %vm144_vm1, %v11593_v34 }
  0xde   :  { %v1239_v41 = vmax.f32 %v1238_v31, %v609_v39  ;;  %v2625_v42 = vmax.f32 %v2624_v32, %v1995_v40  ;;  %14483 = vmatprep.mubr.msk.f32.mxu0 %vm144_vm1, %v126_v35  ;;  %14677 = vmatprep.mubr.msk.f32.mxu1 %vm144_vm1, %v11594_v36  ;;  %v137_v39 = vld [vmem:[%s20412_s2 + $0x1c48] sm:$0xff] }
  0xdf   :  { %v11605_v40 = vld [vmem:[%s20412_s2 + $0x1cc8] sm:$0xff] }
  0xe0   :  { %v14326_v47 = vpop.f32.mrb[4].mxu0  ;;  %v14520_v48 = vpop.f32.mrb[4].mxu1  ;;  %v1240_v49 = vmax.f32 %v1239_v41, %v14323_v37  ;;  %v2626_v50 = vmax.f32 %v2625_v42, %v14517_v38  ;;  %v138_v41 = vld [vmem:[%s20412_s2 + $0x1c50] sm:$0xff] }
  0xe1   :  { %v619_v51 = vpop.f32.mrb[5].mxu0  ;;  %14484 = vmatmul.mubr.msk.f32.gmra.mrb[110].mxu0 %vm144_vm1, %v127_v43  ;;  %v2005_v52 = vpop.f32.mrb[5].mxu1  ;;  %14678 = vmatmul.mubr.msk.f32.gmra.mrb[110].mxu1 %vm144_vm1, %v11595_v44  ;;  %v11606_v42 = vld [vmem:[%s20412_s2 + $0x1cd0] sm:$0xff] }
  0xe2   :  { %v1241_v53 = vmax.f32 %v1240_v49, %v619_v51  ;;  %v2627_v54 = vmax.f32 %v2626_v50, %v2005_v52  ;;  %14486 = vmatprep.mubr.msk.f32.mxu0 %vm144_vm1, %v128_v45  ;;  %14680 = vmatprep.mubr.msk.f32.mxu1 %vm144_vm1, %v11596_v46  ;;  %v139_v51 = vld [vmem:[%s20412_s2 + $0x1c58] sm:$0xff] }
  0xe3   :  { %v11607_v52 = vld [vmem:[%s20412_s2 + $0x1cd8] sm:$0xff] }
  0xe4   :  { %v14329_v59 = vpop.f32.mrb[6].mxu0  ;;  %v14523_v60 = vpop.f32.mrb[6].mxu1  ;;  %v1242_v61 = vmax.f32 %v1241_v53, %v14326_v47  ;;  %v2628_v62 = vmax.f32 %v2627_v54, %v14520_v48  ;;  %v140_v53 = vld [vmem:[%s20412_s2 + $0x1c60] sm:$0xff] }
  0xe5   :  { %v629_v63 = vpop.f32.mrb[7].mxu0  ;;  %14487 = vmatmul.mubr.msk.f32.gmra.mrb[112].mxu0 %vm144_vm1, %v129_v55  ;;  %v2015_v0 = vpop.f32.mrb[7].mxu1  ;;  %14681 = vmatmul.mubr.msk.f32.gmra.mrb[112].mxu1 %vm144_vm1, %v11597_v56  ;;  %v11608_v54 = vld [vmem:[%s20412_s2 + $0x1ce0] sm:$0xff] }
  0xe6   :  { %v1243_v1 = vmax.f32 %v1242_v61, %v629_v63  ;;  %v2629_v2 = vmax.f32 %v2628_v62, %v2015_v0  ;;  %14489 = vmatprep.mubr.msk.f32.mxu0 %vm144_vm1, %v130_v57  ;;  %14683 = vmatprep.mubr.msk.f32.mxu1 %vm144_vm1, %v11598_v58 }
  0xe8   :  { %v14332_v7 = vpop.f32.mrb[8].mxu0  ;;  %v14526_v8 = vpop.f32.mrb[8].mxu1  ;;  %v1244_v9 = vmax.f32 %v1243_v1, %v14329_v59  ;;  %v2630_v10 = vmax.f32 %v2629_v2, %v14523_v60  ;;  %v141_v1 = vld [vmem:[%s20412_s2 + $0x1c68] sm:$0xff] }
  0xe9   :  { %v639_v11 = vpop.f32.mrb[9].mxu0  ;;  %14490 = vmatmul.mubr.msk.f32.gmra.mrb[114].mxu0 %vm144_vm1, %v131_v3  ;;  %v2025_v12 = vpop.f32.mrb[9].mxu1  ;;  %14684 = vmatmul.mubr.msk.f32.gmra.mrb[114].mxu1 %vm144_vm1, %v11599_v4  ;;  %v11609_v2 = vld [vmem:[%s20412_s2 + $0x1ce8] sm:$0xff]  ;;  %v142_v3 = vld [vmem:[%s20412_s2 + $0x1c70] sm:$0xff] }
  0xea   :  { %v1245_v13 = vmax.f32 %v1244_v9, %v639_v11  ;;  %v2631_v14 = vmax.f32 %v2630_v10, %v2025_v12  ;;  %14492 = vmatprep.mubr.msk.f32.mxu0 %vm144_vm1, %v132_v5  ;;  %14686 = vmatprep.mubr.msk.f32.mxu1 %vm144_vm1, %v11600_v6  ;;  %v11610_v4 = vld [vmem:[%s20412_s2 + $0x1cf0] sm:$0xff] }
  0xec   :  { %v14335_v19 = vpop.f32.mrb[10].mxu0  ;;  %v14529_v20 = vpop.f32.mrb[10].mxu1  ;;  %v1246_v21 = vmax.f32 %v1245_v13, %v14332_v7  ;;  %v2632_v22 = vmax.f32 %v2631_v14, %v14526_v8 }
  0xed   :  { %v649_v23 = vpop.f32.mrb[11].mxu0  ;;  %14493 = vmatmul.mubr.msk.f32.gmra.mrb[116].mxu0 %vm144_vm1, %v133_v15  ;;  %v2035_v24 = vpop.f32.mrb[11].mxu1  ;;  %14687 = vmatmul.mubr.msk.f32.gmra.mrb[116].mxu1 %vm144_vm1, %v11601_v16  ;;  %v143_v15 = vld [vmem:[%s20412_s2 + $0x1c78] sm:$0xff] }
  0xee   :  { %v1247_v25 = vmax.f32 %v1246_v21, %v649_v23  ;;  %v2633_v26 = vmax.f32 %v2632_v22, %v2035_v24  ;;  %14495 = vmatprep.mubr.msk.f32.mxu0 %vm144_vm1, %v134_v17  ;;  %14689 = vmatprep.mubr.msk.f32.mxu1 %vm144_vm1, %v11602_v18  ;;  %v11611_v16 = vld [vmem:[%s20412_s2 + $0x1cf8] sm:$0xff]  ;;  %v11741_v17 = vld [vmem:[%s20412_s2 + $0x100] sm:$0xff] }
  0xef   :  { %v11998_v18 = vld [vmem:[%s20412_s2 + $0x180] sm:$0xff] }
  0xf0   :  { %v14338_v31 = vpop.f32.mrb[12].mxu0  ;;  %v14532_v32 = vpop.f32.mrb[12].mxu1  ;;  %v1248_v33 = vmax.f32 %v1247_v25, %v14335_v19  ;;  %v2634_v34 = vmax.f32 %v2633_v26, %v14529_v20 }
  0xf1   :  { %v659_v35 = vpop.f32.mrb[13].mxu0  ;;  %14496 = vmatmul.mubr.msk.f32.gmra.mrb[118].mxu0 %vm144_vm1, %v135_v27  ;;  %v2045_v36 = vpop.f32.mrb[13].mxu1  ;;  %14690 = vmatmul.mubr.msk.f32.gmra.mrb[118].mxu1 %vm144_vm1, %v11603_v28 }
  0xf2   :  { %v1249_v37 = vmax.f32 %v1248_v33, %v659_v35  ;;  %v2635_v38 = vmax.f32 %v2634_v34, %v2045_v36  ;;  %14498 = vmatprep.mubr.msk.f32.mxu0 %vm144_vm1, %v136_v29  ;;  %14692 = vmatprep.mubr.msk.f32.mxu1 %vm144_vm1, %v11604_v30  ;;  %v11743_v33 = vld [vmem:[%s20412_s2 + $0x110] sm:$0xff] }
  0xf4   :  { %v14341_v43 = vpop.f32.mrb[14].mxu0  ;;  %v14535_v44 = vpop.f32.mrb[14].mxu1  ;;  %v1250_v45 = vmax.f32 %v1249_v37, %v14338_v31  ;;  %v2636_v46 = vmax.f32 %v2635_v38, %v14532_v32  ;;  %v11742_v31 = vld [vmem:[%s20412_s2 + $0x108] sm:$0xff] }
  0xf5   :  { %v669_v47 = vpop.f32.mrb[15].mxu0  ;;  %14499 = vmatmul.mubr.msk.f32.gmra.mrb[120].mxu0 %vm144_vm1, %v137_v39  ;;  %v2055_v48 = vpop.f32.mrb[15].mxu1  ;;  %14693 = vmatmul.mubr.msk.f32.gmra.mrb[120].mxu1 %vm144_vm1, %v11605_v40  ;;  %v11999_v32 = vld [vmem:[%s20412_s2 + $0x188] sm:$0xff]  ;;  %v12000_v40 = vld [vmem:[%s20412_s2 + $0x190] sm:$0xff] }
  0xf6   :  { %v1251_v49 = vmax.f32 %v1250_v45, %v669_v47  ;;  %v2637_v50 = vmax.f32 %v2636_v46, %v2055_v48  ;;  %14501 = vmatprep.mubr.msk.f32.mxu0 %vm144_vm1, %v138_v41  ;;  %14695 = vmatprep.mubr.msk.f32.mxu1 %vm144_vm1, %v11606_v42  ;;  %v15887_v46 = vld [vmem:[%s20410_s0] sm:$0x7]  ;;  %v11744_v47 = vld [vmem:[%s20412_s2 + $0x118] sm:$0xff] }
  0xf7   :  { %v12001_v48 = vld [vmem:[%s20412_s2 + $0x198] sm:$0xff] }
  0xf8   :  { %v1252_v55 = vmax.f32 %v1251_v49, %v14341_v43  ;;  %v2638_v56 = vmax.f32 %v2637_v50, %v14535_v44  ;;  %v14344_v57 = vpop.f32.mrb[16].mxu0  ;;  %v14538_v58 = vpop.f32.mrb[16].mxu1  ;;  %v11745_v49 = vld [vmem:[%s20412_s2 + $0x120] sm:$0xff] }
  0xf9   :  { %v679_v59 = vpop.f32.mrb[17].mxu0  ;;  %14502 = vmatmul.mubr.msk.f32.gmra.mrb[122].mxu0 %vm144_vm1, %v139_v51  ;;  %14696 = vmatmul.mubr.msk.f32.gmra.mrb[122].mxu1 %vm144_vm1, %v11607_v52  ;;  %v2065_v60 = vpop.f32.mrb[17].mxu1  ;;  %v12002_v50 = vld [vmem:[%s20412_s2 + $0x1a0] sm:$0xff] }
  0xfa   :  { %v1253_v61 = vrot.slane %v1252_v55, 4  ;;  %v2639_v62 = vrot.slane %v2638_v56, 4  ;;  %v1259_v63 = vmax.f32 %v679_v59, %v14344_v57  ;;  %v2645_v0 = vmax.f32 %v2065_v60, %v14538_v58  ;;  %14504 = vmatprep.mubr.msk.f32.mxu0 %vm144_vm1, %v140_v53  ;;  %14698 = vmatprep.mubr.msk.f32.mxu1 %vm144_vm1, %v11608_v54  ;;  %v11746_v59 = vld [vmem:[%s20412_s2 + $0x128] sm:$0xff] }
  0xfb   :  { %v12003_v60 = vld [vmem:[%s20412_s2 + $0x1a8] sm:$0xff] }
  0xfc   :  { %v1254_v5 = vmax.f32 %v1252_v55, %v1253_v61  ;;  %v2640_v6 = vmax.f32 %v2638_v56, %v2639_v62  ;;  %v14347_v7 = vpop.f32.mrb[18].mxu0  ;;  %v14541_v8 = vpop.f32.mrb[18].mxu1  ;;  %v11747_v61 = vld [vmem:[%s20412_s2 + $0x130] sm:$0xff] }
  0xfd   :  { %v689_v9 = vpop.f32.mrb[19].mxu0  ;;  %14505 = vmatmul.mubr.msk.f32.gmra.mrb[124].mxu0 %vm144_vm1, %v141_v1  ;;  %v2075_v10 = vpop.f32.mrb[19].mxu1  ;;  %14699 = vmatmul.mubr.msk.f32.gmra.mrb[124].mxu1 %vm144_vm1, %v11609_v2  ;;  %v12004_v62 = vld [vmem:[%s20412_s2 + $0x1b0] sm:$0xff] }
  0xfe   :  { %v1255_v11 = vrot.slane %v1254_v5, 2  ;;  %v2641_v12 = vrot.slane %v2640_v6, 2  ;;  %v1260_v13 = vmax.f32 %v1259_v63, %v689_v9  ;;  %v2646_v14 = vmax.f32 %v2645_v0, %v2075_v10  ;;  %14507 = vmatprep.mubr.msk.f32.mxu0 %vm144_vm1, %v142_v3  ;;  %14701 = vmatprep.mubr.msk.f32.mxu1 %vm144_vm1, %v11610_v4  ;;  %v11749_v9 = vld [vmem:[%s20412_s2 + $0x140] sm:$0xff] }
  0xff   :  { %v12006_v10 = vld [vmem:[%s20412_s2 + $0x1c0] sm:$0xff] }
 0x100   :  { %v1256_v19 = vmax.f32 %v1254_v5, %v1255_v11  ;;  %v2642_v20 = vmax.f32 %v2640_v6, %v2641_v12  ;;  %v14350_v21 = vpop.f32.mrb[20].mxu0  ;;  %v14544_v22 = vpop.f32.mrb[20].mxu1  ;;  %v1261_v23 = vmax.f32 %v1260_v13, %v14347_v7  ;;  %v2647_v24 = vmax.f32 %v2646_v14, %v14541_v8  ;;  %v11748_v7 = vld [vmem:[%s20412_s2 + $0x138] sm:$0xff] }
 0x101   :  { %v699_v25 = vpop.f32.mrb[21].mxu0  ;;  %14508 = vmatmul.mubr.msk.f32.gmra.mrb[126].mxu0 %vm144_vm1, %v143_v15  ;;  %v2085_v26 = vpop.f32.mrb[21].mxu1  ;;  %14702 = vmatmul.mubr.msk.f32.gmra.mrb[126].mxu1 %vm144_vm1, %v11611_v16  ;;  %v12005_v8 = vld [vmem:[%s20412_s2 + $0x1b8] sm:$0xff] }
 0x102   :  { %v1257_v27 = vrot.slane %v1256_v19, 1  ;;  %v2643_v28 = vrot.slane %v2642_v20, 1  ;;  %v1262_v29 = vmax.f32 %v1261_v23, %v699_v25  ;;  %v2648_v30 = vmax.f32 %v2647_v24, %v2085_v26  ;;  %14706 = vmatprep.mubr.msk.f32.mxu0 %vm144_vm1, %v11741_v17  ;;  %14900 = vmatprep.mubr.msk.f32.mxu1 %vm144_vm1, %v11998_v18 }
 0x104   :  { %v16988_v34 = vmax.f32 %v1256_v19, %v1257_v27  ;;  %v16990_v35 = vmax.f32 %v2642_v20, %v2643_v28  ;;  %v14353_v36 = vpop.f32.mrb[22].mxu0  ;;  %v14547_v37 = vpop.f32.mrb[22].mxu1  ;;  %v1263_v38 = vmax.f32 %v1262_v29, %v14350_v21  ;;  %v2649_v39 = vmax.f32 %v2648_v30, %v14544_v22  ;;  %v11750_v19 = vld [vmem:[%s20412_s2 + $0x148] sm:$0xff]  ;;  %v11751_v21 = vld [vmem:[%s20412_s2 + $0x150] sm:$0xff] }
 0x105   :  { %v709_v41 = vpop.f32.mrb[23].mxu0  ;;  %v2095_v42 = vpop.f32.mrb[23].mxu1  ;;  %14707 = vmatmul.mubr.msk.f32.vlgmr.msra.gmra.mrb[128].mxu0 %vm144_vm1, %v11742_v31  ;;  %14901 = vmatmul.mubr.msk.f32.vlgmr.msra.gmra.mrb[128].mxu1 %vm144_vm1, %v11999_v32  ;;  %v12007_v20 = vld [vmem:[%s20412_s2 + $0x1c8] sm:$0xff]  ;;  %v12008_v22 = vld [vmem:[%s20412_s2 + $0x1d0] sm:$0xff]  ;;  %v11752_v31 = vld [vmem:[%s20412_s2 + $0x158] sm:$0xff] }
 0x106   :  { %v2792_v43 = vmax.f32 %v16988_v34, %v16990_v35  ;;  %v1264_v44 = vmax.f32 %v1263_v38, %v709_v41  ;;  %v2650_v45 = vmax.f32 %v2649_v39, %v2095_v42  ;;  %15093 = vmatpush3.msk.msra.mxu0 %vm529_vm0, %v15887_v46  ;;  %14709 = vmatprep.mubr.msk.f32.mxu0 %vm144_vm1, %v11743_v33  ;;  %v12009_v32 = vld [vmem:[%s20412_s2 + $0x1d8] sm:$0xff]  ;;  %v11753_v33 = vld [vmem:[%s20412_s2 + $0x160] sm:$0xff] }
 0x107   :  { %14903 = vmatprep.mubr.msk.f32.mxu1 %vm144_vm1, %v12000_v40  ;;  %15287 = vmatpush3.msk.msra.mxu1 %vm529_vm0, %v15887_v46  ;;  %v12515_v34 = vld [vmem:[%s20412_s2 + $0x298] sm:$0xff]  ;;  %v12259_v35 = vld [vmem:[%s20412_s2 + $0x220] sm:$0xff] }
 0x108   :  { %v14356_v51 = vpop.f32.mrb[24].mxu0  ;;  %v14550_v52 = vpop.f32.mrb[24].mxu1  ;;  %v1265_v53 = vmax.f32 %v1264_v44, %v14353_v36  ;;  %v2651_v54 = vmax.f32 %v2650_v45, %v14547_v37  ;;  %15480 = vmatprep.subr.msk.mxu0 %vm529_vm0, %v15887_v46  ;;  %15674 = vmatprep.subr.msk.mxu1 %vm529_vm0, %v15887_v46  ;;  %v12010_v36 = vld [vmem:[%s20412_s2 + $0x1e0] sm:$0xff] }
 0x109   :  { %v719_v55 = vpop.f32.mrb[25].mxu0  ;;  %v2105_v56 = vpop.f32.mrb[25].mxu1  ;;  %14710 = vmatmul.mubr.msk.f32.gmra.mrb[130].mxu0 %vm144_vm1, %v11744_v47  ;;  %14904 = vmatmul.mubr.msk.f32.gmra.mrb[130].mxu1 %vm144_vm1, %v12001_v48  ;;  %v11754_v48 = vld [vmem:[%s20412_s2 + $0x168] sm:$0xff] }
 0x10a   :  { %v1266_v57 = vmax.f32 %v1265_v53, %v719_v55  ;;  %v2652_v58 = vmax.f32 %v2651_v54, %v2105_v56  ;;  %14712 = vmatprep.mubr.msk.f32.mxu0 %vm144_vm1, %v11745_v49  ;;  %14906 = vmatprep.mubr.msk.f32.mxu1 %vm144_vm1, %v12002_v50  ;;  %v12011_v49 = vld [vmem:[%s20412_s2 + $0x1e8] sm:$0xff]  ;;  %v11755_v50 = vld [vmem:[%s20412_s2 + $0x170] sm:$0xff] }
 0x10c   :  { %v14359_v63 = vpop.f32.mrb[26].mxu0  ;;  %v14553_v0 = vpop.f32.mrb[26].mxu1  ;;  %v1267_v1 = vmax.f32 %v1266_v57, %v14356_v51  ;;  %v2653_v2 = vmax.f32 %v2652_v58, %v14550_v52  ;;  %v12012_v51 = vld [vmem:[%s20412_s2 + $0x1f0] sm:$0xff] }
 0x10d   :  { %v729_v3 = vpop.f32.mrb[27].mxu0  ;;  %v2115_v4 = vpop.f32.mrb[27].mxu1  ;;  %14713 = vmatmul.mubr.msk.f32.gmra.mrb[132].mxu0 %vm144_vm1, %v11746_v59  ;;  %14907 = vmatmul.mubr.msk.f32.gmra.mrb[132].mxu1 %vm144_vm1, %v12003_v60 }
 0x10e   :  { %v1268_v5 = vmax.f32 %v1267_v1, %v729_v3  ;;  %v2654_v6 = vmax.f32 %v2653_v2, %v2115_v4  ;;  %14715 = vmatprep.mubr.msk.f32.mxu0 %vm144_vm1, %v11747_v61  ;;  %14909 = vmatprep.mubr.msk.f32.mxu1 %vm144_vm1, %v12004_v62  ;;  %v11756_v62 = vld [vmem:[%s20412_s2 + $0x178] sm:$0xff]  ;;  %v12014_v1 = vld [vmem:[%s20412_s2 + $0x580] sm:$0xff] }
 0x110   :  { %v14362_v11 = vpop.f32.mrb[28].mxu0  ;;  %v14556_v12 = vpop.f32.mrb[28].mxu1  ;;  %v1269_v13 = vmax.f32 %v1268_v5, %v14359_v63  ;;  %v2655_v14 = vmax.f32 %v2654_v6, %v14553_v0  ;;  %v12013_v63 = vld [vmem:[%s20412_s2 + $0x1f8] sm:$0xff]  ;;  %v11757_v0 = vld [vmem:[%s20412_s2 + $0x500] sm:$0xff] }
 0x111   :  { %v739_v15 = vpop.f32.mrb[29].mxu0  ;;  %v2125_v16 = vpop.f32.mrb[29].mxu1  ;;  %14716 = vmatmul.mubr.msk.f32.gmra.mrb[134].mxu0 %vm144_vm1, %v11748_v7  ;;  %14910 = vmatmul.mubr.msk.f32.gmra.mrb[134].mxu1 %vm144_vm1, %v12005_v8 }
 0x112   :  { %v1270_v17 = vmax.f32 %v1269_v13, %v739_v15  ;;  %v2656_v18 = vmax.f32 %v2655_v14, %v2125_v16  ;;  %14718 = vmatprep.mubr.msk.f32.mxu0 %vm144_vm1, %v11749_v9  ;;  %14912 = vmatprep.mubr.msk.f32.mxu1 %vm144_vm1, %v12006_v10  ;;  %v11758_v14 = vld [vmem:[%s20412_s2 + $0x508] sm:$0xff]  ;;  %v11759_v16 = vld [vmem:[%s20412_s2 + $0x510] sm:$0xff] }
 0x113   :  { %v12015_v15 = vld [vmem:[%s20412_s2 + $0x588] sm:$0xff] }
 0x114   :  { %v14365_v23 = vpop.f32.mrb[30].mxu0  ;;  %v14559_v24 = vpop.f32.mrb[30].mxu1  ;;  %v1271_v25 = vmax.f32 %v1270_v17, %v14362_v11  ;;  %v2657_v26 = vmax.f32 %v2656_v18, %v14556_v12  ;;  %v12016_v17 = vld [vmem:[%s20412_s2 + $0x590] sm:$0xff] }
 0x115   :  { %v749_v27 = vpop.f32.mrb[31].mxu0  ;;  %v2135_v28 = vpop.f32.mrb[31].mxu1  ;;  %14719 = vmatmul.mubr.msk.f32.gmra.mrb[136].mxu0 %vm144_vm1, %v11750_v19  ;;  %14913 = vmatmul.mubr.msk.f32.gmra.mrb[136].mxu1 %vm144_vm1, %v12007_v20 }
 0x116   :  { %v1272_v29 = vmax.f32 %v1271_v25, %v749_v27  ;;  %v2658_v30 = vmax.f32 %v2657_v26, %v2135_v28  ;;  %14721 = vmatprep.mubr.msk.f32.mxu0 %vm144_vm1, %v11751_v21  ;;  %14915 = vmatprep.mubr.msk.f32.mxu1 %vm144_vm1, %v12008_v22 }
 0x118   :  { %v1273_v37 = vmax.f32 %v1272_v29, %v14365_v23  ;;  %v2659_v38 = vmax.f32 %v2658_v30, %v14559_v24  ;;  %v14368_v39 = vpop.f32.mrb[32].mxu0  ;;  %v14562_v40 = vpop.f32.mrb[32].mxu1  ;;  %v11760_v29 = vld [vmem:[%s20412_s2 + $0x518] sm:$0xff] }
 0x119   :  { %v759_v41 = vpop.f32.mrb[33].mxu0  ;;  %14722 = vmatmul.mubr.msk.f32.gmra.mrb[138].mxu0 %vm144_vm1, %v11752_v31  ;;  %14916 = vmatmul.mubr.msk.f32.gmra.mrb[138].mxu1 %vm144_vm1, %v12009_v32  ;;  %v2145_v42 = vpop.f32.mrb[33].mxu1  ;;  %v12017_v30 = vld [vmem:[%s20412_s2 + $0x598] sm:$0xff]  ;;  %v11761_v31 = vld [vmem:[%s20412_s2 + $0x520] sm:$0xff] }
 0x11a   :  { %v1274_v44 = vrot.slane %v1273_v37, 4  ;;  %v2660_v45 = vrot.slane %v2659_v38, 4  ;;  %v1280_v46 = vmax.f32 %v759_v41, %v14368_v39  ;;  %v2666_v47 = vmax.f32 %v2145_v42, %v14562_v40  ;;  %14724 = vmatprep.mubr.msk.f32.mxu0 %vm144_vm1, %v11753_v33  ;;  %14918 = vmatprep.mubr.msk.f32.mxu1 %vm144_vm1, %v12010_v36  ;;  %v12018_v32 = vld [vmem:[%s20412_s2 + $0x5a0] sm:$0xff] }
 0x11c   :  { %v1275_v52 = vmax.f32 %v1273_v37, %v1274_v44  ;;  %v2661_v53 = vmax.f32 %v2659_v38, %v2660_v45  ;;  %v14371_v54 = vpop.f32.mrb[34].mxu0  ;;  %v14565_v55 = vpop.f32.mrb[34].mxu1  ;;  %v11762_v44 = vld [vmem:[%s20412_s2 + $0x528] sm:$0xff] }
 0x11d   :  { %v769_v56 = vpop.f32.mrb[35].mxu0  ;;  %v2155_v57 = vpop.f32.mrb[35].mxu1  ;;  %14725 = vmatmul.mubr.msk.f32.gmra.mrb[140].mxu0 %vm144_vm1, %v11754_v48  ;;  %14919 = vmatmul.mubr.msk.f32.gmra.mrb[140].mxu1 %vm144_vm1, %v12011_v49  ;;  %v12019_v45 = vld [vmem:[%s20412_s2 + $0x5a8] sm:$0xff] }
 0x11e   :  { %v1276_v58 = vrot.slane %v1275_v52, 2  ;;  %v2662_v59 = vrot.slane %v2661_v53, 2  ;;  %v1281_v60 = vmax.f32 %v1280_v46, %v769_v56  ;;  %v2667_v61 = vmax.f32 %v2666_v47, %v2155_v57  ;;  %14727 = vmatprep.mubr.msk.f32.mxu0 %vm144_vm1, %v11755_v50  ;;  %14921 = vmatprep.mubr.msk.f32.mxu1 %vm144_vm1, %v12012_v51  ;;  %v11763_v46 = vld [vmem:[%s20412_s2 + $0x530] sm:$0xff]  ;;  %v11764_v56 = vld [vmem:[%s20412_s2 + $0x538] sm:$0xff] }
 0x11f   :  { %v12020_v47 = vld [vmem:[%s20412_s2 + $0x5b0] sm:$0xff]  ;;  %v12021_v57 = vld [vmem:[%s20412_s2 + $0x5b8] sm:$0xff] }
 0x120   :  { %v1277_v2 = vmax.f32 %v1275_v52, %v1276_v58  ;;  %v2663_v3 = vmax.f32 %v2661_v53, %v2662_v59  ;;  %v14374_v4 = vpop.f32.mrb[36].mxu0  ;;  %v14568_v5 = vpop.f32.mrb[36].mxu1  ;;  %v1282_v6 = vmax.f32 %v1281_v60, %v14371_v54  ;;  %v2668_v7 = vmax.f32 %v2667_v61, %v14565_v55  ;;  %v11765_v58 = vld [vmem:[%s20412_s2 + $0x540] sm:$0xff] }
 0x121   :  { %v779_v8 = vpop.f32.mrb[37].mxu0  ;;  %v2165_v9 = vpop.f32.mrb[37].mxu1  ;;  %14728 = vmatmul.mubr.msk.f32.gmra.mrb[142].mxu0 %vm144_vm1, %v11756_v62  ;;  %14922 = vmatmul.mubr.msk.f32.gmra.mrb[142].mxu1 %vm144_vm1, %v12013_v63  ;;  %v12022_v59 = vld [vmem:[%s20412_s2 + $0x5c0] sm:$0xff] }
 0x122   :  { %v1278_v10 = vrot.slane %v1277_v2, 1  ;;  %v2664_v11 = vrot.slane %v2663_v3, 1  ;;  %v1283_v12 = vmax.f32 %v1282_v6, %v779_v8  ;;  %v2669_v13 = vmax.f32 %v2668_v7, %v2165_v9  ;;  %14730 = vmatprep.mubr.msk.f32.mxu0 %vm144_vm1, %v11757_v0  ;;  %14924 = vmatprep.mubr.msk.f32.mxu1 %vm144_vm1, %v12014_v1  ;;  %v11767_v6 = vld [vmem:[%s20412_s2 + $0x550] sm:$0xff] }
 0x123   :  { %v12024_v7 = vld [vmem:[%s20412_s2 + $0x5d0] sm:$0xff] }
 0x124   :  { %v17132_v18 = vmax.f32 %v1277_v2, %v1278_v10  ;;  %v17134_v19 = vmax.f32 %v2663_v3, %v2664_v11  ;;  %v14377_v20 = vpop.f32.mrb[38].mxu0  ;;  %v14571_v21 = vpop.f32.mrb[38].mxu1  ;;  %v1284_v22 = vmax.f32 %v1283_v12, %v14374_v4  ;;  %v2670_v23 = vmax.f32 %v2669_v13, %v14568_v5  ;;  %v11766_v4 = vld [vmem:[%s20412_s2 + $0x548] sm:$0xff] }
 0x125   :  { %v789_v24 = vpop.f32.mrb[39].mxu0  ;;  %v2175_v25 = vpop.f32.mrb[39].mxu1  ;;  %14731 = vmatmul.mubr.msk.f32.gmra.mrb[144].mxu0 %vm144_vm1, %v11758_v14  ;;  %14925 = vmatmul.mubr.msk.f32.gmra.mrb[144].mxu1 %vm144_vm1, %v12015_v15  ;;  %v12023_v5 = vld [vmem:[%s20412_s2 + $0x5c8] sm:$0xff] }
 0x126   :  { %v2793_v26 = vmax.f32 %v17132_v18, %v17134_v19  ;;  %v1285_v27 = vmax.f32 %v1284_v22, %v789_v24  ;;  %v2671_v28 = vmax.f32 %v2670_v23, %v2175_v25  ;;  %14733 = vmatprep.mubr.msk.f32.mxu0 %vm144_vm1, %v11759_v16  ;;  %14927 = vmatprep.mubr.msk.f32.mxu1 %vm144_vm1, %v12016_v17  ;;  %v11768_v16 = vld [vmem:[%s20412_s2 + $0x558] sm:$0xff]  ;;  %v12275_v18 = vld [vmem:[%s20412_s2 + $0x620] sm:$0xff] }
 0x127   :  { %v12025_v17 = vld [vmem:[%s20412_s2 + $0x5d8] sm:$0xff]  ;;  %v12532_v19 = vld [vmem:[%s20412_s2 + $0x6a0] sm:$0xff] }
 0x128   :  { %v14380_v33 = vpop.f32.mrb[40].mxu0  ;;  %v14574_v36 = vpop.f32.mrb[40].mxu1  ;;  %v1286_v37 = vmax.f32 %v1285_v27, %v14377_v20  ;;  %v2672_v38 = vmax.f32 %v2671_v28, %v14571_v21  ;;  %v11769_v20 = vld [vmem:[%s20412_s2 + $0x560] sm:$0xff] }
 0x129   :  { %v799_v39 = vpop.f32.mrb[41].mxu0  ;;  %v2185_v40 = vpop.f32.mrb[41].mxu1  ;;  %14734 = vmatmul.mubr.msk.f32.gmra.mrb[146].mxu0 %vm144_vm1, %v11760_v29  ;;  %14928 = vmatmul.mubr.msk.f32.gmra.mrb[146].mxu1 %vm144_vm1, %v12017_v30  ;;  %v12026_v21 = vld [vmem:[%s20412_s2 + $0x5e0] sm:$0xff] }
 0x12a   :  { %v1287_v41 = vmax.f32 %v1286_v37, %v799_v39  ;;  %v2673_v42 = vmax.f32 %v2672_v38, %v2185_v40  ;;  %14736 = vmatprep.mubr.msk.f32.mxu0 %vm144_vm1, %v11761_v31  ;;  %14930 = vmatprep.mubr.msk.f32.mxu1 %vm144_vm1, %v12018_v32  ;;  %v11771_v37 = vld [vmem:[%s20412_s2 + $0x570] sm:$0xff] }
 0x12b   :  { %v12028_v38 = vld [vmem:[%s20412_s2 + $0x5f0] sm:$0xff] }
 0x12c   :  { %v14383_v48 = vpop.f32.mrb[42].mxu0  ;;  %v14577_v49 = vpop.f32.mrb[42].mxu1  ;;  %v1288_v50 = vmax.f32 %v1287_v41, %v14380_v33  ;;  %v2674_v51 = vmax.f32 %v2673_v42, %v14574_v36  ;;  %v11770_v33 = vld [vmem:[%s20412_s2 + $0x568] sm:$0xff] }
 0x12d   :  { %v809_v52 = vpop.f32.mrb[43].mxu0  ;;  %v2195_v53 = vpop.f32.mrb[43].mxu1  ;;  %14737 = vmatmul.mubr.msk.f32.gmra.mrb[148].mxu0 %vm144_vm1, %v11762_v44  ;;  %14931 = vmatmul.mubr.msk.f32.gmra.mrb[148].mxu1 %vm144_vm1, %v12019_v45  ;;  %v12027_v36 = vld [vmem:[%s20412_s2 + $0x5e8] sm:$0xff] }
 0x12e   :  { %v1289_v54 = vmax.f32 %v1288_v50, %v809_v52  ;;  %v2675_v55 = vmax.f32 %v2674_v51, %v2195_v53  ;;  %14739 = vmatprep.mubr.msk.f32.mxu0 %vm144_vm1, %v11763_v46  ;;  %14933 = vmatprep.mubr.msk.f32.mxu1 %vm144_vm1, %v12020_v47  ;;  %v11772_v50 = vld [vmem:[%s20412_s2 + $0x578] sm:$0xff]  ;;  %v11773_v52 = vld [vmem:[%s20412_s2 + $0x900] sm:$0xff] }
 0x12f   :  { %v12029_v51 = vld [vmem:[%s20412_s2 + $0x5f8] sm:$0xff]  ;;  %v12030_v53 = vld [vmem:[%s20412_s2 + $0x980] sm:$0xff] }
 0x130   :  { %v14386_v60 = vpop.f32.mrb[44].mxu0  ;;  %v14580_v61 = vpop.f32.mrb[44].mxu1  ;;  %v1290_v62 = vmax.f32 %v1289_v54, %v14383_v48  ;;  %v2676_v63 = vmax.f32 %v2675_v55, %v14577_v49 }
 0x131   :  { %v819_v0 = vpop.f32.mrb[45].mxu0  ;;  %v2205_v1 = vpop.f32.mrb[45].mxu1  ;;  %14740 = vmatmul.mubr.msk.f32.gmra.mrb[150].mxu0 %vm144_vm1, %v11764_v56  ;;  %14934 = vmatmul.mubr.msk.f32.gmra.mrb[150].mxu1 %vm144_vm1, %v12021_v57 }
 0x132   :  { %v1291_v2 = vmax.f32 %v1290_v62, %v819_v0  ;;  %v2677_v3 = vmax.f32 %v2676_v63, %v2205_v1  ;;  %14742 = vmatprep.mubr.msk.f32.mxu0 %vm144_vm1, %v11765_v58  ;;  %14936 = vmatprep.mubr.msk.f32.mxu1 %vm144_vm1, %v12022_v59 }
 0x134   :  { %v14389_v8 = vpop.f32.mrb[46].mxu0  ;;  %v14583_v9 = vpop.f32.mrb[46].mxu1  ;;  %v1292_v10 = vmax.f32 %v1291_v2, %v14386_v60  ;;  %v2678_v11 = vmax.f32 %v2677_v3, %v14580_v61  ;;  %v11774_v2 = vld [vmem:[%s20412_s2 + $0x908] sm:$0xff] }
 0x135   :  { %v829_v12 = vpop.f32.mrb[47].mxu0  ;;  %v2215_v13 = vpop.f32.mrb[47].mxu1  ;;  %14743 = vmatmul.mubr.msk.f32.gmra.mrb[152].mxu0 %vm144_vm1, %v11766_v4  ;;  %14937 = vmatmul.mubr.msk.f32.gmra.mrb[152].mxu1 %vm144_vm1, %v12023_v5  ;;  %v12031_v3 = vld [vmem:[%s20412_s2 + $0x988] sm:$0xff]  ;;  %v11775_v4 = vld [vmem:[%s20412_s2 + $0x910] sm:$0xff] }
 0x136   :  { %v1293_v14 = vmax.f32 %v1292_v10, %v829_v12  ;;  %v2679_v15 = vmax.f32 %v2678_v11, %v2215_v13  ;;  %14745 = vmatprep.mubr.msk.f32.mxu0 %vm144_vm1, %v11767_v6  ;;  %14939 = vmatprep.mubr.msk.f32.mxu1 %vm144_vm1, %v12024_v7  ;;  %v12032_v5 = vld [vmem:[%s20412_s2 + $0x990] sm:$0xff] }
 0x138   :  { %v1294_v22 = vmax.f32 %v1293_v14, %v14389_v8  ;;  %v2680_v23 = vmax.f32 %v2679_v15, %v14583_v9  ;;  %v14392_v24 = vpop.f32.mrb[48].mxu0  ;;  %v14586_v25 = vpop.f32.mrb[48].mxu1 }
 0x139   :  { %v839_v27 = vpop.f32.mrb[49].mxu0  ;;  %14746 = vmatmul.mubr.msk.f32.gmra.mrb[154].mxu0 %vm144_vm1, %v11768_v16  ;;  %14940 = vmatmul.mubr.msk.f32.gmra.mrb[154].mxu1 %vm144_vm1, %v12025_v17  ;;  %v2225_v28 = vpop.f32.mrb[49].mxu1  ;;  %v11776_v17 = vld [vmem:[%s20412_s2 + $0x918] sm:$0xff] }
 0x13a   :  { %v1295_v29 = vrot.slane %v1294_v22, 4  ;;  %v2681_v30 = vrot.slane %v2680_v23, 4  ;;  %v1301_v31 = vmax.f32 %v839_v27, %v14392_v24  ;;  %v2687_v32 = vmax.f32 %v2225_v28, %v14586_v25  ;;  %14748 = vmatprep.mubr.msk.f32.mxu0 %vm144_vm1, %v11769_v20  ;;  %14942 = vmatprep.mubr.msk.f32.mxu1 %vm144_vm1, %v12026_v21  ;;  %v12033_v20 = vld [vmem:[%s20412_s2 + $0x998] sm:$0xff]  ;;  %v11777_v21 = vld [vmem:[%s20412_s2 + $0x920] sm:$0xff] }
 0x13c   :  { %v1296_v39 = vmax.f32 %v1294_v22, %v1295_v29  ;;  %v2682_v40 = vmax.f32 %v2680_v23, %v2681_v30  ;;  %v14395_v41 = vpop.f32.mrb[50].mxu0  ;;  %v14589_v42 = vpop.f32.mrb[50].mxu1  ;;  %v12034_v22 = vld [vmem:[%s20412_s2 + $0x9a0] sm:$0xff] }
 0x13d   :  { %v849_v44 = vpop.f32.mrb[51].mxu0  ;;  %v2235_v45 = vpop.f32.mrb[51].mxu1  ;;  %14749 = vmatmul.mubr.msk.f32.gmra.mrb[156].mxu0 %vm144_vm1, %v11770_v33  ;;  %14943 = vmatmul.mubr.msk.f32.gmra.mrb[156].mxu1 %vm144_vm1, %v12027_v36  ;;  %v12035_v33 = vld [vmem:[%s20412_s2 + $0x9a8] sm:$0xff]  ;;  %v11779_v36 = vld [vmem:[%s20412_s2 + $0x930] sm:$0xff] }
 0x13e   :  { %v1297_v46 = vrot.slane %v1296_v39, 2  ;;  %v2683_v47 = vrot.slane %v2682_v40, 2  ;;  %v1302_v48 = vmax.f32 %v1301_v31, %v849_v44  ;;  %v2688_v49 = vmax.f32 %v2687_v32, %v2235_v45  ;;  %14751 = vmatprep.mubr.msk.f32.mxu0 %vm144_vm1, %v11771_v37  ;;  %14945 = vmatprep.mubr.msk.f32.mxu1 %vm144_vm1, %v12028_v38  ;;  %v11778_v32 = vld [vmem:[%s20412_s2 + $0x928] sm:$0xff]  ;;  %v12036_v37 = vld [vmem:[%s20412_s2 + $0x9b0] sm:$0xff] }
 0x140   :  { %v1298_v54 = vmax.f32 %v1296_v39, %v1297_v46  ;;  %v2684_v55 = vmax.f32 %v2682_v40, %v2683_v47  ;;  %v14398_v56 = vpop.f32.mrb[52].mxu0  ;;  %v14592_v57 = vpop.f32.mrb[52].mxu1  ;;  %v1303_v58 = vmax.f32 %v1302_v48, %v14395_v41  ;;  %v2689_v59 = vmax.f32 %v2688_v49, %v14589_v42  ;;  %v11780_v47 = vld [vmem:[%s20412_s2 + $0x938] sm:$0xff]  ;;  %v11781_v49 = vld [vmem:[%s20412_s2 + $0x940] sm:$0xff] }
 0x141   :  { %v859_v60 = vpop.f32.mrb[53].mxu0  ;;  %v2245_v61 = vpop.f32.mrb[53].mxu1  ;;  %14752 = vmatmul.mubr.msk.f32.gmra.mrb[158].mxu0 %vm144_vm1, %v11772_v50  ;;  %14946 = vmatmul.mubr.msk.f32.gmra.mrb[158].mxu1 %vm144_vm1, %v12029_v51  ;;  %v12037_v48 = vld [vmem:[%s20412_s2 + $0x9b8] sm:$0xff]  ;;  %v12038_v50 = vld [vmem:[%s20412_s2 + $0x9c0] sm:$0xff] }
 0x142   :  { %v1299_v62 = vrot.slane %v1298_v54, 1  ;;  %v2685_v63 = vrot.slane %v2684_v55, 1  ;;  %v1304_v0 = vmax.f32 %v1303_v58, %v859_v60  ;;  %v2690_v1 = vmax.f32 %v2689_v59, %v2245_v61  ;;  %14754 = vmatprep.mubr.msk.f32.mxu0 %vm144_vm1, %v11773_v52  ;;  %14948 = vmatprep.mubr.msk.f32.mxu1 %vm144_vm1, %v12030_v53  ;;  %v11782_v59 = vld [vmem:[%s20412_s2 + $0x948] sm:$0xff]  ;;  %v11783_v61 = vld [vmem:[%s20412_s2 + $0x950] sm:$0xff] }
 0x143   :  { %v12039_v60 = vld [vmem:[%s20412_s2 + $0x9c8] sm:$0xff] }
 0x144   :  { %v17266_v6 = vmax.f32 %v1298_v54, %v1299_v62  ;;  %v17268_v7 = vmax.f32 %v2684_v55, %v2685_v63  ;;  %v14401_v8 = vpop.f32.mrb[54].mxu0  ;;  %v14595_v9 = vpop.f32.mrb[54].mxu1  ;;  %v1305_v10 = vmax.f32 %v1304_v0, %v14398_v56  ;;  %v2691_v11 = vmax.f32 %v2690_v1, %v14592_v57  ;;  %v12040_v62 = vld [vmem:[%s20412_s2 + $0x9d0] sm:$0xff] }
 0x145   :  { %v869_v12 = vpop.f32.mrb[55].mxu0  ;;  %v2255_v13 = vpop.f32.mrb[55].mxu1  ;;  %14755 = vmatmul.mubr.msk.f32.gmra.mrb[160].mxu0 %vm144_vm1, %v11774_v2  ;;  %14949 = vmatmul.mubr.msk.f32.gmra.mrb[160].mxu1 %vm144_vm1, %v12031_v3 }
 0x146   :  { %v2794_v14 = vmax.f32 %v17266_v6, %v17268_v7  ;;  %v1306_v15 = vmax.f32 %v1305_v10, %v869_v12  ;;  %v2692_v16 = vmax.f32 %v2691_v11, %v2255_v13  ;;  %14757 = vmatprep.mubr.msk.f32.mxu0 %vm144_vm1, %v11775_v4  ;;  %14951 = vmatprep.mubr.msk.f32.mxu1 %vm144_vm1, %v12032_v5  ;;  %v12041_v10 = vld [vmem:[%s20412_s2 + $0x9d8] sm:$0xff]  ;;  %v11785_v11 = vld [vmem:[%s20412_s2 + $0x960] sm:$0xff] }
 0x147   :  { %v12042_v12 = vld [vmem:[%s20412_s2 + $0x9e0] sm:$0xff] }
 0x148   :  { %v14404_v23 = vpop.f32.mrb[56].mxu0  ;;  %v14598_v24 = vpop.f32.mrb[56].mxu1  ;;  %v1307_v25 = vmax.f32 %v1306_v15, %v14401_v8  ;;  %v2693_v27 = vmax.f32 %v2692_v16, %v14595_v9  ;;  %v11784_v9 = vld [vmem:[%s20412_s2 + $0x958] sm:$0xff]  ;;  %v12291_v6 = vld [vmem:[%s20412_s2 + $0xa20] sm:$0xff] }
 0x149   :  { %v879_v28 = vpop.f32.mrb[57].mxu0  ;;  %v2265_v29 = vpop.f32.mrb[57].mxu1  ;;  %14758 = vmatmul.mubr.msk.f32.gmra.mrb[162].mxu0 %vm144_vm1, %v11776_v17  ;;  %14952 = vmatmul.mubr.msk.f32.gmra.mrb[162].mxu1 %vm144_vm1, %v12033_v20  ;;  %v12548_v7 = vld [vmem:[%s20412_s2 + $0xaa0] sm:$0xff] }
 0x14a   :  { %v1308_v30 = vmax.f32 %v1307_v25, %v879_v28  ;;  %v2694_v31 = vmax.f32 %v2693_v27, %v2265_v29  ;;  %14760 = vmatprep.mubr.msk.f32.mxu0 %vm144_vm1, %v11777_v21  ;;  %14954 = vmatprep.mubr.msk.f32.mxu1 %vm144_vm1, %v12034_v22  ;;  %v11786_v27 = vld [vmem:[%s20412_s2 + $0x968] sm:$0xff]  ;;  %v11787_v29 = vld [vmem:[%s20412_s2 + $0x970] sm:$0xff] }
 0x14b   :  { %v12043_v28 = vld [vmem:[%s20412_s2 + $0x9e8] sm:$0xff] }
 0x14c   :  { %v14407_v38 = vpop.f32.mrb[58].mxu0  ;;  %v14601_v39 = vpop.f32.mrb[58].mxu1  ;;  %v1309_v40 = vmax.f32 %v1308_v30, %v14404_v23  ;;  %v2695_v41 = vmax.f32 %v2694_v31, %v14598_v24  ;;  %v12044_v30 = vld [vmem:[%s20412_s2 + $0x9f0] sm:$0xff] }
 0x14d   :  { %v889_v42 = vpop.f32.mrb[59].mxu0  ;;  %v2275_v44 = vpop.f32.mrb[59].mxu1  ;;  %14761 = vmatmul.mubr.msk.f32.gmra.mrb[164].mxu0 %vm144_vm1, %v11778_v32  ;;  %14955 = vmatmul.mubr.msk.f32.gmra.mrb[164].mxu1 %vm144_vm1, %v12035_v33 }
 0x14e   :  { %v1310_v45 = vmax.f32 %v1309_v40, %v889_v42  ;;  %v2696_v46 = vmax.f32 %v2695_v41, %v2275_v44  ;;  %14763 = vmatprep.mubr.msk.f32.mxu0 %vm144_vm1, %v11779_v36  ;;  %14957 = vmatprep.mubr.msk.f32.mxu1 %vm144_vm1, %v12036_v37  ;;  %v11788_v44 = vld [vmem:[%s20412_s2 + $0x978] sm:$0xff] }
 0x150   :  { %v14410_v51 = vpop.f32.mrb[60].mxu0  ;;  %v14604_v52 = vpop.f32.mrb[60].mxu1  ;;  %v1311_v53 = vmax.f32 %v1310_v45, %v14407_v38  ;;  %v2697_v54 = vmax.f32 %v2696_v46, %v14601_v39  ;;  %v12045_v45 = vld [vmem:[%s20412_s2 + $0x9f8] sm:$0xff]  ;;  %v11789_v46 = vld [vmem:[%s20412_s2 + $0xd00] sm:$0xff] }
 0x151   :  { %v899_v55 = vpop.f32.mrb[61].mxu0  ;;  %v2285_v56 = vpop.f32.mrb[61].mxu1  ;;  %14764 = vmatmul.mubr.msk.f32.gmra.mrb[166].mxu0 %vm144_vm1, %v11780_v47  ;;  %14958 = vmatmul.mubr.msk.f32.gmra.mrb[166].mxu1 %vm144_vm1, %v12037_v48  ;;  %v12046_v47 = vld [vmem:[%s20412_s2 + $0xd80] sm:$0xff] }
 0x152   :  { %v1312_v57 = vmax.f32 %v1311_v53, %v899_v55  ;;  %v2698_v58 = vmax.f32 %v2697_v54, %v2285_v56  ;;  %14766 = vmatprep.mubr.msk.f32.mxu0 %vm144_vm1, %v11781_v49  ;;  %14960 = vmatprep.mubr.msk.f32.mxu1 %vm144_vm1, %v12038_v50 }
 0x154   :  { %v14413_v63 = vpop.f32.mrb[62].mxu0  ;;  %v14607_v0 = vpop.f32.mrb[62].mxu1  ;;  %v1313_v1 = vmax.f32 %v1312_v57, %v14410_v51  ;;  %v2699_v2 = vmax.f32 %v2698_v58, %v14604_v52 }
 0x155   :  { %v909_v3 = vpop.f32.mrb[63].mxu0  ;;  %v2295_v4 = vpop.f32.mrb[63].mxu1  ;;  %14767 = vmatmul.mubr.msk.f32.gmra.mrb[168].mxu0 %vm144_vm1, %v11782_v59  ;;  %14961 = vmatmul.mubr.msk.f32.gmra.mrb[168].mxu1 %vm144_vm1, %v12039_v60  ;;  %v11790_v60 = vld [vmem:[%s20412_s2 + $0xd08] sm:$0xff] }
 0x156   :  { %v1314_v5 = vmax.f32 %v1313_v1, %v909_v3  ;;  %v2700_v8 = vmax.f32 %v2699_v2, %v2295_v4  ;;  %14769 = vmatprep.mubr.msk.f32.mxu0 %vm144_vm1, %v11783_v61  ;;  %14963 = vmatprep.mubr.msk.f32.mxu1 %vm144_vm1, %v12040_v62  ;;  %v12047_v61 = vld [vmem:[%s20412_s2 + $0xd88] sm:$0xff]  ;;  %v11791_v62 = vld [vmem:[%s20412_s2 + $0xd10] sm:$0xff] }
 0x158   :  { %v1315_v13 = vmax.f32 %v1314_v5, %v14413_v63  ;;  %v2701_v15 = vmax.f32 %v2700_v8, %v14607_v0  ;;  %v14416_v16 = vpop.f32.mrb[64].mxu0  ;;  %v14610_v17 = vpop.f32.mrb[64].mxu1  ;;  %v12048_v63 = vld [vmem:[%s20412_s2 + $0xd90] sm:$0xff] }
 0x159   :  { %v919_v20 = vpop.f32.mrb[65].mxu0  ;;  %14770 = vmatmul.mubr.msk.f32.gmra.mrb[170].mxu0 %vm144_vm1, %v11784_v9  ;;  %14964 = vmatmul.mubr.msk.f32.gmra.mrb[170].mxu1 %vm144_vm1, %v12041_v10  ;;  %v2305_v21 = vpop.f32.mrb[65].mxu1 }
 0x15a   :  { %v1316_v22 = vrot.slane %v1315_v13, 4  ;;  %v2702_v23 = vrot.slane %v2701_v15, 4  ;;  %v1322_v24 = vmax.f32 %v919_v20, %v14416_v16  ;;  %v2708_v25 = vmax.f32 %v2305_v21, %v14610_v17  ;;  %14772 = vmatprep.mubr.msk.f32.mxu0 %vm144_vm1, %v11785_v11  ;;  %14966 = vmatprep.mubr.msk.f32.mxu1 %vm144_vm1, %v12042_v12  ;;  %v11793_v16 = vld [vmem:[%s20412_s2 + $0xd20] sm:$0xff] }
 0x15b   :  { %v12050_v17 = vld [vmem:[%s20412_s2 + $0xda0] sm:$0xff] }
 0x15c   :  { %v1317_v31 = vmax.f32 %v1315_v13, %v1316_v22  ;;  %v2703_v32 = vmax.f32 %v2701_v15, %v2702_v23  ;;  %v14419_v33 = vpop.f32.mrb[66].mxu0  ;;  %v14613_v36 = vpop.f32.mrb[66].mxu1  ;;  %v11792_v13 = vld [vmem:[%s20412_s2 + $0xd18] sm:$0xff] }
 0x15d   :  { %v929_v37 = vpop.f32.mrb[67].mxu0  ;;  %v2315_v38 = vpop.f32.mrb[67].mxu1  ;;  %14773 = vmatmul.mubr.msk.f32.gmra.mrb[172].mxu0 %vm144_vm1, %v11786_v27  ;;  %14967 = vmatmul.mubr.msk.f32.gmra.mrb[172].mxu1 %vm144_vm1, %v12043_v28  ;;  %v12049_v15 = vld [vmem:[%s20412_s2 + $0xd98] sm:$0xff] }
 0x15e   :  { %v1318_v39 = vrot.slane %v1317_v31, 2  ;;  %v2704_v40 = vrot.slane %v2703_v32, 2  ;;  %v1323_v41 = vmax.f32 %v1322_v24, %v929_v37  ;;  %v2709_v42 = vmax.f32 %v2708_v25, %v2315_v38  ;;  %14775 = vmatprep.mubr.msk.f32.mxu0 %vm144_vm1, %v11787_v29  ;;  %14969 = vmatprep.mubr.msk.f32.mxu1 %vm144_vm1, %v12044_v30  ;;  %v11794_v29 = vld [vmem:[%s20412_s2 + $0xd28] sm:$0xff] }
 0x15f   :  { %v12051_v30 = vld [vmem:[%s20412_s2 + $0xda8] sm:$0xff] }
 0x160   :  { %v1319_v48 = vmax.f32 %v1317_v31, %v1318_v39  ;;  %v2705_v49 = vmax.f32 %v2703_v32, %v2704_v40  ;;  %v14422_v50 = vpop.f32.mrb[68].mxu0  ;;  %v14616_v51 = vpop.f32.mrb[68].mxu1  ;;  %v1324_v52 = vmax.f32 %v1323_v41, %v14419_v33  ;;  %v2710_v53 = vmax.f32 %v2709_v42, %v14613_v36  ;;  %v11795_v31 = vld [vmem:[%s20412_s2 + $0xd30] sm:$0xff] }
 0x161   :  { %v939_v54 = vpop.f32.mrb[69].mxu0  ;;  %v2325_v55 = vpop.f32.mrb[69].mxu1  ;;  %14776 = vmatmul.mubr.msk.f32.gmra.mrb[174].mxu0 %vm144_vm1, %v11788_v44  ;;  %14970 = vmatmul.mubr.msk.f32.gmra.mrb[174].mxu1 %vm144_vm1, %v12045_v45  ;;  %v12052_v32 = vld [vmem:[%s20412_s2 + $0xdb0] sm:$0xff]  ;;  %v11796_v44 = vld [vmem:[%s20412_s2 + $0xd38] sm:$0xff] }
 0x162   :  { %v1320_v56 = vrot.slane %v1319_v48, 1  ;;  %v2706_v57 = vrot.slane %v2705_v49, 1  ;;  %v1325_v58 = vmax.f32 %v1324_v52, %v939_v54  ;;  %v2711_v59 = vmax.f32 %v2710_v53, %v2325_v55  ;;  %14778 = vmatprep.mubr.msk.f32.mxu0 %vm144_vm1, %v11789_v46  ;;  %14972 = vmatprep.mubr.msk.f32.mxu1 %vm144_vm1, %v12046_v47  ;;  %v12053_v45 = vld [vmem:[%s20412_s2 + $0xdb8] sm:$0xff]  ;;  %v11797_v46 = vld [vmem:[%s20412_s2 + $0xd40] sm:$0xff] }
 0x163   :  { %v12054_v47 = vld [vmem:[%s20412_s2 + $0xdc0] sm:$0xff] }
 0x164   :  { %v17400_v0 = vmax.f32 %v1319_v48, %v1320_v56  ;;  %v17402_v1 = vmax.f32 %v2705_v49, %v2706_v57  ;;  %v14425_v2 = vpop.f32.mrb[70].mxu0  ;;  %v14619_v3 = vpop.f32.mrb[70].mxu1  ;;  %v1326_v4 = vmax.f32 %v1325_v58, %v14422_v50  ;;  %v2712_v5 = vmax.f32 %v2711_v59, %v14616_v51  ;;  %v11798_v56 = vld [vmem:[%s20412_s2 + $0xd48] sm:$0xff]  ;;  %v11799_v58 = vld [vmem:[%s20412_s2 + $0xd50] sm:$0xff] }
 0x165   :  { %v949_v8 = vpop.f32.mrb[71].mxu0  ;;  %v2335_v9 = vpop.f32.mrb[71].mxu1  ;;  %14779 = vmatmul.mubr.msk.f32.gmra.mrb[176].mxu0 %vm144_vm1, %v11790_v60  ;;  %14973 = vmatmul.mubr.msk.f32.gmra.mrb[176].mxu1 %vm144_vm1, %v12047_v61  ;;  %v12055_v57 = vld [vmem:[%s20412_s2 + $0xdc8] sm:$0xff]  ;;  %v12056_v59 = vld [vmem:[%s20412_s2 + $0xdd0] sm:$0xff] }
 0x166   :  { %v2795_v10 = vmax.f32 %v17400_v0, %v17402_v1  ;;  %v1327_v11 = vmax.f32 %v1326_v4, %v949_v8  ;;  %v2713_v12 = vmax.f32 %v2712_v5, %v2335_v9  ;;  %14781 = vmatprep.mubr.msk.f32.mxu0 %vm144_vm1, %v11791_v62  ;;  %14975 = vmatprep.mubr.msk.f32.mxu1 %vm144_vm1, %v12048_v63  ;;  %v11800_v8 = vld [vmem:[%s20412_s2 + $0xd58] sm:$0xff]  ;;  %v12307_v0 = vld [vmem:[%s20412_s2 + $0xe20] sm:$0xff] }
 0x167   :  { %v12057_v9 = vld [vmem:[%s20412_s2 + $0xdd8] sm:$0xff]  ;;  %v12564_v1 = vld [vmem:[%s20412_s2 + $0xea0] sm:$0xff] }
 0x168   :  { %v14428_v20 = vpop.f32.mrb[72].mxu0  ;;  %v14622_v21 = vpop.f32.mrb[72].mxu1  ;;  %v1328_v22 = vmax.f32 %v1327_v11, %v14425_v2  ;;  %v2714_v23 = vmax.f32 %v2713_v12, %v14619_v3  ;;  %v11801_v11 = vld [vmem:[%s20412_s2 + $0xd60] sm:$0xff] }
 0x169   :  { %v959_v24 = vpop.f32.mrb[73].mxu0  ;;  %v2345_v25 = vpop.f32.mrb[73].mxu1  ;;  %14782 = vmatmul.mubr.msk.f32.gmra.mrb[178].mxu0 %vm144_vm1, %v11792_v13  ;;  %14976 = vmatmul.mubr.msk.f32.gmra.mrb[178].mxu1 %vm144_vm1, %v12049_v15  ;;  %v12058_v12 = vld [vmem:[%s20412_s2 + $0xde0] sm:$0xff] }
 0x16a   :  { %v1329_v27 = vmax.f32 %v1328_v22, %v959_v24  ;;  %v2715_v28 = vmax.f32 %v2714_v23, %v2345_v25  ;;  %14784 = vmatprep.mubr.msk.f32.mxu0 %vm144_vm1, %v11793_v16  ;;  %14978 = vmatprep.mubr.msk.f32.mxu1 %vm144_vm1, %v12050_v17 }
 0x16c   :  { %v14431_v33 = vpop.f32.mrb[74].mxu0  ;;  %v14625_v36 = vpop.f32.mrb[74].mxu1  ;;  %v1330_v37 = vmax.f32 %v1329_v27, %v14428_v20  ;;  %v2716_v38 = vmax.f32 %v2715_v28, %v14622_v21  ;;  %v11802_v27 = vld [vmem:[%s20412_s2 + $0xd68] sm:$0xff] }
 0x16d   :  { %v969_v39 = vpop.f32.mrb[75].mxu0  ;;  %v2355_v40 = vpop.f32.mrb[75].mxu1  ;;  %14785 = vmatmul.mubr.msk.f32.gmra.mrb[180].mxu0 %vm144_vm1, %v11794_v29  ;;  %14979 = vmatmul.mubr.msk.f32.gmra.mrb[180].mxu1 %vm144_vm1, %v12051_v30  ;;  %v12059_v28 = vld [vmem:[%s20412_s2 + $0xde8] sm:$0xff]  ;;  %v11803_v29 = vld [vmem:[%s20412_s2 + $0xd70] sm:$0xff] }
 0x16e   :  { %v1331_v41 = vmax.f32 %v1330_v37, %v969_v39  ;;  %v2717_v42 = vmax.f32 %v2716_v38, %v2355_v40  ;;  %14787 = vmatprep.mubr.msk.f32.mxu0 %vm144_vm1, %v11795_v31  ;;  %14981 = vmatprep.mubr.msk.f32.mxu1 %vm144_vm1, %v12052_v32  ;;  %v12060_v30 = vld [vmem:[%s20412_s2 + $0xdf0] sm:$0xff] }
 0x170   :  { %v14434_v48 = vpop.f32.mrb[76].mxu0  ;;  %v14628_v49 = vpop.f32.mrb[76].mxu1  ;;  %v1332_v50 = vmax.f32 %v1331_v41, %v14431_v33  ;;  %v2718_v51 = vmax.f32 %v2717_v42, %v14625_v36 }
 0x171   :  { %v979_v52 = vpop.f32.mrb[77].mxu0  ;;  %v2365_v53 = vpop.f32.mrb[77].mxu1  ;;  %14788 = vmatmul.mubr.msk.f32.gmra.mrb[182].mxu0 %vm144_vm1, %v11796_v44  ;;  %14982 = vmatmul.mubr.msk.f32.gmra.mrb[182].mxu1 %vm144_vm1, %v12053_v45  ;;  %v11804_v44 = vld [vmem:[%s20412_s2 + $0xd78] sm:$0xff] }
 0x172   :  { %v1333_v54 = vmax.f32 %v1332_v50, %v979_v52  ;;  %v2719_v55 = vmax.f32 %v2718_v51, %v2365_v53  ;;  %14790 = vmatprep.mubr.msk.f32.mxu0 %vm144_vm1, %v11797_v46  ;;  %14984 = vmatprep.mubr.msk.f32.mxu1 %vm144_vm1, %v12054_v47  ;;  %v12061_v45 = vld [vmem:[%s20412_s2 + $0xdf8] sm:$0xff]  ;;  %v11805_v46 = vld [vmem:[%s20412_s2 + $0x1100] sm:$0xff] }
 0x173   :  { %v12062_v47 = vld [vmem:[%s20412_s2 + $0x1180] sm:$0xff] }
 0x174   :  { %v14437_v60 = vpop.f32.mrb[78].mxu0  ;;  %v14631_v61 = vpop.f32.mrb[78].mxu1  ;;  %v1334_v62 = vmax.f32 %v1333_v54, %v14434_v48  ;;  %v2720_v63 = vmax.f32 %v2719_v55, %v14628_v49 }
 0x175   :  { %v989_v2 = vpop.f32.mrb[79].mxu0  ;;  %v2375_v3 = vpop.f32.mrb[79].mxu1  ;;  %14791 = vmatmul.mubr.msk.f32.gmra.mrb[184].mxu0 %vm144_vm1, %v11798_v56  ;;  %14985 = vmatmul.mubr.msk.f32.gmra.mrb[184].mxu1 %vm144_vm1, %v12055_v57 }
 0x176   :  { %v1335_v4 = vmax.f32 %v1334_v62, %v989_v2  ;;  %v2721_v5 = vmax.f32 %v2720_v63, %v2375_v3  ;;  %14793 = vmatprep.mubr.msk.f32.mxu0 %vm144_vm1, %v11799_v58  ;;  %14987 = vmatprep.mubr.msk.f32.mxu1 %vm144_vm1, %v12056_v59  ;;  %v11807_v62 = vld [vmem:[%s20412_s2 + $0x1110] sm:$0xff] }
 0x177   :  { %v12064_v63 = vld [vmem:[%s20412_s2 + $0x1190] sm:$0xff] }
 0x178   :  { %v1336_v13 = vmax.f32 %v1335_v4, %v14437_v60  ;;  %v2722_v15 = vmax.f32 %v2721_v5, %v14631_v61  ;;  %v14440_v16 = vpop.f32.mrb[80].mxu0  ;;  %v14634_v17 = vpop.f32.mrb[80].mxu1  ;;  %v11806_v60 = vld [vmem:[%s20412_s2 + $0x1108] sm:$0xff] }
 0x179   :  { %v999_v20 = vpop.f32.mrb[81].mxu0  ;;  %14794 = vmatmul.mubr.msk.f32.gmra.mrb[186].mxu0 %vm144_vm1, %v11800_v8  ;;  %14988 = vmatmul.mubr.msk.f32.gmra.mrb[186].mxu1 %vm144_vm1, %v12057_v9  ;;  %v2385_v21 = vpop.f32.mrb[81].mxu1  ;;  %v12063_v61 = vld [vmem:[%s20412_s2 + $0x1188] sm:$0xff] }
 0x17a   :  { %v1337_v22 = vrot.slane %v1336_v13, 4  ;;  %v2723_v23 = vrot.slane %v2722_v15, 4  ;;  %v1343_v24 = vmax.f32 %v999_v20, %v14440_v16  ;;  %v2729_v25 = vmax.f32 %v2385_v21, %v14634_v17  ;;  %14796 = vmatprep.mubr.msk.f32.mxu0 %vm144_vm1, %v11801_v11  ;;  %14990 = vmatprep.mubr.msk.f32.mxu1 %vm144_vm1, %v12058_v12  ;;  %v11808_v17 = vld [vmem:[%s20412_s2 + $0x1118] sm:$0xff]  ;;  %v11809_v21 = vld [vmem:[%s20412_s2 + $0x1120] sm:$0xff] }
 0x17b   :  { %v12065_v20 = vld [vmem:[%s20412_s2 + $0x1198] sm:$0xff] }
 0x17c   :  { %v1338_v31 = vmax.f32 %v1336_v13, %v1337_v22  ;;  %v2724_v32 = vmax.f32 %v2722_v15, %v2723_v23  ;;  %v14443_v33 = vpop.f32.mrb[82].mxu0  ;;  %v14637_v36 = vpop.f32.mrb[82].mxu1  ;;  %v12066_v22 = vld [vmem:[%s20412_s2 + $0x11a0] sm:$0xff] }
 0x17d   :  { %v1009_v37 = vpop.f32.mrb[83].mxu0  ;;  %v2395_v38 = vpop.f32.mrb[83].mxu1  ;;  %14797 = vmatmul.mubr.msk.f32.gmra.mrb[188].mxu0 %vm144_vm1, %v11802_v27  ;;  %14991 = vmatmul.mubr.msk.f32.gmra.mrb[188].mxu1 %vm144_vm1, %v12059_v28 }
 0x17e   :  { %v1339_v39 = vrot.slane %v1338_v31, 2  ;;  %v2725_v40 = vrot.slane %v2724_v32, 2  ;;  %v1344_v41 = vmax.f32 %v1343_v24, %v1009_v37  ;;  %v2730_v42 = vmax.f32 %v2729_v25, %v2395_v38  ;;  %14799 = vmatprep.mubr.msk.f32.mxu0 %vm144_vm1, %v11803_v29  ;;  %14993 = vmatprep.mubr.msk.f32.mxu1 %vm144_vm1, %v12060_v30  ;;  %v12068_v37 = vld [vmem:[%s20412_s2 + $0x11b0] sm:$0xff] }
 0x180   :  { %v1340_v48 = vmax.f32 %v1338_v31, %v1339_v39  ;;  %v2726_v49 = vmax.f32 %v2724_v32, %v2725_v40  ;;  %v14446_v50 = vpop.f32.mrb[84].mxu0  ;;  %v14640_v51 = vpop.f32.mrb[84].mxu1  ;;  %v1345_v52 = vmax.f32 %v1344_v41, %v14443_v33  ;;  %v2731_v53 = vmax.f32 %v2730_v42, %v14637_v36  ;;  %v11810_v32 = vld [vmem:[%s20412_s2 + $0x1128] sm:$0xff]  ;;  %v11811_v36 = vld [vmem:[%s20412_s2 + $0x1130] sm:$0xff] }
 0x181   :  { %v1019_v54 = vpop.f32.mrb[85].mxu0  ;;  %v2405_v55 = vpop.f32.mrb[85].mxu1  ;;  %14800 = vmatmul.mubr.msk.f32.gmra.mrb[190].mxu0 %vm144_vm1, %v11804_v44  ;;  %14994 = vmatmul.mubr.msk.f32.gmra.mrb[190].mxu1 %vm144_vm1, %v12061_v45  ;;  %v12067_v33 = vld [vmem:[%s20412_s2 + $0x11a8] sm:$0xff] }
 0x182   :  { %v1341_v56 = vrot.slane %v1340_v48, 1  ;;  %v2727_v57 = vrot.slane %v2726_v49, 1  ;;  %v1346_v58 = vmax.f32 %v1345_v52, %v1019_v54  ;;  %v2732_v59 = vmax.f32 %v2731_v53, %v2405_v55  ;;  %14802 = vmatprep.mubr.msk.f32.mxu0 %vm144_vm1, %v11805_v46  ;;  %14996 = vmatprep.mubr.msk.f32.mxu1 %vm144_vm1, %v12062_v47  ;;  %v11812_v47 = vld [vmem:[%s20412_s2 + $0x1138] sm:$0xff] }
 0x184   :  { %v17534_v2 = vmax.f32 %v1340_v48, %v1341_v56  ;;  %v17536_v3 = vmax.f32 %v2726_v49, %v2727_v57  ;;  %v14449_v4 = vpop.f32.mrb[86].mxu0  ;;  %v14643_v5 = vpop.f32.mrb[86].mxu1  ;;  %v1347_v8 = vmax.f32 %v1346_v58, %v14446_v50  ;;  %v2733_v9 = vmax.f32 %v2732_v59, %v14640_v51  ;;  %v12069_v48 = vld [vmem:[%s20412_s2 + $0x11b8] sm:$0xff]  ;;  %v11813_v49 = vld [vmem:[%s20412_s2 + $0x1140] sm:$0xff]  ;;  %v11814_v59 = vld [vmem:[%s20412_s2 + $0x1148] sm:$0xff] }
 0x185   :  { %v1029_v11 = vpop.f32.mrb[87].mxu0  ;;  %v2415_v12 = vpop.f32.mrb[87].mxu1  ;;  %14803 = vmatmul.mubr.msk.f32.gmra.mrb[192].mxu0 %vm144_vm1, %v11806_v60  ;;  %14997 = vmatmul.mubr.msk.f32.gmra.mrb[192].mxu1 %vm144_vm1, %v12063_v61  ;;  %v12070_v50 = vld [vmem:[%s20412_s2 + $0x11c0] sm:$0xff]  ;;  %v12071_v60 = vld [vmem:[%s20412_s2 + $0x11c8] sm:$0xff]  ;;  %v11815_v61 = vld [vmem:[%s20412_s2 + $0x1150] sm:$0xff] }
 0x186   :  { %v2796_v13 = vmax.f32 %v17534_v2, %v17536_v3  ;;  %v1348_v15 = vmax.f32 %v1347_v8, %v1029_v11  ;;  %v2734_v16 = vmax.f32 %v2733_v9, %v2415_v12  ;;  %14805 = vmatprep.mubr.msk.f32.mxu0 %vm144_vm1, %v11807_v62  ;;  %14999 = vmatprep.mubr.msk.f32.mxu1 %vm144_vm1, %v12064_v63  ;;  %v12072_v62 = vld [vmem:[%s20412_s2 + $0x11d0] sm:$0xff]  ;;  %v12323_v2 = vld [vmem:[%s20412_s2 + $0x1220] sm:$0xff] }
 0x187   :  { %v12580_v3 = vld [vmem:[%s20412_s2 + $0x12a0] sm:$0xff] }
 0x188   :  { %v14452_v23 = vpop.f32.mrb[88].mxu0  ;;  %v14646_v24 = vpop.f32.mrb[88].mxu1  ;;  %v1349_v25 = vmax.f32 %v1348_v15, %v14449_v4  ;;  %v2735_v27 = vmax.f32 %v2734_v16, %v14643_v5  ;;  %v11816_v16 = vld [vmem:[%s20412_s2 + $0x1158] sm:$0xff] }
 0x189   :  { %v1039_v28 = vpop.f32.mrb[89].mxu0  ;;  %v2425_v29 = vpop.f32.mrb[89].mxu1  ;;  %14806 = vmatmul.mubr.msk.f32.gmra.mrb[194].mxu0 %vm144_vm1, %v11808_v17  ;;  %15000 = vmatmul.mubr.msk.f32.gmra.mrb[194].mxu1 %vm144_vm1, %v12065_v20  ;;  %v12073_v17 = vld [vmem:[%s20412_s2 + $0x11d8] sm:$0xff]  ;;  %v11817_v20 = vld [vmem:[%s20412_s2 + $0x1160] sm:$0xff] }
 0x18a   :  { %v1350_v30 = vmax.f32 %v1349_v25, %v1039_v28  ;;  %v2736_v31 = vmax.f32 %v2735_v27, %v2425_v29  ;;  %14808 = vmatprep.mubr.msk.f32.mxu0 %vm144_vm1, %v11809_v21  ;;  %15002 = vmatprep.mubr.msk.f32.mxu1 %vm144_vm1, %v12066_v22  ;;  %v12074_v21 = vld [vmem:[%s20412_s2 + $0x11e0] sm:$0xff] }
 0x18c   :  { %v14455_v38 = vpop.f32.mrb[90].mxu0  ;;  %v14649_v39 = vpop.f32.mrb[90].mxu1  ;;  %v1351_v40 = vmax.f32 %v1350_v30, %v14452_v23  ;;  %v2737_v41 = vmax.f32 %v2736_v31, %v14646_v24 }
 0x18d   :  { %v1049_v42 = vpop.f32.mrb[91].mxu0  ;;  %v2435_v44 = vpop.f32.mrb[91].mxu1  ;;  %14809 = vmatmul.mubr.msk.f32.gmra.mrb[196].mxu0 %vm144_vm1, %v11810_v32  ;;  %15003 = vmatmul.mubr.msk.f32.gmra.mrb[196].mxu1 %vm144_vm1, %v12067_v33  ;;  %v11818_v33 = vld [vmem:[%s20412_s2 + $0x1168] sm:$0xff] }
 0x18e   :  { %v1352_v45 = vmax.f32 %v1351_v40, %v1049_v42  ;;  %v2738_v46 = vmax.f32 %v2737_v41, %v2435_v44  ;;  %14811 = vmatprep.mubr.msk.f32.mxu0 %vm144_vm1, %v11811_v36  ;;  %15005 = vmatprep.mubr.msk.f32.mxu1 %vm144_vm1, %v12068_v37  ;;  %v12075_v36 = vld [vmem:[%s20412_s2 + $0x11e8] sm:$0xff]  ;;  %v11819_v37 = vld [vmem:[%s20412_s2 + $0x1170] sm:$0xff] }
 0x190   :  { %v14458_v51 = vpop.f32.mrb[92].mxu0  ;;  %v14652_v52 = vpop.f32.mrb[92].mxu1  ;;  %v1353_v53 = vmax.f32 %v1352_v45, %v14455_v38  ;;  %v2739_v54 = vmax.f32 %v2738_v46, %v14649_v39  ;;  %v12076_v38 = vld [vmem:[%s20412_s2 + $0x11f0] sm:$0xff] }
 0x191   :  { %v1059_v55 = vpop.f32.mrb[93].mxu0  ;;  %v2445_v56 = vpop.f32.mrb[93].mxu1  ;;  %14812 = vmatmul.mubr.msk.f32.gmra.mrb[198].mxu0 %vm144_vm1, %v11812_v47  ;;  %15006 = vmatmul.mubr.msk.f32.gmra.mrb[198].mxu1 %vm144_vm1, %v12069_v48 }
 0x192   :  { %v1354_v57 = vmax.f32 %v1353_v53, %v1059_v55  ;;  %v2740_v58 = vmax.f32 %v2739_v54, %v2445_v56  ;;  %14814 = vmatprep.mubr.msk.f32.mxu0 %vm144_vm1, %v11813_v49  ;;  %15008 = vmatprep.mubr.msk.f32.mxu1 %vm144_vm1, %v12070_v50  ;;  %v11820_v50 = vld [vmem:[%s20412_s2 + $0x1178] sm:$0xff]  ;;  %v12078_v53 = vld [vmem:[%s20412_s2 + $0x1580] sm:$0xff] }
 0x194   :  { %v14461_v63 = vpop.f32.mrb[94].mxu0  ;;  %v14655_v4 = vpop.f32.mrb[94].mxu1  ;;  %v1355_v5 = vmax.f32 %v1354_v57, %v14458_v51  ;;  %v2741_v8 = vmax.f32 %v2740_v58, %v14652_v52  ;;  %v12077_v51 = vld [vmem:[%s20412_s2 + $0x11f8] sm:$0xff]  ;;  %v11821_v52 = vld [vmem:[%s20412_s2 + $0x1500] sm:$0xff] }
 0x195   :  { %v1069_v9 = vpop.f32.mrb[95].mxu0  ;;  %v2455_v11 = vpop.f32.mrb[95].mxu1  ;;  %14815 = vmatmul.mubr.msk.f32.gmra.mrb[200].mxu0 %vm144_vm1, %v11814_v59  ;;  %15009 = vmatmul.mubr.msk.f32.gmra.mrb[200].mxu1 %vm144_vm1, %v12071_v60 }
 0x196   :  { %v1356_v12 = vmax.f32 %v1355_v5, %v1069_v9  ;;  %v2742_v15 = vmax.f32 %v2741_v8, %v2455_v11  ;;  %14817 = vmatprep.mubr.msk.f32.mxu0 %vm144_vm1, %v11815_v61  ;;  %15011 = vmatprep.mubr.msk.f32.mxu1 %vm144_vm1, %v12072_v62  ;;  %v11822_v8 = vld [vmem:[%s20412_s2 + $0x1508] sm:$0xff]  ;;  %v11823_v11 = vld [vmem:[%s20412_s2 + $0x1510] sm:$0xff] }
 0x197   :  { %v12079_v9 = vld [vmem:[%s20412_s2 + $0x1588] sm:$0xff] }
 0x198   :  { %v1357_v22 = vmax.f32 %v1356_v12, %v14461_v63  ;;  %v2743_v23 = vmax.f32 %v2742_v15, %v14655_v4  ;;  %v14464_v24 = vpop.f32.mrb[96].mxu0  ;;  %v14658_v25 = vpop.f32.mrb[96].mxu1  ;;  %v12080_v12 = vld [vmem:[%s20412_s2 + $0x1590] sm:$0xff] }
 0x199   :  { %v1079_v27 = vpop.f32.mrb[97].mxu0  ;;  %14818 = vmatmul.mubr.msk.f32.gmra.mrb[202].mxu0 %vm144_vm1, %v11816_v16  ;;  %15012 = vmatmul.mubr.msk.f32.gmra.mrb[202].mxu1 %vm144_vm1, %v12073_v17  ;;  %v2465_v28 = vpop.f32.mrb[97].mxu1 }
 0x19a   :  { %v1358_v29 = vrot.slane %v1357_v22, 4  ;;  %v2744_v30 = vrot.slane %v2743_v23, 4  ;;  %v1364_v31 = vmax.f32 %v1079_v27, %v14464_v24  ;;  %v2750_v32 = vmax.f32 %v2465_v28, %v14658_v25  ;;  %14820 = vmatprep.mubr.msk.f32.mxu0 %vm144_vm1, %v11817_v20  ;;  %15014 = vmatprep.mubr.msk.f32.mxu1 %vm144_vm1, %v12074_v21 }
 0x19c   :  { %v1359_v39 = vmax.f32 %v1357_v22, %v1358_v29  ;;  %v2745_v40 = vmax.f32 %v2743_v23, %v2744_v30  ;;  %v14467_v41 = vpop.f32.mrb[98].mxu0  ;;  %v14661_v42 = vpop.f32.mrb[98].mxu1  ;;  %v11824_v29 = vld [vmem:[%s20412_s2 + $0x1518] sm:$0xff] }
 0x19d   :  { %v1089_v44 = vpop.f32.mrb[99].mxu0  ;;  %v2475_v45 = vpop.f32.mrb[99].mxu1  ;;  %14821 = vmatmul.mubr.msk.f32.gmra.mrb[204].mxu0 %vm144_vm1, %v11818_v33  ;;  %15015 = vmatmul.mubr.msk.f32.gmra.mrb[204].mxu1 %vm144_vm1, %v12075_v36  ;;  %v12081_v30 = vld [vmem:[%s20412_s2 + $0x1598] sm:$0xff] }
 0x19e   :  { %v1360_v46 = vrot.slane %v1359_v39, 2  ;;  %v2746_v47 = vrot.slane %v2745_v40, 2  ;;  %v1365_v48 = vmax.f32 %v1364_v31, %v1089_v44  ;;  %v2751_v49 = vmax.f32 %v2750_v32, %v2475_v45  ;;  %14823 = vmatprep.mubr.msk.f32.mxu0 %vm144_vm1, %v11819_v37  ;;  %15017 = vmatprep.mubr.msk.f32.mxu1 %vm144_vm1, %v12076_v38  ;;  %v11825_v31 = vld [vmem:[%s20412_s2 + $0x1520] sm:$0xff]  ;;  %v11826_v44 = vld [vmem:[%s20412_s2 + $0x1528] sm:$0xff] }
 0x19f   :  { %v12082_v32 = vld [vmem:[%s20412_s2 + $0x15a0] sm:$0xff]  ;;  %v12083_v45 = vld [vmem:[%s20412_s2 + $0x15a8] sm:$0xff] }
 0x1a0   :  { %v1361_v54 = vmax.f32 %v1359_v39, %v1360_v46  ;;  %v2747_v55 = vmax.f32 %v2745_v40, %v2746_v47  ;;  %v14470_v56 = vpop.f32.mrb[100].mxu0  ;;  %v14664_v57 = vpop.f32.mrb[100].mxu1  ;;  %v1366_v58 = vmax.f32 %v1365_v48, %v14467_v41  ;;  %v2752_v59 = vmax.f32 %v2751_v49, %v14661_v42  ;;  %v11827_v46 = vld [vmem:[%s20412_s2 + $0x1530] sm:$0xff] }
 0x1a1   :  { %v1099_v60 = vpop.f32.mrb[101].mxu0  ;;  %v2485_v61 = vpop.f32.mrb[101].mxu1  ;;  %14824 = vmatmul.mubr.msk.f32.gmra.mrb[206].mxu0 %vm144_vm1, %v11820_v50  ;;  %15018 = vmatmul.mubr.msk.f32.gmra.mrb[206].mxu1 %vm144_vm1, %v12077_v51  ;;  %v12084_v47 = vld [vmem:[%s20412_s2 + $0x15b0] sm:$0xff] }
 0x1a2   :  { %v1362_v62 = vrot.slane %v1361_v54, 1  ;;  %v2748_v63 = vrot.slane %v2747_v55, 1  ;;  %v1367_v4 = vmax.f32 %v1366_v58, %v1099_v60  ;;  %v2753_v5 = vmax.f32 %v2752_v59, %v2485_v61  ;;  %14826 = vmatprep.mubr.msk.f32.mxu0 %vm144_vm1, %v11821_v52  ;;  %15020 = vmatprep.mubr.msk.f32.mxu1 %vm144_vm1, %v12078_v53  ;;  %v11829_v58 = vld [vmem:[%s20412_s2 + $0x1540] sm:$0xff] }
 0x1a3   :  { %v12086_v59 = vld [vmem:[%s20412_s2 + $0x15c0] sm:$0xff] }
 0x1a4   :  { %v17668_v15 = vmax.f32 %v1361_v54, %v1362_v62  ;;  %v17670_v16 = vmax.f32 %v2747_v55, %v2748_v63  ;;  %v14473_v17 = vpop.f32.mrb[102].mxu0  ;;  %v14667_v20 = vpop.f32.mrb[102].mxu1  ;;  %v1368_v21 = vmax.f32 %v1367_v4, %v14470_v56  ;;  %v2754_v22 = vmax.f32 %v2753_v5, %v14664_v57  ;;  %v11828_v56 = vld [vmem:[%s20412_s2 + $0x1538] sm:$0xff] }
 0x1a5   :  { %v1109_v23 = vpop.f32.mrb[103].mxu0  ;;  %v2495_v24 = vpop.f32.mrb[103].mxu1  ;;  %14827 = vmatmul.mubr.msk.f32.gmra.mrb[208].mxu0 %vm144_vm1, %v11822_v8  ;;  %15021 = vmatmul.mubr.msk.f32.gmra.mrb[208].mxu1 %vm144_vm1, %v12079_v9  ;;  %v12085_v57 = vld [vmem:[%s20412_s2 + $0x15b8] sm:$0xff] }
 0x1a6   :  { %v2797_v25 = vmax.f32 %v17668_v15, %v17670_v16  ;;  %v1369_v27 = vmax.f32 %v1368_v21, %v1109_v23  ;;  %v2755_v28 = vmax.f32 %v2754_v22, %v2495_v24  ;;  %14829 = vmatprep.mubr.msk.f32.mxu0 %vm144_vm1, %v11823_v11  ;;  %15023 = vmatprep.mubr.msk.f32.mxu1 %vm144_vm1, %v12080_v12  ;;  %v11830_v11 = vld [vmem:[%s20412_s2 + $0x1548] sm:$0xff]  ;;  %v12339_v15 = vld [vmem:[%s20412_s2 + $0x1620] sm:$0xff] }
 0x1a7   :  { %v12087_v12 = vld [vmem:[%s20412_s2 + $0x15c8] sm:$0xff]  ;;  %v12596_v16 = vld [vmem:[%s20412_s2 + $0x16a0] sm:$0xff] }
 0x1a8   :  { %v14476_v33 = vpop.f32.mrb[104].mxu0  ;;  %v14670_v36 = vpop.f32.mrb[104].mxu1  ;;  %v1370_v37 = vmax.f32 %v1369_v27, %v14473_v17  ;;  %v2756_v38 = vmax.f32 %v2755_v28, %v14667_v20  ;;  %v11831_v17 = vld [vmem:[%s20412_s2 + $0x1550] sm:$0xff] }
 0x1a9   :  { %v1119_v39 = vpop.f32.mrb[105].mxu0  ;;  %v2505_v40 = vpop.f32.mrb[105].mxu1  ;;  %14830 = vmatmul.mubr.msk.f32.gmra.mrb[210].mxu0 %vm144_vm1, %v11824_v29  ;;  %15024 = vmatmul.mubr.msk.f32.gmra.mrb[210].mxu1 %vm144_vm1, %v12081_v30  ;;  %v12088_v20 = vld [vmem:[%s20412_s2 + $0x15d0] sm:$0xff] }
 0x1aa   :  { %v1371_v41 = vmax.f32 %v1370_v37, %v1119_v39  ;;  %v2757_v42 = vmax.f32 %v2756_v38, %v2505_v40  ;;  %14832 = vmatprep.mubr.msk.f32.mxu0 %vm144_vm1, %v11825_v31  ;;  %15026 = vmatprep.mubr.msk.f32.mxu1 %vm144_vm1, %v12082_v32  ;;  %v11832_v31 = vld [vmem:[%s20412_s2 + $0x1558] sm:$0xff] }
 0x1ab   :  { %v12089_v32 = vld [vmem:[%s20412_s2 + $0x15d8] sm:$0xff] }
 0x1ac   :  { %v14479_v48 = vpop.f32.mrb[106].mxu0  ;;  %v14673_v49 = vpop.f32.mrb[106].mxu1  ;;  %v1372_v50 = vmax.f32 %v1371_v41, %v14476_v33  ;;  %v2758_v51 = vmax.f32 %v2757_v42, %v14670_v36  ;;  %v11833_v33 = vld [vmem:[%s20412_s2 + $0x1560] sm:$0xff] }
 0x1ad   :  { %v1129_v52 = vpop.f32.mrb[107].mxu0  ;;  %v2515_v53 = vpop.f32.mrb[107].mxu1  ;;  %14833 = vmatmul.mubr.msk.f32.gmra.mrb[212].mxu0 %vm144_vm1, %v11826_v44  ;;  %15027 = vmatmul.mubr.msk.f32.gmra.mrb[212].mxu1 %vm144_vm1, %v12083_v45  ;;  %v12090_v36 = vld [vmem:[%s20412_s2 + $0x15e0] sm:$0xff] }
 0x1ae   :  { %v1373_v54 = vmax.f32 %v1372_v50, %v1129_v52  ;;  %v2759_v55 = vmax.f32 %v2758_v51, %v2515_v53  ;;  %14835 = vmatprep.mubr.msk.f32.mxu0 %vm144_vm1, %v11827_v46  ;;  %15029 = vmatprep.mubr.msk.f32.mxu1 %vm144_vm1, %v12084_v47  ;;  %v11835_v50 = vld [vmem:[%s20412_s2 + $0x1570] sm:$0xff] }
 0x1af   :  { %v12092_v51 = vld [vmem:[%s20412_s2 + $0x15f0] sm:$0xff] }
 0x1b0   :  { %v14482_v60 = vpop.f32.mrb[108].mxu0  ;;  %v14676_v61 = vpop.f32.mrb[108].mxu1  ;;  %v1374_v62 = vmax.f32 %v1373_v54, %v14479_v48  ;;  %v2760_v63 = vmax.f32 %v2759_v55, %v14673_v49  ;;  %v11834_v48 = vld [vmem:[%s20412_s2 + $0x1568] sm:$0xff] }
 0x1b1   :  { %v1139_v4 = vpop.f32.mrb[109].mxu0  ;;  %v2525_v5 = vpop.f32.mrb[109].mxu1  ;;  %14836 = vmatmul.mubr.msk.f32.gmra.mrb[214].mxu0 %vm144_vm1, %v11828_v56  ;;  %15030 = vmatmul.mubr.msk.f32.gmra.mrb[214].mxu1 %vm144_vm1, %v12085_v57  ;;  %v12091_v49 = vld [vmem:[%s20412_s2 + $0x15e8] sm:$0xff] }
 0x1b2   :  { %v1375_v8 = vmax.f32 %v1374_v62, %v1139_v4  ;;  %v2761_v9 = vmax.f32 %v2760_v63, %v2525_v5  ;;  %14838 = vmatprep.mubr.msk.f32.mxu0 %vm144_vm1, %v11829_v58  ;;  %15032 = vmatprep.mubr.msk.f32.mxu1 %vm144_vm1, %v12086_v59  ;;  %v11836_v62 = vld [vmem:[%s20412_s2 + $0x1578] sm:$0xff]  ;;  %v11837_v4 = vld [vmem:[%s20412_s2 + $0x1900] sm:$0xff] }
 0x1b3   :  { %v12093_v63 = vld [vmem:[%s20412_s2 + $0x15f8] sm:$0xff]  ;;  %v12094_v5 = vld [vmem:[%s20412_s2 + $0x1980] sm:$0xff] }
 0x1b4   :  { %v14485_v21 = vpop.f32.mrb[110].mxu0  ;;  %v14679_v22 = vpop.f32.mrb[110].mxu1  ;;  %v1376_v23 = vmax.f32 %v1375_v8, %v14482_v60  ;;  %v2762_v24 = vmax.f32 %v2761_v9, %v14676_v61 }
 0x1b5   :  { %v1149_v27 = vpop.f32.mrb[111].mxu0  ;;  %v2535_v28 = vpop.f32.mrb[111].mxu1  ;;  %14839 = vmatmul.mubr.msk.f32.gmra.mrb[216].mxu0 %vm144_vm1, %v11830_v11  ;;  %15033 = vmatmul.mubr.msk.f32.gmra.mrb[216].mxu1 %vm144_vm1, %v12087_v12 }
 0x1b6   :  { %v1377_v29 = vmax.f32 %v1376_v23, %v1149_v27  ;;  %v2763_v30 = vmax.f32 %v2762_v24, %v2535_v28  ;;  %14841 = vmatprep.mubr.msk.f32.mxu0 %vm144_vm1, %v11831_v17  ;;  %15035 = vmatprep.mubr.msk.f32.mxu1 %vm144_vm1, %v12088_v20 }
 0x1b8   :  { %v1378_v37 = vmax.f32 %v1377_v29, %v14485_v21  ;;  %v2764_v38 = vmax.f32 %v2763_v30, %v14679_v22  ;;  %v14488_v39 = vpop.f32.mrb[112].mxu0  ;;  %v14682_v40 = vpop.f32.mrb[112].mxu1  ;;  %v11838_v29 = vld [vmem:[%s20412_s2 + $0x1908] sm:$0xff] }
 0x1b9   :  { %v1159_v41 = vpop.f32.mrb[113].mxu0  ;;  %14842 = vmatmul.mubr.msk.f32.gmra.mrb[218].mxu0 %vm144_vm1, %v11832_v31  ;;  %15036 = vmatmul.mubr.msk.f32.gmra.mrb[218].mxu1 %vm144_vm1, %v12089_v32  ;;  %v2545_v42 = vpop.f32.mrb[113].mxu1  ;;  %v12095_v30 = vld [vmem:[%s20412_s2 + $0x1988] sm:$0xff]  ;;  %v11839_v31 = vld [vmem:[%s20412_s2 + $0x1910] sm:$0xff] }
 0x1ba   :  { %v1379_v44 = vrot.slane %v1378_v37, 4  ;;  %v2765_v45 = vrot.slane %v2764_v38, 4  ;;  %v1385_v46 = vmax.f32 %v1159_v41, %v14488_v39  ;;  %v2771_v47 = vmax.f32 %v2545_v42, %v14682_v40  ;;  %14844 = vmatprep.mubr.msk.f32.mxu0 %vm144_vm1, %v11833_v33  ;;  %15038 = vmatprep.mubr.msk.f32.mxu1 %vm144_vm1, %v12090_v36  ;;  %v12096_v32 = vld [vmem:[%s20412_s2 + $0x1990] sm:$0xff] }
 0x1bc   :  { %v1380_v52 = vmax.f32 %v1378_v37, %v1379_v44  ;;  %v2766_v53 = vmax.f32 %v2764_v38, %v2765_v45  ;;  %v14491_v54 = vpop.f32.mrb[114].mxu0  ;;  %v14685_v55 = vpop.f32.mrb[114].mxu1 }
 0x1bd   :  { %v1169_v56 = vpop.f32.mrb[115].mxu0  ;;  %v2555_v57 = vpop.f32.mrb[115].mxu1  ;;  %14845 = vmatmul.mubr.msk.f32.gmra.mrb[220].mxu0 %vm144_vm1, %v11834_v48  ;;  %15039 = vmatmul.mubr.msk.f32.gmra.mrb[220].mxu1 %vm144_vm1, %v12091_v49  ;;  %v12097_v48 = vld [vmem:[%s20412_s2 + $0x1998] sm:$0xff]  ;;  %v11841_v49 = vld [vmem:[%s20412_s2 + $0x1920] sm:$0xff] }
 0x1be   :  { %v1381_v58 = vrot.slane %v1380_v52, 2  ;;  %v2767_v59 = vrot.slane %v2766_v53, 2  ;;  %v1386_v60 = vmax.f32 %v1385_v46, %v1169_v56  ;;  %v2772_v61 = vmax.f32 %v2771_v47, %v2555_v57  ;;  %14847 = vmatprep.mubr.msk.f32.mxu0 %vm144_vm1, %v11835_v50  ;;  %15041 = vmatprep.mubr.msk.f32.mxu1 %vm144_vm1, %v12092_v51  ;;  %v11840_v47 = vld [vmem:[%s20412_s2 + $0x1918] sm:$0xff]  ;;  %v12098_v50 = vld [vmem:[%s20412_s2 + $0x19a0] sm:$0xff] }
 0x1c0   :  { %v1382_v8 = vmax.f32 %v1380_v52, %v1381_v58  ;;  %v2768_v9 = vmax.f32 %v2766_v53, %v2767_v59  ;;  %v14494_v11 = vpop.f32.mrb[116].mxu0  ;;  %v14688_v12 = vpop.f32.mrb[116].mxu1  ;;  %v1387_v17 = vmax.f32 %v1386_v60, %v14491_v54  ;;  %v2773_v20 = vmax.f32 %v2772_v61, %v14685_v55  ;;  %v11842_v59 = vld [vmem:[%s20412_s2 + $0x1928] sm:$0xff]  ;;  %v11843_v61 = vld [vmem:[%s20412_s2 + $0x1930] sm:$0xff] }
 0x1c1   :  { %v1179_v21 = vpop.f32.mrb[117].mxu0  ;;  %v2565_v22 = vpop.f32.mrb[117].mxu1  ;;  %14848 = vmatmul.mubr.msk.f32.gmra.mrb[222].mxu0 %vm144_vm1, %v11836_v62  ;;  %15042 = vmatmul.mubr.msk.f32.gmra.mrb[222].mxu1 %vm144_vm1, %v12093_v63  ;;  %v12099_v60 = vld [vmem:[%s20412_s2 + $0x19a8] sm:$0xff]  ;;  %v12100_v62 = vld [vmem:[%s20412_s2 + $0x19b0] sm:$0xff] }
 0x1c2   :  { %v1383_v23 = vrot.slane %v1382_v8, 1  ;;  %v2769_v24 = vrot.slane %v2768_v9, 1  ;;  %v1388_v27 = vmax.f32 %v1387_v17, %v1179_v21  ;;  %v2774_v28 = vmax.f32 %v2773_v20, %v2565_v22  ;;  %14850 = vmatprep.mubr.msk.f32.mxu0 %vm144_vm1, %v11837_v4  ;;  %15044 = vmatprep.mubr.msk.f32.mxu1 %vm144_vm1, %v12094_v5  ;;  %v11844_v20 = vld [vmem:[%s20412_s2 + $0x1938] sm:$0xff]  ;;  %v11845_v22 = vld [vmem:[%s20412_s2 + $0x1940] sm:$0xff] }
 0x1c3   :  { %v12101_v21 = vld [vmem:[%s20412_s2 + $0x19b8] sm:$0xff] }
 0x1c4   :  { %v17802_v33 = vmax.f32 %v1382_v8, %v1383_v23  ;;  %v17804_v36 = vmax.f32 %v2768_v9, %v2769_v24  ;;  %v14497_v37 = vpop.f32.mrb[118].mxu0  ;;  %v14691_v38 = vpop.f32.mrb[118].mxu1  ;;  %v1389_v39 = vmax.f32 %v1388_v27, %v14494_v11  ;;  %v2775_v40 = vmax.f32 %v2774_v28, %v14688_v12  ;;  %v12102_v23 = vld [vmem:[%s20412_s2 + $0x19c0] sm:$0xff] }
 0x1c5   :  { %v1189_v41 = vpop.f32.mrb[119].mxu0  ;;  %v2575_v42 = vpop.f32.mrb[119].mxu1  ;;  %14851 = vmatmul.mubr.msk.f32.gmra.mrb[224].mxu0 %vm144_vm1, %v11838_v29  ;;  %15045 = vmatmul.mubr.msk.f32.gmra.mrb[224].mxu1 %vm144_vm1, %v12095_v30 }
 0x1c6   :  { %v2798_v44 = vmax.f32 %v17802_v33, %v17804_v36  ;;  %v1390_v45 = vmax.f32 %v1389_v39, %v1189_v41  ;;  %v2776_v46 = vmax.f32 %v2775_v40, %v2575_v42  ;;  %14853 = vmatprep.mubr.msk.f32.mxu0 %vm144_vm1, %v11839_v31  ;;  %15047 = vmatprep.mubr.msk.f32.mxu1 %vm144_vm1, %v12096_v32  ;;  %v12103_v39 = vld [vmem:[%s20412_s2 + $0x19c8] sm:$0xff]  ;;  %v11847_v40 = vld [vmem:[%s20412_s2 + $0x1950] sm:$0xff]  ;;  %v12355_v33 = vld [vmem:[%s20412_s2 + $0x1a20] sm:$0xff] }
 0x1c7   :  { %v12104_v41 = vld [vmem:[%s20412_s2 + $0x19d0] sm:$0xff]  ;;  %v12612_v36 = vld [vmem:[%s20412_s2 + $0x1aa0] sm:$0xff] }
 0x1c8   :  { %v14500_v51 = vpop.f32.mrb[120].mxu0  ;;  %v14694_v52 = vpop.f32.mrb[120].mxu1  ;;  %v1391_v53 = vmax.f32 %v1390_v45, %v14497_v37  ;;  %v2777_v54 = vmax.f32 %v2776_v46, %v14691_v38  ;;  %v11846_v38 = vld [vmem:[%s20412_s2 + $0x1948] sm:$0xff] }
 0x1c9   :  { %v1199_v55 = vpop.f32.mrb[121].mxu0  ;;  %v2585_v56 = vpop.f32.mrb[121].mxu1  ;;  %14854 = vmatmul.mubr.msk.f32.gmra.mrb[226].mxu0 %vm144_vm1, %v11840_v47  ;;  %15048 = vmatmul.mubr.msk.f32.gmra.mrb[226].mxu1 %vm144_vm1, %v12097_v48 }
 0x1ca   :  { %v1392_v57 = vmax.f32 %v1391_v53, %v1199_v55  ;;  %v2778_v58 = vmax.f32 %v2777_v54, %v2585_v56  ;;  %14856 = vmatprep.mubr.msk.f32.mxu0 %vm144_vm1, %v11841_v49  ;;  %15050 = vmatprep.mubr.msk.f32.mxu1 %vm144_vm1, %v12098_v50  ;;  %v12105_v53 = vld [vmem:[%s20412_s2 + $0x19d8] sm:$0xff]  ;;  %v11849_v54 = vld [vmem:[%s20412_s2 + $0x1960] sm:$0xff] }
 0x1cb   :  { %v12106_v55 = vld [vmem:[%s20412_s2 + $0x19e0] sm:$0xff] }
 0x1cc   :  { %v14503_v63 = vpop.f32.mrb[122].mxu0  ;;  %v14697_v4 = vpop.f32.mrb[122].mxu1  ;;  %v1393_v5 = vmax.f32 %v1392_v57, %v14500_v51  ;;  %v2779_v8 = vmax.f32 %v2778_v58, %v14694_v52  ;;  %v11848_v52 = vld [vmem:[%s20412_s2 + $0x1958] sm:$0xff] }
 0x1cd   :  { %v1209_v9 = vpop.f32.mrb[123].mxu0  ;;  %v2595_v11 = vpop.f32.mrb[123].mxu1  ;;  %14857 = vmatmul.mubr.msk.f32.gmra.mrb[228].mxu0 %vm144_vm1, %v11842_v59  ;;  %15051 = vmatmul.mubr.msk.f32.gmra.mrb[228].mxu1 %vm144_vm1, %v12099_v60 }
 0x1ce   :  { %v1394_v12 = vmax.f32 %v1393_v5, %v1209_v9  ;;  %v2780_v17 = vmax.f32 %v2779_v8, %v2595_v11  ;;  %14859 = vmatprep.mubr.msk.f32.mxu0 %vm144_vm1, %v11843_v61  ;;  %15053 = vmatprep.mubr.msk.f32.mxu1 %vm144_vm1, %v12100_v62  ;;  %v11850_v8 = vld [vmem:[%s20412_s2 + $0x1968] sm:$0xff]  ;;  %v11851_v11 = vld [vmem:[%s20412_s2 + $0x1970] sm:$0xff] }
 0x1cf   :  { %v12107_v9 = vld [vmem:[%s20412_s2 + $0x19e8] sm:$0xff] }
 0x1d0   :  { %v14506_v24 = vpop.f32.mrb[124].mxu0  ;;  %v14700_v27 = vpop.f32.mrb[124].mxu1  ;;  %v1395_v28 = vmax.f32 %v1394_v12, %v14503_v63  ;;  %v2781_v29 = vmax.f32 %v2780_v17, %v14697_v4  ;;  %v12108_v12 = vld [vmem:[%s20412_s2 + $0x19f0] sm:$0xff] }
 0x1d1   :  { %v1219_v30 = vpop.f32.mrb[125].mxu0  ;;  %v2605_v31 = vpop.f32.mrb[125].mxu1  ;;  %14860 = vmatmul.mubr.msk.f32.gmra.mrb[230].mxu0 %vm144_vm1, %v11844_v20  ;;  %15054 = vmatmul.mubr.msk.f32.gmra.mrb[230].mxu1 %vm144_vm1, %v12101_v21 }
 0x1d2   :  { %v1396_v32 = vmax.f32 %v1395_v28, %v1219_v30  ;;  %v2782_v37 = vmax.f32 %v2781_v29, %v2605_v31  ;;  %14862 = vmatprep.mubr.msk.f32.mxu0 %vm144_vm1, %v11845_v22  ;;  %15056 = vmatprep.mubr.msk.f32.mxu1 %vm144_vm1, %v12102_v23  ;;  %v11852_v31 = vld [vmem:[%s20412_s2 + $0x1978] sm:$0xff] }
 0x1d4   :  { %v14509_v42 = vpop.f32.mrb[126].mxu0  ;;  %v14703_v45 = vpop.f32.mrb[126].mxu1  ;;  %v1397_v46 = vmax.f32 %v1396_v32, %v14506_v24  ;;  %v2783_v47 = vmax.f32 %v2782_v37, %v14700_v27  ;;  %v12109_v32 = vld [vmem:[%s20412_s2 + $0x19f8] sm:$0xff]  ;;  %v11853_v37 = vld [vmem:[%s20412_s2 + $0x1d00] sm:$0xff] }
 0x1d5   :  { %v1229_v48 = vpop.f32.mrb[127].mxu0  ;;  %v2615_v49 = vpop.f32.mrb[127].mxu1  ;;  %14863 = vmatmul.mubr.msk.f32.gmra.mrb[232].mxu0 %vm144_vm1, %v11846_v38  ;;  %15057 = vmatmul.mubr.msk.f32.gmra.mrb[232].mxu1 %vm144_vm1, %v12103_v39  ;;  %v12110_v38 = vld [vmem:[%s20412_s2 + $0x1d80] sm:$0xff] }
 0x1d6   :  { %v1398_v50 = vmax.f32 %v1397_v46, %v1229_v48  ;;  %v2784_v51 = vmax.f32 %v2783_v47, %v2615_v49  ;;  %14865 = vmatprep.mubr.msk.f32.mxu0 %vm144_vm1, %v11847_v40  ;;  %15059 = vmatprep.mubr.msk.f32.mxu1 %vm144_vm1, %v12104_v41 }
 0x1d8   :  { %v1399_v56 = vmax.f32 %v1398_v50, %v14509_v42  ;;  %v2785_v57 = vmax.f32 %v2784_v51, %v14703_v45  ;;  %v14708_v58 = vpop.f32.mrb[128].mxu0  ;;  %v14902_v59 = vpop.f32.mrb[128].mxu1 }
 0x1d9   :  { %v3379_v60 = vpop.f32.mrb[129].mxu0  ;;  %14866 = vmatmul.mubr.msk.f32.gmra.mrb[234].mxu0 %vm144_vm1, %v11848_v52  ;;  %15060 = vmatmul.mubr.msk.f32.gmra.mrb[234].mxu1 %vm144_vm1, %v12105_v53  ;;  %v4773_v61 = vpop.f32.mrb[129].mxu1  ;;  %v11854_v53 = vld [vmem:[%s20412_s2 + $0x1d08] sm:$0xff] }
 0x1da   :  { %v1400_v62 = vrot.slane %v1399_v56, 4  ;;  %v2786_v63 = vrot.slane %v2785_v57, 4  ;;  %v4018_v4 = vmax.f32 %v3379_v60, %v14708_v58  ;;  %v5412_v5 = vmax.f32 %v4773_v61, %v14902_v59  ;;  %14868 = vmatprep.mubr.msk.f32.mxu0 %vm144_vm1, %v11849_v54  ;;  %15062 = vmatprep.mubr.msk.f32.mxu1 %vm144_vm1, %v12106_v55  ;;  %v12111_v54 = vld [vmem:[%s20412_s2 + $0x1d88] sm:$0xff]  ;;  %v11855_v55 = vld [vmem:[%s20412_s2 + $0x1d10] sm:$0xff] }
 0x1dc   :  { %v1401_v17 = vmax.f32 %v1399_v56, %v1400_v62  ;;  %v2787_v20 = vmax.f32 %v2785_v57, %v2786_v63  ;;  %v14711_v21 = vpop.f32.mrb[130].mxu0  ;;  %v14905_v22 = vpop.f32.mrb[130].mxu1  ;;  %v12112_v56 = vld [vmem:[%s20412_s2 + $0x1d90] sm:$0xff] }
 0x1dd   :  { %v3389_v23 = vpop.f32.mrb[131].mxu0  ;;  %14869 = vmatmul.mubr.msk.f32.gmra.mrb[236].mxu0 %vm144_vm1, %v11850_v8  ;;  %v4783_v24 = vpop.f32.mrb[131].mxu1  ;;  %15063 = vmatmul.mubr.msk.f32.gmra.mrb[236].mxu1 %vm144_vm1, %v12107_v9 }
 0x1de   :  { %v1402_v27 = vrot.slane %v1401_v17, 2  ;;  %v2788_v28 = vrot.slane %v2787_v20, 2  ;;  %v4019_v29 = vmax.f32 %v4018_v4, %v3389_v23  ;;  %v5413_v30 = vmax.f32 %v5412_v5, %v4783_v24  ;;  %14871 = vmatprep.mubr.msk.f32.mxu0 %vm144_vm1, %v11851_v11  ;;  %15065 = vmatprep.mubr.msk.f32.mxu1 %vm144_vm1, %v12108_v12  ;;  %v11856_v11 = vld [vmem:[%s20412_s2 + $0x1d18] sm:$0xff] }
 0x1df   :  { %v12113_v12 = vld [vmem:[%s20412_s2 + $0x1d98] sm:$0xff] }
 0x1e0   :  { %v1403_v39 = vmax.f32 %v1401_v17, %v1402_v27  ;;  %v2789_v40 = vmax.f32 %v2787_v20, %v2788_v28  ;;  %v14714_v41 = vpop.f32.mrb[132].mxu0  ;;  %v14908_v42 = vpop.f32.mrb[132].mxu1  ;;  %v4020_v45 = vmax.f32 %v4019_v29, %v14711_v21  ;;  %v5414_v46 = vmax.f32 %v5413_v30, %v14905_v22  ;;  %v11857_v17 = vld [vmem:[%s20412_s2 + $0x1d20] sm:$0xff] }
 0x1e1   :  { %v3399_v47 = vpop.f32.mrb[133].mxu0  ;;  %14872 = vmatmul.mubr.msk.f32.gmra.mrb[238].mxu0 %vm144_vm1, %v11852_v31  ;;  %v4793_v48 = vpop.f32.mrb[133].mxu1  ;;  %15066 = vmatmul.mubr.msk.f32.gmra.mrb[238].mxu1 %vm144_vm1, %v12109_v32  ;;  %v12114_v20 = vld [vmem:[%s20412_s2 + $0x1da0] sm:$0xff]  ;;  %v11858_v31 = vld [vmem:[%s20412_s2 + $0x1d28] sm:$0xff] }
 0x1e2   :  { %v1404_v49 = vrot.slane %v1403_v39, 1  ;;  %v2790_v50 = vrot.slane %v2789_v40, 1  ;;  %v4021_v51 = vmax.f32 %v4020_v45, %v3399_v47  ;;  %v5415_v52 = vmax.f32 %v5414_v46, %v4793_v48  ;;  %14874 = vmatprep.mubr.msk.f32.mxu0 %vm144_vm1, %v11853_v37  ;;  %15068 = vmatprep.mubr.msk.f32.mxu1 %vm144_vm1, %v12110_v38  ;;  %v12115_v32 = vld [vmem:[%s20412_s2 + $0x1da8] sm:$0xff]  ;;  %v11859_v37 = vld [vmem:[%s20412_s2 + $0x1d30] sm:$0xff] }
 0x1e3   :  { %v12116_v38 = vld [vmem:[%s20412_s2 + $0x1db0] sm:$0xff] }
 0x1e4   :  { %v17936_v57 = vmax.f32 %v1403_v39, %v1404_v49  ;;  %v17938_v58 = vmax.f32 %v2789_v40, %v2790_v50  ;;  %v14717_v59 = vpop.f32.mrb[134].mxu0  ;;  %v14911_v60 = vpop.f32.mrb[134].mxu1  ;;  %v4022_v61 = vmax.f32 %v4021_v51, %v14714_v41  ;;  %v5416_v62 = vmax.f32 %v5415_v52, %v14908_v42  ;;  %v11860_v49 = vld [vmem:[%s20412_s2 + $0x1d38] sm:$0xff]  ;;  %v11861_v51 = vld [vmem:[%s20412_s2 + $0x1d40] sm:$0xff] }
 0x1e5   :  { %v3409_v63 = vpop.f32.mrb[135].mxu0  ;;  %14875 = vmatmul.mubr.msk.f32.gmra.mrb[240].mxu0 %vm144_vm1, %v11854_v53  ;;  %v4803_v4 = vpop.f32.mrb[135].mxu1  ;;  %15069 = vmatmul.mubr.msk.f32.gmra.mrb[240].mxu1 %vm144_vm1, %v12111_v54  ;;  %v12117_v50 = vld [vmem:[%s20412_s2 + $0x1db8] sm:$0xff]  ;;  %v12118_v52 = vld [vmem:[%s20412_s2 + $0x1dc0] sm:$0xff] }
 0x1e6   :  { %v2799_v5 = vmax.f32 %v17936_v57, %v17938_v58  ;;  %v4023_v8 = vmax.f32 %v4022_v61, %v3409_v63  ;;  %v5417_v9 = vmax.f32 %v5416_v62, %v4803_v4  ;;  %14877 = vmatprep.mubr.msk.f32.mxu0 %vm144_vm1, %v11855_v55  ;;  %15071 = vmatprep.mubr.msk.f32.mxu1 %vm144_vm1, %v12112_v56  ;;  %v11862_v63 = vld [vmem:[%s20412_s2 + $0x1d48] sm:$0xff]  ;;  %v12371_v57 = vld [vmem:[%s20412_s2 + $0x1e20] sm:$0xff] }
 0x1e7   :  { %v12119_v4 = vld [vmem:[%s20412_s2 + $0x1dc8] sm:$0xff]  ;;  %v12628_v58 = vld [vmem:[%s20412_s2 + $0x1ea0] sm:$0xff] }
 0x1e8   :  { %v14720_v21 = vpop.f32.mrb[136].mxu0  ;;  %v14914_v22 = vpop.f32.mrb[136].mxu1  ;;  %v4024_v23 = vmax.f32 %v4023_v8, %v14717_v59  ;;  %v5418_v24 = vmax.f32 %v5417_v9, %v14911_v60  ;;  %v11863_v8 = vld [vmem:[%s20412_s2 + $0x1d50] sm:$0xff] }
 0x1e9   :  { %v3419_v27 = vpop.f32.mrb[137].mxu0  ;;  %14878 = vmatmul.mubr.msk.f32.gmra.mrb[242].mxu0 %vm144_vm1, %v11856_v11  ;;  %v4813_v28 = vpop.f32.mrb[137].mxu1  ;;  %15072 = vmatmul.mubr.msk.f32.gmra.mrb[242].mxu1 %vm144_vm1, %v12113_v12  ;;  %v12120_v9 = vld [vmem:[%s20412_s2 + $0x1dd0] sm:$0xff] }
 0x1ea   :  { %v4025_v29 = vmax.f32 %v4024_v23, %v3419_v27  ;;  %v5419_v30 = vmax.f32 %v5418_v24, %v4813_v28  ;;  %14880 = vmatprep.mubr.msk.f32.mxu0 %vm144_vm1, %v11857_v17  ;;  %15074 = vmatprep.mubr.msk.f32.mxu1 %vm144_vm1, %v12114_v20  ;;  %v11864_v27 = vld [vmem:[%s20412_s2 + $0x1d58] sm:$0xff] }
 0x1eb   :  { %v12121_v28 = vld [vmem:[%s20412_s2 + $0x1dd8] sm:$0xff] }
 0x1ec   :  { %v14723_v39 = vpop.f32.mrb[138].mxu0  ;;  %v14917_v40 = vpop.f32.mrb[138].mxu1  ;;  %v4026_v41 = vmax.f32 %v4025_v29, %v14720_v21  ;;  %v5420_v42 = vmax.f32 %v5419_v30, %v14914_v22  ;;  %v11865_v29 = vld [vmem:[%s20412_s2 + $0x1d60] sm:$0xff] }
 0x1ed   :  { %v3429_v45 = vpop.f32.mrb[139].mxu0  ;;  %14881 = vmatmul.mubr.msk.f32.gmra.mrb[244].mxu0 %vm144_vm1, %v11858_v31  ;;  %v4823_v46 = vpop.f32.mrb[139].mxu1  ;;  %15075 = vmatmul.mubr.msk.f32.gmra.mrb[244].mxu1 %vm144_vm1, %v12115_v32  ;;  %v12122_v30 = vld [vmem:[%s20412_s2 + $0x1de0] sm:$0xff] }
 0x1ee   :  { %v4027_v47 = vmax.f32 %v4026_v41, %v3429_v45  ;;  %v5421_v48 = vmax.f32 %v5420_v42, %v4823_v46  ;;  %14883 = vmatprep.mubr.msk.f32.mxu0 %vm144_vm1, %v11859_v37  ;;  %15077 = vmatprep.mubr.msk.f32.mxu1 %vm144_vm1, %v12116_v38 }
 0x1f0   :  { %v14726_v53 = vpop.f32.mrb[140].mxu0  ;;  %v14920_v54 = vpop.f32.mrb[140].mxu1  ;;  %v4028_v55 = vmax.f32 %v4027_v47, %v14723_v39  ;;  %v5422_v56 = vmax.f32 %v5421_v48, %v14917_v40  ;;  %v11866_v47 = vld [vmem:[%s20412_s2 + $0x1d68] sm:$0xff] }
 0x1f1   :  { %v3439_v59 = vpop.f32.mrb[141].mxu0  ;;  %14884 = vmatmul.mubr.msk.f32.gmra.mrb[246].mxu0 %vm144_vm1, %v11860_v49  ;;  %v4833_v60 = vpop.f32.mrb[141].mxu1  ;;  %15078 = vmatmul.mubr.msk.f32.gmra.mrb[246].mxu1 %vm144_vm1, %v12117_v50  ;;  %v12123_v48 = vld [vmem:[%s20412_s2 + $0x1de8] sm:$0xff]  ;;  %v11867_v49 = vld [vmem:[%s20412_s2 + $0x1d70] sm:$0xff] }
 0x1f2   :  { %v4029_v61 = vmax.f32 %v4028_v55, %v3439_v59  ;;  %v5423_v62 = vmax.f32 %v5422_v56, %v4833_v60  ;;  %14886 = vmatprep.mubr.msk.f32.mxu0 %vm144_vm1, %v11861_v51  ;;  %15080 = vmatprep.mubr.msk.f32.mxu1 %vm144_vm1, %v12118_v52  ;;  %v12124_v50 = vld [vmem:[%s20412_s2 + $0x1df0] sm:$0xff] }
 0x1f4   :  { %v14729_v11 = vpop.f32.mrb[142].mxu0  ;;  %v14923_v12 = vpop.f32.mrb[142].mxu1  ;;  %v4030_v17 = vmax.f32 %v4029_v61, %v14726_v53  ;;  %v5424_v20 = vmax.f32 %v5423_v62, %v14920_v54 }
 0x1f5   :  { %v3449_v21 = vpop.f32.mrb[143].mxu0  ;;  %14887 = vmatmul.mubr.msk.f32.gmra.mrb[248].mxu0 %vm144_vm1, %v11862_v63  ;;  %v4843_v22 = vpop.f32.mrb[143].mxu1  ;;  %15081 = vmatmul.mubr.msk.f32.gmra.mrb[248].mxu1 %vm144_vm1, %v12119_v4  ;;  %v11868_v63 = vld [vmem:[%s20412_s2 + $0x1d78] sm:$0xff] }
 0x1f6   :  { %v4031_v23 = vmax.f32 %v4030_v17, %v3449_v21  ;;  %v5425_v24 = vmax.f32 %v5424_v20, %v4843_v22  ;;  %14889 = vmatprep.mubr.msk.f32.mxu0 %vm144_vm1, %v11863_v8  ;;  %15083 = vmatprep.mubr.msk.f32.mxu1 %vm144_vm1, %v12120_v9  ;;  %v12125_v4 = vld [vmem:[%s20412_s2 + $0x1df8] sm:$0xff]  ;;  %v12255_v8 = vld [vmem:[%s20412_s2 + $0x200] sm:$0xff] }
 0x1f7   :  { %v12512_v9 = vld [vmem:[%s20412_s2 + $0x280] sm:$0xff] }
 0x1f8   :  { %v4032_v31 = vmax.f32 %v4031_v23, %v14729_v11  ;;  %v5426_v32 = vmax.f32 %v5425_v24, %v14923_v12  ;;  %v14732_v37 = vpop.f32.mrb[144].mxu0  ;;  %v14926_v38 = vpop.f32.mrb[144].mxu1 }
 0x1f9   :  { %v3459_v39 = vpop.f32.mrb[145].mxu0  ;;  %14890 = vmatmul.mubr.msk.f32.gmra.mrb[250].mxu0 %vm144_vm1, %v11864_v27  ;;  %15084 = vmatmul.mubr.msk.f32.gmra.mrb[250].mxu1 %vm144_vm1, %v12121_v28  ;;  %v4853_v40 = vpop.f32.mrb[145].mxu1 }
 0x1fa   :  { %v4033_v41 = vrot.slane %v4032_v31, 4  ;;  %v5427_v42 = vrot.slane %v5426_v32, 4  ;;  %v4039_v45 = vmax.f32 %v3459_v39, %v14732_v37  ;;  %v5433_v46 = vmax.f32 %v4853_v40, %v14926_v38  ;;  %14892 = vmatprep.mubr.msk.f32.mxu0 %vm144_vm1, %v11865_v29  ;;  %15086 = vmatprep.mubr.msk.f32.mxu1 %vm144_vm1, %v12122_v30  ;;  %v12257_v37 = vld [vmem:[%s20412_s2 + $0x210] sm:$0xff] }
 0x1fc   :  { %v4034_v51 = vmax.f32 %v4032_v31, %v4033_v41  ;;  %v5428_v52 = vmax.f32 %v5426_v32, %v5427_v42  ;;  %v14735_v53 = vpop.f32.mrb[146].mxu0  ;;  %v14929_v54 = vpop.f32.mrb[146].mxu1  ;;  %v12256_v31 = vld [vmem:[%s20412_s2 + $0x208] sm:$0xff] }
 0x1fd   :  { %v3469_v55 = vpop.f32.mrb[147].mxu0  ;;  %14893 = vmatmul.mubr.msk.f32.gmra.mrb[252].mxu0 %vm144_vm1, %v11866_v47  ;;  %v4863_v56 = vpop.f32.mrb[147].mxu1  ;;  %15087 = vmatmul.mubr.msk.f32.gmra.mrb[252].mxu1 %vm144_vm1, %v12123_v48  ;;  %v12513_v32 = vld [vmem:[%s20412_s2 + $0x288] sm:$0xff] }
 0x1fe   :  { %v4035_v59 = vrot.slane %v4034_v51, 2  ;;  %v5429_v60 = vrot.slane %v5428_v52, 2  ;;  %v4040_v61 = vmax.f32 %v4039_v45, %v3469_v55  ;;  %v5434_v62 = vmax.f32 %v5433_v46, %v4863_v56  ;;  %14895 = vmatprep.mubr.msk.f32.mxu0 %vm144_vm1, %v11867_v49  ;;  %15089 = vmatprep.mubr.msk.f32.mxu1 %vm144_vm1, %v12124_v50  ;;  %v12514_v45 = vld [vmem:[%s20412_s2 + $0x290] sm:$0xff] }
 0x200   :  { %v4036_v11 = vmax.f32 %v4034_v51, %v4035_v59  ;;  %v5430_v12 = vmax.f32 %v5428_v52, %v5429_v60  ;;  %v14738_v17 = vpop.f32.mrb[148].mxu0  ;;  %v14932_v20 = vpop.f32.mrb[148].mxu1  ;;  %v4041_v21 = vmax.f32 %v4040_v61, %v14735_v53  ;;  %v5435_v22 = vmax.f32 %v5434_v62, %v14929_v54  ;;  %v15888_v52 = vld [vmem:[%s20410_s0] sm:$0x7]  ;;  %v12258_v53 = vld [vmem:[%s20412_s2 + $0x218] sm:$0xff] }
 0x201   :  { %v3479_v23 = vpop.f32.mrb[149].mxu0  ;;  %14896 = vmatmul.mubr.msk.f32.gmra.mrb[254].mxu0 %vm144_vm1, %v11868_v63  ;;  %v4873_v24 = vpop.f32.mrb[149].mxu1  ;;  %15090 = vmatmul.mubr.msk.f32.gmra.mrb[254].mxu1 %vm144_vm1, %v12125_v4 }
 0x202   :  { %v4037_v27 = vrot.slane %v4036_v11, 1  ;;  %v5431_v28 = vrot.slane %v5430_v12, 1  ;;  %v4042_v29 = vmax.f32 %v4041_v21, %v3479_v23  ;;  %v5436_v30 = vmax.f32 %v5435_v22, %v4873_v24  ;;  %15094 = vmatprep.mubr.msk.f32.mxu0 %vm144_vm1, %v12255_v8  ;;  %15288 = vmatprep.mubr.msk.f32.mxu1 %vm144_vm1, %v12512_v9  ;;  %v12260_v8 = vld [vmem:[%s20412_s2 + $0x228] sm:$0xff] }
 0x203   :  { %v12517_v9 = vld [vmem:[%s20412_s2 + $0x2a8] sm:$0xff] }
 0x204   :  { %v4038_v38 = vmax.f32 %v4036_v11, %v4037_v27  ;;  %v14741_v39 = vpop.f32.mrb[150].mxu0  ;;  %v14935_v40 = vpop.f32.mrb[150].mxu1  ;;  %v4043_v41 = vmax.f32 %v4042_v29, %v14738_v17  ;;  %v5437_v42 = vmax.f32 %v5436_v30, %v14932_v20  ;;  %v18070_v46 = vmax.f32 %v5430_v12, %v5431_v28  ;;  %v12261_v11 = vld [vmem:[%s20412_s2 + $0x230] sm:$0xff]  ;;  %v12262_v29 = vld [vmem:[%s20412_s2 + $0x238] sm:$0xff] }
 0x205   :  { %v3489_v47 = vpop.f32.mrb[151].mxu0  ;;  %v4883_v48 = vpop.f32.mrb[151].mxu1  ;;  %15095 = vmatmul.mubr.msk.f32.vlgmr.msra.gmra.mrb[0].mxu0 %vm144_vm1, %v12256_v31  ;;  %15289 = vmatmul.mubr.msk.f32.vlgmr.msra.gmra.mrb[0].mxu1 %vm144_vm1, %v12513_v32  ;;  %v12518_v12 = vld [vmem:[%s20412_s2 + $0x2b0] sm:$0xff]  ;;  %v12519_v30 = vld [vmem:[%s20412_s2 + $0x2b8] sm:$0xff]  ;;  %v12263_v31 = vld [vmem:[%s20412_s2 + $0x240] sm:$0xff] }
 0x206   :  { %v18077_v49 = vmax.f32 %v2792_v43, %v4038_v38  ;;  %v4044_v50 = vmax.f32 %v4043_v41, %v3489_v47  ;;  %v5438_v51 = vmax.f32 %v5437_v42, %v4883_v48  ;;  %15481 = vmatpush3.msk.msra.mxu0 %vm529_vm0, %v15888_v52  ;;  %15097 = vmatprep.mubr.msk.f32.mxu0 %vm144_vm1, %v12257_v37  ;;  %v12516_v43 = vld [vmem:[%s20412_s2 + $0x2a0] sm:$0xff]  ;;  %v12264_v48 = vld [vmem:[%s20412_s2 + $0x248] sm:$0xff] }
 0x207   :  { %15291 = vmatprep.mubr.msk.f32.mxu1 %vm144_vm1, %v12514_v45  ;;  %15675 = vmatpush3.msk.msra.mxu1 %vm529_vm0, %v15888_v52  ;;  %v12520_v32 = vld [vmem:[%s20412_s2 + $0x2c0] sm:$0xff]  ;;  %v12522_v52 = vld [vmem:[%s20412_s2 + $0x2d0] sm:$0xff] }
 0x208   :  { %v14744_v54 = vpop.f32.mrb[152].mxu0  ;;  %v14938_v55 = vpop.f32.mrb[152].mxu1  ;;  %v4045_v56 = vmax.f32 %v4044_v50, %v14741_v39  ;;  %v5439_v59 = vmax.f32 %v5438_v51, %v14935_v40  ;;  %v5580_v60 = vmax.f32 %v18077_v49, %v18070_v46  ;;  %v12521_v50 = vld [vmem:[%s20412_s2 + $0x2c8] sm:$0xff]  ;;  %v12265_v51 = vld [vmem:[%s20412_s2 + $0x250] sm:$0xff]  ;;  %v12773_v46 = vld [vmem:[%s20412_s2 + $0x320] sm:$0xff] }
 0x209   :  { %v3499_v61 = vpop.f32.mrb[153].mxu0  ;;  %v4893_v62 = vpop.f32.mrb[153].mxu1  ;;  %15098 = vmatmul.mubr.msk.f32.gmra.mrb[2].mxu0 %vm144_vm1, %v12258_v53  ;;  %15292 = vmatmul.mubr.msk.f32.gmra.mrb[2].mxu1 %vm144_vm1, %v12515_v34  ;;  %v13030_v49 = vld [vmem:[%s20412_s2 + $0x3a0] sm:$0xff] }
 0x20a   :  { %v4046_v63 = vmax.f32 %v4045_v56, %v3499_v61  ;;  %v5440_v4 = vmax.f32 %v5439_v59, %v4893_v62  ;;  %15100 = vmatprep.mubr.msk.f32.mxu0 %vm144_vm1, %v12259_v35  ;;  %15294 = vmatprep.mubr.msk.f32.mxu1 %vm144_vm1, %v12516_v43  ;;  %v12266_v61 = vld [vmem:[%s20412_s2 + $0x258] sm:$0xff] }
 0x20b   :  { %v12523_v62 = vld [vmem:[%s20412_s2 + $0x2d8] sm:$0xff] }
 0x20c   :  { %v14747_v17 = vpop.f32.mrb[154].mxu0  ;;  %v14941_v20 = vpop.f32.mrb[154].mxu1  ;;  %v4047_v21 = vmax.f32 %v4046_v63, %v14744_v54  ;;  %v5441_v22 = vmax.f32 %v5440_v4, %v14938_v55  ;;  %v12267_v63 = vld [vmem:[%s20412_s2 + $0x260] sm:$0xff] }
 0x20d   :  { %v3509_v23 = vpop.f32.mrb[155].mxu0  ;;  %v4903_v24 = vpop.f32.mrb[155].mxu1  ;;  %15101 = vmatmul.mubr.msk.f32.gmra.mrb[4].mxu0 %vm144_vm1, %v12260_v8  ;;  %15295 = vmatmul.mubr.msk.f32.gmra.mrb[4].mxu1 %vm144_vm1, %v12517_v9  ;;  %v12524_v4 = vld [vmem:[%s20412_s2 + $0x2e0] sm:$0xff] }
 0x20e   :  { %v4048_v27 = vmax.f32 %v4047_v21, %v3509_v23  ;;  %v5442_v28 = vmax.f32 %v5441_v22, %v4903_v24  ;;  %15103 = vmatprep.mubr.msk.f32.mxu0 %vm144_vm1, %v12261_v11  ;;  %15297 = vmatprep.mubr.msk.f32.mxu1 %vm144_vm1, %v12518_v12 }
 0x210   :  { %v14750_v37 = vpop.f32.mrb[156].mxu0  ;;  %v14944_v38 = vpop.f32.mrb[156].mxu1  ;;  %v4049_v39 = vmax.f32 %v4048_v27, %v14747_v17  ;;  %v5443_v40 = vmax.f32 %v5442_v28, %v14941_v20  ;;  %v12268_v27 = vld [vmem:[%s20412_s2 + $0x268] sm:$0xff] }
 0x211   :  { %v3519_v41 = vpop.f32.mrb[157].mxu0  ;;  %v4913_v42 = vpop.f32.mrb[157].mxu1  ;;  %15104 = vmatmul.mubr.msk.f32.gmra.mrb[6].mxu0 %vm144_vm1, %v12262_v29  ;;  %15298 = vmatmul.mubr.msk.f32.gmra.mrb[6].mxu1 %vm144_vm1, %v12519_v30  ;;  %v12525_v28 = vld [vmem:[%s20412_s2 + $0x2e8] sm:$0xff]  ;;  %v12269_v29 = vld [vmem:[%s20412_s2 + $0x270] sm:$0xff] }
 0x212   :  { %v4050_v45 = vmax.f32 %v4049_v39, %v3519_v41  ;;  %v5444_v47 = vmax.f32 %v5443_v40, %v4913_v42  ;;  %15106 = vmatprep.mubr.msk.f32.mxu0 %vm144_vm1, %v12263_v31  ;;  %15300 = vmatprep.mubr.msk.f32.mxu1 %vm144_vm1, %v12520_v32  ;;  %v12526_v30 = vld [vmem:[%s20412_s2 + $0x2f0] sm:$0xff] }
 0x214   :  { %v14753_v53 = vpop.f32.mrb[158].mxu0  ;;  %v14947_v34 = vpop.f32.mrb[158].mxu1  ;;  %v4051_v35 = vmax.f32 %v4050_v45, %v14750_v37  ;;  %v5445_v43 = vmax.f32 %v5444_v47, %v14944_v38 }
 0x215   :  { %v3529_v54 = vpop.f32.mrb[159].mxu0  ;;  %v4923_v55 = vpop.f32.mrb[159].mxu1  ;;  %15107 = vmatmul.mubr.msk.f32.gmra.mrb[8].mxu0 %vm144_vm1, %v12264_v48  ;;  %15301 = vmatmul.mubr.msk.f32.gmra.mrb[8].mxu1 %vm144_vm1, %v12521_v50  ;;  %v12270_v48 = vld [vmem:[%s20412_s2 + $0x278] sm:$0xff] }
 0x216   :  { %v4052_v56 = vmax.f32 %v4051_v35, %v3529_v54  ;;  %v5446_v59 = vmax.f32 %v5445_v43, %v4923_v55  ;;  %15109 = vmatprep.mubr.msk.f32.mxu0 %vm144_vm1, %v12265_v51  ;;  %15303 = vmatprep.mubr.msk.f32.mxu1 %vm144_vm1, %v12522_v52  ;;  %v12527_v50 = vld [vmem:[%s20412_s2 + $0x2f8] sm:$0xff]  ;;  %v12271_v51 = vld [vmem:[%s20412_s2 + $0x600] sm:$0xff] }
 0x217   :  { %v12528_v52 = vld [vmem:[%s20412_s2 + $0x680] sm:$0xff] }
 0x218   :  { %v4053_v8 = vmax.f32 %v4052_v56, %v14753_v53  ;;  %v5447_v9 = vmax.f32 %v5446_v59, %v14947_v34  ;;  %v14756_v11 = vpop.f32.mrb[160].mxu0  ;;  %v14950_v12 = vpop.f32.mrb[160].mxu1 }
 0x219   :  { %v3539_v17 = vpop.f32.mrb[161].mxu0  ;;  %15110 = vmatmul.mubr.msk.f32.gmra.mrb[10].mxu0 %vm144_vm1, %v12266_v61  ;;  %15304 = vmatmul.mubr.msk.f32.gmra.mrb[10].mxu1 %vm144_vm1, %v12523_v62  ;;  %v4933_v20 = vpop.f32.mrb[161].mxu1 }
 0x21a   :  { %v4054_v21 = vrot.slane %v4053_v8, 4  ;;  %v5448_v22 = vrot.slane %v5447_v9, 4  ;;  %v4060_v23 = vmax.f32 %v3539_v17, %v14756_v11  ;;  %v5454_v24 = vmax.f32 %v4933_v20, %v14950_v12  ;;  %15112 = vmatprep.mubr.msk.f32.mxu0 %vm144_vm1, %v12267_v63  ;;  %15306 = vmatprep.mubr.msk.f32.mxu1 %vm144_vm1, %v12524_v4  ;;  %v12273_v11 = vld [vmem:[%s20412_s2 + $0x610] sm:$0xff] }
 0x21b   :  { %v12530_v12 = vld [vmem:[%s20412_s2 + $0x690] sm:$0xff] }
 0x21c   :  { %v4055_v31 = vmax.f32 %v4053_v8, %v4054_v21  ;;  %v5449_v32 = vmax.f32 %v5447_v9, %v5448_v22  ;;  %v14759_v37 = vpop.f32.mrb[162].mxu0  ;;  %v14953_v38 = vpop.f32.mrb[162].mxu1  ;;  %v12272_v8 = vld [vmem:[%s20412_s2 + $0x608] sm:$0xff] }
 0x21d   :  { %v3549_v39 = vpop.f32.mrb[163].mxu0  ;;  %v4943_v40 = vpop.f32.mrb[163].mxu1  ;;  %15113 = vmatmul.mubr.msk.f32.gmra.mrb[12].mxu0 %vm144_vm1, %v12268_v27  ;;  %15307 = vmatmul.mubr.msk.f32.gmra.mrb[12].mxu1 %vm144_vm1, %v12525_v28  ;;  %v12529_v9 = vld [vmem:[%s20412_s2 + $0x688] sm:$0xff] }
 0x21e   :  { %v4056_v41 = vrot.slane %v4055_v31, 2  ;;  %v5450_v42 = vrot.slane %v5449_v32, 2  ;;  %v4061_v45 = vmax.f32 %v4060_v23, %v3549_v39  ;;  %v5455_v47 = vmax.f32 %v5454_v24, %v4943_v40  ;;  %15115 = vmatprep.mubr.msk.f32.mxu0 %vm144_vm1, %v12269_v29  ;;  %15309 = vmatprep.mubr.msk.f32.mxu1 %vm144_vm1, %v12526_v30 }
 0x220   :  { %v4057_v53 = vmax.f32 %v4055_v31, %v4056_v41  ;;  %v5451_v34 = vmax.f32 %v5449_v32, %v5450_v42  ;;  %v14762_v35 = vpop.f32.mrb[164].mxu0  ;;  %v14956_v43 = vpop.f32.mrb[164].mxu1  ;;  %v4062_v54 = vmax.f32 %v4061_v45, %v14759_v37  ;;  %v5456_v55 = vmax.f32 %v5455_v47, %v14953_v38  ;;  %v12274_v32 = vld [vmem:[%s20412_s2 + $0x618] sm:$0xff] }
 0x221   :  { %v3559_v56 = vpop.f32.mrb[165].mxu0  ;;  %v4953_v59 = vpop.f32.mrb[165].mxu1  ;;  %15116 = vmatmul.mubr.msk.f32.gmra.mrb[14].mxu0 %vm144_vm1, %v12270_v48  ;;  %15310 = vmatmul.mubr.msk.f32.gmra.mrb[14].mxu1 %vm144_vm1, %v12527_v50  ;;  %v12531_v37 = vld [vmem:[%s20412_s2 + $0x698] sm:$0xff]  ;;  %v12276_v50 = vld [vmem:[%s20412_s2 + $0x628] sm:$0xff] }
 0x222   :  { %v4058_v61 = vrot.slane %v4057_v53, 1  ;;  %v5452_v62 = vrot.slane %v5451_v34, 1  ;;  %v4063_v63 = vmax.f32 %v4062_v54, %v3559_v56  ;;  %v5457_v4 = vmax.f32 %v5456_v55, %v4953_v59  ;;  %15118 = vmatprep.mubr.msk.f32.mxu0 %vm144_vm1, %v12271_v51  ;;  %15312 = vmatprep.mubr.msk.f32.mxu1 %vm144_vm1, %v12528_v52  ;;  %v12533_v51 = vld [vmem:[%s20412_s2 + $0x6a8] sm:$0xff]  ;;  %v12277_v52 = vld [vmem:[%s20412_s2 + $0x630] sm:$0xff] }
 0x224   :  { %v4059_v17 = vmax.f32 %v4057_v53, %v4058_v61  ;;  %v14765_v20 = vpop.f32.mrb[166].mxu0  ;;  %v14959_v21 = vpop.f32.mrb[166].mxu1  ;;  %v4064_v22 = vmax.f32 %v4063_v63, %v14762_v35  ;;  %v5458_v23 = vmax.f32 %v5457_v4, %v14956_v43  ;;  %v18212_v24 = vmax.f32 %v5451_v34, %v5452_v62  ;;  %v12534_v53 = vld [vmem:[%s20412_s2 + $0x6b0] sm:$0xff]  ;;  %v12278_v62 = vld [vmem:[%s20412_s2 + $0x638] sm:$0xff]  ;;  %v12279_v4 = vld [vmem:[%s20412_s2 + $0x640] sm:$0xff] }
 0x225   :  { %v3569_v27 = vpop.f32.mrb[167].mxu0  ;;  %v4963_v28 = vpop.f32.mrb[167].mxu1  ;;  %15119 = vmatmul.mubr.msk.f32.gmra.mrb[16].mxu0 %vm144_vm1, %v12272_v8  ;;  %15313 = vmatmul.mubr.msk.f32.gmra.mrb[16].mxu1 %vm144_vm1, %v12529_v9  ;;  %v12535_v63 = vld [vmem:[%s20412_s2 + $0x6b8] sm:$0xff]  ;;  %v12536_v8 = vld [vmem:[%s20412_s2 + $0x6c0] sm:$0xff] }
 0x226   :  { %v18219_v29 = vmax.f32 %v2793_v26, %v4059_v17  ;;  %v4065_v30 = vmax.f32 %v4064_v22, %v3569_v27  ;;  %v5459_v31 = vmax.f32 %v5458_v23, %v4963_v28  ;;  %15121 = vmatprep.mubr.msk.f32.mxu0 %vm144_vm1, %v12273_v11  ;;  %15315 = vmatprep.mubr.msk.f32.mxu1 %vm144_vm1, %v12530_v12  ;;  %v12280_v27 = vld [vmem:[%s20412_s2 + $0x648] sm:$0xff] }
 0x227   :  { %v12537_v28 = vld [vmem:[%s20412_s2 + $0x6c8] sm:$0xff] }
 0x228   :  { %v14768_v26 = vpop.f32.mrb[168].mxu0  ;;  %v14962_v38 = vpop.f32.mrb[168].mxu1  ;;  %v4066_v39 = vmax.f32 %v4065_v30, %v14765_v20  ;;  %v5460_v40 = vmax.f32 %v5459_v31, %v14959_v21  ;;  %v5581_v41 = vmax.f32 %v18219_v29, %v18212_v24  ;;  %v12281_v30 = vld [vmem:[%s20412_s2 + $0x650] sm:$0xff]  ;;  %v12789_v24 = vld [vmem:[%s20412_s2 + $0x720] sm:$0xff] }
 0x229   :  { %v3579_v42 = vpop.f32.mrb[169].mxu0  ;;  %v4973_v45 = vpop.f32.mrb[169].mxu1  ;;  %15122 = vmatmul.mubr.msk.f32.gmra.mrb[18].mxu0 %vm144_vm1, %v12274_v32  ;;  %15316 = vmatmul.mubr.msk.f32.gmra.mrb[18].mxu1 %vm144_vm1, %v12531_v37  ;;  %v12538_v31 = vld [vmem:[%s20412_s2 + $0x6d0] sm:$0xff]  ;;  %v13046_v29 = vld [vmem:[%s20412_s2 + $0x7a0] sm:$0xff] }
 0x22a   :  { %v4067_v47 = vmax.f32 %v4066_v39, %v3579_v42  ;;  %v5461_v48 = vmax.f32 %v5460_v40, %v4973_v45  ;;  %15124 = vmatprep.mubr.msk.f32.mxu0 %vm144_vm1, %v12275_v18  ;;  %15318 = vmatprep.mubr.msk.f32.mxu1 %vm144_vm1, %v12532_v19  ;;  %v12282_v42 = vld [vmem:[%s20412_s2 + $0x658] sm:$0xff] }
 0x22b   :  { %v12539_v45 = vld [vmem:[%s20412_s2 + $0x6d8] sm:$0xff] }
 0x22c   :  { %v14771_v34 = vpop.f32.mrb[170].mxu0  ;;  %v14965_v35 = vpop.f32.mrb[170].mxu1  ;;  %v4068_v43 = vmax.f32 %v4067_v47, %v14768_v26  ;;  %v5462_v54 = vmax.f32 %v5461_v48, %v14962_v38  ;;  %v12283_v47 = vld [vmem:[%s20412_s2 + $0x660] sm:$0xff] }
 0x22d   :  { %v3589_v55 = vpop.f32.mrb[171].mxu0  ;;  %v4983_v56 = vpop.f32.mrb[171].mxu1  ;;  %15125 = vmatmul.mubr.msk.f32.gmra.mrb[20].mxu0 %vm144_vm1, %v12276_v50  ;;  %15319 = vmatmul.mubr.msk.f32.gmra.mrb[20].mxu1 %vm144_vm1, %v12533_v51  ;;  %v12540_v48 = vld [vmem:[%s20412_s2 + $0x6e0] sm:$0xff] }
 0x22e   :  { %v4069_v59 = vmax.f32 %v4068_v43, %v3589_v55  ;;  %v5463_v61 = vmax.f32 %v5462_v54, %v4983_v56  ;;  %15127 = vmatprep.mubr.msk.f32.mxu0 %vm144_vm1, %v12277_v52  ;;  %15321 = vmatprep.mubr.msk.f32.mxu1 %vm144_vm1, %v12534_v53 }
 0x230   :  { %v14774_v9 = vpop.f32.mrb[172].mxu0  ;;  %v14968_v11 = vpop.f32.mrb[172].mxu1  ;;  %v4070_v12 = vmax.f32 %v4069_v59, %v14771_v34  ;;  %v5464_v17 = vmax.f32 %v5463_v61, %v14965_v35  ;;  %v12284_v59 = vld [vmem:[%s20412_s2 + $0x668] sm:$0xff] }
 0x231   :  { %v3599_v20 = vpop.f32.mrb[173].mxu0  ;;  %v4993_v21 = vpop.f32.mrb[173].mxu1  ;;  %15128 = vmatmul.mubr.msk.f32.gmra.mrb[22].mxu0 %vm144_vm1, %v12278_v62  ;;  %15322 = vmatmul.mubr.msk.f32.gmra.mrb[22].mxu1 %vm144_vm1, %v12535_v63  ;;  %v12541_v61 = vld [vmem:[%s20412_s2 + $0x6e8] sm:$0xff]  ;;  %v12285_v62 = vld [vmem:[%s20412_s2 + $0x670] sm:$0xff] }
 0x232   :  { %v4071_v22 = vmax.f32 %v4070_v12, %v3599_v20  ;;  %v5465_v23 = vmax.f32 %v5464_v17, %v4993_v21  ;;  %15130 = vmatprep.mubr.msk.f32.mxu0 %vm144_vm1, %v12279_v4  ;;  %15324 = vmatprep.mubr.msk.f32.mxu1 %vm144_vm1, %v12536_v8  ;;  %v12542_v63 = vld [vmem:[%s20412_s2 + $0x6f0] sm:$0xff] }
 0x234   :  { %v14777_v32 = vpop.f32.mrb[174].mxu0  ;;  %v14971_v37 = vpop.f32.mrb[174].mxu1  ;;  %v4072_v18 = vmax.f32 %v4071_v22, %v14774_v9  ;;  %v5466_v19 = vmax.f32 %v5465_v23, %v14968_v11 }
 0x235   :  { %v3609_v26 = vpop.f32.mrb[175].mxu0  ;;  %v5003_v38 = vpop.f32.mrb[175].mxu1  ;;  %15131 = vmatmul.mubr.msk.f32.gmra.mrb[24].mxu0 %vm144_vm1, %v12280_v27  ;;  %15325 = vmatmul.mubr.msk.f32.gmra.mrb[24].mxu1 %vm144_vm1, %v12537_v28  ;;  %v12286_v27 = vld [vmem:[%s20412_s2 + $0x678] sm:$0xff] }
 0x236   :  { %v4073_v39 = vmax.f32 %v4072_v18, %v3609_v26  ;;  %v5467_v40 = vmax.f32 %v5466_v19, %v5003_v38  ;;  %15133 = vmatprep.mubr.msk.f32.mxu0 %vm144_vm1, %v12281_v30  ;;  %15327 = vmatprep.mubr.msk.f32.mxu1 %vm144_vm1, %v12538_v31  ;;  %v12543_v28 = vld [vmem:[%s20412_s2 + $0x6f8] sm:$0xff]  ;;  %v12287_v30 = vld [vmem:[%s20412_s2 + $0xa00] sm:$0xff] }
 0x237   :  { %v12544_v31 = vld [vmem:[%s20412_s2 + $0xa80] sm:$0xff] }
 0x238   :  { %v4074_v50 = vmax.f32 %v4073_v39, %v14777_v32  ;;  %v5468_v51 = vmax.f32 %v5467_v40, %v14971_v37  ;;  %v14780_v52 = vpop.f32.mrb[176].mxu0  ;;  %v14974_v53 = vpop.f32.mrb[176].mxu1 }
 0x239   :  { %v3619_v34 = vpop.f32.mrb[177].mxu0  ;;  %15134 = vmatmul.mubr.msk.f32.gmra.mrb[26].mxu0 %vm144_vm1, %v12282_v42  ;;  %15328 = vmatmul.mubr.msk.f32.gmra.mrb[26].mxu1 %vm144_vm1, %v12539_v45  ;;  %v5013_v35 = vpop.f32.mrb[177].mxu1 }
 0x23a   :  { %v4075_v43 = vrot.slane %v4074_v50, 4  ;;  %v5469_v54 = vrot.slane %v5468_v51, 4  ;;  %v4081_v55 = vmax.f32 %v3619_v34, %v14780_v52  ;;  %v5475_v56 = vmax.f32 %v5013_v35, %v14974_v53  ;;  %15136 = vmatprep.mubr.msk.f32.mxu0 %vm144_vm1, %v12283_v47  ;;  %15330 = vmatprep.mubr.msk.f32.mxu1 %vm144_vm1, %v12540_v48  ;;  %v12289_v52 = vld [vmem:[%s20412_s2 + $0xa10] sm:$0xff] }
 0x23b   :  { %v12546_v53 = vld [vmem:[%s20412_s2 + $0xa90] sm:$0xff] }
 0x23c   :  { %v4076_v4 = vmax.f32 %v4074_v50, %v4075_v43  ;;  %v5470_v8 = vmax.f32 %v5468_v51, %v5469_v54  ;;  %v14783_v9 = vpop.f32.mrb[178].mxu0  ;;  %v14977_v11 = vpop.f32.mrb[178].mxu1  ;;  %v12288_v50 = vld [vmem:[%s20412_s2 + $0xa08] sm:$0xff] }
 0x23d   :  { %v3629_v12 = vpop.f32.mrb[179].mxu0  ;;  %v5023_v17 = vpop.f32.mrb[179].mxu1  ;;  %15137 = vmatmul.mubr.msk.f32.gmra.mrb[28].mxu0 %vm144_vm1, %v12284_v59  ;;  %15331 = vmatmul.mubr.msk.f32.gmra.mrb[28].mxu1 %vm144_vm1, %v12541_v61  ;;  %v12545_v51 = vld [vmem:[%s20412_s2 + $0xa88] sm:$0xff] }
 0x23e   :  { %v4077_v20 = vrot.slane %v4076_v4, 2  ;;  %v5471_v21 = vrot.slane %v5470_v8, 2  ;;  %v4082_v22 = vmax.f32 %v4081_v55, %v3629_v12  ;;  %v5476_v23 = vmax.f32 %v5475_v56, %v5023_v17  ;;  %15139 = vmatprep.mubr.msk.f32.mxu0 %vm144_vm1, %v12285_v62  ;;  %15333 = vmatprep.mubr.msk.f32.mxu1 %vm144_vm1, %v12542_v63 }
 0x240   :  { %v4078_v32 = vmax.f32 %v4076_v4, %v4077_v20  ;;  %v5472_v37 = vmax.f32 %v5470_v8, %v5471_v21  ;;  %v14786_v18 = vpop.f32.mrb[180].mxu0  ;;  %v14980_v19 = vpop.f32.mrb[180].mxu1  ;;  %v4083_v26 = vmax.f32 %v4082_v22, %v14783_v9  ;;  %v5477_v38 = vmax.f32 %v5476_v23, %v14977_v11  ;;  %v12290_v8 = vld [vmem:[%s20412_s2 + $0xa18] sm:$0xff] }
 0x241   :  { %v3639_v39 = vpop.f32.mrb[181].mxu0  ;;  %v5033_v40 = vpop.f32.mrb[181].mxu1  ;;  %15140 = vmatmul.mubr.msk.f32.gmra.mrb[30].mxu0 %vm144_vm1, %v12286_v27  ;;  %15334 = vmatmul.mubr.msk.f32.gmra.mrb[30].mxu1 %vm144_vm1, %v12543_v28  ;;  %v12547_v9 = vld [vmem:[%s20412_s2 + $0xa98] sm:$0xff]  ;;  %v12292_v28 = vld [vmem:[%s20412_s2 + $0xa28] sm:$0xff] }
 0x242   :  { %v4079_v42 = vrot.slane %v4078_v32, 1  ;;  %v5473_v45 = vrot.slane %v5472_v37, 1  ;;  %v4084_v47 = vmax.f32 %v4083_v26, %v3639_v39  ;;  %v5478_v48 = vmax.f32 %v5477_v38, %v5033_v40  ;;  %15142 = vmatprep.mubr.msk.f32.mxu0 %vm144_vm1, %v12287_v30  ;;  %15336 = vmatprep.mubr.msk.f32.mxu1 %vm144_vm1, %v12544_v31  ;;  %v12549_v30 = vld [vmem:[%s20412_s2 + $0xaa8] sm:$0xff]  ;;  %v12293_v31 = vld [vmem:[%s20412_s2 + $0xa30] sm:$0xff] }
 0x244   :  { %v4080_v34 = vmax.f32 %v4078_v32, %v4079_v42  ;;  %v14789_v35 = vpop.f32.mrb[182].mxu0  ;;  %v14983_v43 = vpop.f32.mrb[182].mxu1  ;;  %v4085_v54 = vmax.f32 %v4084_v47, %v14786_v18  ;;  %v5479_v55 = vmax.f32 %v5478_v48, %v14980_v19  ;;  %v18349_v56 = vmax.f32 %v5472_v37, %v5473_v45  ;;  %v12550_v32 = vld [vmem:[%s20412_s2 + $0xab0] sm:$0xff]  ;;  %v12294_v45 = vld [vmem:[%s20412_s2 + $0xa38] sm:$0xff]  ;;  %v12295_v48 = vld [vmem:[%s20412_s2 + $0xa40] sm:$0xff] }
 0x245   :  { %v3649_v59 = vpop.f32.mrb[183].mxu0  ;;  %v5043_v61 = vpop.f32.mrb[183].mxu1  ;;  %15143 = vmatmul.mubr.msk.f32.gmra.mrb[32].mxu0 %vm144_vm1, %v12288_v50  ;;  %15337 = vmatmul.mubr.msk.f32.gmra.mrb[32].mxu1 %vm144_vm1, %v12545_v51  ;;  %v12551_v47 = vld [vmem:[%s20412_s2 + $0xab8] sm:$0xff]  ;;  %v12552_v50 = vld [vmem:[%s20412_s2 + $0xac0] sm:$0xff] }
 0x246   :  { %v18356_v62 = vmax.f32 %v2794_v14, %v4080_v34  ;;  %v4086_v63 = vmax.f32 %v4085_v54, %v3649_v59  ;;  %v5480_v4 = vmax.f32 %v5479_v55, %v5043_v61  ;;  %15145 = vmatprep.mubr.msk.f32.mxu0 %vm144_vm1, %v12289_v52  ;;  %15339 = vmatprep.mubr.msk.f32.mxu1 %vm144_vm1, %v12546_v53  ;;  %v12296_v59 = vld [vmem:[%s20412_s2 + $0xa48] sm:$0xff] }
 0x247   :  { %v12553_v61 = vld [vmem:[%s20412_s2 + $0xac8] sm:$0xff] }
 0x248   :  { %v14792_v14 = vpop.f32.mrb[184].mxu0  ;;  %v14986_v11 = vpop.f32.mrb[184].mxu1  ;;  %v4087_v12 = vmax.f32 %v4086_v63, %v14789_v35  ;;  %v5481_v17 = vmax.f32 %v5480_v4, %v14983_v43  ;;  %v5582_v20 = vmax.f32 %v18356_v62, %v18349_v56  ;;  %v12297_v63 = vld [vmem:[%s20412_s2 + $0xa50] sm:$0xff]  ;;  %v12805_v56 = vld [vmem:[%s20412_s2 + $0xb20] sm:$0xff] }
 0x249   :  { %v3659_v21 = vpop.f32.mrb[185].mxu0  ;;  %v5053_v22 = vpop.f32.mrb[185].mxu1  ;;  %15146 = vmatmul.mubr.msk.f32.gmra.mrb[34].mxu0 %vm144_vm1, %v12290_v8  ;;  %15340 = vmatmul.mubr.msk.f32.gmra.mrb[34].mxu1 %vm144_vm1, %v12547_v9  ;;  %v12554_v4 = vld [vmem:[%s20412_s2 + $0xad0] sm:$0xff]  ;;  %v13062_v62 = vld [vmem:[%s20412_s2 + $0xba0] sm:$0xff] }
 0x24a   :  { %v4088_v23 = vmax.f32 %v4087_v12, %v3659_v21  ;;  %v5482_v27 = vmax.f32 %v5481_v17, %v5053_v22  ;;  %15148 = vmatprep.mubr.msk.f32.mxu0 %vm144_vm1, %v12291_v6  ;;  %15342 = vmatprep.mubr.msk.f32.mxu1 %vm144_vm1, %v12548_v7  ;;  %v12298_v21 = vld [vmem:[%s20412_s2 + $0xa58] sm:$0xff] }
 0x24b   :  { %v12555_v22 = vld [vmem:[%s20412_s2 + $0xad8] sm:$0xff] }
 0x24c   :  { %v14795_v37 = vpop.f32.mrb[186].mxu0  ;;  %v14989_v18 = vpop.f32.mrb[186].mxu1  ;;  %v4089_v19 = vmax.f32 %v4088_v23, %v14792_v14  ;;  %v5483_v26 = vmax.f32 %v5482_v27, %v14986_v11  ;;  %v12299_v23 = vld [vmem:[%s20412_s2 + $0xa60] sm:$0xff] }
 0x24d   :  { %v3669_v38 = vpop.f32.mrb[187].mxu0  ;;  %v5063_v39 = vpop.f32.mrb[187].mxu1  ;;  %15149 = vmatmul.mubr.msk.f32.gmra.mrb[36].mxu0 %vm144_vm1, %v12292_v28  ;;  %15343 = vmatmul.mubr.msk.f32.gmra.mrb[36].mxu1 %vm144_vm1, %v12549_v30  ;;  %v12556_v27 = vld [vmem:[%s20412_s2 + $0xae0] sm:$0xff] }
 0x24e   :  { %v4090_v40 = vmax.f32 %v4089_v19, %v3669_v38  ;;  %v5484_v42 = vmax.f32 %v5483_v26, %v5063_v39  ;;  %15151 = vmatprep.mubr.msk.f32.mxu0 %vm144_vm1, %v12293_v31  ;;  %15345 = vmatprep.mubr.msk.f32.mxu1 %vm144_vm1, %v12550_v32 }
 0x250   :  { %v14798_v51 = vpop.f32.mrb[188].mxu0  ;;  %v14992_v52 = vpop.f32.mrb[188].mxu1  ;;  %v4091_v53 = vmax.f32 %v4090_v40, %v14795_v37  ;;  %v5485_v34 = vmax.f32 %v5484_v42, %v14989_v18  ;;  %v12300_v40 = vld [vmem:[%s20412_s2 + $0xa68] sm:$0xff] }
 0x251   :  { %v3679_v35 = vpop.f32.mrb[189].mxu0  ;;  %v5073_v43 = vpop.f32.mrb[189].mxu1  ;;  %15152 = vmatmul.mubr.msk.f32.gmra.mrb[38].mxu0 %vm144_vm1, %v12294_v45  ;;  %15346 = vmatmul.mubr.msk.f32.gmra.mrb[38].mxu1 %vm144_vm1, %v12551_v47  ;;  %v12557_v42 = vld [vmem:[%s20412_s2 + $0xae8] sm:$0xff]  ;;  %v12301_v45 = vld [vmem:[%s20412_s2 + $0xa70] sm:$0xff] }
 0x252   :  { %v4092_v54 = vmax.f32 %v4091_v53, %v3679_v35  ;;  %v5486_v55 = vmax.f32 %v5485_v34, %v5073_v43  ;;  %15154 = vmatprep.mubr.msk.f32.mxu0 %vm144_vm1, %v12295_v48  ;;  %15348 = vmatprep.mubr.msk.f32.mxu1 %vm144_vm1, %v12552_v50  ;;  %v12558_v47 = vld [vmem:[%s20412_s2 + $0xaf0] sm:$0xff] }
 0x254   :  { %v14801_v8 = vpop.f32.mrb[190].mxu0  ;;  %v14995_v9 = vpop.f32.mrb[190].mxu1  ;;  %v4093_v6 = vmax.f32 %v4092_v54, %v14798_v51  ;;  %v5487_v7 = vmax.f32 %v5486_v55, %v14992_v52 }
 0x255   :  { %v3689_v14 = vpop.f32.mrb[191].mxu0  ;;  %v5083_v11 = vpop.f32.mrb[191].mxu1  ;;  %15155 = vmatmul.mubr.msk.f32.gmra.mrb[40].mxu0 %vm144_vm1, %v12296_v59  ;;  %15349 = vmatmul.mubr.msk.f32.gmra.mrb[40].mxu1 %vm144_vm1, %v12553_v61  ;;  %v12302_v59 = vld [vmem:[%s20412_s2 + $0xa78] sm:$0xff] }
 0x256   :  { %v4094_v12 = vmax.f32 %v4093_v6, %v3689_v14  ;;  %v5488_v17 = vmax.f32 %v5487_v7, %v5083_v11  ;;  %15157 = vmatprep.mubr.msk.f32.mxu0 %vm144_vm1, %v12297_v63  ;;  %15351 = vmatprep.mubr.msk.f32.mxu1 %vm144_vm1, %v12554_v4  ;;  %v12559_v61 = vld [vmem:[%s20412_s2 + $0xaf8] sm:$0xff]  ;;  %v12303_v63 = vld [vmem:[%s20412_s2 + $0xe00] sm:$0xff] }
 0x257   :  { %v12560_v4 = vld [vmem:[%s20412_s2 + $0xe80] sm:$0xff] }
 0x258   :  { %v4095_v28 = vmax.f32 %v4094_v12, %v14801_v8  ;;  %v5489_v30 = vmax.f32 %v5488_v17, %v14995_v9  ;;  %v14804_v31 = vpop.f32.mrb[192].mxu0  ;;  %v14998_v32 = vpop.f32.mrb[192].mxu1 }
 0x259   :  { %v3699_v37 = vpop.f32.mrb[193].mxu0  ;;  %15158 = vmatmul.mubr.msk.f32.gmra.mrb[42].mxu0 %vm144_vm1, %v12298_v21  ;;  %15352 = vmatmul.mubr.msk.f32.gmra.mrb[42].mxu1 %vm144_vm1, %v12555_v22  ;;  %v5093_v18 = vpop.f32.mrb[193].mxu1 }
 0x25a   :  { %v4096_v19 = vrot.slane %v4095_v28, 4  ;;  %v5490_v26 = vrot.slane %v5489_v30, 4  ;;  %v4102_v38 = vmax.f32 %v3699_v37, %v14804_v31  ;;  %v5496_v39 = vmax.f32 %v5093_v18, %v14998_v32  ;;  %15160 = vmatprep.mubr.msk.f32.mxu0 %vm144_vm1, %v12299_v23  ;;  %15354 = vmatprep.mubr.msk.f32.mxu1 %vm144_vm1, %v12556_v27  ;;  %v12305_v31 = vld [vmem:[%s20412_s2 + $0xe10] sm:$0xff] }
 0x25b   :  { %v12562_v32 = vld [vmem:[%s20412_s2 + $0xe90] sm:$0xff] }
 0x25c   :  { %v4097_v48 = vmax.f32 %v4095_v28, %v4096_v19  ;;  %v5491_v50 = vmax.f32 %v5489_v30, %v5490_v26  ;;  %v14807_v51 = vpop.f32.mrb[194].mxu0  ;;  %v15001_v52 = vpop.f32.mrb[194].mxu1  ;;  %v12304_v28 = vld [vmem:[%s20412_s2 + $0xe08] sm:$0xff] }
 0x25d   :  { %v3709_v53 = vpop.f32.mrb[195].mxu0  ;;  %v5103_v34 = vpop.f32.mrb[195].mxu1  ;;  %15161 = vmatmul.mubr.msk.f32.gmra.mrb[44].mxu0 %vm144_vm1, %v12300_v40  ;;  %15355 = vmatmul.mubr.msk.f32.gmra.mrb[44].mxu1 %vm144_vm1, %v12557_v42  ;;  %v12561_v30 = vld [vmem:[%s20412_s2 + $0xe88] sm:$0xff] }
 0x25e   :  { %v4098_v35 = vrot.slane %v4097_v48, 2  ;;  %v5492_v43 = vrot.slane %v5491_v50, 2  ;;  %v4103_v54 = vmax.f32 %v4102_v38, %v3709_v53  ;;  %v5497_v55 = vmax.f32 %v5496_v39, %v5103_v34  ;;  %15163 = vmatprep.mubr.msk.f32.mxu0 %vm144_vm1, %v12301_v45  ;;  %15357 = vmatprep.mubr.msk.f32.mxu1 %vm144_vm1, %v12558_v47 }
 0x260   :  { %v4099_v8 = vmax.f32 %v4097_v48, %v4098_v35  ;;  %v5493_v9 = vmax.f32 %v5491_v50, %v5492_v43  ;;  %v14810_v6 = vpop.f32.mrb[196].mxu0  ;;  %v15004_v7 = vpop.f32.mrb[196].mxu1  ;;  %v4104_v14 = vmax.f32 %v4103_v54, %v14807_v51  ;;  %v5498_v11 = vmax.f32 %v5497_v55, %v15001_v52  ;;  %v12306_v50 = vld [vmem:[%s20412_s2 + $0xe18] sm:$0xff] }
 0x261   :  { %v3719_v12 = vpop.f32.mrb[197].mxu0  ;;  %v5113_v17 = vpop.f32.mrb[197].mxu1  ;;  %15164 = vmatmul.mubr.msk.f32.gmra.mrb[46].mxu0 %vm144_vm1, %v12302_v59  ;;  %15358 = vmatmul.mubr.msk.f32.gmra.mrb[46].mxu1 %vm144_vm1, %v12559_v61  ;;  %v12563_v51 = vld [vmem:[%s20412_s2 + $0xe98] sm:$0xff]  ;;  %v12308_v61 = vld [vmem:[%s20412_s2 + $0xe28] sm:$0xff] }
 0x262   :  { %v4100_v21 = vrot.slane %v4099_v8, 1  ;;  %v5494_v22 = vrot.slane %v5493_v9, 1  ;;  %v4105_v23 = vmax.f32 %v4104_v14, %v3719_v12  ;;  %v5499_v27 = vmax.f32 %v5498_v11, %v5113_v17  ;;  %15166 = vmatprep.mubr.msk.f32.mxu0 %vm144_vm1, %v12303_v63  ;;  %15360 = vmatprep.mubr.msk.f32.mxu1 %vm144_vm1, %v12560_v4  ;;  %v12565_v63 = vld [vmem:[%s20412_s2 + $0xea8] sm:$0xff]  ;;  %v12309_v4 = vld [vmem:[%s20412_s2 + $0xe30] sm:$0xff] }
 0x264   :  { %v4101_v37 = vmax.f32 %v4099_v8, %v4100_v21  ;;  %v14813_v18 = vpop.f32.mrb[198].mxu0  ;;  %v15007_v19 = vpop.f32.mrb[198].mxu1  ;;  %v4106_v26 = vmax.f32 %v4105_v23, %v14810_v6  ;;  %v5500_v38 = vmax.f32 %v5499_v27, %v15004_v7  ;;  %v18486_v39 = vmax.f32 %v5493_v9, %v5494_v22  ;;  %v12566_v8 = vld [vmem:[%s20412_s2 + $0xeb0] sm:$0xff]  ;;  %v12310_v22 = vld [vmem:[%s20412_s2 + $0xe38] sm:$0xff]  ;;  %v12311_v27 = vld [vmem:[%s20412_s2 + $0xe40] sm:$0xff] }
 0x265   :  { %v3729_v40 = vpop.f32.mrb[199].mxu0  ;;  %v5123_v42 = vpop.f32.mrb[199].mxu1  ;;  %15167 = vmatmul.mubr.msk.f32.gmra.mrb[48].mxu0 %vm144_vm1, %v12304_v28  ;;  %15361 = vmatmul.mubr.msk.f32.gmra.mrb[48].mxu1 %vm144_vm1, %v12561_v30  ;;  %v12567_v23 = vld [vmem:[%s20412_s2 + $0xeb8] sm:$0xff]  ;;  %v12568_v28 = vld [vmem:[%s20412_s2 + $0xec0] sm:$0xff] }
 0x266   :  { %v18493_v45 = vmax.f32 %v2795_v10, %v4101_v37  ;;  %v4107_v47 = vmax.f32 %v4106_v26, %v3729_v40  ;;  %v5501_v48 = vmax.f32 %v5500_v38, %v5123_v42  ;;  %15169 = vmatprep.mubr.msk.f32.mxu0 %vm144_vm1, %v12305_v31  ;;  %15363 = vmatprep.mubr.msk.f32.mxu1 %vm144_vm1, %v12562_v32  ;;  %v12312_v40 = vld [vmem:[%s20412_s2 + $0xe48] sm:$0xff] }
 0x267   :  { %v12569_v42 = vld [vmem:[%s20412_s2 + $0xec8] sm:$0xff] }
 0x268   :  { %v14816_v10 = vpop.f32.mrb[200].mxu0  ;;  %v15010_v52 = vpop.f32.mrb[200].mxu1  ;;  %v4108_v53 = vmax.f32 %v4107_v47, %v14813_v18  ;;  %v5502_v34 = vmax.f32 %v5501_v48, %v15007_v19  ;;  %v5583_v35 = vmax.f32 %v18493_v45, %v18486_v39  ;;  %v12313_v47 = vld [vmem:[%s20412_s2 + $0xe50] sm:$0xff]  ;;  %v12821_v39 = vld [vmem:[%s20412_s2 + $0xf20] sm:$0xff] }
 0x269   :  { %v3739_v43 = vpop.f32.mrb[201].mxu0  ;;  %v5133_v54 = vpop.f32.mrb[201].mxu1  ;;  %15170 = vmatmul.mubr.msk.f32.gmra.mrb[50].mxu0 %vm144_vm1, %v12306_v50  ;;  %15364 = vmatmul.mubr.msk.f32.gmra.mrb[50].mxu1 %vm144_vm1, %v12563_v51  ;;  %v12570_v48 = vld [vmem:[%s20412_s2 + $0xed0] sm:$0xff]  ;;  %v13078_v45 = vld [vmem:[%s20412_s2 + $0xfa0] sm:$0xff] }
 0x26a   :  { %v4109_v55 = vmax.f32 %v4108_v53, %v3739_v43  ;;  %v5503_v59 = vmax.f32 %v5502_v34, %v5133_v54  ;;  %15172 = vmatprep.mubr.msk.f32.mxu0 %vm144_vm1, %v12307_v0  ;;  %15366 = vmatprep.mubr.msk.f32.mxu1 %vm144_vm1, %v12564_v1  ;;  %v12314_v43 = vld [vmem:[%s20412_s2 + $0xe58] sm:$0xff] }
 0x26b   :  { %v12571_v54 = vld [vmem:[%s20412_s2 + $0xed8] sm:$0xff] }
 0x26c   :  { %v14819_v9 = vpop.f32.mrb[202].mxu0  ;;  %v15013_v6 = vpop.f32.mrb[202].mxu1  ;;  %v4110_v7 = vmax.f32 %v4109_v55, %v14816_v10  ;;  %v5504_v14 = vmax.f32 %v5503_v59, %v15010_v52  ;;  %v12315_v55 = vld [vmem:[%s20412_s2 + $0xe60] sm:$0xff] }
 0x26d   :  { %v3749_v11 = vpop.f32.mrb[203].mxu0  ;;  %v5143_v12 = vpop.f32.mrb[203].mxu1  ;;  %15173 = vmatmul.mubr.msk.f32.gmra.mrb[52].mxu0 %vm144_vm1, %v12308_v61  ;;  %15367 = vmatmul.mubr.msk.f32.gmra.mrb[52].mxu1 %vm144_vm1, %v12565_v63  ;;  %v12572_v59 = vld [vmem:[%s20412_s2 + $0xee0] sm:$0xff] }
 0x26e   :  { %v4111_v17 = vmax.f32 %v4110_v7, %v3749_v11  ;;  %v5505_v21 = vmax.f32 %v5504_v14, %v5143_v12  ;;  %15175 = vmatprep.mubr.msk.f32.mxu0 %vm144_vm1, %v12309_v4  ;;  %15369 = vmatprep.mubr.msk.f32.mxu1 %vm144_vm1, %v12566_v8 }
 0x270   :  { %v14822_v30 = vpop.f32.mrb[204].mxu0  ;;  %v15016_v31 = vpop.f32.mrb[204].mxu1  ;;  %v4112_v32 = vmax.f32 %v4111_v17, %v14819_v9  ;;  %v5506_v37 = vmax.f32 %v5505_v21, %v15013_v6  ;;  %v12316_v17 = vld [vmem:[%s20412_s2 + $0xe68] sm:$0xff] }
 0x271   :  { %v3759_v18 = vpop.f32.mrb[205].mxu0  ;;  %v5153_v19 = vpop.f32.mrb[205].mxu1  ;;  %15176 = vmatmul.mubr.msk.f32.gmra.mrb[54].mxu0 %vm144_vm1, %v12310_v22  ;;  %15370 = vmatmul.mubr.msk.f32.gmra.mrb[54].mxu1 %vm144_vm1, %v12567_v23  ;;  %v12573_v21 = vld [vmem:[%s20412_s2 + $0xee8] sm:$0xff]  ;;  %v12317_v22 = vld [vmem:[%s20412_s2 + $0xe70] sm:$0xff] }
 0x272   :  { %v4113_v26 = vmax.f32 %v4112_v32, %v3759_v18  ;;  %v5507_v38 = vmax.f32 %v5506_v37, %v5153_v19  ;;  %15178 = vmatprep.mubr.msk.f32.mxu0 %vm144_vm1, %v12311_v27  ;;  %15372 = vmatprep.mubr.msk.f32.mxu1 %vm144_vm1, %v12568_v28  ;;  %v12574_v23 = vld [vmem:[%s20412_s2 + $0xef0] sm:$0xff] }
 0x274   :  { %v14825_v50 = vpop.f32.mrb[206].mxu0  ;;  %v15019_v51 = vpop.f32.mrb[206].mxu1  ;;  %v4114_v0 = vmax.f32 %v4113_v26, %v14822_v30  ;;  %v5508_v1 = vmax.f32 %v5507_v38, %v15016_v31 }
 0x275   :  { %v3769_v10 = vpop.f32.mrb[207].mxu0  ;;  %v5163_v52 = vpop.f32.mrb[207].mxu1  ;;  %15179 = vmatmul.mubr.msk.f32.gmra.mrb[56].mxu0 %vm144_vm1, %v12312_v40  ;;  %15373 = vmatmul.mubr.msk.f32.gmra.mrb[56].mxu1 %vm144_vm1, %v12569_v42  ;;  %v12318_v40 = vld [vmem:[%s20412_s2 + $0xe78] sm:$0xff] }
 0x276   :  { %v4115_v53 = vmax.f32 %v4114_v0, %v3769_v10  ;;  %v5509_v34 = vmax.f32 %v5508_v1, %v5163_v52  ;;  %15181 = vmatprep.mubr.msk.f32.mxu0 %vm144_vm1, %v12313_v47  ;;  %15375 = vmatprep.mubr.msk.f32.mxu1 %vm144_vm1, %v12570_v48  ;;  %v12575_v42 = vld [vmem:[%s20412_s2 + $0xef8] sm:$0xff]  ;;  %v12319_v47 = vld [vmem:[%s20412_s2 + $0x1200] sm:$0xff] }
 0x277   :  { %v12576_v48 = vld [vmem:[%s20412_s2 + $0x1280] sm:$0xff] }
 0x278   :  { %v4116_v61 = vmax.f32 %v4115_v53, %v14825_v50  ;;  %v5510_v63 = vmax.f32 %v5509_v34, %v15019_v51  ;;  %v14828_v4 = vpop.f32.mrb[208].mxu0  ;;  %v15022_v8 = vpop.f32.mrb[208].mxu1 }
 0x279   :  { %v3779_v9 = vpop.f32.mrb[209].mxu0  ;;  %15182 = vmatmul.mubr.msk.f32.gmra.mrb[58].mxu0 %vm144_vm1, %v12314_v43  ;;  %15376 = vmatmul.mubr.msk.f32.gmra.mrb[58].mxu1 %vm144_vm1, %v12571_v54  ;;  %v5173_v6 = vpop.f32.mrb[209].mxu1 }
 0x27a   :  { %v4117_v7 = vrot.slane %v4116_v61, 4  ;;  %v5511_v14 = vrot.slane %v5510_v63, 4  ;;  %v4123_v11 = vmax.f32 %v3779_v9, %v14828_v4  ;;  %v5517_v12 = vmax.f32 %v5173_v6, %v15022_v8  ;;  %15184 = vmatprep.mubr.msk.f32.mxu0 %vm144_vm1, %v12315_v55  ;;  %15378 = vmatprep.mubr.msk.f32.mxu1 %vm144_vm1, %v12572_v59  ;;  %v12321_v4 = vld [vmem:[%s20412_s2 + $0x1210] sm:$0xff] }
 0x27b   :  { %v12578_v8 = vld [vmem:[%s20412_s2 + $0x1290] sm:$0xff] }
 0x27c   :  { %v4118_v27 = vmax.f32 %v4116_v61, %v4117_v7  ;;  %v5512_v28 = vmax.f32 %v5510_v63, %v5511_v14  ;;  %v14831_v30 = vpop.f32.mrb[210].mxu0  ;;  %v15025_v31 = vpop.f32.mrb[210].mxu1  ;;  %v12320_v61 = vld [vmem:[%s20412_s2 + $0x1208] sm:$0xff] }
 0x27d   :  { %v3789_v32 = vpop.f32.mrb[211].mxu0  ;;  %v5183_v37 = vpop.f32.mrb[211].mxu1  ;;  %15185 = vmatmul.mubr.msk.f32.gmra.mrb[60].mxu0 %vm144_vm1, %v12316_v17  ;;  %15379 = vmatmul.mubr.msk.f32.gmra.mrb[60].mxu1 %vm144_vm1, %v12573_v21  ;;  %v12577_v63 = vld [vmem:[%s20412_s2 + $0x1288] sm:$0xff] }
 0x27e   :  { %v4119_v18 = vrot.slane %v4118_v27, 2  ;;  %v5513_v19 = vrot.slane %v5512_v28, 2  ;;  %v4124_v26 = vmax.f32 %v4123_v11, %v3789_v32  ;;  %v5518_v38 = vmax.f32 %v5517_v12, %v5183_v37  ;;  %15187 = vmatprep.mubr.msk.f32.mxu0 %vm144_vm1, %v12317_v22  ;;  %15381 = vmatprep.mubr.msk.f32.mxu1 %vm144_vm1, %v12574_v23 }
 0x280   :  { %v4120_v50 = vmax.f32 %v4118_v27, %v4119_v18  ;;  %v5514_v51 = vmax.f32 %v5512_v28, %v5513_v19  ;;  %v14834_v0 = vpop.f32.mrb[212].mxu0  ;;  %v15028_v1 = vpop.f32.mrb[212].mxu1  ;;  %v4125_v10 = vmax.f32 %v4124_v26, %v14831_v30  ;;  %v5519_v52 = vmax.f32 %v5518_v38, %v15025_v31  ;;  %v12322_v28 = vld [vmem:[%s20412_s2 + $0x1218] sm:$0xff] }
 0x281   :  { %v3799_v53 = vpop.f32.mrb[213].mxu0  ;;  %v5193_v34 = vpop.f32.mrb[213].mxu1  ;;  %15188 = vmatmul.mubr.msk.f32.gmra.mrb[62].mxu0 %vm144_vm1, %v12318_v40  ;;  %15382 = vmatmul.mubr.msk.f32.gmra.mrb[62].mxu1 %vm144_vm1, %v12575_v42  ;;  %v12579_v30 = vld [vmem:[%s20412_s2 + $0x1298] sm:$0xff]  ;;  %v12324_v42 = vld [vmem:[%s20412_s2 + $0x1228] sm:$0xff] }
 0x282   :  { %v4121_v43 = vrot.slane %v4120_v50, 1  ;;  %v5515_v54 = vrot.slane %v5514_v51, 1  ;;  %v4126_v55 = vmax.f32 %v4125_v10, %v3799_v53  ;;  %v5520_v59 = vmax.f32 %v5519_v52, %v5193_v34  ;;  %15190 = vmatprep.mubr.msk.f32.mxu0 %vm144_vm1, %v12319_v47  ;;  %15384 = vmatprep.mubr.msk.f32.mxu1 %vm144_vm1, %v12576_v48  ;;  %v12581_v47 = vld [vmem:[%s20412_s2 + $0x12a8] sm:$0xff]  ;;  %v12325_v48 = vld [vmem:[%s20412_s2 + $0x1230] sm:$0xff] }
 0x284   :  { %v4122_v9 = vmax.f32 %v4120_v50, %v4121_v43  ;;  %v14837_v6 = vpop.f32.mrb[214].mxu0  ;;  %v15031_v7 = vpop.f32.mrb[214].mxu1  ;;  %v4127_v14 = vmax.f32 %v4126_v55, %v14834_v0  ;;  %v5521_v11 = vmax.f32 %v5520_v59, %v15028_v1  ;;  %v18623_v12 = vmax.f32 %v5514_v51, %v5515_v54  ;;  %v12582_v50 = vld [vmem:[%s20412_s2 + $0x12b0] sm:$0xff]  ;;  %v12326_v54 = vld [vmem:[%s20412_s2 + $0x1238] sm:$0xff]  ;;  %v12327_v59 = vld [vmem:[%s20412_s2 + $0x1240] sm:$0xff] }
 0x285   :  { %v3809_v17 = vpop.f32.mrb[215].mxu0  ;;  %v5203_v21 = vpop.f32.mrb[215].mxu1  ;;  %15191 = vmatmul.mubr.msk.f32.gmra.mrb[64].mxu0 %vm144_vm1, %v12320_v61  ;;  %15385 = vmatmul.mubr.msk.f32.gmra.mrb[64].mxu1 %vm144_vm1, %v12577_v63  ;;  %v12583_v55 = vld [vmem:[%s20412_s2 + $0x12b8] sm:$0xff]  ;;  %v12584_v61 = vld [vmem:[%s20412_s2 + $0x12c0] sm:$0xff] }
 0x286   :  { %v18630_v22 = vmax.f32 %v2796_v13, %v4122_v9  ;;  %v4128_v23 = vmax.f32 %v4127_v14, %v3809_v17  ;;  %v5522_v27 = vmax.f32 %v5521_v11, %v5203_v21  ;;  %15193 = vmatprep.mubr.msk.f32.mxu0 %vm144_vm1, %v12321_v4  ;;  %15387 = vmatprep.mubr.msk.f32.mxu1 %vm144_vm1, %v12578_v8  ;;  %v12328_v17 = vld [vmem:[%s20412_s2 + $0x1248] sm:$0xff] }
 0x287   :  { %v12585_v21 = vld [vmem:[%s20412_s2 + $0x12c8] sm:$0xff] }
 0x288   :  { %v14840_v13 = vpop.f32.mrb[216].mxu0  ;;  %v15034_v31 = vpop.f32.mrb[216].mxu1  ;;  %v4129_v32 = vmax.f32 %v4128_v23, %v14837_v6  ;;  %v5523_v37 = vmax.f32 %v5522_v27, %v15031_v7  ;;  %v5584_v18 = vmax.f32 %v18630_v22, %v18623_v12  ;;  %v12329_v23 = vld [vmem:[%s20412_s2 + $0x1250] sm:$0xff]  ;;  %v12837_v12 = vld [vmem:[%s20412_s2 + $0x1320] sm:$0xff] }
 0x289   :  { %v3819_v19 = vpop.f32.mrb[217].mxu0  ;;  %v5213_v26 = vpop.f32.mrb[217].mxu1  ;;  %15194 = vmatmul.mubr.msk.f32.gmra.mrb[66].mxu0 %vm144_vm1, %v12322_v28  ;;  %15388 = vmatmul.mubr.msk.f32.gmra.mrb[66].mxu1 %vm144_vm1, %v12579_v30  ;;  %v12586_v27 = vld [vmem:[%s20412_s2 + $0x12d0] sm:$0xff]  ;;  %v13094_v22 = vld [vmem:[%s20412_s2 + $0x13a0] sm:$0xff] }
 0x28a   :  { %v4130_v38 = vmax.f32 %v4129_v32, %v3819_v19  ;;  %v5524_v40 = vmax.f32 %v5523_v37, %v5213_v26  ;;  %15196 = vmatprep.mubr.msk.f32.mxu0 %vm144_vm1, %v12323_v2  ;;  %15390 = vmatprep.mubr.msk.f32.mxu1 %vm144_vm1, %v12580_v3  ;;  %v12330_v19 = vld [vmem:[%s20412_s2 + $0x1258] sm:$0xff] }
 0x28b   :  { %v12587_v26 = vld [vmem:[%s20412_s2 + $0x12d8] sm:$0xff] }
 0x28c   :  { %v14843_v51 = vpop.f32.mrb[218].mxu0  ;;  %v15037_v0 = vpop.f32.mrb[218].mxu1  ;;  %v4131_v1 = vmax.f32 %v4130_v38, %v14840_v13  ;;  %v5525_v10 = vmax.f32 %v5524_v40, %v15034_v31  ;;  %v12331_v38 = vld [vmem:[%s20412_s2 + $0x1260] sm:$0xff] }
 0x28d   :  { %v3829_v52 = vpop.f32.mrb[219].mxu0  ;;  %v5223_v53 = vpop.f32.mrb[219].mxu1  ;;  %15197 = vmatmul.mubr.msk.f32.gmra.mrb[68].mxu0 %vm144_vm1, %v12324_v42  ;;  %15391 = vmatmul.mubr.msk.f32.gmra.mrb[68].mxu1 %vm144_vm1, %v12581_v47  ;;  %v12588_v40 = vld [vmem:[%s20412_s2 + $0x12e0] sm:$0xff] }
 0x28e   :  { %v4132_v34 = vmax.f32 %v4131_v1, %v3829_v52  ;;  %v5526_v43 = vmax.f32 %v5525_v10, %v5223_v53  ;;  %15199 = vmatprep.mubr.msk.f32.mxu0 %vm144_vm1, %v12325_v48  ;;  %15393 = vmatprep.mubr.msk.f32.mxu1 %vm144_vm1, %v12582_v50 }
 0x290   :  { %v14846_v63 = vpop.f32.mrb[220].mxu0  ;;  %v15040_v4 = vpop.f32.mrb[220].mxu1  ;;  %v4133_v8 = vmax.f32 %v4132_v34, %v14843_v51  ;;  %v5527_v9 = vmax.f32 %v5526_v43, %v15037_v0  ;;  %v12332_v34 = vld [vmem:[%s20412_s2 + $0x1268] sm:$0xff] }
 0x291   :  { %v3839_v6 = vpop.f32.mrb[221].mxu0  ;;  %v5233_v7 = vpop.f32.mrb[221].mxu1  ;;  %15200 = vmatmul.mubr.msk.f32.gmra.mrb[70].mxu0 %vm144_vm1, %v12326_v54  ;;  %15394 = vmatmul.mubr.msk.f32.gmra.mrb[70].mxu1 %vm144_vm1, %v12583_v55  ;;  %v12589_v43 = vld [vmem:[%s20412_s2 + $0x12e8] sm:$0xff]  ;;  %v12333_v54 = vld [vmem:[%s20412_s2 + $0x1270] sm:$0xff] }
 0x292   :  { %v4134_v14 = vmax.f32 %v4133_v8, %v3839_v6  ;;  %v5528_v11 = vmax.f32 %v5527_v9, %v5233_v7  ;;  %15202 = vmatprep.mubr.msk.f32.mxu0 %vm144_vm1, %v12327_v59  ;;  %15396 = vmatprep.mubr.msk.f32.mxu1 %vm144_vm1, %v12584_v61  ;;  %v12590_v55 = vld [vmem:[%s20412_s2 + $0x12f0] sm:$0xff] }
 0x294   :  { %v14849_v28 = vpop.f32.mrb[222].mxu0  ;;  %v15043_v30 = vpop.f32.mrb[222].mxu1  ;;  %v4135_v2 = vmax.f32 %v4134_v14, %v14846_v63  ;;  %v5529_v3 = vmax.f32 %v5528_v11, %v15040_v4 }
 0x295   :  { %v3849_v13 = vpop.f32.mrb[223].mxu0  ;;  %v5243_v31 = vpop.f32.mrb[223].mxu1  ;;  %15203 = vmatmul.mubr.msk.f32.gmra.mrb[72].mxu0 %vm144_vm1, %v12328_v17  ;;  %15397 = vmatmul.mubr.msk.f32.gmra.mrb[72].mxu1 %vm144_vm1, %v12585_v21  ;;  %v12334_v17 = vld [vmem:[%s20412_s2 + $0x1278] sm:$0xff] }
 0x296   :  { %v4136_v32 = vmax.f32 %v4135_v2, %v3849_v13  ;;  %v5530_v37 = vmax.f32 %v5529_v3, %v5243_v31  ;;  %15205 = vmatprep.mubr.msk.f32.mxu0 %vm144_vm1, %v12329_v23  ;;  %15399 = vmatprep.mubr.msk.f32.mxu1 %vm144_vm1, %v12586_v27  ;;  %v12591_v21 = vld [vmem:[%s20412_s2 + $0x12f8] sm:$0xff]  ;;  %v12335_v23 = vld [vmem:[%s20412_s2 + $0x1600] sm:$0xff] }
 0x297   :  { %v12592_v27 = vld [vmem:[%s20412_s2 + $0x1680] sm:$0xff] }
 0x298   :  { %v4137_v42 = vmax.f32 %v4136_v32, %v14849_v28  ;;  %v5531_v47 = vmax.f32 %v5530_v37, %v15043_v30  ;;  %v14852_v48 = vpop.f32.mrb[224].mxu0  ;;  %v15046_v50 = vpop.f32.mrb[224].mxu1 }
 0x299   :  { %v3859_v51 = vpop.f32.mrb[225].mxu0  ;;  %15206 = vmatmul.mubr.msk.f32.gmra.mrb[74].mxu0 %vm144_vm1, %v12330_v19  ;;  %15400 = vmatmul.mubr.msk.f32.gmra.mrb[74].mxu1 %vm144_vm1, %v12587_v26  ;;  %v5253_v0 = vpop.f32.mrb[225].mxu1 }
 0x29a   :  { %v4138_v1 = vrot.slane %v4137_v42, 4  ;;  %v5532_v10 = vrot.slane %v5531_v47, 4  ;;  %v4144_v52 = vmax.f32 %v3859_v51, %v14852_v48  ;;  %v5538_v53 = vmax.f32 %v5253_v0, %v15046_v50  ;;  %15208 = vmatprep.mubr.msk.f32.mxu0 %vm144_vm1, %v12331_v38  ;;  %15402 = vmatprep.mubr.msk.f32.mxu1 %vm144_vm1, %v12588_v40  ;;  %v12337_v48 = vld [vmem:[%s20412_s2 + $0x1610] sm:$0xff] }
 0x29b   :  { %v12594_v50 = vld [vmem:[%s20412_s2 + $0x1690] sm:$0xff] }
 0x29c   :  { %v4139_v59 = vmax.f32 %v4137_v42, %v4138_v1  ;;  %v5533_v61 = vmax.f32 %v5531_v47, %v5532_v10  ;;  %v14855_v63 = vpop.f32.mrb[226].mxu0  ;;  %v15049_v4 = vpop.f32.mrb[226].mxu1  ;;  %v12336_v42 = vld [vmem:[%s20412_s2 + $0x1608] sm:$0xff] }
 0x29d   :  { %v3869_v8 = vpop.f32.mrb[227].mxu0  ;;  %v5263_v9 = vpop.f32.mrb[227].mxu1  ;;  %15209 = vmatmul.mubr.msk.f32.gmra.mrb[76].mxu0 %vm144_vm1, %v12332_v34  ;;  %15403 = vmatmul.mubr.msk.f32.gmra.mrb[76].mxu1 %vm144_vm1, %v12589_v43  ;;  %v12593_v47 = vld [vmem:[%s20412_s2 + $0x1688] sm:$0xff] }
 0x29e   :  { %v4140_v6 = vrot.slane %v4139_v59, 2  ;;  %v5534_v7 = vrot.slane %v5533_v61, 2  ;;  %v4145_v14 = vmax.f32 %v4144_v52, %v3869_v8  ;;  %v5539_v11 = vmax.f32 %v5538_v53, %v5263_v9  ;;  %15211 = vmatprep.mubr.msk.f32.mxu0 %vm144_vm1, %v12333_v54  ;;  %15405 = vmatprep.mubr.msk.f32.mxu1 %vm144_vm1, %v12590_v55 }
 0x2a0   :  { %v4141_v28 = vmax.f32 %v4139_v59, %v4140_v6  ;;  %v5535_v30 = vmax.f32 %v5533_v61, %v5534_v7  ;;  %v14858_v2 = vpop.f32.mrb[228].mxu0  ;;  %v15052_v3 = vpop.f32.mrb[228].mxu1  ;;  %v4146_v13 = vmax.f32 %v4145_v14, %v14855_v63  ;;  %v5540_v31 = vmax.f32 %v5539_v11, %v15049_v4  ;;  %v12338_v61 = vld [vmem:[%s20412_s2 + $0x1618] sm:$0xff] }
 0x2a1   :  { %v3879_v32 = vpop.f32.mrb[229].mxu0  ;;  %v5273_v37 = vpop.f32.mrb[229].mxu1  ;;  %15212 = vmatmul.mubr.msk.f32.gmra.mrb[78].mxu0 %vm144_vm1, %v12334_v17  ;;  %15406 = vmatmul.mubr.msk.f32.gmra.mrb[78].mxu1 %vm144_vm1, %v12591_v21  ;;  %v12595_v63 = vld [vmem:[%s20412_s2 + $0x1698] sm:$0xff]  ;;  %v12340_v21 = vld [vmem:[%s20412_s2 + $0x1628] sm:$0xff] }
 0x2a2   :  { %v4142_v19 = vrot.slane %v4141_v28, 1  ;;  %v5536_v26 = vrot.slane %v5535_v30, 1  ;;  %v4147_v38 = vmax.f32 %v4146_v13, %v3879_v32  ;;  %v5541_v40 = vmax.f32 %v5540_v31, %v5273_v37  ;;  %15214 = vmatprep.mubr.msk.f32.mxu0 %vm144_vm1, %v12335_v23  ;;  %15408 = vmatprep.mubr.msk.f32.mxu1 %vm144_vm1, %v12592_v27  ;;  %v12597_v23 = vld [vmem:[%s20412_s2 + $0x16a8] sm:$0xff]  ;;  %v12341_v27 = vld [vmem:[%s20412_s2 + $0x1630] sm:$0xff] }
 0x2a4   :  { %v4143_v51 = vmax.f32 %v4141_v28, %v4142_v19  ;;  %v14861_v0 = vpop.f32.mrb[230].mxu0  ;;  %v15055_v1 = vpop.f32.mrb[230].mxu1  ;;  %v4148_v10 = vmax.f32 %v4147_v38, %v14858_v2  ;;  %v5542_v52 = vmax.f32 %v5541_v40, %v15052_v3  ;;  %v18760_v53 = vmax.f32 %v5535_v30, %v5536_v26  ;;  %v12598_v28 = vld [vmem:[%s20412_s2 + $0x16b0] sm:$0xff]  ;;  %v12342_v26 = vld [vmem:[%s20412_s2 + $0x1638] sm:$0xff]  ;;  %v12343_v40 = vld [vmem:[%s20412_s2 + $0x1640] sm:$0xff] }
 0x2a5   :  { %v3889_v34 = vpop.f32.mrb[231].mxu0  ;;  %v5283_v43 = vpop.f32.mrb[231].mxu1  ;;  %15215 = vmatmul.mubr.msk.f32.gmra.mrb[80].mxu0 %vm144_vm1, %v12336_v42  ;;  %15409 = vmatmul.mubr.msk.f32.gmra.mrb[80].mxu1 %vm144_vm1, %v12593_v47  ;;  %v12599_v38 = vld [vmem:[%s20412_s2 + $0x16b8] sm:$0xff]  ;;  %v12600_v42 = vld [vmem:[%s20412_s2 + $0x16c0] sm:$0xff] }
 0x2a6   :  { %v18767_v54 = vmax.f32 %v2797_v25, %v4143_v51  ;;  %v4149_v55 = vmax.f32 %v4148_v10, %v3889_v34  ;;  %v5543_v59 = vmax.f32 %v5542_v52, %v5283_v43  ;;  %15217 = vmatprep.mubr.msk.f32.mxu0 %vm144_vm1, %v12337_v48  ;;  %15411 = vmatprep.mubr.msk.f32.mxu1 %vm144_vm1, %v12594_v50  ;;  %v12344_v34 = vld [vmem:[%s20412_s2 + $0x1648] sm:$0xff] }
 0x2a7   :  { %v12601_v43 = vld [vmem:[%s20412_s2 + $0x16c8] sm:$0xff] }
 0x2a8   :  { %v14864_v25 = vpop.f32.mrb[232].mxu0  ;;  %v15058_v4 = vpop.f32.mrb[232].mxu1  ;;  %v4150_v8 = vmax.f32 %v4149_v55, %v14861_v0  ;;  %v5544_v9 = vmax.f32 %v5543_v59, %v15055_v1  ;;  %v5585_v6 = vmax.f32 %v18767_v54, %v18760_v53  ;;  %v12345_v55 = vld [vmem:[%s20412_s2 + $0x1650] sm:$0xff]  ;;  %v12853_v53 = vld [vmem:[%s20412_s2 + $0x1720] sm:$0xff] }
 0x2a9   :  { %v3899_v7 = vpop.f32.mrb[233].mxu0  ;;  %v5293_v14 = vpop.f32.mrb[233].mxu1  ;;  %15218 = vmatmul.mubr.msk.f32.gmra.mrb[82].mxu0 %vm144_vm1, %v12338_v61  ;;  %15412 = vmatmul.mubr.msk.f32.gmra.mrb[82].mxu1 %vm144_vm1, %v12595_v63  ;;  %v12602_v59 = vld [vmem:[%s20412_s2 + $0x16d0] sm:$0xff]  ;;  %v13110_v54 = vld [vmem:[%s20412_s2 + $0x17a0] sm:$0xff] }
 0x2aa   :  { %v4151_v11 = vmax.f32 %v4150_v8, %v3899_v7  ;;  %v5545_v17 = vmax.f32 %v5544_v9, %v5293_v14  ;;  %15220 = vmatprep.mubr.msk.f32.mxu0 %vm144_vm1, %v12339_v15  ;;  %15414 = vmatprep.mubr.msk.f32.mxu1 %vm144_vm1, %v12596_v16  ;;  %v12346_v7 = vld [vmem:[%s20412_s2 + $0x1658] sm:$0xff] }
 0x2ab   :  { %v12603_v14 = vld [vmem:[%s20412_s2 + $0x16d8] sm:$0xff] }
 0x2ac   :  { %v14867_v30 = vpop.f32.mrb[234].mxu0  ;;  %v15061_v2 = vpop.f32.mrb[234].mxu1  ;;  %v4152_v3 = vmax.f32 %v4151_v11, %v14864_v25  ;;  %v5546_v13 = vmax.f32 %v5545_v17, %v15058_v4  ;;  %v12347_v11 = vld [vmem:[%s20412_s2 + $0x1660] sm:$0xff] }
 0x2ad   :  { %v3909_v31 = vpop.f32.mrb[235].mxu0  ;;  %v5303_v32 = vpop.f32.mrb[235].mxu1  ;;  %15221 = vmatmul.mubr.msk.f32.gmra.mrb[84].mxu0 %vm144_vm1, %v12340_v21  ;;  %15415 = vmatmul.mubr.msk.f32.gmra.mrb[84].mxu1 %vm144_vm1, %v12597_v23  ;;  %v12604_v17 = vld [vmem:[%s20412_s2 + $0x16e0] sm:$0xff] }
 0x2ae   :  { %v4153_v37 = vmax.f32 %v4152_v3, %v3909_v31  ;;  %v5547_v19 = vmax.f32 %v5546_v13, %v5303_v32  ;;  %15223 = vmatprep.mubr.msk.f32.mxu0 %vm144_vm1, %v12341_v27  ;;  %15417 = vmatprep.mubr.msk.f32.mxu1 %vm144_vm1, %v12598_v28 }
 0x2b0   :  { %v14870_v47 = vpop.f32.mrb[236].mxu0  ;;  %v15064_v48 = vpop.f32.mrb[236].mxu1  ;;  %v4154_v50 = vmax.f32 %v4153_v37, %v14867_v30  ;;  %v5548_v51 = vmax.f32 %v5547_v19, %v15061_v2  ;;  %v12348_v37 = vld [vmem:[%s20412_s2 + $0x1668] sm:$0xff] }
 0x2b1   :  { %v3919_v0 = vpop.f32.mrb[237].mxu0  ;;  %v5313_v1 = vpop.f32.mrb[237].mxu1  ;;  %15224 = vmatmul.mubr.msk.f32.gmra.mrb[86].mxu0 %vm144_vm1, %v12342_v26  ;;  %15418 = vmatmul.mubr.msk.f32.gmra.mrb[86].mxu1 %vm144_vm1, %v12599_v38  ;;  %v12605_v19 = vld [vmem:[%s20412_s2 + $0x16e8] sm:$0xff]  ;;  %v12349_v26 = vld [vmem:[%s20412_s2 + $0x1670] sm:$0xff] }
 0x2b2   :  { %v4155_v10 = vmax.f32 %v4154_v50, %v3919_v0  ;;  %v5549_v52 = vmax.f32 %v5548_v51, %v5313_v1  ;;  %15226 = vmatprep.mubr.msk.f32.mxu0 %vm144_vm1, %v12343_v40  ;;  %15420 = vmatprep.mubr.msk.f32.mxu1 %vm144_vm1, %v12600_v42  ;;  %v12606_v38 = vld [vmem:[%s20412_s2 + $0x16f0] sm:$0xff] }
 0x2b4   :  { %v14873_v61 = vpop.f32.mrb[238].mxu0  ;;  %v15067_v63 = vpop.f32.mrb[238].mxu1  ;;  %v4156_v15 = vmax.f32 %v4155_v10, %v14870_v47  ;;  %v5550_v16 = vmax.f32 %v5549_v52, %v15064_v48 }
 0x2b5   :  { %v3929_v25 = vpop.f32.mrb[239].mxu0  ;;  %v5323_v4 = vpop.f32.mrb[239].mxu1  ;;  %15227 = vmatmul.mubr.msk.f32.gmra.mrb[88].mxu0 %vm144_vm1, %v12344_v34  ;;  %15421 = vmatmul.mubr.msk.f32.gmra.mrb[88].mxu1 %vm144_vm1, %v12601_v43  ;;  %v12350_v34 = vld [vmem:[%s20412_s2 + $0x1678] sm:$0xff] }
 0x2b6   :  { %v4157_v8 = vmax.f32 %v4156_v15, %v3929_v25  ;;  %v5551_v9 = vmax.f32 %v5550_v16, %v5323_v4  ;;  %15229 = vmatprep.mubr.msk.f32.mxu0 %vm144_vm1, %v12345_v55  ;;  %15423 = vmatprep.mubr.msk.f32.mxu1 %vm144_vm1, %v12602_v59  ;;  %v12607_v43 = vld [vmem:[%s20412_s2 + $0x16f8] sm:$0xff]  ;;  %v12351_v55 = vld [vmem:[%s20412_s2 + $0x1a00] sm:$0xff] }
 0x2b7   :  { %v12608_v59 = vld [vmem:[%s20412_s2 + $0x1a80] sm:$0xff] }
 0x2b8   :  { %v4158_v21 = vmax.f32 %v4157_v8, %v14873_v61  ;;  %v5552_v23 = vmax.f32 %v5551_v9, %v15067_v63  ;;  %v14876_v27 = vpop.f32.mrb[240].mxu0  ;;  %v15070_v28 = vpop.f32.mrb[240].mxu1 }
 0x2b9   :  { %v3939_v30 = vpop.f32.mrb[241].mxu0  ;;  %15230 = vmatmul.mubr.msk.f32.gmra.mrb[90].mxu0 %vm144_vm1, %v12346_v7  ;;  %15424 = vmatmul.mubr.msk.f32.gmra.mrb[90].mxu1 %vm144_vm1, %v12603_v14  ;;  %v5333_v2 = vpop.f32.mrb[241].mxu1 }
 0x2ba   :  { %v4159_v3 = vrot.slane %v4158_v21, 4  ;;  %v5553_v13 = vrot.slane %v5552_v23, 4  ;;  %v4165_v31 = vmax.f32 %v3939_v30, %v14876_v27  ;;  %v5559_v32 = vmax.f32 %v5333_v2, %v15070_v28  ;;  %15232 = vmatprep.mubr.msk.f32.mxu0 %vm144_vm1, %v12347_v11  ;;  %15426 = vmatprep.mubr.msk.f32.mxu1 %vm144_vm1, %v12604_v17  ;;  %v12353_v27 = vld [vmem:[%s20412_s2 + $0x1a10] sm:$0xff] }
 0x2bb   :  { %v12610_v28 = vld [vmem:[%s20412_s2 + $0x1a90] sm:$0xff] }
 0x2bc   :  { %v4160_v40 = vmax.f32 %v4158_v21, %v4159_v3  ;;  %v5554_v42 = vmax.f32 %v5552_v23, %v5553_v13  ;;  %v14879_v47 = vpop.f32.mrb[242].mxu0  ;;  %v15073_v48 = vpop.f32.mrb[242].mxu1  ;;  %v12352_v21 = vld [vmem:[%s20412_s2 + $0x1a08] sm:$0xff] }
 0x2bd   :  { %v3949_v50 = vpop.f32.mrb[243].mxu0  ;;  %v5343_v51 = vpop.f32.mrb[243].mxu1  ;;  %15233 = vmatmul.mubr.msk.f32.gmra.mrb[92].mxu0 %vm144_vm1, %v12348_v37  ;;  %15427 = vmatmul.mubr.msk.f32.gmra.mrb[92].mxu1 %vm144_vm1, %v12605_v19  ;;  %v12609_v23 = vld [vmem:[%s20412_s2 + $0x1a88] sm:$0xff] }
 0x2be   :  { %v4161_v0 = vrot.slane %v4160_v40, 2  ;;  %v5555_v1 = vrot.slane %v5554_v42, 2  ;;  %v4166_v10 = vmax.f32 %v4165_v31, %v3949_v50  ;;  %v5560_v52 = vmax.f32 %v5559_v32, %v5343_v51  ;;  %15235 = vmatprep.mubr.msk.f32.mxu0 %vm144_vm1, %v12349_v26  ;;  %15429 = vmatprep.mubr.msk.f32.mxu1 %vm144_vm1, %v12606_v38 }
 0x2c0   :  { %v4162_v61 = vmax.f32 %v4160_v40, %v4161_v0  ;;  %v5556_v63 = vmax.f32 %v5554_v42, %v5555_v1  ;;  %v14882_v15 = vpop.f32.mrb[244].mxu0  ;;  %v15076_v16 = vpop.f32.mrb[244].mxu1  ;;  %v4167_v25 = vmax.f32 %v4166_v10, %v14879_v47  ;;  %v5561_v4 = vmax.f32 %v5560_v52, %v15073_v48  ;;  %v12354_v42 = vld [vmem:[%s20412_s2 + $0x1a18] sm:$0xff] }
 0x2c1   :  { %v3959_v8 = vpop.f32.mrb[245].mxu0  ;;  %v5353_v9 = vpop.f32.mrb[245].mxu1  ;;  %15236 = vmatmul.mubr.msk.f32.gmra.mrb[94].mxu0 %vm144_vm1, %v12350_v34  ;;  %15430 = vmatmul.mubr.msk.f32.gmra.mrb[94].mxu1 %vm144_vm1, %v12607_v43  ;;  %v12611_v47 = vld [vmem:[%s20412_s2 + $0x1a98] sm:$0xff]  ;;  %v12356_v43 = vld [vmem:[%s20412_s2 + $0x1a28] sm:$0xff] }
 0x2c2   :  { %v4163_v7 = vrot.slane %v4162_v61, 1  ;;  %v5557_v14 = vrot.slane %v5556_v63, 1  ;;  %v4168_v11 = vmax.f32 %v4167_v25, %v3959_v8  ;;  %v5562_v17 = vmax.f32 %v5561_v4, %v5353_v9  ;;  %15238 = vmatprep.mubr.msk.f32.mxu0 %vm144_vm1, %v12351_v55  ;;  %15432 = vmatprep.mubr.msk.f32.mxu1 %vm144_vm1, %v12608_v59  ;;  %v12613_v55 = vld [vmem:[%s20412_s2 + $0x1aa8] sm:$0xff]  ;;  %v12357_v59 = vld [vmem:[%s20412_s2 + $0x1a30] sm:$0xff] }
 0x2c4   :  { %v4164_v30 = vmax.f32 %v4162_v61, %v4163_v7  ;;  %v14885_v2 = vpop.f32.mrb[246].mxu0  ;;  %v15079_v3 = vpop.f32.mrb[246].mxu1  ;;  %v4169_v13 = vmax.f32 %v4168_v11, %v14882_v15  ;;  %v5563_v31 = vmax.f32 %v5562_v17, %v15076_v16  ;;  %v18897_v32 = vmax.f32 %v5556_v63, %v5557_v14  ;;  %v12614_v61 = vld [vmem:[%s20412_s2 + $0x1ab0] sm:$0xff]  ;;  %v12358_v14 = vld [vmem:[%s20412_s2 + $0x1a38] sm:$0xff]  ;;  %v12359_v17 = vld [vmem:[%s20412_s2 + $0x1a40] sm:$0xff] }
 0x2c5   :  { %v3969_v37 = vpop.f32.mrb[247].mxu0  ;;  %v5363_v19 = vpop.f32.mrb[247].mxu1  ;;  %15239 = vmatmul.mubr.msk.f32.gmra.mrb[96].mxu0 %vm144_vm1, %v12352_v21  ;;  %15433 = vmatmul.mubr.msk.f32.gmra.mrb[96].mxu1 %vm144_vm1, %v12609_v23  ;;  %v12615_v11 = vld [vmem:[%s20412_s2 + $0x1ab8] sm:$0xff]  ;;  %v12616_v21 = vld [vmem:[%s20412_s2 + $0x1ac0] sm:$0xff] }
 0x2c6   :  { %v18904_v26 = vmax.f32 %v2798_v44, %v4164_v30  ;;  %v4170_v38 = vmax.f32 %v4169_v13, %v3969_v37  ;;  %v5564_v40 = vmax.f32 %v5563_v31, %v5363_v19  ;;  %15241 = vmatprep.mubr.msk.f32.mxu0 %vm144_vm1, %v12353_v27  ;;  %15435 = vmatprep.mubr.msk.f32.mxu1 %vm144_vm1, %v12610_v28  ;;  %v12360_v37 = vld [vmem:[%s20412_s2 + $0x1a48] sm:$0xff] }
 0x2c7   :  { %v12617_v19 = vld [vmem:[%s20412_s2 + $0x1ac8] sm:$0xff] }
 0x2c8   :  { %v14888_v44 = vpop.f32.mrb[248].mxu0  ;;  %v15082_v48 = vpop.f32.mrb[248].mxu1  ;;  %v4171_v50 = vmax.f32 %v4170_v38, %v14885_v2  ;;  %v5565_v51 = vmax.f32 %v5564_v40, %v15079_v3  ;;  %v5586_v0 = vmax.f32 %v18904_v26, %v18897_v32  ;;  %v12361_v38 = vld [vmem:[%s20412_s2 + $0x1a50] sm:$0xff]  ;;  %v12869_v32 = vld [vmem:[%s20412_s2 + $0x1b20] sm:$0xff] }
 0x2c9   :  { %v3979_v1 = vpop.f32.mrb[249].mxu0  ;;  %v5373_v10 = vpop.f32.mrb[249].mxu1  ;;  %15242 = vmatmul.mubr.msk.f32.gmra.mrb[98].mxu0 %vm144_vm1, %v12354_v42  ;;  %15436 = vmatmul.mubr.msk.f32.gmra.mrb[98].mxu1 %vm144_vm1, %v12611_v47  ;;  %v12618_v40 = vld [vmem:[%s20412_s2 + $0x1ad0] sm:$0xff]  ;;  %v13126_v26 = vld [vmem:[%s20412_s2 + $0x1ba0] sm:$0xff] }
 0x2ca   :  { %v4172_v52 = vmax.f32 %v4171_v50, %v3979_v1  ;;  %v5566_v34 = vmax.f32 %v5565_v51, %v5373_v10  ;;  %15244 = vmatprep.mubr.msk.f32.mxu0 %vm144_vm1, %v12355_v33  ;;  %15438 = vmatprep.mubr.msk.f32.mxu1 %vm144_vm1, %v12612_v36  ;;  %v12362_v1 = vld [vmem:[%s20412_s2 + $0x1a58] sm:$0xff] }
 0x2cb   :  { %v12619_v10 = vld [vmem:[%s20412_s2 + $0x1ad8] sm:$0xff] }
 0x2cc   :  { %v14891_v63 = vpop.f32.mrb[250].mxu0  ;;  %v15085_v15 = vpop.f32.mrb[250].mxu1  ;;  %v4173_v16 = vmax.f32 %v4172_v52, %v14888_v44  ;;  %v5567_v25 = vmax.f32 %v5566_v34, %v15082_v48  ;;  %v12363_v52 = vld [vmem:[%s20412_s2 + $0x1a60] sm:$0xff] }
 0x2cd   :  { %v3989_v4 = vpop.f32.mrb[251].mxu0  ;;  %v5383_v8 = vpop.f32.mrb[251].mxu1  ;;  %15245 = vmatmul.mubr.msk.f32.gmra.mrb[100].mxu0 %vm144_vm1, %v12356_v43  ;;  %15439 = vmatmul.mubr.msk.f32.gmra.mrb[100].mxu1 %vm144_vm1, %v12613_v55  ;;  %v12620_v34 = vld [vmem:[%s20412_s2 + $0x1ae0] sm:$0xff] }
 0x2ce   :  { %v4174_v9 = vmax.f32 %v4173_v16, %v3989_v4  ;;  %v5568_v7 = vmax.f32 %v5567_v25, %v5383_v8  ;;  %15247 = vmatprep.mubr.msk.f32.mxu0 %vm144_vm1, %v12357_v59  ;;  %15441 = vmatprep.mubr.msk.f32.mxu1 %vm144_vm1, %v12614_v61 }
 0x2d0   :  { %v14894_v23 = vpop.f32.mrb[252].mxu0  ;;  %v15088_v27 = vpop.f32.mrb[252].mxu1  ;;  %v4175_v28 = vmax.f32 %v4174_v9, %v14891_v63  ;;  %v5569_v30 = vmax.f32 %v5568_v7, %v15085_v15  ;;  %v12364_v9 = vld [vmem:[%s20412_s2 + $0x1a68] sm:$0xff] }
 0x2d1   :  { %v3999_v2 = vpop.f32.mrb[253].mxu0  ;;  %v5393_v3 = vpop.f32.mrb[253].mxu1  ;;  %15248 = vmatmul.mubr.msk.f32.gmra.mrb[102].mxu0 %vm144_vm1, %v12358_v14  ;;  %15442 = vmatmul.mubr.msk.f32.gmra.mrb[102].mxu1 %vm144_vm1, %v12615_v11  ;;  %v12621_v7 = vld [vmem:[%s20412_s2 + $0x1ae8] sm:$0xff]  ;;  %v12365_v14 = vld [vmem:[%s20412_s2 + $0x1a70] sm:$0xff] }
 0x2d2   :  { %v4176_v13 = vmax.f32 %v4175_v28, %v3999_v2  ;;  %v5570_v31 = vmax.f32 %v5569_v30, %v5393_v3  ;;  %15250 = vmatprep.mubr.msk.f32.mxu0 %vm144_vm1, %v12359_v17  ;;  %15444 = vmatprep.mubr.msk.f32.mxu1 %vm144_vm1, %v12616_v21  ;;  %v12622_v11 = vld [vmem:[%s20412_s2 + $0x1af0] sm:$0xff] }
 0x2d4   :  { %v14897_v42 = vpop.f32.mrb[254].mxu0  ;;  %v15091_v47 = vpop.f32.mrb[254].mxu1  ;;  %v4177_v33 = vmax.f32 %v4176_v13, %v14894_v23  ;;  %v5571_v36 = vmax.f32 %v5570_v31, %v15088_v27 }
 0x2d5   :  { %v4009_v44 = vpop.f32.mrb[255].mxu0  ;;  %v5403_v48 = vpop.f32.mrb[255].mxu1  ;;  %15251 = vmatmul.mubr.msk.f32.gmra.mrb[104].mxu0 %vm144_vm1, %v12360_v37  ;;  %15445 = vmatmul.mubr.msk.f32.gmra.mrb[104].mxu1 %vm144_vm1, %v12617_v19  ;;  %v12366_v37 = vld [vmem:[%s20412_s2 + $0x1a78] sm:$0xff] }
 0x2d6   :  { %v4178_v50 = vmax.f32 %v4177_v33, %v4009_v44  ;;  %v5572_v51 = vmax.f32 %v5571_v36, %v5403_v48  ;;  %15253 = vmatprep.mubr.msk.f32.mxu0 %vm144_vm1, %v12361_v38  ;;  %15447 = vmatprep.mubr.msk.f32.mxu1 %vm144_vm1, %v12618_v40  ;;  %v12623_v19 = vld [vmem:[%s20412_s2 + $0x1af8] sm:$0xff]  ;;  %v12367_v38 = vld [vmem:[%s20412_s2 + $0x1e00] sm:$0xff] }
 0x2d7   :  { %v12624_v40 = vld [vmem:[%s20412_s2 + $0x1e80] sm:$0xff] }
 0x2d8   :  { %v4179_v43 = vmax.f32 %v4178_v50, %v14897_v42  ;;  %v5573_v55 = vmax.f32 %v5572_v51, %v15091_v47  ;;  %v15096_v59 = vpop.f32.mrb[0].mxu0  ;;  %v15290_v61 = vpop.f32.mrb[0].mxu1 }
 0x2d9   :  { %v6167_v63 = vpop.f32.mrb[1].mxu0  ;;  %15254 = vmatmul.mubr.msk.f32.gmra.mrb[106].mxu0 %vm144_vm1, %v12362_v1  ;;  %15448 = vmatmul.mubr.msk.f32.gmra.mrb[106].mxu1 %vm144_vm1, %v12619_v10  ;;  %v7561_v15 = vpop.f32.mrb[1].mxu1 }
 0x2da   :  { %v4180_v16 = vrot.slane %v4179_v43, 4  ;;  %v5574_v25 = vrot.slane %v5573_v55, 4  ;;  %v6806_v4 = vmax.f32 %v6167_v63, %v15096_v59  ;;  %v8200_v8 = vmax.f32 %v7561_v15, %v15290_v61  ;;  %15256 = vmatprep.mubr.msk.f32.mxu0 %vm144_vm1, %v12363_v52  ;;  %15450 = vmatprep.mubr.msk.f32.mxu1 %vm144_vm1, %v12620_v34  ;;  %v12369_v59 = vld [vmem:[%s20412_s2 + $0x1e10] sm:$0xff] }
 0x2db   :  { %v12626_v61 = vld [vmem:[%s20412_s2 + $0x1e90] sm:$0xff] }
 0x2dc   :  { %v4181_v17 = vmax.f32 %v4179_v43, %v4180_v16  ;;  %v5575_v21 = vmax.f32 %v5573_v55, %v5574_v25  ;;  %v15099_v23 = vpop.f32.mrb[2].mxu0  ;;  %v15293_v27 = vpop.f32.mrb[2].mxu1  ;;  %v12368_v43 = vld [vmem:[%s20412_s2 + $0x1e08] sm:$0xff] }
 0x2dd   :  { %v6177_v28 = vpop.f32.mrb[3].mxu0  ;;  %15257 = vmatmul.mubr.msk.f32.gmra.mrb[108].mxu0 %vm144_vm1, %v12364_v9  ;;  %v7571_v30 = vpop.f32.mrb[3].mxu1  ;;  %15451 = vmatmul.mubr.msk.f32.gmra.mrb[108].mxu1 %vm144_vm1, %v12621_v7  ;;  %v12625_v55 = vld [vmem:[%s20412_s2 + $0x1e88] sm:$0xff] }
 0x2de   :  { %v4182_v2 = vrot.slane %v4181_v17, 2  ;;  %v5576_v3 = vrot.slane %v5575_v21, 2  ;;  %v6807_v13 = vmax.f32 %v6806_v4, %v6177_v28  ;;  %v8201_v31 = vmax.f32 %v8200_v8, %v7571_v30  ;;  %15259 = vmatprep.mubr.msk.f32.mxu0 %vm144_vm1, %v12365_v14  ;;  %15453 = vmatprep.mubr.msk.f32.mxu1 %vm144_vm1, %v12622_v11 }
 0x2e0   :  { %v4183_v42 = vmax.f32 %v4181_v17, %v4182_v2  ;;  %v5577_v47 = vmax.f32 %v5575_v21, %v5576_v3  ;;  %v15102_v33 = vpop.f32.mrb[4].mxu0  ;;  %v15296_v36 = vpop.f32.mrb[4].mxu1  ;;  %v6808_v44 = vmax.f32 %v6807_v13, %v15099_v23  ;;  %v8202_v48 = vmax.f32 %v8201_v31, %v15293_v27  ;;  %v12370_v21 = vld [vmem:[%s20412_s2 + $0x1e18] sm:$0xff] }
 0x2e1   :  { %v6187_v50 = vpop.f32.mrb[5].mxu0  ;;  %15260 = vmatmul.mubr.msk.f32.gmra.mrb[110].mxu0 %vm144_vm1, %v12366_v37  ;;  %v7581_v51 = vpop.f32.mrb[5].mxu1  ;;  %15454 = vmatmul.mubr.msk.f32.gmra.mrb[110].mxu1 %vm144_vm1, %v12623_v19  ;;  %v12627_v23 = vld [vmem:[%s20412_s2 + $0x1e98] sm:$0xff]  ;;  %v12372_v19 = vld [vmem:[%s20412_s2 + $0x1e28] sm:$0xff] }
 0x2e2   :  { %v4184_v1 = vrot.slane %v4183_v42, 1  ;;  %v5578_v10 = vrot.slane %v5577_v47, 1  ;;  %v6809_v52 = vmax.f32 %v6808_v44, %v6187_v50  ;;  %v8203_v34 = vmax.f32 %v8202_v48, %v7581_v51  ;;  %15262 = vmatprep.mubr.msk.f32.mxu0 %vm144_vm1, %v12367_v38  ;;  %15456 = vmatprep.mubr.msk.f32.mxu1 %vm144_vm1, %v12624_v40  ;;  %v12629_v38 = vld [vmem:[%s20412_s2 + $0x1ea8] sm:$0xff]  ;;  %v12373_v40 = vld [vmem:[%s20412_s2 + $0x1e30] sm:$0xff] }
 0x2e4   :  { %v4185_v63 = vmax.f32 %v4183_v42, %v4184_v1  ;;  %v15105_v15 = vpop.f32.mrb[6].mxu0  ;;  %v15299_v16 = vpop.f32.mrb[6].mxu1  ;;  %v6810_v25 = vmax.f32 %v6809_v52, %v15102_v33  ;;  %v8204_v4 = vmax.f32 %v8203_v34, %v15296_v36  ;;  %v19034_v8 = vmax.f32 %v5577_v47, %v5578_v10  ;;  %v12630_v42 = vld [vmem:[%s20412_s2 + $0x1eb0] sm:$0xff]  ;;  %v12374_v10 = vld [vmem:[%s20412_s2 + $0x1e38] sm:$0xff]  ;;  %v12375_v34 = vld [vmem:[%s20412_s2 + $0x1e40] sm:$0xff] }
 0x2e5   :  { %v6197_v9 = vpop.f32.mrb[7].mxu0  ;;  %15263 = vmatmul.mubr.msk.f32.gmra.mrb[112].mxu0 %vm144_vm1, %v12368_v43  ;;  %v7591_v7 = vpop.f32.mrb[7].mxu1  ;;  %15457 = vmatmul.mubr.msk.f32.gmra.mrb[112].mxu1 %vm144_vm1, %v12625_v55  ;;  %v12631_v52 = vld [vmem:[%s20412_s2 + $0x1eb8] sm:$0xff]  ;;  %v12632_v43 = vld [vmem:[%s20412_s2 + $0x1ec0] sm:$0xff] }
 0x2e6   :  { %v19041_v14 = vmax.f32 %v2799_v5, %v4185_v63  ;;  %v6811_v11 = vmax.f32 %v6810_v25, %v6197_v9  ;;  %v8205_v17 = vmax.f32 %v8204_v4, %v7591_v7  ;;  %15265 = vmatprep.mubr.msk.f32.mxu0 %vm144_vm1, %v12369_v59  ;;  %15459 = vmatprep.mubr.msk.f32.mxu1 %vm144_vm1, %v12626_v61  ;;  %v12376_v9 = vld [vmem:[%s20412_s2 + $0x1e48] sm:$0xff] }
 0x2e7   :  { %v12633_v7 = vld [vmem:[%s20412_s2 + $0x1ec8] sm:$0xff] }
 0x2e8   :  { %v15108_v5 = vpop.f32.mrb[8].mxu0  ;;  %v15302_v27 = vpop.f32.mrb[8].mxu1  ;;  %v6812_v28 = vmax.f32 %v6811_v11, %v15105_v15  ;;  %v8206_v30 = vmax.f32 %v8205_v17, %v15299_v16  ;;  %v5587_v2 = vmax.f32 %v19041_v14, %v19034_v8  ;;  %v12377_v11 = vld [vmem:[%s20412_s2 + $0x1e50] sm:$0xff]  ;;  %v12885_v8 = vld [vmem:[%s20412_s2 + $0x1f20] sm:$0xff] }
 0x2e9   :  { %v6207_v3 = vpop.f32.mrb[9].mxu0  ;;  %15266 = vmatmul.mubr.msk.f32.gmra.mrb[114].mxu0 %vm144_vm1, %v12370_v21  ;;  %v7601_v13 = vpop.f32.mrb[9].mxu1  ;;  %15460 = vmatmul.mubr.msk.f32.gmra.mrb[114].mxu1 %vm144_vm1, %v12627_v23  ;;  %v12634_v17 = vld [vmem:[%s20412_s2 + $0x1ed0] sm:$0xff]  ;;  %v13142_v14 = vld [vmem:[%s20412_s2 + $0x1fa0] sm:$0xff] }
 0x2ea   :  { %v6813_v31 = vmax.f32 %v6812_v28, %v6207_v3  ;;  %v8207_v37 = vmax.f32 %v8206_v30, %v7601_v13  ;;  %15268 = vmatprep.mubr.msk.f32.mxu0 %vm144_vm1, %v12371_v57  ;;  %15462 = vmatprep.mubr.msk.f32.mxu1 %vm144_vm1, %v12628_v58  ;;  %v12378_v3 = vld [vmem:[%s20412_s2 + $0x1e58] sm:$0xff] }
 0x2eb   :  { %v12635_v13 = vld [vmem:[%s20412_s2 + $0x1ed8] sm:$0xff] }
 0x2ec   :  { %v15111_v47 = vpop.f32.mrb[10].mxu0  ;;  %v15305_v33 = vpop.f32.mrb[10].mxu1  ;;  %v6814_v36 = vmax.f32 %v6813_v31, %v15108_v5  ;;  %v8208_v44 = vmax.f32 %v8207_v37, %v15302_v27  ;;  %v12379_v31 = vld [vmem:[%s20412_s2 + $0x1e60] sm:$0xff] }
 0x2ed   :  { %v6217_v48 = vpop.f32.mrb[11].mxu0  ;;  %15269 = vmatmul.mubr.msk.f32.gmra.mrb[116].mxu0 %vm144_vm1, %v12372_v19  ;;  %v7611_v50 = vpop.f32.mrb[11].mxu1  ;;  %15463 = vmatmul.mubr.msk.f32.gmra.mrb[116].mxu1 %vm144_vm1, %v12629_v38  ;;  %v12636_v37 = vld [vmem:[%s20412_s2 + $0x1ee0] sm:$0xff] }
 0x2ee   :  { %v6815_v51 = vmax.f32 %v6814_v36, %v6217_v48  ;;  %v8209_v1 = vmax.f32 %v8208_v44, %v7611_v50  ;;  %15271 = vmatprep.mubr.msk.f32.mxu0 %vm144_vm1, %v12373_v40  ;;  %15465 = vmatprep.mubr.msk.f32.mxu1 %vm144_vm1, %v12630_v42 }
 0x2f0   :  { %v15114_v55 = vpop.f32.mrb[12].mxu0  ;;  %v15308_v59 = vpop.f32.mrb[12].mxu1  ;;  %v6816_v61 = vmax.f32 %v6815_v51, %v15111_v47  ;;  %v8210_v63 = vmax.f32 %v8209_v1, %v15305_v33  ;;  %v12380_v51 = vld [vmem:[%s20412_s2 + $0x1e68] sm:$0xff] }
 0x2f1   :  { %v6227_v15 = vpop.f32.mrb[13].mxu0  ;;  %15272 = vmatmul.mubr.msk.f32.gmra.mrb[118].mxu0 %vm144_vm1, %v12374_v10  ;;  %v7621_v16 = vpop.f32.mrb[13].mxu1  ;;  %15466 = vmatmul.mubr.msk.f32.gmra.mrb[118].mxu1 %vm144_vm1, %v12631_v52  ;;  %v12637_v1 = vld [vmem:[%s20412_s2 + $0x1ee8] sm:$0xff]  ;;  %v12381_v10 = vld [vmem:[%s20412_s2 + $0x1e70] sm:$0xff] }
 0x2f2   :  { %v6817_v25 = vmax.f32 %v6816_v61, %v6227_v15  ;;  %v8211_v4 = vmax.f32 %v8210_v63, %v7621_v16  ;;  %15274 = vmatprep.mubr.msk.f32.mxu0 %vm144_vm1, %v12375_v34  ;;  %15468 = vmatprep.mubr.msk.f32.mxu1 %vm144_vm1, %v12632_v43  ;;  %v12638_v52 = vld [vmem:[%s20412_s2 + $0x1ef0] sm:$0xff] }
 0x2f4   :  { %v15117_v21 = vpop.f32.mrb[14].mxu0  ;;  %v15311_v23 = vpop.f32.mrb[14].mxu1  ;;  %v6818_v57 = vmax.f32 %v6817_v25, %v15114_v55  ;;  %v8212_v58 = vmax.f32 %v8211_v4, %v15308_v59 }
 0x2f5   :  { %v6237_v5 = vpop.f32.mrb[15].mxu0  ;;  %15275 = vmatmul.mubr.msk.f32.gmra.mrb[120].mxu0 %vm144_vm1, %v12376_v9  ;;  %v7631_v27 = vpop.f32.mrb[15].mxu1  ;;  %15469 = vmatmul.mubr.msk.f32.gmra.mrb[120].mxu1 %vm144_vm1, %v12633_v7  ;;  %v12382_v9 = vld [vmem:[%s20412_s2 + $0x1e78] sm:$0xff] }
 0x2f6   :  { %v6819_v28 = vmax.f32 %v6818_v57, %v6237_v5  ;;  %v8213_v30 = vmax.f32 %v8212_v58, %v7631_v27  ;;  %15277 = vmatprep.mubr.msk.f32.mxu0 %vm144_vm1, %v12377_v11  ;;  %15471 = vmatprep.mubr.msk.f32.mxu1 %vm144_vm1, %v12634_v17  ;;  %v12639_v7 = vld [vmem:[%s20412_s2 + $0x1ef8] sm:$0xff]  ;;  %v12769_v11 = vld [vmem:[%s20412_s2 + $0x300] sm:$0xff] }
 0x2f7   :  { %v13026_v17 = vld [vmem:[%s20412_s2 + $0x380] sm:$0xff] }
 0x2f8   :  { %v6820_v19 = vmax.f32 %v6819_v28, %v15117_v21  ;;  %v8214_v38 = vmax.f32 %v8213_v30, %v15311_v23  ;;  %v15120_v40 = vpop.f32.mrb[16].mxu0  ;;  %v15314_v42 = vpop.f32.mrb[16].mxu1 }
 0x2f9   :  { %v6247_v47 = vpop.f32.mrb[17].mxu0  ;;  %15278 = vmatmul.mubr.msk.f32.gmra.mrb[122].mxu0 %vm144_vm1, %v12378_v3  ;;  %15472 = vmatmul.mubr.msk.f32.gmra.mrb[122].mxu1 %vm144_vm1, %v12635_v13  ;;  %v7641_v33 = vpop.f32.mrb[17].mxu1 }
 0x2fa   :  { %v6821_v36 = vrot.slane %v6820_v19, 4  ;;  %v8215_v44 = vrot.slane %v8214_v38, 4  ;;  %v6827_v48 = vmax.f32 %v6247_v47, %v15120_v40  ;;  %v8221_v50 = vmax.f32 %v7641_v33, %v15314_v42  ;;  %15280 = vmatprep.mubr.msk.f32.mxu0 %vm144_vm1, %v12379_v31  ;;  %15474 = vmatprep.mubr.msk.f32.mxu1 %vm144_vm1, %v12636_v37  ;;  %v12771_v40 = vld [vmem:[%s20412_s2 + $0x310] sm:$0xff] }
 0x2fb   :  { %v13028_v42 = vld [vmem:[%s20412_s2 + $0x390] sm:$0xff] }
 0x2fc   :  { %v6822_v34 = vmax.f32 %v6820_v19, %v6821_v36  ;;  %v8216_v43 = vmax.f32 %v8214_v38, %v8215_v44  ;;  %v15123_v55 = vpop.f32.mrb[18].mxu0  ;;  %v15317_v59 = vpop.f32.mrb[18].mxu1  ;;  %v12770_v19 = vld [vmem:[%s20412_s2 + $0x308] sm:$0xff] }
 0x2fd   :  { %v6257_v61 = vpop.f32.mrb[19].mxu0  ;;  %15281 = vmatmul.mubr.msk.f32.gmra.mrb[124].mxu0 %vm144_vm1, %v12380_v51  ;;  %v7651_v63 = vpop.f32.mrb[19].mxu1  ;;  %15475 = vmatmul.mubr.msk.f32.gmra.mrb[124].mxu1 %vm144_vm1, %v12637_v1  ;;  %v13027_v38 = vld [vmem:[%s20412_s2 + $0x388] sm:$0xff] }
 0x2fe   :  { %v6823_v15 = vrot.slane %v6822_v34, 2  ;;  %v8217_v16 = vrot.slane %v8216_v43, 2  ;;  %v6828_v25 = vmax.f32 %v6827_v48, %v6257_v61  ;;  %v8222_v4 = vmax.f32 %v8221_v50, %v7651_v63  ;;  %15283 = vmatprep.mubr.msk.f32.mxu0 %vm144_vm1, %v12381_v10  ;;  %15477 = vmatprep.mubr.msk.f32.mxu1 %vm144_vm1, %v12638_v52 }
 0x300   :  { %v6824_v21 = vmax.f32 %v6822_v34, %v6823_v15  ;;  %v8218_v23 = vmax.f32 %v8216_v43, %v8217_v16  ;;  %v15126_v57 = vpop.f32.mrb[20].mxu0  ;;  %v15320_v58 = vpop.f32.mrb[20].mxu1  ;;  %v6829_v5 = vmax.f32 %v6828_v25, %v15123_v55  ;;  %v8223_v27 = vmax.f32 %v8222_v4, %v15317_v59  ;;  %v12772_v43 = vld [vmem:[%s20412_s2 + $0x318] sm:$0xff] }
 0x301   :  { %v6267_v28 = vpop.f32.mrb[21].mxu0  ;;  %15284 = vmatmul.mubr.msk.f32.gmra.mrb[126].mxu0 %vm144_vm1, %v12382_v9  ;;  %v7661_v30 = vpop.f32.mrb[21].mxu1  ;;  %15478 = vmatmul.mubr.msk.f32.gmra.mrb[126].mxu1 %vm144_vm1, %v12639_v7  ;;  %v13029_v55 = vld [vmem:[%s20412_s2 + $0x398] sm:$0xff]  ;;  %v12774_v7 = vld [vmem:[%s20412_s2 + $0x328] sm:$0xff] }
 0x302   :  { %v6825_v3 = vrot.slane %v6824_v21, 1  ;;  %v8219_v13 = vrot.slane %v8218_v23, 1  ;;  %v6830_v31 = vmax.f32 %v6829_v5, %v6267_v28  ;;  %v8224_v37 = vmax.f32 %v8223_v27, %v7661_v30  ;;  %15482 = vmatprep.mubr.msk.f32.mxu0 %vm144_vm1, %v12769_v11  ;;  %15676 = vmatprep.mubr.msk.f32.mxu1 %vm144_vm1, %v13026_v17  ;;  %v13031_v11 = vld [vmem:[%s20412_s2 + $0x3a8] sm:$0xff]  ;;  %v12775_v17 = vld [vmem:[%s20412_s2 + $0x330] sm:$0xff] }
 0x304   :  { %v6826_v47 = vmax.f32 %v6824_v21, %v6825_v3  ;;  %v15129_v33 = vpop.f32.mrb[22].mxu0  ;;  %v15323_v36 = vpop.f32.mrb[22].mxu1  ;;  %v6831_v44 = vmax.f32 %v6830_v31, %v15126_v57  ;;  %v8225_v48 = vmax.f32 %v8224_v37, %v15320_v58  ;;  %v19171_v50 = vmax.f32 %v8218_v23, %v8219_v13  ;;  %v13032_v21 = vld [vmem:[%s20412_s2 + $0x3b0] sm:$0xff]  ;;  %v12776_v13 = vld [vmem:[%s20412_s2 + $0x338] sm:$0xff]  ;;  %v12777_v37 = vld [vmem:[%s20412_s2 + $0x340] sm:$0xff] }
 0x305   :  { %v6277_v51 = vpop.f32.mrb[23].mxu0  ;;  %v7671_v1 = vpop.f32.mrb[23].mxu1  ;;  %15483 = vmatmul.mubr.msk.f32.vlgmr.msra.gmra.mrb[128].mxu0 %vm144_vm1, %v12770_v19  ;;  %15677 = vmatmul.mubr.msk.f32.vlgmr.msra.gmra.mrb[128].mxu1 %vm144_vm1, %v13027_v38  ;;  %v13033_v31 = vld [vmem:[%s20412_s2 + $0x3b8] sm:$0xff]  ;;  %v13034_v19 = vld [vmem:[%s20412_s2 + $0x3c0] sm:$0xff] }
 0x306   :  { %v19178_v10 = vmax.f32 %v5580_v60, %v6826_v47  ;;  %v6832_v52 = vmax.f32 %v6831_v44, %v6277_v51  ;;  %v8226_v34 = vmax.f32 %v8225_v48, %v7671_v1  ;;  %15485 = vmatprep.mubr.msk.f32.mxu0 %vm144_vm1, %v12771_v40  ;;  %15679 = vmatprep.mubr.msk.f32.mxu1 %vm144_vm1, %v13028_v42  ;;  %v12778_v51 = vld [vmem:[%s20412_s2 + $0x348] sm:$0xff] }
 0x307   :  { %v13035_v1 = vld [vmem:[%s20412_s2 + $0x3c8] sm:$0xff] }
 0x308   :  { %v8368_v60 = vmax.f32 %v19178_v10, %v19171_v50  ;;  %v15132_v59 = vpop.f32.mrb[24].mxu0  ;;  %v15326_v61 = vpop.f32.mrb[24].mxu1  ;;  %v6833_v63 = vmax.f32 %v6832_v52, %v15129_v33  ;;  %v8227_v15 = vmax.f32 %v8226_v34, %v15323_v36  ;;  %v12779_v52 = vld [vmem:[%s20412_s2 + $0x350] sm:$0xff] }
 0x309   :  { %v6287_v16 = vpop.f32.mrb[25].mxu0  ;;  %v7681_v25 = vpop.f32.mrb[25].mxu1  ;;  %15486 = vmatmul.mubr.msk.f32.gmra.mrb[130].mxu0 %vm144_vm1, %v12772_v43  ;;  %15680 = vmatmul.mubr.msk.f32.gmra.mrb[130].mxu1 %vm144_vm1, %v13029_v55  ;;  %v13036_v34 = vld [vmem:[%s20412_s2 + $0x3d0] sm:$0xff] }
 0x30a   :  { %v6834_v4 = vmax.f32 %v6833_v63, %v6287_v16  ;;  %v8228_v9 = vmax.f32 %v8227_v15, %v7681_v25  ;;  %15488 = vmatprep.mubr.msk.f32.mxu0 %vm144_vm1, %v12773_v46  ;;  %15682 = vmatprep.mubr.msk.f32.mxu1 %vm144_vm1, %v13030_v49  ;;  %v12780_v16 = vld [vmem:[%s20412_s2 + $0x358] sm:$0xff] }
 0x30b   :  { %v13037_v25 = vld [vmem:[%s20412_s2 + $0x3d8] sm:$0xff] }
 0x30c   :  { %v15135_v23 = vpop.f32.mrb[26].mxu0  ;;  %v15329_v57 = vpop.f32.mrb[26].mxu1  ;;  %v6835_v58 = vmax.f32 %v6834_v4, %v15132_v59  ;;  %v8229_v5 = vmax.f32 %v8228_v9, %v15326_v61  ;;  %v12781_v4 = vld [vmem:[%s20412_s2 + $0x360] sm:$0xff] }
 0x30d   :  { %v6297_v27 = vpop.f32.mrb[27].mxu0  ;;  %v7691_v28 = vpop.f32.mrb[27].mxu1  ;;  %15489 = vmatmul.mubr.msk.f32.gmra.mrb[132].mxu0 %vm144_vm1, %v12774_v7  ;;  %15683 = vmatmul.mubr.msk.f32.gmra.mrb[132].mxu1 %vm144_vm1, %v13031_v11  ;;  %v13038_v9 = vld [vmem:[%s20412_s2 + $0x3e0] sm:$0xff] }
 0x30e   :  { %v6836_v30 = vmax.f32 %v6835_v58, %v6297_v27  ;;  %v8230_v3 = vmax.f32 %v8229_v5, %v7691_v28  ;;  %15491 = vmatprep.mubr.msk.f32.mxu0 %vm144_vm1, %v12775_v17  ;;  %15685 = vmatprep.mubr.msk.f32.mxu1 %vm144_vm1, %v13032_v21 }
 0x310   :  { %v15138_v38 = vpop.f32.mrb[28].mxu0  ;;  %v15332_v40 = vpop.f32.mrb[28].mxu1  ;;  %v6837_v42 = vmax.f32 %v6836_v30, %v15135_v23  ;;  %v8231_v47 = vmax.f32 %v8230_v3, %v15329_v57  ;;  %v12782_v30 = vld [vmem:[%s20412_s2 + $0x368] sm:$0xff] }
 0x311   :  { %v6307_v33 = vpop.f32.mrb[29].mxu0  ;;  %v7701_v36 = vpop.f32.mrb[29].mxu1  ;;  %15492 = vmatmul.mubr.msk.f32.gmra.mrb[134].mxu0 %vm144_vm1, %v12776_v13  ;;  %15686 = vmatmul.mubr.msk.f32.gmra.mrb[134].mxu1 %vm144_vm1, %v13033_v31  ;;  %v13039_v3 = vld [vmem:[%s20412_s2 + $0x3e8] sm:$0xff]  ;;  %v12783_v13 = vld [vmem:[%s20412_s2 + $0x370] sm:$0xff] }
 0x312   :  { %v6838_v44 = vmax.f32 %v6837_v42, %v6307_v33  ;;  %v8232_v48 = vmax.f32 %v8231_v47, %v7701_v36  ;;  %15494 = vmatprep.mubr.msk.f32.mxu0 %vm144_vm1, %v12777_v37  ;;  %15688 = vmatprep.mubr.msk.f32.mxu1 %vm144_vm1, %v13034_v19  ;;  %v13040_v31 = vld [vmem:[%s20412_s2 + $0x3f0] sm:$0xff] }
 0x314   :  { %v15141_v43 = vpop.f32.mrb[30].mxu0  ;;  %v15335_v55 = vpop.f32.mrb[30].mxu1  ;;  %v6839_v46 = vmax.f32 %v6838_v44, %v15138_v38  ;;  %v8233_v49 = vmax.f32 %v8232_v48, %v15332_v40 }
 0x315   :  { %v6317_v59 = vpop.f32.mrb[31].mxu0  ;;  %v7711_v61 = vpop.f32.mrb[31].mxu1  ;;  %15495 = vmatmul.mubr.msk.f32.gmra.mrb[136].mxu0 %vm144_vm1, %v12778_v51  ;;  %15689 = vmatmul.mubr.msk.f32.gmra.mrb[136].mxu1 %vm144_vm1, %v13035_v1  ;;  %v12784_v51 = vld [vmem:[%s20412_s2 + $0x378] sm:$0xff] }
 0x316   :  { %v6840_v63 = vmax.f32 %v6839_v46, %v6317_v59  ;;  %v8234_v15 = vmax.f32 %v8233_v49, %v7711_v61  ;;  %15497 = vmatprep.mubr.msk.f32.mxu0 %vm144_vm1, %v12779_v52  ;;  %15691 = vmatprep.mubr.msk.f32.mxu1 %vm144_vm1, %v13036_v34  ;;  %v13041_v1 = vld [vmem:[%s20412_s2 + $0x3f8] sm:$0xff]  ;;  %v12785_v52 = vld [vmem:[%s20412_s2 + $0x700] sm:$0xff] }
 0x317   :  { %v13042_v34 = vld [vmem:[%s20412_s2 + $0x780] sm:$0xff] }
 0x318   :  { %v6841_v7 = vmax.f32 %v6840_v63, %v15141_v43  ;;  %v8235_v11 = vmax.f32 %v8234_v15, %v15335_v55  ;;  %v15144_v17 = vpop.f32.mrb[32].mxu0  ;;  %v15338_v21 = vpop.f32.mrb[32].mxu1 }
 0x319   :  { %v6327_v23 = vpop.f32.mrb[33].mxu0  ;;  %15498 = vmatmul.mubr.msk.f32.gmra.mrb[138].mxu0 %vm144_vm1, %v12780_v16  ;;  %15692 = vmatmul.mubr.msk.f32.gmra.mrb[138].mxu1 %vm144_vm1, %v13037_v25  ;;  %v7721_v57 = vpop.f32.mrb[33].mxu1 }
 0x31a   :  { %v6842_v58 = vrot.slane %v6841_v7, 4  ;;  %v8236_v5 = vrot.slane %v8235_v11, 4  ;;  %v6848_v27 = vmax.f32 %v6327_v23, %v15144_v17  ;;  %v8242_v28 = vmax.f32 %v7721_v57, %v15338_v21  ;;  %15500 = vmatprep.mubr.msk.f32.mxu0 %vm144_vm1, %v12781_v4  ;;  %15694 = vmatprep.mubr.msk.f32.mxu1 %vm144_vm1, %v13038_v9  ;;  %v12787_v17 = vld [vmem:[%s20412_s2 + $0x710] sm:$0xff] }
 0x31b   :  { %v13044_v21 = vld [vmem:[%s20412_s2 + $0x790] sm:$0xff] }
 0x31c   :  { %v6843_v37 = vmax.f32 %v6841_v7, %v6842_v58  ;;  %v8237_v19 = vmax.f32 %v8235_v11, %v8236_v5  ;;  %v15147_v38 = vpop.f32.mrb[34].mxu0  ;;  %v15341_v40 = vpop.f32.mrb[34].mxu1  ;;  %v12786_v7 = vld [vmem:[%s20412_s2 + $0x708] sm:$0xff] }
 0x31d   :  { %v6337_v42 = vpop.f32.mrb[35].mxu0  ;;  %v7731_v47 = vpop.f32.mrb[35].mxu1  ;;  %15501 = vmatmul.mubr.msk.f32.gmra.mrb[140].mxu0 %vm144_vm1, %v12782_v30  ;;  %15695 = vmatmul.mubr.msk.f32.gmra.mrb[140].mxu1 %vm144_vm1, %v13039_v3  ;;  %v13043_v11 = vld [vmem:[%s20412_s2 + $0x788] sm:$0xff] }
 0x31e   :  { %v6844_v33 = vrot.slane %v6843_v37, 2  ;;  %v8238_v36 = vrot.slane %v8237_v19, 2  ;;  %v6849_v44 = vmax.f32 %v6848_v27, %v6337_v42  ;;  %v8243_v48 = vmax.f32 %v8242_v28, %v7731_v47  ;;  %15503 = vmatprep.mubr.msk.f32.mxu0 %vm144_vm1, %v12783_v13  ;;  %15697 = vmatprep.mubr.msk.f32.mxu1 %vm144_vm1, %v13040_v31 }
 0x320   :  { %v6845_v43 = vmax.f32 %v6843_v37, %v6844_v33  ;;  %v8239_v55 = vmax.f32 %v8237_v19, %v8238_v36  ;;  %v15150_v46 = vpop.f32.mrb[36].mxu0  ;;  %v15344_v49 = vpop.f32.mrb[36].mxu1  ;;  %v6850_v59 = vmax.f32 %v6849_v44, %v15147_v38  ;;  %v8244_v61 = vmax.f32 %v8243_v48, %v15341_v40  ;;  %v12788_v19 = vld [vmem:[%s20412_s2 + $0x718] sm:$0xff] }
 0x321   :  { %v6347_v63 = vpop.f32.mrb[37].mxu0  ;;  %v7741_v15 = vpop.f32.mrb[37].mxu1  ;;  %15504 = vmatmul.mubr.msk.f32.gmra.mrb[142].mxu0 %vm144_vm1, %v12784_v51  ;;  %15698 = vmatmul.mubr.msk.f32.gmra.mrb[142].mxu1 %vm144_vm1, %v13041_v1  ;;  %v13045_v38 = vld [vmem:[%s20412_s2 + $0x798] sm:$0xff]  ;;  %v12790_v1 = vld [vmem:[%s20412_s2 + $0x728] sm:$0xff] }
 0x322   :  { %v6846_v16 = vrot.slane %v6845_v43, 1  ;;  %v8240_v25 = vrot.slane %v8239_v55, 1  ;;  %v6851_v4 = vmax.f32 %v6850_v59, %v6347_v63  ;;  %v8245_v9 = vmax.f32 %v8244_v61, %v7741_v15  ;;  %15506 = vmatprep.mubr.msk.f32.mxu0 %vm144_vm1, %v12785_v52  ;;  %15700 = vmatprep.mubr.msk.f32.mxu1 %vm144_vm1, %v13042_v34  ;;  %v13047_v52 = vld [vmem:[%s20412_s2 + $0x7a8] sm:$0xff]  ;;  %v12791_v34 = vld [vmem:[%s20412_s2 + $0x730] sm:$0xff] }
 0x324   :  { %v6847_v23 = vmax.f32 %v6845_v43, %v6846_v16  ;;  %v15153_v57 = vpop.f32.mrb[38].mxu0  ;;  %v15347_v58 = vpop.f32.mrb[38].mxu1  ;;  %v6852_v5 = vmax.f32 %v6851_v4, %v15150_v46  ;;  %v8246_v27 = vmax.f32 %v8245_v9, %v15344_v49  ;;  %v19308_v28 = vmax.f32 %v8239_v55, %v8240_v25  ;;  %v13048_v43 = vld [vmem:[%s20412_s2 + $0x7b0] sm:$0xff]  ;;  %v12792_v25 = vld [vmem:[%s20412_s2 + $0x738] sm:$0xff]  ;;  %v12793_v9 = vld [vmem:[%s20412_s2 + $0x740] sm:$0xff] }
 0x325   :  { %v6357_v30 = vpop.f32.mrb[39].mxu0  ;;  %v7751_v3 = vpop.f32.mrb[39].mxu1  ;;  %15507 = vmatmul.mubr.msk.f32.gmra.mrb[144].mxu0 %vm144_vm1, %v12786_v7  ;;  %15701 = vmatmul.mubr.msk.f32.gmra.mrb[144].mxu1 %vm144_vm1, %v13043_v11  ;;  %v13049_v4 = vld [vmem:[%s20412_s2 + $0x7b8] sm:$0xff]  ;;  %v13050_v7 = vld [vmem:[%s20412_s2 + $0x7c0] sm:$0xff] }
 0x326   :  { %v19315_v13 = vmax.f32 %v5581_v41, %v6847_v23  ;;  %v6853_v31 = vmax.f32 %v6852_v5, %v6357_v30  ;;  %v8247_v37 = vmax.f32 %v8246_v27, %v7751_v3  ;;  %15509 = vmatprep.mubr.msk.f32.mxu0 %vm144_vm1, %v12787_v17  ;;  %15703 = vmatprep.mubr.msk.f32.mxu1 %vm144_vm1, %v13044_v21  ;;  %v12794_v30 = vld [vmem:[%s20412_s2 + $0x748] sm:$0xff] }
 0x327   :  { %v13051_v3 = vld [vmem:[%s20412_s2 + $0x7c8] sm:$0xff] }
 0x328   :  { %v8369_v41 = vmax.f32 %v19315_v13, %v19308_v28  ;;  %v15156_v40 = vpop.f32.mrb[40].mxu0  ;;  %v15350_v42 = vpop.f32.mrb[40].mxu1  ;;  %v6854_v47 = vmax.f32 %v6853_v31, %v15153_v57  ;;  %v8248_v33 = vmax.f32 %v8247_v37, %v15347_v58  ;;  %v12795_v31 = vld [vmem:[%s20412_s2 + $0x750] sm:$0xff] }
 0x329   :  { %v6367_v36 = vpop.f32.mrb[41].mxu0  ;;  %v7761_v44 = vpop.f32.mrb[41].mxu1  ;;  %15510 = vmatmul.mubr.msk.f32.gmra.mrb[146].mxu0 %vm144_vm1, %v12788_v19  ;;  %15704 = vmatmul.mubr.msk.f32.gmra.mrb[146].mxu1 %vm144_vm1, %v13045_v38  ;;  %v13052_v37 = vld [vmem:[%s20412_s2 + $0x7d0] sm:$0xff] }
 0x32a   :  { %v6855_v48 = vmax.f32 %v6854_v47, %v6367_v36  ;;  %v8249_v51 = vmax.f32 %v8248_v33, %v7761_v44  ;;  %15512 = vmatprep.mubr.msk.f32.mxu0 %vm144_vm1, %v12789_v24  ;;  %15706 = vmatprep.mubr.msk.f32.mxu1 %vm144_vm1, %v13046_v29  ;;  %v12796_v36 = vld [vmem:[%s20412_s2 + $0x758] sm:$0xff] }
 0x32b   :  { %v13053_v44 = vld [vmem:[%s20412_s2 + $0x7d8] sm:$0xff] }
 0x32c   :  { %v15159_v55 = vpop.f32.mrb[42].mxu0  ;;  %v15353_v46 = vpop.f32.mrb[42].mxu1  ;;  %v6856_v49 = vmax.f32 %v6855_v48, %v15156_v40  ;;  %v8250_v59 = vmax.f32 %v8249_v51, %v15350_v42  ;;  %v12797_v48 = vld [vmem:[%s20412_s2 + $0x760] sm:$0xff] }
 0x32d   :  { %v6377_v61 = vpop.f32.mrb[43].mxu0  ;;  %v7771_v63 = vpop.f32.mrb[43].mxu1  ;;  %15513 = vmatmul.mubr.msk.f32.gmra.mrb[148].mxu0 %vm144_vm1, %v12790_v1  ;;  %15707 = vmatmul.mubr.msk.f32.gmra.mrb[148].mxu1 %vm144_vm1, %v13047_v52  ;;  %v13054_v51 = vld [vmem:[%s20412_s2 + $0x7e0] sm:$0xff] }
 0x32e   :  { %v6857_v15 = vmax.f32 %v6856_v49, %v6377_v61  ;;  %v8251_v16 = vmax.f32 %v8250_v59, %v7771_v63  ;;  %15515 = vmatprep.mubr.msk.f32.mxu0 %vm144_vm1, %v12791_v34  ;;  %15709 = vmatprep.mubr.msk.f32.mxu1 %vm144_vm1, %v13048_v43 }
 0x330   :  { %v15162_v11 = vpop.f32.mrb[44].mxu0  ;;  %v15356_v17 = vpop.f32.mrb[44].mxu1  ;;  %v6858_v21 = vmax.f32 %v6857_v15, %v15159_v55  ;;  %v8252_v23 = vmax.f32 %v8251_v16, %v15353_v46  ;;  %v12798_v15 = vld [vmem:[%s20412_s2 + $0x768] sm:$0xff] }
 0x331   :  { %v6387_v57 = vpop.f32.mrb[45].mxu0  ;;  %v7781_v58 = vpop.f32.mrb[45].mxu1  ;;  %15516 = vmatmul.mubr.msk.f32.gmra.mrb[150].mxu0 %vm144_vm1, %v12792_v25  ;;  %15710 = vmatmul.mubr.msk.f32.gmra.mrb[150].mxu1 %vm144_vm1, %v13049_v4  ;;  %v13055_v16 = vld [vmem:[%s20412_s2 + $0x7e8] sm:$0xff]  ;;  %v12799_v25 = vld [vmem:[%s20412_s2 + $0x770] sm:$0xff] }
 0x332   :  { %v6859_v5 = vmax.f32 %v6858_v21, %v6387_v57  ;;  %v8253_v27 = vmax.f32 %v8252_v23, %v7781_v58  ;;  %15518 = vmatprep.mubr.msk.f32.mxu0 %vm144_vm1, %v12793_v9  ;;  %15712 = vmatprep.mubr.msk.f32.mxu1 %vm144_vm1, %v13050_v7  ;;  %v13056_v4 = vld [vmem:[%s20412_s2 + $0x7f0] sm:$0xff] }
 0x334   :  { %v15165_v19 = vpop.f32.mrb[46].mxu0  ;;  %v15359_v38 = vpop.f32.mrb[46].mxu1  ;;  %v6860_v24 = vmax.f32 %v6859_v5, %v15162_v11  ;;  %v8254_v29 = vmax.f32 %v8253_v27, %v15356_v17 }
 0x335   :  { %v6397_v40 = vpop.f32.mrb[47].mxu0  ;;  %v7791_v42 = vpop.f32.mrb[47].mxu1  ;;  %15519 = vmatmul.mubr.msk.f32.gmra.mrb[152].mxu0 %vm144_vm1, %v12794_v30  ;;  %15713 = vmatmul.mubr.msk.f32.gmra.mrb[152].mxu1 %vm144_vm1, %v13051_v3  ;;  %v12800_v30 = vld [vmem:[%s20412_s2 + $0x778] sm:$0xff] }
 0x336   :  { %v6861_v47 = vmax.f32 %v6860_v24, %v6397_v40  ;;  %v8255_v33 = vmax.f32 %v8254_v29, %v7791_v42  ;;  %15521 = vmatprep.mubr.msk.f32.mxu0 %vm144_vm1, %v12795_v31  ;;  %15715 = vmatprep.mubr.msk.f32.mxu1 %vm144_vm1, %v13052_v37  ;;  %v13057_v3 = vld [vmem:[%s20412_s2 + $0x7f8] sm:$0xff]  ;;  %v12801_v31 = vld [vmem:[%s20412_s2 + $0xb00] sm:$0xff] }
 0x337   :  { %v13058_v37 = vld [vmem:[%s20412_s2 + $0xb80] sm:$0xff] }
 0x338   :  { %v6862_v1 = vmax.f32 %v6861_v47, %v15165_v19  ;;  %v8256_v52 = vmax.f32 %v8255_v33, %v15359_v38  ;;  %v15168_v34 = vpop.f32.mrb[48].mxu0  ;;  %v15362_v43 = vpop.f32.mrb[48].mxu1 }
 0x339   :  { %v6407_v55 = vpop.f32.mrb[49].mxu0  ;;  %15522 = vmatmul.mubr.msk.f32.gmra.mrb[154].mxu0 %vm144_vm1, %v12796_v36  ;;  %15716 = vmatmul.mubr.msk.f32.gmra.mrb[154].mxu1 %vm144_vm1, %v13053_v44  ;;  %v7801_v46 = vpop.f32.mrb[49].mxu1 }
 0x33a   :  { %v6863_v49 = vrot.slane %v6862_v1, 4  ;;  %v8257_v59 = vrot.slane %v8256_v52, 4  ;;  %v6869_v61 = vmax.f32 %v6407_v55, %v15168_v34  ;;  %v8263_v63 = vmax.f32 %v7801_v46, %v15362_v43  ;;  %15524 = vmatprep.mubr.msk.f32.mxu0 %vm144_vm1, %v12797_v48  ;;  %15718 = vmatprep.mubr.msk.f32.mxu1 %vm144_vm1, %v13054_v51  ;;  %v12803_v34 = vld [vmem:[%s20412_s2 + $0xb10] sm:$0xff] }
 0x33b   :  { %v13060_v43 = vld [vmem:[%s20412_s2 + $0xb90] sm:$0xff] }
 0x33c   :  { %v6864_v9 = vmax.f32 %v6862_v1, %v6863_v49  ;;  %v8258_v7 = vmax.f32 %v8256_v52, %v8257_v59  ;;  %v15171_v11 = vpop.f32.mrb[50].mxu0  ;;  %v15365_v17 = vpop.f32.mrb[50].mxu1  ;;  %v12802_v1 = vld [vmem:[%s20412_s2 + $0xb08] sm:$0xff] }
 0x33d   :  { %v6417_v21 = vpop.f32.mrb[51].mxu0  ;;  %v7811_v23 = vpop.f32.mrb[51].mxu1  ;;  %15525 = vmatmul.mubr.msk.f32.gmra.mrb[156].mxu0 %vm144_vm1, %v12798_v15  ;;  %15719 = vmatmul.mubr.msk.f32.gmra.mrb[156].mxu1 %vm144_vm1, %v13055_v16  ;;  %v13059_v52 = vld [vmem:[%s20412_s2 + $0xb88] sm:$0xff] }
 0x33e   :  { %v6865_v57 = vrot.slane %v6864_v9, 2  ;;  %v8259_v58 = vrot.slane %v8258_v7, 2  ;;  %v6870_v5 = vmax.f32 %v6869_v61, %v6417_v21  ;;  %v8264_v27 = vmax.f32 %v8263_v63, %v7811_v23  ;;  %15527 = vmatprep.mubr.msk.f32.mxu0 %vm144_vm1, %v12799_v25  ;;  %15721 = vmatprep.mubr.msk.f32.mxu1 %vm144_vm1, %v13056_v4 }
 0x340   :  { %v6866_v19 = vmax.f32 %v6864_v9, %v6865_v57  ;;  %v8260_v38 = vmax.f32 %v8258_v7, %v8259_v58  ;;  %v15174_v24 = vpop.f32.mrb[52].mxu0  ;;  %v15368_v29 = vpop.f32.mrb[52].mxu1  ;;  %v6871_v40 = vmax.f32 %v6870_v5, %v15171_v11  ;;  %v8265_v42 = vmax.f32 %v8264_v27, %v15365_v17  ;;  %v12804_v7 = vld [vmem:[%s20412_s2 + $0xb18] sm:$0xff] }
 0x341   :  { %v6427_v47 = vpop.f32.mrb[53].mxu0  ;;  %v7821_v33 = vpop.f32.mrb[53].mxu1  ;;  %15528 = vmatmul.mubr.msk.f32.gmra.mrb[158].mxu0 %vm144_vm1, %v12800_v30  ;;  %15722 = vmatmul.mubr.msk.f32.gmra.mrb[158].mxu1 %vm144_vm1, %v13057_v3  ;;  %v13061_v11 = vld [vmem:[%s20412_s2 + $0xb98] sm:$0xff]  ;;  %v12806_v3 = vld [vmem:[%s20412_s2 + $0xb28] sm:$0xff] }
 0x342   :  { %v6867_v36 = vrot.slane %v6866_v19, 1  ;;  %v8261_v44 = vrot.slane %v8260_v38, 1  ;;  %v6872_v48 = vmax.f32 %v6871_v40, %v6427_v47  ;;  %v8266_v51 = vmax.f32 %v8265_v42, %v7821_v33  ;;  %15530 = vmatprep.mubr.msk.f32.mxu0 %vm144_vm1, %v12801_v31  ;;  %15724 = vmatprep.mubr.msk.f32.mxu1 %vm144_vm1, %v13058_v37  ;;  %v13063_v31 = vld [vmem:[%s20412_s2 + $0xba8] sm:$0xff]  ;;  %v12807_v37 = vld [vmem:[%s20412_s2 + $0xb30] sm:$0xff] }
 0x344   :  { %v6868_v55 = vmax.f32 %v6866_v19, %v6867_v36  ;;  %v15177_v46 = vpop.f32.mrb[54].mxu0  ;;  %v15371_v49 = vpop.f32.mrb[54].mxu1  ;;  %v6873_v59 = vmax.f32 %v6872_v48, %v15174_v24  ;;  %v8267_v61 = vmax.f32 %v8266_v51, %v15368_v29  ;;  %v19445_v63 = vmax.f32 %v8260_v38, %v8261_v44  ;;  %v13064_v19 = vld [vmem:[%s20412_s2 + $0xbb0] sm:$0xff]  ;;  %v12808_v44 = vld [vmem:[%s20412_s2 + $0xb38] sm:$0xff]  ;;  %v12809_v51 = vld [vmem:[%s20412_s2 + $0xb40] sm:$0xff] }
 0x345   :  { %v6437_v15 = vpop.f32.mrb[55].mxu0  ;;  %v7831_v16 = vpop.f32.mrb[55].mxu1  ;;  %15531 = vmatmul.mubr.msk.f32.gmra.mrb[160].mxu0 %vm144_vm1, %v12802_v1  ;;  %15725 = vmatmul.mubr.msk.f32.gmra.mrb[160].mxu1 %vm144_vm1, %v13059_v52  ;;  %v13065_v48 = vld [vmem:[%s20412_s2 + $0xbb8] sm:$0xff]  ;;  %v13066_v1 = vld [vmem:[%s20412_s2 + $0xbc0] sm:$0xff] }
 0x346   :  { %v19452_v25 = vmax.f32 %v5582_v20, %v6868_v55  ;;  %v6874_v4 = vmax.f32 %v6873_v59, %v6437_v15  ;;  %v8268_v9 = vmax.f32 %v8267_v61, %v7831_v16  ;;  %15533 = vmatprep.mubr.msk.f32.mxu0 %vm144_vm1, %v12803_v34  ;;  %15727 = vmatprep.mubr.msk.f32.mxu1 %vm144_vm1, %v13060_v43  ;;  %v12810_v15 = vld [vmem:[%s20412_s2 + $0xb48] sm:$0xff] }
 0x347   :  { %v13067_v16 = vld [vmem:[%s20412_s2 + $0xbc8] sm:$0xff] }
 0x348   :  { %v8370_v20 = vmax.f32 %v19452_v25, %v19445_v63  ;;  %v15180_v17 = vpop.f32.mrb[56].mxu0  ;;  %v15374_v21 = vpop.f32.mrb[56].mxu1  ;;  %v6875_v23 = vmax.f32 %v6874_v4, %v15177_v46  ;;  %v8269_v57 = vmax.f32 %v8268_v9, %v15371_v49  ;;  %v12811_v4 = vld [vmem:[%s20412_s2 + $0xb50] sm:$0xff] }
 0x349   :  { %v6447_v58 = vpop.f32.mrb[57].mxu0  ;;  %v7841_v5 = vpop.f32.mrb[57].mxu1  ;;  %15534 = vmatmul.mubr.msk.f32.gmra.mrb[162].mxu0 %vm144_vm1, %v12804_v7  ;;  %15728 = vmatmul.mubr.msk.f32.gmra.mrb[162].mxu1 %vm144_vm1, %v13061_v11  ;;  %v13068_v9 = vld [vmem:[%s20412_s2 + $0xbd0] sm:$0xff] }
 0x34a   :  { %v6876_v27 = vmax.f32 %v6875_v23, %v6447_v58  ;;  %v8270_v30 = vmax.f32 %v8269_v57, %v7841_v5  ;;  %15536 = vmatprep.mubr.msk.f32.mxu0 %vm144_vm1, %v12805_v56  ;;  %15730 = vmatprep.mubr.msk.f32.mxu1 %vm144_vm1, %v13062_v62  ;;  %v12812_v58 = vld [vmem:[%s20412_s2 + $0xb58] sm:$0xff] }
 0x34b   :  { %v13069_v5 = vld [vmem:[%s20412_s2 + $0xbd8] sm:$0xff] }
 0x34c   :  { %v15183_v38 = vpop.f32.mrb[58].mxu0  ;;  %v15377_v24 = vpop.f32.mrb[58].mxu1  ;;  %v6877_v29 = vmax.f32 %v6876_v27, %v15180_v17  ;;  %v8271_v40 = vmax.f32 %v8270_v30, %v15374_v21  ;;  %v12813_v27 = vld [vmem:[%s20412_s2 + $0xb60] sm:$0xff] }
 0x34d   :  { %v6457_v42 = vpop.f32.mrb[59].mxu0  ;;  %v7851_v47 = vpop.f32.mrb[59].mxu1  ;;  %15537 = vmatmul.mubr.msk.f32.gmra.mrb[164].mxu0 %vm144_vm1, %v12806_v3  ;;  %15731 = vmatmul.mubr.msk.f32.gmra.mrb[164].mxu1 %vm144_vm1, %v13063_v31  ;;  %v13070_v30 = vld [vmem:[%s20412_s2 + $0xbe0] sm:$0xff] }
 0x34e   :  { %v6878_v33 = vmax.f32 %v6877_v29, %v6457_v42  ;;  %v8272_v36 = vmax.f32 %v8271_v40, %v7851_v47  ;;  %15539 = vmatprep.mubr.msk.f32.mxu0 %vm144_vm1, %v12807_v37  ;;  %15733 = vmatprep.mubr.msk.f32.mxu1 %vm144_vm1, %v13064_v19 }
 0x350   :  { %v15186_v52 = vpop.f32.mrb[60].mxu0  ;;  %v15380_v34 = vpop.f32.mrb[60].mxu1  ;;  %v6879_v43 = vmax.f32 %v6878_v33, %v15183_v38  ;;  %v8273_v55 = vmax.f32 %v8272_v36, %v15377_v24  ;;  %v12814_v33 = vld [vmem:[%s20412_s2 + $0xb68] sm:$0xff] }
 0x351   :  { %v6467_v46 = vpop.f32.mrb[61].mxu0  ;;  %v7861_v49 = vpop.f32.mrb[61].mxu1  ;;  %15540 = vmatmul.mubr.msk.f32.gmra.mrb[166].mxu0 %vm144_vm1, %v12808_v44  ;;  %15734 = vmatmul.mubr.msk.f32.gmra.mrb[166].mxu1 %vm144_vm1, %v13065_v48  ;;  %v13071_v36 = vld [vmem:[%s20412_s2 + $0xbe8] sm:$0xff]  ;;  %v12815_v44 = vld [vmem:[%s20412_s2 + $0xb70] sm:$0xff] }
 0x352   :  { %v6880_v59 = vmax.f32 %v6879_v43, %v6467_v46  ;;  %v8274_v61 = vmax.f32 %v8273_v55, %v7861_v49  ;;  %15542 = vmatprep.mubr.msk.f32.mxu0 %vm144_vm1, %v12809_v51  ;;  %15736 = vmatprep.mubr.msk.f32.mxu1 %vm144_vm1, %v13066_v1  ;;  %v13072_v48 = vld [vmem:[%s20412_s2 + $0xbf0] sm:$0xff] }
 0x354   :  { %v15189_v7 = vpop.f32.mrb[62].mxu0  ;;  %v15383_v11 = vpop.f32.mrb[62].mxu1  ;;  %v6881_v56 = vmax.f32 %v6880_v59, %v15186_v52  ;;  %v8275_v62 = vmax.f32 %v8274_v61, %v15380_v34 }
 0x355   :  { %v6477_v17 = vpop.f32.mrb[63].mxu0  ;;  %v7871_v21 = vpop.f32.mrb[63].mxu1  ;;  %15543 = vmatmul.mubr.msk.f32.gmra.mrb[168].mxu0 %vm144_vm1, %v12810_v15  ;;  %15737 = vmatmul.mubr.msk.f32.gmra.mrb[168].mxu1 %vm144_vm1, %v13067_v16  ;;  %v12816_v15 = vld [vmem:[%s20412_s2 + $0xb78] sm:$0xff] }
 0x356   :  { %v6882_v23 = vmax.f32 %v6881_v56, %v6477_v17  ;;  %v8276_v57 = vmax.f32 %v8275_v62, %v7871_v21  ;;  %15545 = vmatprep.mubr.msk.f32.mxu0 %vm144_vm1, %v12811_v4  ;;  %15739 = vmatprep.mubr.msk.f32.mxu1 %vm144_vm1, %v13068_v9  ;;  %v13073_v16 = vld [vmem:[%s20412_s2 + $0xbf8] sm:$0xff]  ;;  %v12817_v4 = vld [vmem:[%s20412_s2 + $0xf00] sm:$0xff] }
 0x357   :  { %v13074_v9 = vld [vmem:[%s20412_s2 + $0xf80] sm:$0xff] }
 0x358   :  { %v6883_v3 = vmax.f32 %v6882_v23, %v15189_v7  ;;  %v8277_v31 = vmax.f32 %v8276_v57, %v15383_v11  ;;  %v15192_v37 = vpop.f32.mrb[64].mxu0  ;;  %v15386_v19 = vpop.f32.mrb[64].mxu1 }
 0x359   :  { %v6487_v38 = vpop.f32.mrb[65].mxu0  ;;  %15546 = vmatmul.mubr.msk.f32.gmra.mrb[170].mxu0 %vm144_vm1, %v12812_v58  ;;  %15740 = vmatmul.mubr.msk.f32.gmra.mrb[170].mxu1 %vm144_vm1, %v13069_v5  ;;  %v7881_v24 = vpop.f32.mrb[65].mxu1 }
 0x35a   :  { %v6884_v29 = vrot.slane %v6883_v3, 4  ;;  %v8278_v40 = vrot.slane %v8277_v31, 4  ;;  %v6890_v42 = vmax.f32 %v6487_v38, %v15192_v37  ;;  %v8284_v47 = vmax.f32 %v7881_v24, %v15386_v19  ;;  %15548 = vmatprep.mubr.msk.f32.mxu0 %vm144_vm1, %v12813_v27  ;;  %15742 = vmatprep.mubr.msk.f32.mxu1 %vm144_vm1, %v13070_v30  ;;  %v12819_v37 = vld [vmem:[%s20412_s2 + $0xf10] sm:$0xff] }
 0x35b   :  { %v13076_v19 = vld [vmem:[%s20412_s2 + $0xf90] sm:$0xff] }
 0x35c   :  { %v6885_v51 = vmax.f32 %v6883_v3, %v6884_v29  ;;  %v8279_v1 = vmax.f32 %v8277_v31, %v8278_v40  ;;  %v15195_v52 = vpop.f32.mrb[66].mxu0  ;;  %v15389_v34 = vpop.f32.mrb[66].mxu1  ;;  %v12818_v3 = vld [vmem:[%s20412_s2 + $0xf08] sm:$0xff] }
 0x35d   :  { %v6497_v43 = vpop.f32.mrb[67].mxu0  ;;  %v7891_v55 = vpop.f32.mrb[67].mxu1  ;;  %15549 = vmatmul.mubr.msk.f32.gmra.mrb[172].mxu0 %vm144_vm1, %v12814_v33  ;;  %15743 = vmatmul.mubr.msk.f32.gmra.mrb[172].mxu1 %vm144_vm1, %v13071_v36  ;;  %v13075_v31 = vld [vmem:[%s20412_s2 + $0xf88] sm:$0xff] }
 0x35e   :  { %v6886_v46 = vrot.slane %v6885_v51, 2  ;;  %v8280_v49 = vrot.slane %v8279_v1, 2  ;;  %v6891_v59 = vmax.f32 %v6890_v42, %v6497_v43  ;;  %v8285_v61 = vmax.f32 %v8284_v47, %v7891_v55  ;;  %15551 = vmatprep.mubr.msk.f32.mxu0 %vm144_vm1, %v12815_v44  ;;  %15745 = vmatprep.mubr.msk.f32.mxu1 %vm144_vm1, %v13072_v48 }
 0x360   :  { %v6887_v7 = vmax.f32 %v6885_v51, %v6886_v46  ;;  %v8281_v11 = vmax.f32 %v8279_v1, %v8280_v49  ;;  %v15198_v56 = vpop.f32.mrb[68].mxu0  ;;  %v15392_v62 = vpop.f32.mrb[68].mxu1  ;;  %v6892_v17 = vmax.f32 %v6891_v59, %v15195_v52  ;;  %v8286_v21 = vmax.f32 %v8285_v61, %v15389_v34  ;;  %v12820_v1 = vld [vmem:[%s20412_s2 + $0xf18] sm:$0xff] }
 0x361   :  { %v6507_v23 = vpop.f32.mrb[69].mxu0  ;;  %v7901_v57 = vpop.f32.mrb[69].mxu1  ;;  %15552 = vmatmul.mubr.msk.f32.gmra.mrb[174].mxu0 %vm144_vm1, %v12816_v15  ;;  %15746 = vmatmul.mubr.msk.f32.gmra.mrb[174].mxu1 %vm144_vm1, %v13073_v16  ;;  %v13077_v52 = vld [vmem:[%s20412_s2 + $0xf98] sm:$0xff]  ;;  %v12822_v16 = vld [vmem:[%s20412_s2 + $0xf28] sm:$0xff] }
 0x362   :  { %v6888_v58 = vrot.slane %v6887_v7, 1  ;;  %v8282_v5 = vrot.slane %v8281_v11, 1  ;;  %v6893_v27 = vmax.f32 %v6892_v17, %v6507_v23  ;;  %v8287_v30 = vmax.f32 %v8286_v21, %v7901_v57  ;;  %15554 = vmatprep.mubr.msk.f32.mxu0 %vm144_vm1, %v12817_v4  ;;  %15748 = vmatprep.mubr.msk.f32.mxu1 %vm144_vm1, %v13074_v9  ;;  %v13079_v4 = vld [vmem:[%s20412_s2 + $0xfa8] sm:$0xff]  ;;  %v12823_v9 = vld [vmem:[%s20412_s2 + $0xf30] sm:$0xff] }
 0x364   :  { %v6889_v38 = vmax.f32 %v6887_v7, %v6888_v58  ;;  %v15201_v24 = vpop.f32.mrb[70].mxu0  ;;  %v15395_v29 = vpop.f32.mrb[70].mxu1  ;;  %v6894_v40 = vmax.f32 %v6893_v27, %v15198_v56  ;;  %v8288_v42 = vmax.f32 %v8287_v30, %v15392_v62  ;;  %v19582_v47 = vmax.f32 %v8281_v11, %v8282_v5  ;;  %v13080_v7 = vld [vmem:[%s20412_s2 + $0xfb0] sm:$0xff]  ;;  %v12824_v5 = vld [vmem:[%s20412_s2 + $0xf38] sm:$0xff]  ;;  %v12825_v30 = vld [vmem:[%s20412_s2 + $0xf40] sm:$0xff] }
 0x365   :  { %v6517_v33 = vpop.f32.mrb[71].mxu0  ;;  %v7911_v36 = vpop.f32.mrb[71].mxu1  ;;  %15555 = vmatmul.mubr.msk.f32.gmra.mrb[176].mxu0 %vm144_vm1, %v12818_v3  ;;  %15749 = vmatmul.mubr.msk.f32.gmra.mrb[176].mxu1 %vm144_vm1, %v13075_v31  ;;  %v13081_v27 = vld [vmem:[%s20412_s2 + $0xfb8] sm:$0xff]  ;;  %v13082_v3 = vld [vmem:[%s20412_s2 + $0xfc0] sm:$0xff] }
 0x366   :  { %v19589_v44 = vmax.f32 %v5583_v35, %v6889_v38  ;;  %v6895_v48 = vmax.f32 %v6894_v40, %v6517_v33  ;;  %v8289_v51 = vmax.f32 %v8288_v42, %v7911_v36  ;;  %15557 = vmatprep.mubr.msk.f32.mxu0 %vm144_vm1, %v12819_v37  ;;  %15751 = vmatprep.mubr.msk.f32.mxu1 %vm144_vm1, %v13076_v19  ;;  %v12826_v33 = vld [vmem:[%s20412_s2 + $0xf48] sm:$0xff] }
 0x367   :  { %v13083_v36 = vld [vmem:[%s20412_s2 + $0xfc8] sm:$0xff] }
 0x368   :  { %v8371_v35 = vmax.f32 %v19589_v44, %v19582_v47  ;;  %v15204_v34 = vpop.f32.mrb[72].mxu0  ;;  %v15398_v43 = vpop.f32.mrb[72].mxu1  ;;  %v6896_v55 = vmax.f32 %v6895_v48, %v15201_v24  ;;  %v8290_v46 = vmax.f32 %v8289_v51, %v15395_v29  ;;  %v12827_v48 = vld [vmem:[%s20412_s2 + $0xf50] sm:$0xff] }
 0x369   :  { %v6527_v49 = vpop.f32.mrb[73].mxu0  ;;  %v7921_v59 = vpop.f32.mrb[73].mxu1  ;;  %15558 = vmatmul.mubr.msk.f32.gmra.mrb[178].mxu0 %vm144_vm1, %v12820_v1  ;;  %15752 = vmatmul.mubr.msk.f32.gmra.mrb[178].mxu1 %vm144_vm1, %v13077_v52  ;;  %v13084_v51 = vld [vmem:[%s20412_s2 + $0xfd0] sm:$0xff] }
 0x36a   :  { %v6897_v61 = vmax.f32 %v6896_v55, %v6527_v49  ;;  %v8291_v15 = vmax.f32 %v8290_v46, %v7921_v59  ;;  %15560 = vmatprep.mubr.msk.f32.mxu0 %vm144_vm1, %v12821_v39  ;;  %15754 = vmatprep.mubr.msk.f32.mxu1 %vm144_vm1, %v13078_v45  ;;  %v12828_v49 = vld [vmem:[%s20412_s2 + $0xf58] sm:$0xff] }
 0x36b   :  { %v13085_v59 = vld [vmem:[%s20412_s2 + $0xfd8] sm:$0xff] }
 0x36c   :  { %v15207_v11 = vpop.f32.mrb[74].mxu0  ;;  %v15401_v56 = vpop.f32.mrb[74].mxu1  ;;  %v6898_v62 = vmax.f32 %v6897_v61, %v15204_v34  ;;  %v8292_v17 = vmax.f32 %v8291_v15, %v15398_v43  ;;  %v12829_v61 = vld [vmem:[%s20412_s2 + $0xf60] sm:$0xff] }
 0x36d   :  { %v6537_v21 = vpop.f32.mrb[75].mxu0  ;;  %v7931_v23 = vpop.f32.mrb[75].mxu1  ;;  %15561 = vmatmul.mubr.msk.f32.gmra.mrb[180].mxu0 %vm144_vm1, %v12822_v16  ;;  %15755 = vmatmul.mubr.msk.f32.gmra.mrb[180].mxu1 %vm144_vm1, %v13079_v4  ;;  %v13086_v15 = vld [vmem:[%s20412_s2 + $0xfe0] sm:$0xff] }
 0x36e   :  { %v6899_v57 = vmax.f32 %v6898_v62, %v6537_v21  ;;  %v8293_v58 = vmax.f32 %v8292_v17, %v7931_v23  ;;  %15563 = vmatprep.mubr.msk.f32.mxu0 %vm144_vm1, %v12823_v9  ;;  %15757 = vmatprep.mubr.msk.f32.mxu1 %vm144_vm1, %v13080_v7 }
 0x370   :  { %v15210_v31 = vpop.f32.mrb[76].mxu0  ;;  %v15404_v37 = vpop.f32.mrb[76].mxu1  ;;  %v6900_v19 = vmax.f32 %v6899_v57, %v15207_v11  ;;  %v8294_v38 = vmax.f32 %v8293_v58, %v15401_v56  ;;  %v12830_v57 = vld [vmem:[%s20412_s2 + $0xf68] sm:$0xff] }
 0x371   :  { %v6547_v24 = vpop.f32.mrb[77].mxu0  ;;  %v7941_v29 = vpop.f32.mrb[77].mxu1  ;;  %15564 = vmatmul.mubr.msk.f32.gmra.mrb[182].mxu0 %vm144_vm1, %v12824_v5  ;;  %15758 = vmatmul.mubr.msk.f32.gmra.mrb[182].mxu1 %vm144_vm1, %v13081_v27  ;;  %v13087_v58 = vld [vmem:[%s20412_s2 + $0xfe8] sm:$0xff]  ;;  %v12831_v5 = vld [vmem:[%s20412_s2 + $0xf70] sm:$0xff] }
 0x372   :  { %v6901_v40 = vmax.f32 %v6900_v19, %v6547_v24  ;;  %v8295_v42 = vmax.f32 %v8294_v38, %v7941_v29  ;;  %15566 = vmatprep.mubr.msk.f32.mxu0 %vm144_vm1, %v12825_v30  ;;  %15760 = vmatprep.mubr.msk.f32.mxu1 %vm144_vm1, %v13082_v3  ;;  %v13088_v27 = vld [vmem:[%s20412_s2 + $0xff0] sm:$0xff] }
 0x374   :  { %v15213_v1 = vpop.f32.mrb[78].mxu0  ;;  %v15407_v52 = vpop.f32.mrb[78].mxu1  ;;  %v6902_v39 = vmax.f32 %v6901_v40, %v15210_v31  ;;  %v8296_v45 = vmax.f32 %v8295_v42, %v15404_v37 }
 0x375   :  { %v6557_v34 = vpop.f32.mrb[79].mxu0  ;;  %v7951_v43 = vpop.f32.mrb[79].mxu1  ;;  %15567 = vmatmul.mubr.msk.f32.gmra.mrb[184].mxu0 %vm144_vm1, %v12826_v33  ;;  %15761 = vmatmul.mubr.msk.f32.gmra.mrb[184].mxu1 %vm144_vm1, %v13083_v36  ;;  %v12832_v33 = vld [vmem:[%s20412_s2 + $0xf78] sm:$0xff] }
 0x376   :  { %v6903_v55 = vmax.f32 %v6902_v39, %v6557_v34  ;;  %v8297_v46 = vmax.f32 %v8296_v45, %v7951_v43  ;;  %15569 = vmatprep.mubr.msk.f32.mxu0 %vm144_vm1, %v12827_v48  ;;  %15763 = vmatprep.mubr.msk.f32.mxu1 %vm144_vm1, %v13084_v51  ;;  %v13089_v36 = vld [vmem:[%s20412_s2 + $0xff8] sm:$0xff]  ;;  %v12833_v48 = vld [vmem:[%s20412_s2 + $0x1300] sm:$0xff] }
 0x377   :  { %v13090_v51 = vld [vmem:[%s20412_s2 + $0x1380] sm:$0xff] }
 0x378   :  { %v6904_v16 = vmax.f32 %v6903_v55, %v15213_v1  ;;  %v8298_v4 = vmax.f32 %v8297_v46, %v15407_v52  ;;  %v15216_v9 = vpop.f32.mrb[80].mxu0  ;;  %v15410_v7 = vpop.f32.mrb[80].mxu1 }
 0x379   :  { %v6567_v11 = vpop.f32.mrb[81].mxu0  ;;  %15570 = vmatmul.mubr.msk.f32.gmra.mrb[186].mxu0 %vm144_vm1, %v12828_v49  ;;  %15764 = vmatmul.mubr.msk.f32.gmra.mrb[186].mxu1 %vm144_vm1, %v13085_v59  ;;  %v7961_v56 = vpop.f32.mrb[81].mxu1 }
 0x37a   :  { %v6905_v62 = vrot.slane %v6904_v16, 4  ;;  %v8299_v17 = vrot.slane %v8298_v4, 4  ;;  %v6911_v21 = vmax.f32 %v6567_v11, %v15216_v9  ;;  %v8305_v23 = vmax.f32 %v7961_v56, %v15410_v7  ;;  %15572 = vmatprep.mubr.msk.f32.mxu0 %vm144_vm1, %v12829_v61  ;;  %15766 = vmatprep.mubr.msk.f32.mxu1 %vm144_vm1, %v13086_v15  ;;  %v12835_v9 = vld [vmem:[%s20412_s2 + $0x1310] sm:$0xff] }
 0x37b   :  { %v13092_v7 = vld [vmem:[%s20412_s2 + $0x1390] sm:$0xff] }
 0x37c   :  { %v6906_v30 = vmax.f32 %v6904_v16, %v6905_v62  ;;  %v8300_v3 = vmax.f32 %v8298_v4, %v8299_v17  ;;  %v15219_v31 = vpop.f32.mrb[82].mxu0  ;;  %v15413_v37 = vpop.f32.mrb[82].mxu1  ;;  %v12834_v16 = vld [vmem:[%s20412_s2 + $0x1308] sm:$0xff] }
 0x37d   :  { %v6577_v19 = vpop.f32.mrb[83].mxu0  ;;  %v7971_v38 = vpop.f32.mrb[83].mxu1  ;;  %15573 = vmatmul.mubr.msk.f32.gmra.mrb[188].mxu0 %vm144_vm1, %v12830_v57  ;;  %15767 = vmatmul.mubr.msk.f32.gmra.mrb[188].mxu1 %vm144_vm1, %v13087_v58  ;;  %v13091_v4 = vld [vmem:[%s20412_s2 + $0x1388] sm:$0xff] }
 0x37e   :  { %v6907_v24 = vrot.slane %v6906_v30, 2  ;;  %v8301_v29 = vrot.slane %v8300_v3, 2  ;;  %v6912_v40 = vmax.f32 %v6911_v21, %v6577_v19  ;;  %v8306_v42 = vmax.f32 %v8305_v23, %v7971_v38  ;;  %15575 = vmatprep.mubr.msk.f32.mxu0 %vm144_vm1, %v12831_v5  ;;  %15769 = vmatprep.mubr.msk.f32.mxu1 %vm144_vm1, %v13088_v27 }
 0x380   :  { %v6908_v1 = vmax.f32 %v6906_v30, %v6907_v24  ;;  %v8302_v52 = vmax.f32 %v8300_v3, %v8301_v29  ;;  %v15222_v39 = vpop.f32.mrb[84].mxu0  ;;  %v15416_v45 = vpop.f32.mrb[84].mxu1  ;;  %v6913_v34 = vmax.f32 %v6912_v40, %v15219_v31  ;;  %v8307_v43 = vmax.f32 %v8306_v42, %v15413_v37  ;;  %v12836_v3 = vld [vmem:[%s20412_s2 + $0x1318] sm:$0xff] }
 0x381   :  { %v6587_v55 = vpop.f32.mrb[85].mxu0  ;;  %v7981_v46 = vpop.f32.mrb[85].mxu1  ;;  %15576 = vmatmul.mubr.msk.f32.gmra.mrb[190].mxu0 %vm144_vm1, %v12832_v33  ;;  %15770 = vmatmul.mubr.msk.f32.gmra.mrb[190].mxu1 %vm144_vm1, %v13089_v36  ;;  %v13093_v31 = vld [vmem:[%s20412_s2 + $0x1398] sm:$0xff]  ;;  %v12838_v36 = vld [vmem:[%s20412_s2 + $0x1328] sm:$0xff] }
 0x382   :  { %v6909_v49 = vrot.slane %v6908_v1, 1  ;;  %v8303_v59 = vrot.slane %v8302_v52, 1  ;;  %v6914_v61 = vmax.f32 %v6913_v34, %v6587_v55  ;;  %v8308_v15 = vmax.f32 %v8307_v43, %v7981_v46  ;;  %15578 = vmatprep.mubr.msk.f32.mxu0 %vm144_vm1, %v12833_v48  ;;  %15772 = vmatprep.mubr.msk.f32.mxu1 %vm144_vm1, %v13090_v51  ;;  %v13095_v48 = vld [vmem:[%s20412_s2 + $0x13a8] sm:$0xff]  ;;  %v12839_v51 = vld [vmem:[%s20412_s2 + $0x1330] sm:$0xff] }
 0x384   :  { %v6910_v11 = vmax.f32 %v6908_v1, %v6909_v49  ;;  %v15225_v56 = vpop.f32.mrb[86].mxu0  ;;  %v15419_v62 = vpop.f32.mrb[86].mxu1  ;;  %v6915_v17 = vmax.f32 %v6914_v61, %v15222_v39  ;;  %v8309_v21 = vmax.f32 %v8308_v15, %v15416_v45  ;;  %v19719_v23 = vmax.f32 %v8302_v52, %v8303_v59  ;;  %v13096_v1 = vld [vmem:[%s20412_s2 + $0x13b0] sm:$0xff]  ;;  %v12840_v59 = vld [vmem:[%s20412_s2 + $0x1338] sm:$0xff]  ;;  %v12841_v15 = vld [vmem:[%s20412_s2 + $0x1340] sm:$0xff] }
 0x385   :  { %v6597_v57 = vpop.f32.mrb[87].mxu0  ;;  %v7991_v58 = vpop.f32.mrb[87].mxu1  ;;  %15579 = vmatmul.mubr.msk.f32.gmra.mrb[192].mxu0 %vm144_vm1, %v12834_v16  ;;  %15773 = vmatmul.mubr.msk.f32.gmra.mrb[192].mxu1 %vm144_vm1, %v13091_v4  ;;  %v13097_v61 = vld [vmem:[%s20412_s2 + $0x13b8] sm:$0xff]  ;;  %v13098_v16 = vld [vmem:[%s20412_s2 + $0x13c0] sm:$0xff] }
 0x386   :  { %v19726_v5 = vmax.f32 %v5584_v18, %v6910_v11  ;;  %v6916_v27 = vmax.f32 %v6915_v17, %v6597_v57  ;;  %v8310_v30 = vmax.f32 %v8309_v21, %v7991_v58  ;;  %15581 = vmatprep.mubr.msk.f32.mxu0 %vm144_vm1, %v12835_v9  ;;  %15775 = vmatprep.mubr.msk.f32.mxu1 %vm144_vm1, %v13092_v7  ;;  %v12842_v57 = vld [vmem:[%s20412_s2 + $0x1348] sm:$0xff] }
 0x387   :  { %v13099_v58 = vld [vmem:[%s20412_s2 + $0x13c8] sm:$0xff] }
 0x388   :  { %v8372_v18 = vmax.f32 %v19726_v5, %v19719_v23  ;;  %v15228_v37 = vpop.f32.mrb[88].mxu0  ;;  %v15422_v19 = vpop.f32.mrb[88].mxu1  ;;  %v6917_v38 = vmax.f32 %v6916_v27, %v15225_v56  ;;  %v8311_v24 = vmax.f32 %v8310_v30, %v15419_v62  ;;  %v12843_v27 = vld [vmem:[%s20412_s2 + $0x1350] sm:$0xff] }
 0x389   :  { %v6607_v29 = vpop.f32.mrb[89].mxu0  ;;  %v8001_v40 = vpop.f32.mrb[89].mxu1  ;;  %15582 = vmatmul.mubr.msk.f32.gmra.mrb[194].mxu0 %vm144_vm1, %v12836_v3  ;;  %15776 = vmatmul.mubr.msk.f32.gmra.mrb[194].mxu1 %vm144_vm1, %v13093_v31  ;;  %v13100_v30 = vld [vmem:[%s20412_s2 + $0x13d0] sm:$0xff] }
 0x38a   :  { %v6918_v42 = vmax.f32 %v6917_v38, %v6607_v29  ;;  %v8312_v33 = vmax.f32 %v8311_v24, %v8001_v40  ;;  %15584 = vmatprep.mubr.msk.f32.mxu0 %vm144_vm1, %v12837_v12  ;;  %15778 = vmatprep.mubr.msk.f32.mxu1 %vm144_vm1, %v13094_v22  ;;  %v12844_v29 = vld [vmem:[%s20412_s2 + $0x1358] sm:$0xff] }
 0x38b   :  { %v13101_v40 = vld [vmem:[%s20412_s2 + $0x13d8] sm:$0xff] }
 0x38c   :  { %v15231_v52 = vpop.f32.mrb[90].mxu0  ;;  %v15425_v39 = vpop.f32.mrb[90].mxu1  ;;  %v6919_v45 = vmax.f32 %v6918_v42, %v15228_v37  ;;  %v8313_v34 = vmax.f32 %v8312_v33, %v15422_v19  ;;  %v12845_v42 = vld [vmem:[%s20412_s2 + $0x1360] sm:$0xff] }
 0x38d   :  { %v6617_v43 = vpop.f32.mrb[91].mxu0  ;;  %v8011_v55 = vpop.f32.mrb[91].mxu1  ;;  %15585 = vmatmul.mubr.msk.f32.gmra.mrb[196].mxu0 %vm144_vm1, %v12838_v36  ;;  %15779 = vmatmul.mubr.msk.f32.gmra.mrb[196].mxu1 %vm144_vm1, %v13095_v48  ;;  %v13102_v33 = vld [vmem:[%s20412_s2 + $0x13e0] sm:$0xff] }
 0x38e   :  { %v6920_v46 = vmax.f32 %v6919_v45, %v6617_v43  ;;  %v8314_v49 = vmax.f32 %v8313_v34, %v8011_v55  ;;  %15587 = vmatprep.mubr.msk.f32.mxu0 %vm144_vm1, %v12839_v51  ;;  %15781 = vmatprep.mubr.msk.f32.mxu1 %vm144_vm1, %v13096_v1 }
 0x390   :  { %v15234_v4 = vpop.f32.mrb[92].mxu0  ;;  %v15428_v9 = vpop.f32.mrb[92].mxu1  ;;  %v6921_v7 = vmax.f32 %v6920_v46, %v15231_v52  ;;  %v8315_v11 = vmax.f32 %v8314_v49, %v15425_v39  ;;  %v12846_v46 = vld [vmem:[%s20412_s2 + $0x1368] sm:$0xff] }
 0x391   :  { %v6627_v56 = vpop.f32.mrb[93].mxu0  ;;  %v8021_v62 = vpop.f32.mrb[93].mxu1  ;;  %15588 = vmatmul.mubr.msk.f32.gmra.mrb[198].mxu0 %vm144_vm1, %v12840_v59  ;;  %15782 = vmatmul.mubr.msk.f32.gmra.mrb[198].mxu1 %vm144_vm1, %v13097_v61  ;;  %v13103_v49 = vld [vmem:[%s20412_s2 + $0x13e8] sm:$0xff]  ;;  %v12847_v59 = vld [vmem:[%s20412_s2 + $0x1370] sm:$0xff] }
 0x392   :  { %v6922_v17 = vmax.f32 %v6921_v7, %v6627_v56  ;;  %v8316_v21 = vmax.f32 %v8315_v11, %v8021_v62  ;;  %15590 = vmatprep.mubr.msk.f32.mxu0 %vm144_vm1, %v12841_v15  ;;  %15784 = vmatprep.mubr.msk.f32.mxu1 %vm144_vm1, %v13098_v16  ;;  %v13104_v61 = vld [vmem:[%s20412_s2 + $0x13f0] sm:$0xff] }
 0x394   :  { %v15237_v3 = vpop.f32.mrb[94].mxu0  ;;  %v15431_v31 = vpop.f32.mrb[94].mxu1  ;;  %v6923_v12 = vmax.f32 %v6922_v17, %v15234_v4  ;;  %v8317_v22 = vmax.f32 %v8316_v21, %v15428_v9 }
 0x395   :  { %v6637_v37 = vpop.f32.mrb[95].mxu0  ;;  %v8031_v19 = vpop.f32.mrb[95].mxu1  ;;  %15591 = vmatmul.mubr.msk.f32.gmra.mrb[200].mxu0 %vm144_vm1, %v12842_v57  ;;  %15785 = vmatmul.mubr.msk.f32.gmra.mrb[200].mxu1 %vm144_vm1, %v13099_v58  ;;  %v12848_v57 = vld [vmem:[%s20412_s2 + $0x1378] sm:$0xff] }
 0x396   :  { %v6924_v38 = vmax.f32 %v6923_v12, %v6637_v37  ;;  %v8318_v24 = vmax.f32 %v8317_v22, %v8031_v19  ;;  %15593 = vmatprep.mubr.msk.f32.mxu0 %vm144_vm1, %v12843_v27  ;;  %15787 = vmatprep.mubr.msk.f32.mxu1 %vm144_vm1, %v13100_v30  ;;  %v13105_v58 = vld [vmem:[%s20412_s2 + $0x13f8] sm:$0xff]  ;;  %v12849_v27 = vld [vmem:[%s20412_s2 + $0x1700] sm:$0xff] }
 0x397   :  { %v13106_v30 = vld [vmem:[%s20412_s2 + $0x1780] sm:$0xff] }
 0x398   :  { %v6925_v36 = vmax.f32 %v6924_v38, %v15237_v3  ;;  %v8319_v48 = vmax.f32 %v8318_v24, %v15431_v31  ;;  %v15240_v51 = vpop.f32.mrb[96].mxu0  ;;  %v15434_v1 = vpop.f32.mrb[96].mxu1 }
 0x399   :  { %v6647_v52 = vpop.f32.mrb[97].mxu0  ;;  %15594 = vmatmul.mubr.msk.f32.gmra.mrb[202].mxu0 %vm144_vm1, %v12844_v29  ;;  %15788 = vmatmul.mubr.msk.f32.gmra.mrb[202].mxu1 %vm144_vm1, %v13101_v40  ;;  %v8041_v39 = vpop.f32.mrb[97].mxu1 }
 0x39a   :  { %v6926_v45 = vrot.slane %v6925_v36, 4  ;;  %v8320_v34 = vrot.slane %v8319_v48, 4  ;;  %v6932_v43 = vmax.f32 %v6647_v52, %v15240_v51  ;;  %v8326_v55 = vmax.f32 %v8041_v39, %v15434_v1  ;;  %15596 = vmatprep.mubr.msk.f32.mxu0 %vm144_vm1, %v12845_v42  ;;  %15790 = vmatprep.mubr.msk.f32.mxu1 %vm144_vm1, %v13102_v33  ;;  %v12851_v51 = vld [vmem:[%s20412_s2 + $0x1710] sm:$0xff] }
 0x39b   :  { %v13108_v1 = vld [vmem:[%s20412_s2 + $0x1790] sm:$0xff] }
 0x39c   :  { %v6927_v15 = vmax.f32 %v6925_v36, %v6926_v45  ;;  %v8321_v16 = vmax.f32 %v8319_v48, %v8320_v34  ;;  %v15243_v4 = vpop.f32.mrb[98].mxu0  ;;  %v15437_v9 = vpop.f32.mrb[98].mxu1  ;;  %v12850_v36 = vld [vmem:[%s20412_s2 + $0x1708] sm:$0xff] }
 0x39d   :  { %v6657_v7 = vpop.f32.mrb[99].mxu0  ;;  %v8051_v11 = vpop.f32.mrb[99].mxu1  ;;  %15597 = vmatmul.mubr.msk.f32.gmra.mrb[204].mxu0 %vm144_vm1, %v12846_v46  ;;  %15791 = vmatmul.mubr.msk.f32.gmra.mrb[204].mxu1 %vm144_vm1, %v13103_v49  ;;  %v13107_v48 = vld [vmem:[%s20412_s2 + $0x1788] sm:$0xff] }
 0x39e   :  { %v6928_v56 = vrot.slane %v6927_v15, 2  ;;  %v8322_v62 = vrot.slane %v8321_v16, 2  ;;  %v6933_v17 = vmax.f32 %v6932_v43, %v6657_v7  ;;  %v8327_v21 = vmax.f32 %v8326_v55, %v8051_v11  ;;  %15599 = vmatprep.mubr.msk.f32.mxu0 %vm144_vm1, %v12847_v59  ;;  %15793 = vmatprep.mubr.msk.f32.mxu1 %vm144_vm1, %v13104_v61 }
 0x3a0   :  { %v6929_v3 = vmax.f32 %v6927_v15, %v6928_v56  ;;  %v8323_v31 = vmax.f32 %v8321_v16, %v8322_v62  ;;  %v15246_v12 = vpop.f32.mrb[100].mxu0  ;;  %v15440_v22 = vpop.f32.mrb[100].mxu1  ;;  %v6934_v37 = vmax.f32 %v6933_v17, %v15243_v4  ;;  %v8328_v19 = vmax.f32 %v8327_v21, %v15437_v9  ;;  %v12852_v16 = vld [vmem:[%s20412_s2 + $0x1718] sm:$0xff] }
 0x3a1   :  { %v6667_v38 = vpop.f32.mrb[101].mxu0  ;;  %v8061_v24 = vpop.f32.mrb[101].mxu1  ;;  %15600 = vmatmul.mubr.msk.f32.gmra.mrb[206].mxu0 %vm144_vm1, %v12848_v57  ;;  %15794 = vmatmul.mubr.msk.f32.gmra.mrb[206].mxu1 %vm144_vm1, %v13105_v58  ;;  %v13109_v4 = vld [vmem:[%s20412_s2 + $0x1798] sm:$0xff]  ;;  %v12854_v58 = vld [vmem:[%s20412_s2 + $0x1728] sm:$0xff] }
 0x3a2   :  { %v6930_v29 = vrot.slane %v6929_v3, 1  ;;  %v8324_v40 = vrot.slane %v8323_v31, 1  ;;  %v6935_v42 = vmax.f32 %v6934_v37, %v6667_v38  ;;  %v8329_v33 = vmax.f32 %v8328_v19, %v8061_v24  ;;  %15602 = vmatprep.mubr.msk.f32.mxu0 %vm144_vm1, %v12849_v27  ;;  %15796 = vmatprep.mubr.msk.f32.mxu1 %vm144_vm1, %v13106_v30  ;;  %v13111_v27 = vld [vmem:[%s20412_s2 + $0x17a8] sm:$0xff]  ;;  %v12855_v30 = vld [vmem:[%s20412_s2 + $0x1730] sm:$0xff] }
 0x3a4   :  { %v6931_v52 = vmax.f32 %v6929_v3, %v6930_v29  ;;  %v15249_v39 = vpop.f32.mrb[102].mxu0  ;;  %v15443_v45 = vpop.f32.mrb[102].mxu1  ;;  %v6936_v34 = vmax.f32 %v6935_v42, %v15246_v12  ;;  %v8330_v43 = vmax.f32 %v8329_v33, %v15440_v22  ;;  %v19856_v55 = vmax.f32 %v8323_v31, %v8324_v40  ;;  %v13112_v3 = vld [vmem:[%s20412_s2 + $0x17b0] sm:$0xff]  ;;  %v12856_v40 = vld [vmem:[%s20412_s2 + $0x1738] sm:$0xff]  ;;  %v12857_v33 = vld [vmem:[%s20412_s2 + $0x1740] sm:$0xff] }
 0x3a5   :  { %v6677_v46 = vpop.f32.mrb[103].mxu0  ;;  %v8071_v49 = vpop.f32.mrb[103].mxu1  ;;  %15603 = vmatmul.mubr.msk.f32.gmra.mrb[208].mxu0 %vm144_vm1, %v12850_v36  ;;  %15797 = vmatmul.mubr.msk.f32.gmra.mrb[208].mxu1 %vm144_vm1, %v13107_v48  ;;  %v13113_v42 = vld [vmem:[%s20412_s2 + $0x17b8] sm:$0xff]  ;;  %v13114_v36 = vld [vmem:[%s20412_s2 + $0x17c0] sm:$0xff] }
 0x3a6   :  { %v19863_v59 = vmax.f32 %v5585_v6, %v6931_v52  ;;  %v6937_v61 = vmax.f32 %v6936_v34, %v6677_v46  ;;  %v8331_v15 = vmax.f32 %v8330_v43, %v8071_v49  ;;  %15605 = vmatprep.mubr.msk.f32.mxu0 %vm144_vm1, %v12851_v51  ;;  %15799 = vmatprep.mubr.msk.f32.mxu1 %vm144_vm1, %v13108_v1  ;;  %v12858_v46 = vld [vmem:[%s20412_s2 + $0x1748] sm:$0xff] }
 0x3a7   :  { %v13115_v49 = vld [vmem:[%s20412_s2 + $0x17c8] sm:$0xff] }
 0x3a8   :  { %v8373_v6 = vmax.f32 %v19863_v59, %v19856_v55  ;;  %v15252_v9 = vpop.f32.mrb[104].mxu0  ;;  %v15446_v7 = vpop.f32.mrb[104].mxu1  ;;  %v6938_v11 = vmax.f32 %v6937_v61, %v15249_v39  ;;  %v8332_v56 = vmax.f32 %v8331_v15, %v15443_v45  ;;  %v12859_v61 = vld [vmem:[%s20412_s2 + $0x1750] sm:$0xff] }
 0x3a9   :  { %v6687_v62 = vpop.f32.mrb[105].mxu0  ;;  %v8081_v17 = vpop.f32.mrb[105].mxu1  ;;  %15606 = vmatmul.mubr.msk.f32.gmra.mrb[210].mxu0 %vm144_vm1, %v12852_v16  ;;  %15800 = vmatmul.mubr.msk.f32.gmra.mrb[210].mxu1 %vm144_vm1, %v13109_v4  ;;  %v13116_v15 = vld [vmem:[%s20412_s2 + $0x17d0] sm:$0xff] }
 0x3aa   :  { %v6939_v21 = vmax.f32 %v6938_v11, %v6687_v62  ;;  %v8333_v57 = vmax.f32 %v8332_v56, %v8081_v17  ;;  %15608 = vmatprep.mubr.msk.f32.mxu0 %vm144_vm1, %v12853_v53  ;;  %15802 = vmatprep.mubr.msk.f32.mxu1 %vm144_vm1, %v13110_v54  ;;  %v12860_v62 = vld [vmem:[%s20412_s2 + $0x1758] sm:$0xff] }
 0x3ab   :  { %v13117_v17 = vld [vmem:[%s20412_s2 + $0x17d8] sm:$0xff] }
 0x3ac   :  { %v15255_v31 = vpop.f32.mrb[106].mxu0  ;;  %v15449_v12 = vpop.f32.mrb[106].mxu1  ;;  %v6940_v22 = vmax.f32 %v6939_v21, %v15252_v9  ;;  %v8334_v37 = vmax.f32 %v8333_v57, %v15446_v7  ;;  %v12861_v21 = vld [vmem:[%s20412_s2 + $0x1760] sm:$0xff] }
 0x3ad   :  { %v6697_v19 = vpop.f32.mrb[107].mxu0  ;;  %v8091_v38 = vpop.f32.mrb[107].mxu1  ;;  %15609 = vmatmul.mubr.msk.f32.gmra.mrb[212].mxu0 %vm144_vm1, %v12854_v58  ;;  %15803 = vmatmul.mubr.msk.f32.gmra.mrb[212].mxu1 %vm144_vm1, %v13111_v27  ;;  %v13118_v57 = vld [vmem:[%s20412_s2 + $0x17e0] sm:$0xff] }
 0x3ae   :  { %v6941_v24 = vmax.f32 %v6940_v22, %v6697_v19  ;;  %v8335_v29 = vmax.f32 %v8334_v37, %v8091_v38  ;;  %15611 = vmatprep.mubr.msk.f32.mxu0 %vm144_vm1, %v12855_v30  ;;  %15805 = vmatprep.mubr.msk.f32.mxu1 %vm144_vm1, %v13112_v3 }
 0x3b0   :  { %v15258_v48 = vpop.f32.mrb[108].mxu0  ;;  %v15452_v51 = vpop.f32.mrb[108].mxu1  ;;  %v6942_v1 = vmax.f32 %v6941_v24, %v15255_v31  ;;  %v8336_v52 = vmax.f32 %v8335_v29, %v15449_v12  ;;  %v12862_v24 = vld [vmem:[%s20412_s2 + $0x1768] sm:$0xff] }
 0x3b1   :  { %v6707_v39 = vpop.f32.mrb[109].mxu0  ;;  %v8101_v45 = vpop.f32.mrb[109].mxu1  ;;  %15612 = vmatmul.mubr.msk.f32.gmra.mrb[214].mxu0 %vm144_vm1, %v12856_v40  ;;  %15806 = vmatmul.mubr.msk.f32.gmra.mrb[214].mxu1 %vm144_vm1, %v13113_v42  ;;  %v13119_v29 = vld [vmem:[%s20412_s2 + $0x17e8] sm:$0xff]  ;;  %v12863_v40 = vld [vmem:[%s20412_s2 + $0x1770] sm:$0xff] }
 0x3b2   :  { %v6943_v34 = vmax.f32 %v6942_v1, %v6707_v39  ;;  %v8337_v43 = vmax.f32 %v8336_v52, %v8101_v45  ;;  %15614 = vmatprep.mubr.msk.f32.mxu0 %vm144_vm1, %v12857_v33  ;;  %15808 = vmatprep.mubr.msk.f32.mxu1 %vm144_vm1, %v13114_v36  ;;  %v13120_v42 = vld [vmem:[%s20412_s2 + $0x17f0] sm:$0xff] }
 0x3b4   :  { %v15261_v16 = vpop.f32.mrb[110].mxu0  ;;  %v15455_v4 = vpop.f32.mrb[110].mxu1  ;;  %v6944_v53 = vmax.f32 %v6943_v34, %v15258_v48  ;;  %v8338_v54 = vmax.f32 %v8337_v43, %v15452_v51 }
 0x3b5   :  { %v6717_v9 = vpop.f32.mrb[111].mxu0  ;;  %v8111_v7 = vpop.f32.mrb[111].mxu1  ;;  %15615 = vmatmul.mubr.msk.f32.gmra.mrb[216].mxu0 %vm144_vm1, %v12858_v46  ;;  %15809 = vmatmul.mubr.msk.f32.gmra.mrb[216].mxu1 %vm144_vm1, %v13115_v49  ;;  %v12864_v46 = vld [vmem:[%s20412_s2 + $0x1778] sm:$0xff] }
 0x3b6   :  { %v6945_v11 = vmax.f32 %v6944_v53, %v6717_v9  ;;  %v8339_v56 = vmax.f32 %v8338_v54, %v8111_v7  ;;  %15617 = vmatprep.mubr.msk.f32.mxu0 %vm144_vm1, %v12859_v61  ;;  %15811 = vmatprep.mubr.msk.f32.mxu1 %vm144_vm1, %v13116_v15  ;;  %v13121_v49 = vld [vmem:[%s20412_s2 + $0x17f8] sm:$0xff]  ;;  %v12865_v61 = vld [vmem:[%s20412_s2 + $0x1b00] sm:$0xff] }
 0x3b7   :  { %v13122_v15 = vld [vmem:[%s20412_s2 + $0x1b80] sm:$0xff] }
 0x3b8   :  { %v6946_v58 = vmax.f32 %v6945_v11, %v15261_v16  ;;  %v8340_v27 = vmax.f32 %v8339_v56, %v15455_v4  ;;  %v15264_v30 = vpop.f32.mrb[112].mxu0  ;;  %v15458_v3 = vpop.f32.mrb[112].mxu1 }
 0x3b9   :  { %v6727_v31 = vpop.f32.mrb[113].mxu0  ;;  %15618 = vmatmul.mubr.msk.f32.gmra.mrb[218].mxu0 %vm144_vm1, %v12860_v62  ;;  %15812 = vmatmul.mubr.msk.f32.gmra.mrb[218].mxu1 %vm144_vm1, %v13117_v17  ;;  %v8121_v12 = vpop.f32.mrb[113].mxu1 }
 0x3ba   :  { %v6947_v22 = vrot.slane %v6946_v58, 4  ;;  %v8341_v37 = vrot.slane %v8340_v27, 4  ;;  %v6953_v19 = vmax.f32 %v6727_v31, %v15264_v30  ;;  %v8347_v38 = vmax.f32 %v8121_v12, %v15458_v3  ;;  %15620 = vmatprep.mubr.msk.f32.mxu0 %vm144_vm1, %v12861_v21  ;;  %15814 = vmatprep.mubr.msk.f32.mxu1 %vm144_vm1, %v13118_v57  ;;  %v12867_v30 = vld [vmem:[%s20412_s2 + $0x1b10] sm:$0xff] }
 0x3bb   :  { %v13124_v3 = vld [vmem:[%s20412_s2 + $0x1b90] sm:$0xff] }
 0x3bc   :  { %v6948_v33 = vmax.f32 %v6946_v58, %v6947_v22  ;;  %v8342_v36 = vmax.f32 %v8340_v27, %v8341_v37  ;;  %v15267_v48 = vpop.f32.mrb[114].mxu0  ;;  %v15461_v51 = vpop.f32.mrb[114].mxu1  ;;  %v12866_v58 = vld [vmem:[%s20412_s2 + $0x1b08] sm:$0xff] }
 0x3bd   :  { %v6737_v1 = vpop.f32.mrb[115].mxu0  ;;  %v8131_v52 = vpop.f32.mrb[115].mxu1  ;;  %15621 = vmatmul.mubr.msk.f32.gmra.mrb[220].mxu0 %vm144_vm1, %v12862_v24  ;;  %15815 = vmatmul.mubr.msk.f32.gmra.mrb[220].mxu1 %vm144_vm1, %v13119_v29  ;;  %v13123_v27 = vld [vmem:[%s20412_s2 + $0x1b88] sm:$0xff] }
 0x3be   :  { %v6949_v39 = vrot.slane %v6948_v33, 2  ;;  %v8343_v45 = vrot.slane %v8342_v36, 2  ;;  %v6954_v34 = vmax.f32 %v6953_v19, %v6737_v1  ;;  %v8348_v43 = vmax.f32 %v8347_v38, %v8131_v52  ;;  %15623 = vmatprep.mubr.msk.f32.mxu0 %vm144_vm1, %v12863_v40  ;;  %15817 = vmatprep.mubr.msk.f32.mxu1 %vm144_vm1, %v13120_v42 }
 0x3c0   :  { %v6950_v16 = vmax.f32 %v6948_v33, %v6949_v39  ;;  %v8344_v4 = vmax.f32 %v8342_v36, %v8343_v45  ;;  %v15270_v53 = vpop.f32.mrb[116].mxu0  ;;  %v15464_v54 = vpop.f32.mrb[116].mxu1  ;;  %v6955_v9 = vmax.f32 %v6954_v34, %v15267_v48  ;;  %v8349_v7 = vmax.f32 %v8348_v43, %v15461_v51  ;;  %v12868_v36 = vld [vmem:[%s20412_s2 + $0x1b18] sm:$0xff] }
 0x3c1   :  { %v6747_v11 = vpop.f32.mrb[117].mxu0  ;;  %v8141_v56 = vpop.f32.mrb[117].mxu1  ;;  %15624 = vmatmul.mubr.msk.f32.gmra.mrb[222].mxu0 %vm144_vm1, %v12864_v46  ;;  %15818 = vmatmul.mubr.msk.f32.gmra.mrb[222].mxu1 %vm144_vm1, %v13121_v49  ;;  %v13125_v48 = vld [vmem:[%s20412_s2 + $0x1b98] sm:$0xff]  ;;  %v12870_v49 = vld [vmem:[%s20412_s2 + $0x1b28] sm:$0xff] }
 0x3c2   :  { %v6951_v62 = vrot.slane %v6950_v16, 1  ;;  %v8345_v17 = vrot.slane %v8344_v4, 1  ;;  %v6956_v21 = vmax.f32 %v6955_v9, %v6747_v11  ;;  %v8350_v57 = vmax.f32 %v8349_v7, %v8141_v56  ;;  %15626 = vmatprep.mubr.msk.f32.mxu0 %vm144_vm1, %v12865_v61  ;;  %15820 = vmatprep.mubr.msk.f32.mxu1 %vm144_vm1, %v13122_v15  ;;  %v13127_v61 = vld [vmem:[%s20412_s2 + $0x1ba8] sm:$0xff]  ;;  %v12871_v15 = vld [vmem:[%s20412_s2 + $0x1b30] sm:$0xff] }
 0x3c4   :  { %v6952_v31 = vmax.f32 %v6950_v16, %v6951_v62  ;;  %v15273_v12 = vpop.f32.mrb[118].mxu0  ;;  %v15467_v22 = vpop.f32.mrb[118].mxu1  ;;  %v6957_v37 = vmax.f32 %v6956_v21, %v15270_v53  ;;  %v8351_v19 = vmax.f32 %v8350_v57, %v15464_v54  ;;  %v19993_v38 = vmax.f32 %v8344_v4, %v8345_v17  ;;  %v13128_v16 = vld [vmem:[%s20412_s2 + $0x1bb0] sm:$0xff]  ;;  %v12872_v17 = vld [vmem:[%s20412_s2 + $0x1b38] sm:$0xff]  ;;  %v12873_v57 = vld [vmem:[%s20412_s2 + $0x1b40] sm:$0xff] }
 0x3c5   :  { %v6757_v24 = vpop.f32.mrb[119].mxu0  ;;  %v8151_v29 = vpop.f32.mrb[119].mxu1  ;;  %15627 = vmatmul.mubr.msk.f32.gmra.mrb[224].mxu0 %vm144_vm1, %v12866_v58  ;;  %15821 = vmatmul.mubr.msk.f32.gmra.mrb[224].mxu1 %vm144_vm1, %v13123_v27  ;;  %v13129_v21 = vld [vmem:[%s20412_s2 + $0x1bb8] sm:$0xff]  ;;  %v13130_v58 = vld [vmem:[%s20412_s2 + $0x1bc0] sm:$0xff] }
 0x3c6   :  { %v20000_v40 = vmax.f32 %v5586_v0, %v6952_v31  ;;  %v6958_v42 = vmax.f32 %v6957_v37, %v6757_v24  ;;  %v8352_v33 = vmax.f32 %v8351_v19, %v8151_v29  ;;  %15629 = vmatprep.mubr.msk.f32.mxu0 %vm144_vm1, %v12867_v30  ;;  %15823 = vmatprep.mubr.msk.f32.mxu1 %vm144_vm1, %v13124_v3  ;;  %v12874_v24 = vld [vmem:[%s20412_s2 + $0x1b48] sm:$0xff] }
 0x3c7   :  { %v13131_v29 = vld [vmem:[%s20412_s2 + $0x1bc8] sm:$0xff] }
 0x3c8   :  { %v8374_v0 = vmax.f32 %v20000_v40, %v19993_v38  ;;  %v15276_v51 = vpop.f32.mrb[120].mxu0  ;;  %v15470_v1 = vpop.f32.mrb[120].mxu1  ;;  %v6959_v52 = vmax.f32 %v6958_v42, %v15273_v12  ;;  %v8353_v39 = vmax.f32 %v8352_v33, %v15467_v22  ;;  %v12875_v42 = vld [vmem:[%s20412_s2 + $0x1b50] sm:$0xff] }
 0x3c9   :  { %v6767_v45 = vpop.f32.mrb[121].mxu0  ;;  %v8161_v34 = vpop.f32.mrb[121].mxu1  ;;  %15630 = vmatmul.mubr.msk.f32.gmra.mrb[226].mxu0 %vm144_vm1, %v12868_v36  ;;  %15824 = vmatmul.mubr.msk.f32.gmra.mrb[226].mxu1 %vm144_vm1, %v13125_v48  ;;  %v13132_v33 = vld [vmem:[%s20412_s2 + $0x1bd0] sm:$0xff] }
 0x3ca   :  { %v6960_v43 = vmax.f32 %v6959_v52, %v6767_v45  ;;  %v8354_v46 = vmax.f32 %v8353_v39, %v8161_v34  ;;  %15632 = vmatprep.mubr.msk.f32.mxu0 %vm144_vm1, %v12869_v32  ;;  %15826 = vmatprep.mubr.msk.f32.mxu1 %vm144_vm1, %v13126_v26  ;;  %v12876_v45 = vld [vmem:[%s20412_s2 + $0x1b58] sm:$0xff] }
 0x3cb   :  { %v13133_v34 = vld [vmem:[%s20412_s2 + $0x1bd8] sm:$0xff] }
 0x3cc   :  { %v15279_v4 = vpop.f32.mrb[122].mxu0  ;;  %v15473_v53 = vpop.f32.mrb[122].mxu1  ;;  %v6961_v54 = vmax.f32 %v6960_v43, %v15276_v51  ;;  %v8355_v9 = vmax.f32 %v8354_v46, %v15470_v1  ;;  %v12877_v43 = vld [vmem:[%s20412_s2 + $0x1b60] sm:$0xff] }
 0x3cd   :  { %v6777_v7 = vpop.f32.mrb[123].mxu0  ;;  %v8171_v11 = vpop.f32.mrb[123].mxu1  ;;  %15633 = vmatmul.mubr.msk.f32.gmra.mrb[228].mxu0 %vm144_vm1, %v12870_v49  ;;  %15827 = vmatmul.mubr.msk.f32.gmra.mrb[228].mxu1 %vm144_vm1, %v13127_v61  ;;  %v13134_v46 = vld [vmem:[%s20412_s2 + $0x1be0] sm:$0xff] }
 0x3ce   :  { %v6962_v56 = vmax.f32 %v6961_v54, %v6777_v7  ;;  %v8356_v62 = vmax.f32 %v8355_v9, %v8171_v11  ;;  %15635 = vmatprep.mubr.msk.f32.mxu0 %vm144_vm1, %v12871_v15  ;;  %15829 = vmatprep.mubr.msk.f32.mxu1 %vm144_vm1, %v13128_v16 }
 0x3d0   :  { %v15282_v27 = vpop.f32.mrb[124].mxu0  ;;  %v15476_v30 = vpop.f32.mrb[124].mxu1  ;;  %v6963_v3 = vmax.f32 %v6962_v56, %v15279_v4  ;;  %v8357_v31 = vmax.f32 %v8356_v62, %v15473_v53  ;;  %v12878_v56 = vld [vmem:[%s20412_s2 + $0x1b68] sm:$0xff] }
 0x3d1   :  { %v6787_v12 = vpop.f32.mrb[125].mxu0  ;;  %v8181_v22 = vpop.f32.mrb[125].mxu1  ;;  %15636 = vmatmul.mubr.msk.f32.gmra.mrb[230].mxu0 %vm144_vm1, %v12872_v17  ;;  %15830 = vmatmul.mubr.msk.f32.gmra.mrb[230].mxu1 %vm144_vm1, %v13129_v21  ;;  %v13135_v62 = vld [vmem:[%s20412_s2 + $0x1be8] sm:$0xff]  ;;  %v12879_v17 = vld [vmem:[%s20412_s2 + $0x1b70] sm:$0xff] }
 0x3d2   :  { %v6964_v37 = vmax.f32 %v6963_v3, %v6787_v12  ;;  %v8358_v19 = vmax.f32 %v8357_v31, %v8181_v22  ;;  %15638 = vmatprep.mubr.msk.f32.mxu0 %vm144_vm1, %v12873_v57  ;;  %15832 = vmatprep.mubr.msk.f32.mxu1 %vm144_vm1, %v13130_v58  ;;  %v13136_v21 = vld [vmem:[%s20412_s2 + $0x1bf0] sm:$0xff] }
 0x3d4   :  { %v15285_v36 = vpop.f32.mrb[126].mxu0  ;;  %v15479_v48 = vpop.f32.mrb[126].mxu1  ;;  %v6965_v32 = vmax.f32 %v6964_v37, %v15282_v27  ;;  %v8359_v26 = vmax.f32 %v8358_v19, %v15476_v30 }
 0x3d5   :  { %v6797_v51 = vpop.f32.mrb[127].mxu0  ;;  %v8191_v1 = vpop.f32.mrb[127].mxu1  ;;  %15639 = vmatmul.mubr.msk.f32.gmra.mrb[232].mxu0 %vm144_vm1, %v12874_v24  ;;  %15833 = vmatmul.mubr.msk.f32.gmra.mrb[232].mxu1 %vm144_vm1, %v13131_v29  ;;  %v12880_v24 = vld [vmem:[%s20412_s2 + $0x1b78] sm:$0xff] }
 0x3d6   :  { %v6966_v52 = vmax.f32 %v6965_v32, %v6797_v51  ;;  %v8360_v39 = vmax.f32 %v8359_v26, %v8191_v1  ;;  %15641 = vmatprep.mubr.msk.f32.mxu0 %vm144_vm1, %v12875_v42  ;;  %15835 = vmatprep.mubr.msk.f32.mxu1 %vm144_vm1, %v13132_v33  ;;  %v13137_v29 = vld [vmem:[%s20412_s2 + $0x1bf8] sm:$0xff]  ;;  %v12881_v42 = vld [vmem:[%s20412_s2 + $0x1f00] sm:$0xff] }
 0x3d7   :  { %v13138_v33 = vld [vmem:[%s20412_s2 + $0x1f80] sm:$0xff] }
 0x3d8   :  { %v6967_v49 = vmax.f32 %v6966_v52, %v15285_v36  ;;  %v8361_v61 = vmax.f32 %v8360_v39, %v15479_v48  ;;  %v15484_v15 = vpop.f32.mrb[128].mxu0  ;;  %v15678_v16 = vpop.f32.mrb[128].mxu1 }
 0x3d9   :  { %v8955_v4 = vpop.f32.mrb[129].mxu0  ;;  %15642 = vmatmul.mubr.msk.f32.gmra.mrb[234].mxu0 %vm144_vm1, %v12876_v45  ;;  %15836 = vmatmul.mubr.msk.f32.gmra.mrb[234].mxu1 %vm144_vm1, %v13133_v34  ;;  %v10349_v53 = vpop.f32.mrb[129].mxu1 }
 0x3da   :  { %v6968_v54 = vrot.slane %v6967_v49, 4  ;;  %v8362_v9 = vrot.slane %v8361_v61, 4  ;;  %v9594_v7 = vmax.f32 %v8955_v4, %v15484_v15  ;;  %v10988_v11 = vmax.f32 %v10349_v53, %v15678_v16  ;;  %15644 = vmatprep.mubr.msk.f32.mxu0 %vm144_vm1, %v12877_v43  ;;  %15838 = vmatprep.mubr.msk.f32.mxu1 %vm144_vm1, %v13134_v46  ;;  %v12883_v15 = vld [vmem:[%s20412_s2 + $0x1f10] sm:$0xff] }
 0x3db   :  { %v13140_v16 = vld [vmem:[%s20412_s2 + $0x1f90] sm:$0xff] }
 0x3dc   :  { %v6969_v57 = vmax.f32 %v6967_v49, %v6968_v54  ;;  %v8363_v58 = vmax.f32 %v8361_v61, %v8362_v9  ;;  %v15487_v27 = vpop.f32.mrb[130].mxu0  ;;  %v15681_v30 = vpop.f32.mrb[130].mxu1  ;;  %v12882_v49 = vld [vmem:[%s20412_s2 + $0x1f08] sm:$0xff] }
 0x3dd   :  { %v8965_v3 = vpop.f32.mrb[131].mxu0  ;;  %15645 = vmatmul.mubr.msk.f32.gmra.mrb[236].mxu0 %vm144_vm1, %v12878_v56  ;;  %v10359_v31 = vpop.f32.mrb[131].mxu1  ;;  %15839 = vmatmul.mubr.msk.f32.gmra.mrb[236].mxu1 %vm144_vm1, %v13135_v62  ;;  %v13139_v61 = vld [vmem:[%s20412_s2 + $0x1f88] sm:$0xff] }
 0x3de   :  { %v6970_v12 = vrot.slane %v6969_v57, 2  ;;  %v8364_v22 = vrot.slane %v8363_v58, 2  ;;  %v9595_v37 = vmax.f32 %v9594_v7, %v8965_v3  ;;  %v10989_v19 = vmax.f32 %v10988_v11, %v10359_v31  ;;  %15647 = vmatprep.mubr.msk.f32.mxu0 %vm144_vm1, %v12879_v17  ;;  %15841 = vmatprep.mubr.msk.f32.mxu1 %vm144_vm1, %v13136_v21 }
 0x3e0   :  { %v6971_v36 = vmax.f32 %v6969_v57, %v6970_v12  ;;  %v8365_v48 = vmax.f32 %v8363_v58, %v8364_v22  ;;  %v15490_v32 = vpop.f32.mrb[132].mxu0  ;;  %v15684_v26 = vpop.f32.mrb[132].mxu1  ;;  %v9596_v51 = vmax.f32 %v9595_v37, %v15487_v27  ;;  %v10990_v1 = vmax.f32 %v10989_v19, %v15681_v30  ;;  %v12884_v58 = vld [vmem:[%s20412_s2 + $0x1f18] sm:$0xff] }
 0x3e1   :  { %v8975_v52 = vpop.f32.mrb[133].mxu0  ;;  %15648 = vmatmul.mubr.msk.f32.gmra.mrb[238].mxu0 %vm144_vm1, %v12880_v24  ;;  %v10369_v39 = vpop.f32.mrb[133].mxu1  ;;  %15842 = vmatmul.mubr.msk.f32.gmra.mrb[238].mxu1 %vm144_vm1, %v13137_v29  ;;  %v13141_v27 = vld [vmem:[%s20412_s2 + $0x1f98] sm:$0xff]  ;;  %v12886_v29 = vld [vmem:[%s20412_s2 + $0x1f28] sm:$0xff] }
 0x3e2   :  { %v6972_v45 = vrot.slane %v6971_v36, 1  ;;  %v8366_v34 = vrot.slane %v8365_v48, 1  ;;  %v9597_v43 = vmax.f32 %v9596_v51, %v8975_v52  ;;  %v10991_v46 = vmax.f32 %v10990_v1, %v10369_v39  ;;  %15650 = vmatprep.mubr.msk.f32.mxu0 %vm144_vm1, %v12881_v42  ;;  %15844 = vmatprep.mubr.msk.f32.mxu1 %vm144_vm1, %v13138_v33  ;;  %v13143_v42 = vld [vmem:[%s20412_s2 + $0x1fa8] sm:$0xff]  ;;  %v12887_v33 = vld [vmem:[%s20412_s2 + $0x1f30] sm:$0xff] }
 0x3e4   :  { %v6973_v4 = vmax.f32 %v6971_v36, %v6972_v45  ;;  %v15493_v53 = vpop.f32.mrb[134].mxu0  ;;  %v15687_v54 = vpop.f32.mrb[134].mxu1  ;;  %v9598_v9 = vmax.f32 %v9597_v43, %v15490_v32  ;;  %v10992_v7 = vmax.f32 %v10991_v46, %v15684_v26  ;;  %v20130_v11 = vmax.f32 %v8365_v48, %v8366_v34  ;;  %v13144_v36 = vld [vmem:[%s20412_s2 + $0x1fb0] sm:$0xff]  ;;  %v12888_v34 = vld [vmem:[%s20412_s2 + $0x1f38] sm:$0xff]  ;;  %v12889_v46 = vld [vmem:[%s20412_s2 + $0x1f40] sm:$0xff] }
 0x3e5   :  { %v8985_v56 = vpop.f32.mrb[135].mxu0  ;;  %15651 = vmatmul.mubr.msk.f32.gmra.mrb[240].mxu0 %vm144_vm1, %v12882_v49  ;;  %v10379_v62 = vpop.f32.mrb[135].mxu1  ;;  %15845 = vmatmul.mubr.msk.f32.gmra.mrb[240].mxu1 %vm144_vm1, %v13139_v61  ;;  %v13145_v43 = vld [vmem:[%s20412_s2 + $0x1fb8] sm:$0xff]  ;;  %v13146_v49 = vld [vmem:[%s20412_s2 + $0x1fc0] sm:$0xff] }
 0x3e6   :  { %v20137_v17 = vmax.f32 %v5587_v2, %v6973_v4  ;;  %v9599_v21 = vmax.f32 %v9598_v9, %v8985_v56  ;;  %v10993_v57 = vmax.f32 %v10992_v7, %v10379_v62  ;;  %15653 = vmatprep.mubr.msk.f32.mxu0 %vm144_vm1, %v12883_v15  ;;  %15847 = vmatprep.mubr.msk.f32.mxu1 %vm144_vm1, %v13140_v16  ;;  %v12890_v56 = vld [vmem:[%s20412_s2 + $0x1f48] sm:$0xff] }
 0x3e7   :  { %v13147_v62 = vld [vmem:[%s20412_s2 + $0x1fc8] sm:$0xff] }
 0x3e8   :  { %v8375_v2 = vmax.f32 %v20137_v17, %v20130_v11  ;;  %v15496_v30 = vpop.f32.mrb[136].mxu0  ;;  %v15690_v3 = vpop.f32.mrb[136].mxu1  ;;  %v9600_v31 = vmax.f32 %v9599_v21, %v15493_v53  ;;  %v10994_v12 = vmax.f32 %v10993_v57, %v15687_v54  ;;  %v12891_v21 = vld [vmem:[%s20412_s2 + $0x1f50] sm:$0xff] }
 0x3e9   :  { %v8995_v22 = vpop.f32.mrb[137].mxu0  ;;  %15654 = vmatmul.mubr.msk.f32.gmra.mrb[242].mxu0 %vm144_vm1, %v12884_v58  ;;  %v10389_v37 = vpop.f32.mrb[137].mxu1  ;;  %15848 = vmatmul.mubr.msk.f32.gmra.mrb[242].mxu1 %vm144_vm1, %v13141_v27  ;;  %v13148_v57 = vld [vmem:[%s20412_s2 + $0x1fd0] sm:$0xff] }
 0x3ea   :  { %v9601_v19 = vmax.f32 %v9600_v31, %v8995_v22  ;;  %v10995_v24 = vmax.f32 %v10994_v12, %v10389_v37  ;;  %15656 = vmatprep.mubr.msk.f32.mxu0 %vm144_vm1, %v12885_v8  ;;  %15850 = vmatprep.mubr.msk.f32.mxu1 %vm144_vm1, %v13142_v14  ;;  %v12892_v22 = vld [vmem:[%s20412_s2 + $0x1f58] sm:$0xff] }
 0x3eb   :  { %v13149_v37 = vld [vmem:[%s20412_s2 + $0x1fd8] sm:$0xff] }
 0x3ec   :  { %v15499_v48 = vpop.f32.mrb[138].mxu0  ;;  %v15693_v32 = vpop.f32.mrb[138].mxu1  ;;  %v9602_v26 = vmax.f32 %v9601_v19, %v15496_v30  ;;  %v10996_v51 = vmax.f32 %v10995_v24, %v15690_v3  ;;  %v12893_v19 = vld [vmem:[%s20412_s2 + $0x1f60] sm:$0xff] }
 0x3ed   :  { %v9005_v1 = vpop.f32.mrb[139].mxu0  ;;  %15657 = vmatmul.mubr.msk.f32.gmra.mrb[244].mxu0 %vm144_vm1, %v12886_v29  ;;  %v10399_v52 = vpop.f32.mrb[139].mxu1  ;;  %15851 = vmatmul.mubr.msk.f32.gmra.mrb[244].mxu1 %vm144_vm1, %v13143_v42  ;;  %v13150_v24 = vld [vmem:[%s20412_s2 + $0x1fe0] sm:$0xff] }
 0x3ee   :  { %v9603_v39 = vmax.f32 %v9602_v26, %v9005_v1  ;;  %v10997_v45 = vmax.f32 %v10996_v51, %v10399_v52  ;;  %15659 = vmatprep.mubr.msk.f32.mxu0 %vm144_vm1, %v12887_v33  ;;  %15853 = vmatprep.mubr.msk.f32.mxu1 %vm144_vm1, %v13144_v36 }
 0x3f0   :  { %v15502_v61 = vpop.f32.mrb[140].mxu0  ;;  %v15696_v15 = vpop.f32.mrb[140].mxu1  ;;  %v9604_v16 = vmax.f32 %v9603_v39, %v15499_v48  ;;  %v10998_v4 = vmax.f32 %v10997_v45, %v15693_v32  ;;  %v12894_v39 = vld [vmem:[%s20412_s2 + $0x1f68] sm:$0xff] }
 0x3f1   :  { %v9015_v53 = vpop.f32.mrb[141].mxu0  ;;  %15660 = vmatmul.mubr.msk.f32.gmra.mrb[246].mxu0 %vm144_vm1, %v12888_v34  ;;  %v10409_v54 = vpop.f32.mrb[141].mxu1  ;;  %15854 = vmatmul.mubr.msk.f32.gmra.mrb[246].mxu1 %vm144_vm1, %v13145_v43  ;;  %v13151_v45 = vld [vmem:[%s20412_s2 + $0x1fe8] sm:$0xff]  ;;  %v12895_v34 = vld [vmem:[%s20412_s2 + $0x1f70] sm:$0xff] }
 0x3f2   :  { %v9605_v9 = vmax.f32 %v9604_v16, %v9015_v53  ;;  %v10999_v7 = vmax.f32 %v10998_v4, %v10409_v54  ;;  %15662 = vmatprep.mubr.msk.f32.mxu0 %vm144_vm1, %v12889_v46  ;;  %15856 = vmatprep.mubr.msk.f32.mxu1 %vm144_vm1, %v13146_v49  ;;  %v13152_v43 = vld [vmem:[%s20412_s2 + $0x1ff0] sm:$0xff] }
 0x3f4   :  { %v15505_v58 = vpop.f32.mrb[142].mxu0  ;;  %v15699_v27 = vpop.f32.mrb[142].mxu1  ;;  %v9606_v8 = vmax.f32 %v9605_v9, %v15502_v61  ;;  %v11000_v14 = vmax.f32 %v10999_v7, %v15696_v15 }
 0x3f5   :  { %v9025_v30 = vpop.f32.mrb[143].mxu0  ;;  %15663 = vmatmul.mubr.msk.f32.gmra.mrb[248].mxu0 %vm144_vm1, %v12890_v56  ;;  %v10419_v3 = vpop.f32.mrb[143].mxu1  ;;  %15857 = vmatmul.mubr.msk.f32.gmra.mrb[248].mxu1 %vm144_vm1, %v13147_v62  ;;  %v12896_v56 = vld [vmem:[%s20412_s2 + $0x1f78] sm:$0xff] }
 0x3f6   :  { %v9607_v31 = vmax.f32 %v9606_v8, %v9025_v30  ;;  %v11001_v12 = vmax.f32 %v11000_v14, %v10419_v3  ;;  %15665 = vmatprep.mubr.msk.f32.mxu0 %vm144_vm1, %v12891_v21  ;;  %15859 = vmatprep.mubr.msk.f32.mxu1 %vm144_vm1, %v13148_v57  ;;  %v13153_v62 = vld [vmem:[%s20412_s2 + $0x1ff8] sm:$0xff] }
 0x3f8   :  { %v9608_v29 = vmax.f32 %v9607_v31, %v15505_v58  ;;  %v11002_v42 = vmax.f32 %v11001_v12, %v15699_v27  ;;  %v15508_v33 = vpop.f32.mrb[144].mxu0  ;;  %v15702_v36 = vpop.f32.mrb[144].mxu1 }
 0x3f9   :  { %v9035_v48 = vpop.f32.mrb[145].mxu0  ;;  %15666 = vmatmul.mubr.msk.f32.gmra.mrb[250].mxu0 %vm144_vm1, %v12892_v22  ;;  %15860 = vmatmul.mubr.msk.f32.gmra.mrb[250].mxu1 %vm144_vm1, %v13149_v37  ;;  %v10429_v32 = vpop.f32.mrb[145].mxu1 }
 0x3fa   :  { %v9609_v26 = vrot.slane %v9608_v29, 4  ;;  %v11003_v51 = vrot.slane %v11002_v42, 4  ;;  %v9615_v1 = vmax.f32 %v9035_v48, %v15508_v33  ;;  %v11009_v52 = vmax.f32 %v10429_v32, %v15702_v36  ;;  %15668 = vmatprep.mubr.msk.f32.mxu0 %vm144_vm1, %v12893_v19  ;;  %15862 = vmatprep.mubr.msk.f32.mxu1 %vm144_vm1, %v13150_v24 }
 0x3fc   :  { %v9610_v46 = vmax.f32 %v9608_v29, %v9609_v26  ;;  %v11004_v49 = vmax.f32 %v11002_v42, %v11003_v51  ;;  %v15511_v61 = vpop.f32.mrb[146].mxu0  ;;  %v15705_v15 = vpop.f32.mrb[146].mxu1 }
 0x3fd   :  { %v9045_v16 = vpop.f32.mrb[147].mxu0  ;;  %15669 = vmatmul.mubr.msk.f32.gmra.mrb[252].mxu0 %vm144_vm1, %v12894_v39  ;;  %v10439_v4 = vpop.f32.mrb[147].mxu1  ;;  %15863 = vmatmul.mubr.msk.f32.gmra.mrb[252].mxu1 %vm144_vm1, %v13151_v45 }
 0x3fe   :  { %v9611_v53 = vrot.slane %v9610_v46, 2  ;;  %v11005_v54 = vrot.slane %v11004_v49, 2  ;;  %v9616_v9 = vmax.f32 %v9615_v1, %v9045_v16  ;;  %v11010_v7 = vmax.f32 %v11009_v52, %v10439_v4  ;;  %15671 = vmatprep.mubr.msk.f32.mxu0 %vm144_vm1, %v12895_v34  ;;  %15865 = vmatprep.mubr.msk.f32.mxu1 %vm144_vm1, %v13152_v43 }
 0x400   :  { %v9612_v21 = vmax.f32 %v9610_v46, %v9611_v53  ;;  %v11006_v57 = vmax.f32 %v11004_v49, %v11005_v54  ;;  %v15514_v58 = vpop.f32.mrb[148].mxu0  ;;  %v15708_v27 = vpop.f32.mrb[148].mxu1  ;;  %v9617_v8 = vmax.f32 %v9616_v9, %v15511_v61  ;;  %v11011_v14 = vmax.f32 %v11010_v7, %v15705_v15 }
 0x401   :  { %v9055_v30 = vpop.f32.mrb[149].mxu0  ;;  %15672 = vmatmul.mubr.msk.f32.gmra.mrb[254].mxu0 %vm144_vm1, %v12896_v56  ;;  %v10449_v3 = vpop.f32.mrb[149].mxu1  ;;  %15866 = vmatmul.mubr.msk.f32.gmra.mrb[254].mxu1 %vm144_vm1, %v13153_v62 }
 0x402   :  { %v9613_v31 = vrot.slane %v9612_v21, 1  ;;  %v11007_v12 = vrot.slane %v11006_v57, 1  ;;  %v9618_v22 = vmax.f32 %v9617_v8, %v9055_v30  ;;  %v11012_v37 = vmax.f32 %v11011_v14, %v10449_v3 }
 0x404   :  { %v9614_v19 = vmax.f32 %v9612_v21, %v9613_v31  ;;  %v15517_v24 = vpop.f32.mrb[150].mxu0  ;;  %v15711_v29 = vpop.f32.mrb[150].mxu1  ;;  %v9619_v42 = vmax.f32 %v9618_v22, %v15514_v58  ;;  %v11013_v33 = vmax.f32 %v11012_v37, %v15708_v27  ;;  %v20252_v26 = vmax.f32 %v11006_v57, %v11007_v12 }
 0x405   :  { %v9065_v36 = vpop.f32.mrb[151].mxu0  ;;  %v10459_v48 = vpop.f32.mrb[151].mxu1 }
 0x406   :  { %v20250_v32 = vmax.f32 %v8368_v60, %v9614_v19  ;;  %v9620_v51 = vmax.f32 %v9619_v42, %v9065_v36  ;;  %v11014_v1 = vmax.f32 %v11013_v33, %v10459_v48 }
 0x408   :  { %v11156_v52 = vmax.f32 %v20250_v32, %v20252_v26  ;;  %v15520_v39 = vpop.f32.mrb[152].mxu0  ;;  %v15714_v45 = vpop.f32.mrb[152].mxu1  ;;  %v9621_v34 = vmax.f32 %v9620_v51, %v15517_v24  ;;  %v11015_v43 = vmax.f32 %v11014_v1, %v15711_v29 }
 0x409   :  { %v9075_v46 = vpop.f32.mrb[153].mxu0  ;;  %v10469_v49 = vpop.f32.mrb[153].mxu1 }
 0x40a   :  { %v9622_v61 = vmax.f32 %v9621_v34, %v9075_v46  ;;  %v11016_v15 = vmax.f32 %v11015_v43, %v10469_v49 }
 0x40c   :  { %v15523_v16 = vpop.f32.mrb[154].mxu0  ;;  %v15717_v4 = vpop.f32.mrb[154].mxu1  ;;  %v9623_v50 = vmax.f32 %v9622_v61, %v15520_v39  ;;  %v11017_v10 = vmax.f32 %v11016_v15, %v15714_v45 }
 0x40d   :  { %v9085_v60 = vpop.f32.mrb[155].mxu0  ;;  %v10479_v53 = vpop.f32.mrb[155].mxu1 }
 0x40e   :  { %v9624_v54 = vmax.f32 %v9623_v50, %v9085_v60  ;;  %v11018_v9 = vmax.f32 %v11017_v10, %v10479_v53 }
 0x410   :  { %v15526_v7 = vpop.f32.mrb[156].mxu0  ;;  %v15720_v56 = vpop.f32.mrb[156].mxu1  ;;  %v9625_v62 = vmax.f32 %v9624_v54, %v15523_v16  ;;  %v11019_v21 = vmax.f32 %v11018_v9, %v15717_v4 }
 0x411   :  { %v9095_v57 = vpop.f32.mrb[157].mxu0  ;;  %v10489_v58 = vpop.f32.mrb[157].mxu1 }
 0x412   :  { %v9626_v27 = vmax.f32 %v9625_v62, %v9095_v57  ;;  %v11020_v8 = vmax.f32 %v11019_v21, %v10489_v58 }
 0x414   :  { %v15529_v14 = vpop.f32.mrb[158].mxu0  ;;  %v15723_v30 = vpop.f32.mrb[158].mxu1  ;;  %v9627_v3 = vmax.f32 %v9626_v27, %v15526_v7  ;;  %v11021_v31 = vmax.f32 %v11020_v8, %v15720_v56 }
 0x415   :  { %v9105_v12 = vpop.f32.mrb[159].mxu0  ;;  %v10499_v22 = vpop.f32.mrb[159].mxu1 }
 0x416   :  { %v9628_v37 = vmax.f32 %v9627_v3, %v9105_v12  ;;  %v11022_v19 = vmax.f32 %v11021_v31, %v10499_v22 }
 0x418   :  { %v9629_v24 = vmax.f32 %v9628_v37, %v15529_v14  ;;  %v11023_v29 = vmax.f32 %v11022_v19, %v15723_v30  ;;  %v15532_v42 = vpop.f32.mrb[160].mxu0  ;;  %v15726_v33 = vpop.f32.mrb[160].mxu1 }
 0x419   :  { %v9115_v36 = vpop.f32.mrb[161].mxu0  ;;  %v10509_v48 = vpop.f32.mrb[161].mxu1 }
 0x41a   :  { %v9630_v51 = vrot.slane %v9629_v24, 4  ;;  %v11024_v1 = vrot.slane %v11023_v29, 4  ;;  %v9636_v39 = vmax.f32 %v9115_v36, %v15532_v42  ;;  %v11030_v45 = vmax.f32 %v10509_v48, %v15726_v33 }
 0x41c   :  { %v9631_v34 = vmax.f32 %v9629_v24, %v9630_v51  ;;  %v11025_v43 = vmax.f32 %v11023_v29, %v11024_v1  ;;  %v15535_v46 = vpop.f32.mrb[162].mxu0  ;;  %v15729_v49 = vpop.f32.mrb[162].mxu1 }
 0x41d   :  { %v9125_v61 = vpop.f32.mrb[163].mxu0  ;;  %v10519_v15 = vpop.f32.mrb[163].mxu1 }
 0x41e   :  { %v9632_v16 = vrot.slane %v9631_v34, 2  ;;  %v11026_v4 = vrot.slane %v11025_v43, 2  ;;  %v9637_v50 = vmax.f32 %v9636_v39, %v9125_v61  ;;  %v11031_v10 = vmax.f32 %v11030_v45, %v10519_v15 }
 0x420   :  { %v9633_v60 = vmax.f32 %v9631_v34, %v9632_v16  ;;  %v11027_v53 = vmax.f32 %v11025_v43, %v11026_v4  ;;  %v15538_v54 = vpop.f32.mrb[164].mxu0  ;;  %v15732_v9 = vpop.f32.mrb[164].mxu1  ;;  %v9638_v7 = vmax.f32 %v9637_v50, %v15535_v46  ;;  %v11032_v56 = vmax.f32 %v11031_v10, %v15729_v49 }
 0x421   :  { %v9135_v62 = vpop.f32.mrb[165].mxu0  ;;  %v10529_v21 = vpop.f32.mrb[165].mxu1 }
 0x422   :  { %v9634_v57 = vrot.slane %v9633_v60, 1  ;;  %v11028_v58 = vrot.slane %v11027_v53, 1  ;;  %v9639_v27 = vmax.f32 %v9638_v7, %v9135_v62  ;;  %v11033_v8 = vmax.f32 %v11032_v56, %v10529_v21 }
 0x424   :  { %v9635_v14 = vmax.f32 %v9633_v60, %v9634_v57  ;;  %v15541_v30 = vpop.f32.mrb[166].mxu0  ;;  %v15735_v3 = vpop.f32.mrb[166].mxu1  ;;  %v9640_v31 = vmax.f32 %v9639_v27, %v15538_v54  ;;  %v11034_v12 = vmax.f32 %v11033_v8, %v15732_v9  ;;  %v20261_v24 = vmax.f32 %v11027_v53, %v11028_v58 }
 0x425   :  { %v9145_v22 = vpop.f32.mrb[167].mxu0  ;;  %v10539_v37 = vpop.f32.mrb[167].mxu1 }
 0x426   :  { %v20259_v19 = vmax.f32 %v8369_v41, %v9635_v14  ;;  %v9641_v29 = vmax.f32 %v9640_v31, %v9145_v22  ;;  %v11035_v42 = vmax.f32 %v11034_v12, %v10539_v37 }
 0x428   :  { %v11157_v33 = vmax.f32 %v20259_v19, %v20261_v24  ;;  %v15544_v36 = vpop.f32.mrb[168].mxu0  ;;  %v15738_v48 = vpop.f32.mrb[168].mxu1  ;;  %v9642_v51 = vmax.f32 %v9641_v29, %v15541_v30  ;;  %v11036_v1 = vmax.f32 %v11035_v42, %v15735_v3 }
 0x429   :  { %v9155_v39 = vpop.f32.mrb[169].mxu0  ;;  %v10549_v45 = vpop.f32.mrb[169].mxu1 }
 0x42a   :  { %v9643_v34 = vmax.f32 %v9642_v51, %v9155_v39  ;;  %v11037_v43 = vmax.f32 %v11036_v1, %v10549_v45 }
 0x42c   :  { %v15547_v46 = vpop.f32.mrb[170].mxu0  ;;  %v15741_v49 = vpop.f32.mrb[170].mxu1  ;;  %v9644_v28 = vmax.f32 %v9643_v34, %v15544_v36  ;;  %v11038_v13 = vmax.f32 %v11037_v43, %v15738_v48 }
 0x42d   :  { %v9165_v41 = vpop.f32.mrb[171].mxu0  ;;  %v10559_v61 = vpop.f32.mrb[171].mxu1 }
 0x42e   :  { %v9645_v15 = vmax.f32 %v9644_v28, %v9165_v41  ;;  %v11039_v16 = vmax.f32 %v11038_v13, %v10559_v61 }
 0x430   :  { %v15550_v4 = vpop.f32.mrb[172].mxu0  ;;  %v15744_v50 = vpop.f32.mrb[172].mxu1  ;;  %v9646_v10 = vmax.f32 %v9645_v15, %v15547_v46  ;;  %v11040_v60 = vmax.f32 %v11039_v16, %v15741_v49 }
 0x431   :  { %v9175_v53 = vpop.f32.mrb[173].mxu0  ;;  %v10569_v54 = vpop.f32.mrb[173].mxu1 }
 0x432   :  { %v9647_v9 = vmax.f32 %v9646_v10, %v9175_v53  ;;  %v11041_v7 = vmax.f32 %v11040_v60, %v10569_v54 }
 0x434   :  { %v15553_v56 = vpop.f32.mrb[174].mxu0  ;;  %v15747_v62 = vpop.f32.mrb[174].mxu1  ;;  %v9648_v21 = vmax.f32 %v9647_v9, %v15550_v4  ;;  %v11042_v57 = vmax.f32 %v11041_v7, %v15744_v50 }
 0x435   :  { %v9185_v58 = vpop.f32.mrb[175].mxu0  ;;  %v10579_v27 = vpop.f32.mrb[175].mxu1 }
 0x436   :  { %v9649_v8 = vmax.f32 %v9648_v21, %v9185_v58  ;;  %v11043_v14 = vmax.f32 %v11042_v57, %v10579_v27 }
 0x438   :  { %v9650_v30 = vmax.f32 %v9649_v8, %v15553_v56  ;;  %v11044_v3 = vmax.f32 %v11043_v14, %v15747_v62  ;;  %v15556_v31 = vpop.f32.mrb[176].mxu0  ;;  %v15750_v12 = vpop.f32.mrb[176].mxu1 }
 0x439   :  { %v9195_v22 = vpop.f32.mrb[177].mxu0  ;;  %v10589_v37 = vpop.f32.mrb[177].mxu1 }
 0x43a   :  { %v9651_v29 = vrot.slane %v9650_v30, 4  ;;  %v11045_v42 = vrot.slane %v11044_v3, 4  ;;  %v9657_v36 = vmax.f32 %v9195_v22, %v15556_v31  ;;  %v11051_v48 = vmax.f32 %v10589_v37, %v15750_v12 }
 0x43c   :  { %v9652_v51 = vmax.f32 %v9650_v30, %v9651_v29  ;;  %v11046_v1 = vmax.f32 %v11044_v3, %v11045_v42  ;;  %v15559_v39 = vpop.f32.mrb[178].mxu0  ;;  %v15753_v45 = vpop.f32.mrb[178].mxu1 }
 0x43d   :  { %v9205_v34 = vpop.f32.mrb[179].mxu0  ;;  %v10599_v43 = vpop.f32.mrb[179].mxu1 }
 0x43e   :  { %v9653_v46 = vrot.slane %v9652_v51, 2  ;;  %v11047_v49 = vrot.slane %v11046_v1, 2  ;;  %v9658_v28 = vmax.f32 %v9657_v36, %v9205_v34  ;;  %v11052_v13 = vmax.f32 %v11051_v48, %v10599_v43 }
 0x440   :  { %v9654_v41 = vmax.f32 %v9652_v51, %v9653_v46  ;;  %v11048_v61 = vmax.f32 %v11046_v1, %v11047_v49  ;;  %v15562_v15 = vpop.f32.mrb[180].mxu0  ;;  %v15756_v16 = vpop.f32.mrb[180].mxu1  ;;  %v9659_v4 = vmax.f32 %v9658_v28, %v15559_v39  ;;  %v11053_v50 = vmax.f32 %v11052_v13, %v15753_v45 }
 0x441   :  { %v9215_v10 = vpop.f32.mrb[181].mxu0  ;;  %v10609_v60 = vpop.f32.mrb[181].mxu1 }
 0x442   :  { %v9655_v53 = vrot.slane %v9654_v41, 1  ;;  %v11049_v54 = vrot.slane %v11048_v61, 1  ;;  %v9660_v9 = vmax.f32 %v9659_v4, %v9215_v10  ;;  %v11054_v7 = vmax.f32 %v11053_v50, %v10609_v60 }
 0x444   :  { %v9656_v56 = vmax.f32 %v9654_v41, %v9655_v53  ;;  %v15565_v62 = vpop.f32.mrb[182].mxu0  ;;  %v15759_v21 = vpop.f32.mrb[182].mxu1  ;;  %v9661_v57 = vmax.f32 %v9660_v9, %v15562_v15  ;;  %v11055_v58 = vmax.f32 %v11054_v7, %v15756_v16  ;;  %v20270_v30 = vmax.f32 %v11048_v61, %v11049_v54 }
 0x445   :  { %v9225_v27 = vpop.f32.mrb[183].mxu0  ;;  %v10619_v8 = vpop.f32.mrb[183].mxu1 }
 0x446   :  { %v20268_v14 = vmax.f32 %v8370_v20, %v9656_v56  ;;  %v9662_v3 = vmax.f32 %v9661_v57, %v9225_v27  ;;  %v11056_v31 = vmax.f32 %v11055_v58, %v10619_v8 }
 0x448   :  { %v11158_v12 = vmax.f32 %v20268_v14, %v20270_v30  ;;  %v15568_v22 = vpop.f32.mrb[184].mxu0  ;;  %v15762_v37 = vpop.f32.mrb[184].mxu1  ;;  %v9663_v29 = vmax.f32 %v9662_v3, %v15565_v62  ;;  %v11057_v42 = vmax.f32 %v11056_v31, %v15759_v21 }
 0x449   :  { %v9235_v36 = vpop.f32.mrb[185].mxu0  ;;  %v10629_v48 = vpop.f32.mrb[185].mxu1 }
 0x44a   :  { %v9664_v51 = vmax.f32 %v9663_v29, %v9235_v36  ;;  %v11058_v1 = vmax.f32 %v11057_v42, %v10629_v48 }
 0x44c   :  { %v15571_v39 = vpop.f32.mrb[186].mxu0  ;;  %v15765_v45 = vpop.f32.mrb[186].mxu1  ;;  %v9665_v63 = vmax.f32 %v9664_v51, %v15568_v22  ;;  %v11059_v25 = vmax.f32 %v11058_v1, %v15762_v37 }
 0x44d   :  { %v9245_v20 = vpop.f32.mrb[187].mxu0  ;;  %v10639_v34 = vpop.f32.mrb[187].mxu1 }
 0x44e   :  { %v9666_v43 = vmax.f32 %v9665_v63, %v9245_v20  ;;  %v11060_v46 = vmax.f32 %v11059_v25, %v10639_v34 }
 0x450   :  { %v15574_v49 = vpop.f32.mrb[188].mxu0  ;;  %v15768_v28 = vpop.f32.mrb[188].mxu1  ;;  %v9667_v13 = vmax.f32 %v9666_v43, %v15571_v39  ;;  %v11061_v41 = vmax.f32 %v11060_v46, %v15765_v45 }
 0x451   :  { %v9255_v61 = vpop.f32.mrb[189].mxu0  ;;  %v10649_v15 = vpop.f32.mrb[189].mxu1 }
 0x452   :  { %v9668_v16 = vmax.f32 %v9667_v13, %v9255_v61  ;;  %v11062_v4 = vmax.f32 %v11061_v41, %v10649_v15 }
 0x454   :  { %v15577_v50 = vpop.f32.mrb[190].mxu0  ;;  %v15771_v10 = vpop.f32.mrb[190].mxu1  ;;  %v9669_v60 = vmax.f32 %v9668_v16, %v15574_v49  ;;  %v11063_v53 = vmax.f32 %v11062_v4, %v15768_v28 }
 0x455   :  { %v9265_v54 = vpop.f32.mrb[191].mxu0  ;;  %v10659_v9 = vpop.f32.mrb[191].mxu1 }
 0x456   :  { %v9670_v7 = vmax.f32 %v9669_v60, %v9265_v54  ;;  %v11064_v56 = vmax.f32 %v11063_v53, %v10659_v9 }
 0x458   :  { %v9671_v62 = vmax.f32 %v9670_v7, %v15577_v50  ;;  %v11065_v21 = vmax.f32 %v11064_v56, %v15771_v10  ;;  %v15580_v57 = vpop.f32.mrb[192].mxu0  ;;  %v15774_v58 = vpop.f32.mrb[192].mxu1 }
 0x459   :  { %v9275_v27 = vpop.f32.mrb[193].mxu0  ;;  %v10669_v8 = vpop.f32.mrb[193].mxu1 }
 0x45a   :  { %v9672_v3 = vrot.slane %v9671_v62, 4  ;;  %v11066_v31 = vrot.slane %v11065_v21, 4  ;;  %v9678_v22 = vmax.f32 %v9275_v27, %v15580_v57  ;;  %v11072_v37 = vmax.f32 %v10669_v8, %v15774_v58 }
 0x45c   :  { %v9673_v29 = vmax.f32 %v9671_v62, %v9672_v3  ;;  %v11067_v42 = vmax.f32 %v11065_v21, %v11066_v31  ;;  %v15583_v36 = vpop.f32.mrb[194].mxu0  ;;  %v15777_v48 = vpop.f32.mrb[194].mxu1 }
 0x45d   :  { %v9285_v51 = vpop.f32.mrb[195].mxu0  ;;  %v10679_v1 = vpop.f32.mrb[195].mxu1 }
 0x45e   :  { %v9674_v39 = vrot.slane %v9673_v29, 2  ;;  %v11068_v45 = vrot.slane %v11067_v42, 2  ;;  %v9679_v63 = vmax.f32 %v9678_v22, %v9285_v51  ;;  %v11073_v25 = vmax.f32 %v11072_v37, %v10679_v1 }
 0x460   :  { %v9675_v20 = vmax.f32 %v9673_v29, %v9674_v39  ;;  %v11069_v34 = vmax.f32 %v11067_v42, %v11068_v45  ;;  %v15586_v43 = vpop.f32.mrb[196].mxu0  ;;  %v15780_v46 = vpop.f32.mrb[196].mxu1  ;;  %v9680_v49 = vmax.f32 %v9679_v63, %v15583_v36  ;;  %v11074_v28 = vmax.f32 %v11073_v25, %v15777_v48 }
 0x461   :  { %v9295_v13 = vpop.f32.mrb[197].mxu0  ;;  %v10689_v41 = vpop.f32.mrb[197].mxu1 }
 0x462   :  { %v9676_v61 = vrot.slane %v9675_v20, 1  ;;  %v11070_v15 = vrot.slane %v11069_v34, 1  ;;  %v9681_v16 = vmax.f32 %v9680_v49, %v9295_v13  ;;  %v11075_v4 = vmax.f32 %v11074_v28, %v10689_v41 }
 0x464   :  { %v9677_v50 = vmax.f32 %v9675_v20, %v9676_v61  ;;  %v15589_v10 = vpop.f32.mrb[198].mxu0  ;;  %v15783_v60 = vpop.f32.mrb[198].mxu1  ;;  %v9682_v53 = vmax.f32 %v9681_v16, %v15586_v43  ;;  %v11076_v54 = vmax.f32 %v11075_v4, %v15780_v46  ;;  %v20279_v62 = vmax.f32 %v11069_v34, %v11070_v15 }
 0x465   :  { %v9305_v9 = vpop.f32.mrb[199].mxu0  ;;  %v10699_v7 = vpop.f32.mrb[199].mxu1 }
 0x466   :  { %v20277_v56 = vmax.f32 %v8371_v35, %v9677_v50  ;;  %v9683_v21 = vmax.f32 %v9682_v53, %v9305_v9  ;;  %v11077_v57 = vmax.f32 %v11076_v54, %v10699_v7 }
 0x468   :  { %v11159_v58 = vmax.f32 %v20277_v56, %v20279_v62  ;;  %v15592_v27 = vpop.f32.mrb[200].mxu0  ;;  %v15786_v8 = vpop.f32.mrb[200].mxu1  ;;  %v9684_v3 = vmax.f32 %v9683_v21, %v15589_v10  ;;  %v11078_v31 = vmax.f32 %v11077_v57, %v15783_v60 }
 0x469   :  { %v9315_v22 = vpop.f32.mrb[201].mxu0  ;;  %v10709_v37 = vpop.f32.mrb[201].mxu1 }
 0x46a   :  { %v9685_v29 = vmax.f32 %v9684_v3, %v9315_v22  ;;  %v11079_v42 = vmax.f32 %v11078_v31, %v10709_v37 }
 0x46c   :  { %v15595_v36 = vpop.f32.mrb[202].mxu0  ;;  %v15789_v48 = vpop.f32.mrb[202].mxu1  ;;  %v9686_v47 = vmax.f32 %v9685_v29, %v15592_v27  ;;  %v11080_v44 = vmax.f32 %v11079_v42, %v15786_v8 }
 0x46d   :  { %v9325_v35 = vpop.f32.mrb[203].mxu0  ;;  %v10719_v51 = vpop.f32.mrb[203].mxu1 }
 0x46e   :  { %v9687_v1 = vmax.f32 %v9686_v47, %v9325_v35  ;;  %v11081_v39 = vmax.f32 %v11080_v44, %v10719_v51 }
 0x470   :  { %v15598_v45 = vpop.f32.mrb[204].mxu0  ;;  %v15792_v63 = vpop.f32.mrb[204].mxu1  ;;  %v9688_v25 = vmax.f32 %v9687_v1, %v15595_v36  ;;  %v11082_v20 = vmax.f32 %v11081_v39, %v15789_v48 }
 0x471   :  { %v9335_v34 = vpop.f32.mrb[205].mxu0  ;;  %v10729_v43 = vpop.f32.mrb[205].mxu1 }
 0x472   :  { %v9689_v46 = vmax.f32 %v9688_v25, %v9335_v34  ;;  %v11083_v49 = vmax.f32 %v11082_v20, %v10729_v43 }
 0x474   :  { %v15601_v28 = vpop.f32.mrb[206].mxu0  ;;  %v15795_v13 = vpop.f32.mrb[206].mxu1  ;;  %v9690_v41 = vmax.f32 %v9689_v46, %v15598_v45  ;;  %v11084_v61 = vmax.f32 %v11083_v49, %v15792_v63 }
 0x475   :  { %v9345_v15 = vpop.f32.mrb[207].mxu0  ;;  %v10739_v16 = vpop.f32.mrb[207].mxu1 }
 0x476   :  { %v9691_v4 = vmax.f32 %v9690_v41, %v9345_v15  ;;  %v11085_v50 = vmax.f32 %v11084_v61, %v10739_v16 }
 0x478   :  { %v9692_v10 = vmax.f32 %v9691_v4, %v15601_v28  ;;  %v11086_v60 = vmax.f32 %v11085_v50, %v15795_v13  ;;  %v15604_v53 = vpop.f32.mrb[208].mxu0  ;;  %v15798_v54 = vpop.f32.mrb[208].mxu1 }
 0x479   :  { %v9355_v9 = vpop.f32.mrb[209].mxu0  ;;  %v10749_v7 = vpop.f32.mrb[209].mxu1 }
 0x47a   :  { %v9693_v21 = vrot.slane %v9692_v10, 4  ;;  %v11087_v57 = vrot.slane %v11086_v60, 4  ;;  %v9699_v27 = vmax.f32 %v9355_v9, %v15604_v53  ;;  %v11093_v8 = vmax.f32 %v10749_v7, %v15798_v54 }
 0x47c   :  { %v9694_v3 = vmax.f32 %v9692_v10, %v9693_v21  ;;  %v11088_v31 = vmax.f32 %v11086_v60, %v11087_v57  ;;  %v15607_v22 = vpop.f32.mrb[210].mxu0  ;;  %v15801_v37 = vpop.f32.mrb[210].mxu1 }
 0x47d   :  { %v9365_v29 = vpop.f32.mrb[211].mxu0  ;;  %v10759_v42 = vpop.f32.mrb[211].mxu1 }
 0x47e   :  { %v9695_v36 = vrot.slane %v9694_v3, 2  ;;  %v11089_v48 = vrot.slane %v11088_v31, 2  ;;  %v9700_v47 = vmax.f32 %v9699_v27, %v9365_v29  ;;  %v11094_v44 = vmax.f32 %v11093_v8, %v10759_v42 }
 0x480   :  { %v9696_v35 = vmax.f32 %v9694_v3, %v9695_v36  ;;  %v11090_v51 = vmax.f32 %v11088_v31, %v11089_v48  ;;  %v15610_v1 = vpop.f32.mrb[212].mxu0  ;;  %v15804_v39 = vpop.f32.mrb[212].mxu1  ;;  %v9701_v45 = vmax.f32 %v9700_v47, %v15607_v22  ;;  %v11095_v63 = vmax.f32 %v11094_v44, %v15801_v37 }
 0x481   :  { %v9375_v25 = vpop.f32.mrb[213].mxu0  ;;  %v10769_v20 = vpop.f32.mrb[213].mxu1 }
 0x482   :  { %v9697_v34 = vrot.slane %v9696_v35, 1  ;;  %v11091_v43 = vrot.slane %v11090_v51, 1  ;;  %v9702_v46 = vmax.f32 %v9701_v45, %v9375_v25  ;;  %v11096_v49 = vmax.f32 %v11095_v63, %v10769_v20 }
 0x484   :  { %v9698_v28 = vmax.f32 %v9696_v35, %v9697_v34  ;;  %v15613_v13 = vpop.f32.mrb[214].mxu0  ;;  %v15807_v41 = vpop.f32.mrb[214].mxu1  ;;  %v9703_v61 = vmax.f32 %v9702_v46, %v15610_v1  ;;  %v11097_v15 = vmax.f32 %v11096_v49, %v15804_v39  ;;  %v20288_v10 = vmax.f32 %v11090_v51, %v11091_v43 }
 0x485   :  { %v9385_v16 = vpop.f32.mrb[215].mxu0  ;;  %v10779_v4 = vpop.f32.mrb[215].mxu1 }
 0x486   :  { %v20286_v50 = vmax.f32 %v8372_v18, %v9698_v28  ;;  %v9704_v60 = vmax.f32 %v9703_v61, %v9385_v16  ;;  %v11098_v53 = vmax.f32 %v11097_v15, %v10779_v4 }
 0x488   :  { %v11160_v54 = vmax.f32 %v20286_v50, %v20288_v10  ;;  %v15616_v9 = vpop.f32.mrb[216].mxu0  ;;  %v15810_v7 = vpop.f32.mrb[216].mxu1  ;;  %v9705_v21 = vmax.f32 %v9704_v60, %v15613_v13  ;;  %v11099_v57 = vmax.f32 %v11098_v53, %v15807_v41 }
 0x489   :  { %v9395_v27 = vpop.f32.mrb[217].mxu0  ;;  %v10789_v8 = vpop.f32.mrb[217].mxu1 }
 0x48a   :  { %v9706_v3 = vmax.f32 %v9705_v21, %v9395_v27  ;;  %v11100_v31 = vmax.f32 %v11099_v57, %v10789_v8 }
 0x48c   :  { %v15619_v22 = vpop.f32.mrb[218].mxu0  ;;  %v15813_v37 = vpop.f32.mrb[218].mxu1  ;;  %v9707_v23 = vmax.f32 %v9706_v3, %v15616_v9  ;;  %v11101_v5 = vmax.f32 %v11100_v31, %v15810_v7 }
 0x48d   :  { %v9405_v18 = vpop.f32.mrb[219].mxu0  ;;  %v10799_v29 = vpop.f32.mrb[219].mxu1 }
 0x48e   :  { %v9708_v42 = vmax.f32 %v9707_v23, %v9405_v18  ;;  %v11102_v36 = vmax.f32 %v11101_v5, %v10799_v29 }
 0x490   :  { %v15622_v48 = vpop.f32.mrb[220].mxu0  ;;  %v15816_v47 = vpop.f32.mrb[220].mxu1  ;;  %v9709_v44 = vmax.f32 %v9708_v42, %v15619_v22  ;;  %v11103_v35 = vmax.f32 %v11102_v36, %v15813_v37 }
 0x491   :  { %v9415_v51 = vpop.f32.mrb[221].mxu0  ;;  %v10809_v1 = vpop.f32.mrb[221].mxu1 }
 0x492   :  { %v9710_v39 = vmax.f32 %v9709_v44, %v9415_v51  ;;  %v11104_v45 = vmax.f32 %v11103_v35, %v10809_v1 }
 0x494   :  { %v15625_v63 = vpop.f32.mrb[222].mxu0  ;;  %v15819_v25 = vpop.f32.mrb[222].mxu1  ;;  %v9711_v20 = vmax.f32 %v9710_v39, %v15622_v48  ;;  %v11105_v34 = vmax.f32 %v11104_v45, %v15816_v47 }
 0x495   :  { %v9425_v43 = vpop.f32.mrb[223].mxu0  ;;  %v10819_v46 = vpop.f32.mrb[223].mxu1 }
 0x496   :  { %v9712_v49 = vmax.f32 %v9711_v20, %v9425_v43  ;;  %v11106_v28 = vmax.f32 %v11105_v34, %v10819_v46 }
 0x498   :  { %v9713_v13 = vmax.f32 %v9712_v49, %v15625_v63  ;;  %v11107_v41 = vmax.f32 %v11106_v28, %v15819_v25  ;;  %v15628_v61 = vpop.f32.mrb[224].mxu0  ;;  %v15822_v15 = vpop.f32.mrb[224].mxu1 }
 0x499   :  { %v9435_v16 = vpop.f32.mrb[225].mxu0  ;;  %v10829_v4 = vpop.f32.mrb[225].mxu1 }
 0x49a   :  { %v9714_v60 = vrot.slane %v9713_v13, 4  ;;  %v11108_v53 = vrot.slane %v11107_v41, 4  ;;  %v9720_v9 = vmax.f32 %v9435_v16, %v15628_v61  ;;  %v11114_v7 = vmax.f32 %v10829_v4, %v15822_v15 }
 0x49c   :  { %v9715_v21 = vmax.f32 %v9713_v13, %v9714_v60  ;;  %v11109_v57 = vmax.f32 %v11107_v41, %v11108_v53  ;;  %v15631_v27 = vpop.f32.mrb[226].mxu0  ;;  %v15825_v8 = vpop.f32.mrb[226].mxu1 }
 0x49d   :  { %v9445_v3 = vpop.f32.mrb[227].mxu0  ;;  %v10839_v31 = vpop.f32.mrb[227].mxu1 }
 0x49e   :  { %v9716_v22 = vrot.slane %v9715_v21, 2  ;;  %v11110_v37 = vrot.slane %v11109_v57, 2  ;;  %v9721_v23 = vmax.f32 %v9720_v9, %v9445_v3  ;;  %v11115_v5 = vmax.f32 %v11114_v7, %v10839_v31 }
 0x4a0   :  { %v9717_v18 = vmax.f32 %v9715_v21, %v9716_v22  ;;  %v11111_v29 = vmax.f32 %v11109_v57, %v11110_v37  ;;  %v15634_v42 = vpop.f32.mrb[228].mxu0  ;;  %v15828_v36 = vpop.f32.mrb[228].mxu1  ;;  %v9722_v48 = vmax.f32 %v9721_v23, %v15631_v27  ;;  %v11116_v47 = vmax.f32 %v11115_v5, %v15825_v8 }
 0x4a1   :  { %v9455_v44 = vpop.f32.mrb[229].mxu0  ;;  %v10849_v35 = vpop.f32.mrb[229].mxu1 }
 0x4a2   :  { %v9718_v51 = vrot.slane %v9717_v18, 1  ;;  %v11112_v1 = vrot.slane %v11111_v29, 1  ;;  %v9723_v39 = vmax.f32 %v9722_v48, %v9455_v44  ;;  %v11117_v45 = vmax.f32 %v11116_v47, %v10849_v35 }
 0x4a4   :  { %v9719_v63 = vmax.f32 %v9717_v18, %v9718_v51  ;;  %v15637_v25 = vpop.f32.mrb[230].mxu0  ;;  %v15831_v20 = vpop.f32.mrb[230].mxu1  ;;  %v9724_v34 = vmax.f32 %v9723_v39, %v15634_v42  ;;  %v11118_v43 = vmax.f32 %v11117_v45, %v15828_v36  ;;  %v20297_v13 = vmax.f32 %v11111_v29, %v11112_v1 }
 0x4a5   :  { %v9465_v46 = vpop.f32.mrb[231].mxu0  ;;  %v10859_v49 = vpop.f32.mrb[231].mxu1 }
 0x4a6   :  { %v20295_v28 = vmax.f32 %v8373_v6, %v9719_v63  ;;  %v9725_v41 = vmax.f32 %v9724_v34, %v9465_v46  ;;  %v11119_v61 = vmax.f32 %v11118_v43, %v10859_v49 }
 0x4a8   :  { %v11161_v15 = vmax.f32 %v20295_v28, %v20297_v13  ;;  %v15640_v16 = vpop.f32.mrb[232].mxu0  ;;  %v15834_v4 = vpop.f32.mrb[232].mxu1  ;;  %v9726_v60 = vmax.f32 %v9725_v41, %v15637_v25  ;;  %v11120_v53 = vmax.f32 %v11119_v61, %v15831_v20  ;;  %v11187_v13 = vlaneseq }
 0x4a9   :  { %v9475_v9 = vpop.f32.mrb[233].mxu0  ;;  %v10869_v7 = vpop.f32.mrb[233].mxu1 }
 0x4aa   :  { %v9727_v21 = vmax.f32 %v9726_v60, %v9475_v9  ;;  %v11121_v57 = vmax.f32 %v11120_v53, %v10869_v7  ;;  %v20346_v11 = vand.u32 127, %v11187_v13 }
 0x4ac   :  { %v15643_v27 = vpop.f32.mrb[234].mxu0  ;;  %v15837_v8 = vpop.f32.mrb[234].mxu1  ;;  %v9728_v55 = vmax.f32 %v9727_v21, %v15640_v16  ;;  %v11122_v59 = vmax.f32 %v11121_v57, %v15834_v4  ;;  %vm11189_vm9 = vcmp.lt.s32.totalorder %v20346_v11, 40 }
 0x4ad   :  { %v9485_v6 = vpop.f32.mrb[235].mxu0  ;;  %v10879_v3 = vpop.f32.mrb[235].mxu1 }
 0x4ae   :  { %v9729_v31 = vmax.f32 %v9728_v55, %v9485_v6  ;;  %v11123_v22 = vmax.f32 %v11122_v59, %v10879_v3 }
 0x4b0   :  { %v15646_v37 = vpop.f32.mrb[236].mxu0  ;;  %v15840_v23 = vpop.f32.mrb[236].mxu1  ;;  %v9730_v5 = vmax.f32 %v9729_v31, %v15643_v27  ;;  %v11124_v18 = vmax.f32 %v11123_v22, %v15837_v8 }
 0x4b1   :  { %v9495_v29 = vpop.f32.mrb[237].mxu0  ;;  %v10889_v42 = vpop.f32.mrb[237].mxu1 }
 0x4b2   :  { %v9731_v36 = vmax.f32 %v9730_v5, %v9495_v29  ;;  %v11125_v48 = vmax.f32 %v11124_v18, %v10889_v42 }
 0x4b4   :  { %v15649_v47 = vpop.f32.mrb[238].mxu0  ;;  %v15843_v44 = vpop.f32.mrb[238].mxu1  ;;  %v9732_v35 = vmax.f32 %v9731_v36, %v15646_v37  ;;  %v11126_v51 = vmax.f32 %v11125_v48, %v15840_v23 }
 0x4b5   :  { %v9505_v1 = vpop.f32.mrb[239].mxu0  ;;  %v10899_v39 = vpop.f32.mrb[239].mxu1 }
 0x4b6   :  { %v9733_v45 = vmax.f32 %v9732_v35, %v9505_v1  ;;  %v11127_v63 = vmax.f32 %v11126_v51, %v10899_v39 }
 0x4b8   :  { %v9734_v25 = vmax.f32 %v9733_v45, %v15649_v47  ;;  %v11128_v20 = vmax.f32 %v11127_v63, %v15843_v44  ;;  %v15652_v34 = vpop.f32.mrb[240].mxu0  ;;  %v15846_v43 = vpop.f32.mrb[240].mxu1 }
 0x4b9   :  { %v9515_v46 = vpop.f32.mrb[241].mxu0  ;;  %v10909_v49 = vpop.f32.mrb[241].mxu1 }
 0x4ba   :  { %v9735_v41 = vrot.slane %v9734_v25, 4  ;;  %v11129_v61 = vrot.slane %v11128_v20, 4  ;;  %v9741_v16 = vmax.f32 %v9515_v46, %v15652_v34  ;;  %v11135_v4 = vmax.f32 %v10909_v49, %v15846_v43 }
 0x4bc   :  { %v9736_v60 = vmax.f32 %v9734_v25, %v9735_v41  ;;  %v11130_v53 = vmax.f32 %v11128_v20, %v11129_v61  ;;  %v15655_v9 = vpop.f32.mrb[242].mxu0  ;;  %v15849_v7 = vpop.f32.mrb[242].mxu1 }
 0x4bd   :  { %v9525_v21 = vpop.f32.mrb[243].mxu0  ;;  %v10919_v57 = vpop.f32.mrb[243].mxu1 }
 0x4be   :  { %v9737_v27 = vrot.slane %v9736_v60, 2  ;;  %v11131_v8 = vrot.slane %v11130_v53, 2  ;;  %v9742_v55 = vmax.f32 %v9741_v16, %v9525_v21  ;;  %v11136_v59 = vmax.f32 %v11135_v4, %v10919_v57 }
 0x4c0   :  { %v9738_v6 = vmax.f32 %v9736_v60, %v9737_v27  ;;  %v11132_v3 = vmax.f32 %v11130_v53, %v11131_v8  ;;  %v15658_v31 = vpop.f32.mrb[244].mxu0  ;;  %v15852_v22 = vpop.f32.mrb[244].mxu1  ;;  %v9743_v37 = vmax.f32 %v9742_v55, %v15655_v9  ;;  %v11137_v23 = vmax.f32 %v11136_v59, %v15849_v7 }
 0x4c1   :  { %v9535_v5 = vpop.f32.mrb[245].mxu0  ;;  %v10929_v18 = vpop.f32.mrb[245].mxu1 }
 0x4c2   :  { %v9739_v29 = vrot.slane %v9738_v6, 1  ;;  %v11133_v42 = vrot.slane %v11132_v3, 1  ;;  %v9744_v36 = vmax.f32 %v9743_v37, %v9535_v5  ;;  %v11138_v48 = vmax.f32 %v11137_v23, %v10929_v18 }
 0x4c4   :  { %v9740_v47 = vmax.f32 %v9738_v6, %v9739_v29  ;;  %v15661_v44 = vpop.f32.mrb[246].mxu0  ;;  %v15855_v35 = vpop.f32.mrb[246].mxu1  ;;  %v9745_v51 = vmax.f32 %v9744_v36, %v15658_v31  ;;  %v11139_v1 = vmax.f32 %v11138_v48, %v15852_v22  ;;  %v11134_v25 = vmax.f32 %v11132_v3, %v11133_v42 }
 0x4c5   :  { %v9545_v39 = vpop.f32.mrb[247].mxu0  ;;  %v10939_v45 = vpop.f32.mrb[247].mxu1 }
 0x4c6   :  { %v9768_v63 = vmax.f32 %v8374_v0, %v9740_v47  ;;  %v9746_v20 = vmax.f32 %v9745_v51, %v9545_v39  ;;  %v11140_v34 = vmax.f32 %v11139_v1, %v10939_v45  ;;  %v13283_v39 = vld [vmem:[%s20411_s1] ss:$0 sm:$0xff]  ;;  %s15913_s1 = smov [#allocation2]  }
 0x4c7   :  { %v11176_v19 = vadd.f32 %v13283_v39, %v11161_v15  ;;  %s11347_s6 = sshll.u32 %s15913_s1, 4  ;;  %s11348_s6 = int_to_ptr.vmem [resolvable:$true] %s11347_s6 }
 0x4c8   :  { %v11162_v43 = vmax.f32 %v9768_v63, %v11134_v25  ;;  %v15664_v46 = vpop.f32.mrb[248].mxu0  ;;  %v15858_v49 = vpop.f32.mrb[248].mxu1  ;;  %v9747_v41 = vmax.f32 %v9746_v20, %v15661_v44  ;;  %v11141_v61 = vmax.f32 %v11140_v34, %v15855_v35  ;;  %v11172_v25 = vadd.f32 %v13283_v39, %v11157_v33  ;;  %s15889_s0 = scalar_lea.vmem %s11348_s6, 128  ;;  %p15894_p1 = scmp.lt.s32.totalorder %s11348_s6, %s11348_s6 }
 0x4c9   :  { %v9555_v16 = vpop.f32.mrb[249].mxu0  ;;  %v10949_v4 = vpop.f32.mrb[249].mxu1  ;;  %v20334_v10 = vmax.f32 %v11176_v19, 0.0  ;;  %p15890_p0 = scmp.ne.s32.totalorder %s11348_s6, %s15889_s0  ;;  %p15895_p2 = scmp.lt.s32.totalorder %s15889_s0, %s15889_s0 }
 0x4ca   :  { %v9748_v60 = vmax.f32 %v9747_v41, %v9555_v16  ;;  %v11142_v53 = vmax.f32 %v11141_v61, %v10949_v4  ;;  %v20316_v16 = vmax.f32 %v11172_v25, 0.0  ;;  %v11175_v4 = vadd.f32 %v13283_v39, %v11160_v54 }
 0x4cb   :  { %v11177_v30 = vadd.f32 %v13283_v39, %v11162_v43  ;;  %p15896_p3 = por %p15895_p2, %p15894_p1 }
 0x4cc   :  { %v15667_v9 = vpop.f32.mrb[250].mxu0  ;;  %v15861_v7 = vpop.f32.mrb[250].mxu1  ;;  %v9749_v21 = vmax.f32 %v9748_v60, %v15664_v46  ;;  %v11143_v57 = vmax.f32 %v11142_v53, %v15858_v49  ;;  %v11173_v46 = vadd.f32 %v13283_v39, %v11158_v12  ;;  %v11174_v49 = vadd.f32 %v13283_v39, %v11159_v58 }
 0x4cd   :  { %v9565_v27 = vpop.f32.mrb[251].mxu0  ;;  %v10959_v8 = vpop.f32.mrb[251].mxu1  ;;  %v11171_v12 = vadd.f32 %v13283_v39, %v11156_v52  ;;  %v11198_v58 = vrot.slane %v20316_v16, 7  ;;  %v20332_v50 = vmax.f32 %v11175_v4, 0.0  ;;  %v20339_v15 = vmax.f32 %v11177_v30, 0.0  ;;  %p15897_p4 = pnand %p15896_p3, %p15890_p0 }
 0x4ce   :  { %v9750_v38 = vmax.f32 %v9749_v21, %v9565_v27  ;;  %v11144_v40 = vmax.f32 %v11143_v57, %v10959_v8  ;;  %v20324_v14 = vmax.f32 %v11173_v46, 0.0  ;;  %v20329_v56 = vmax.f32 %v11174_v49, 0.0 }
 0x4cf   :  { %v20342_v26 = vmax.f32 %v11171_v12, 0.0  ;;  %v11207_v60 = vrot.slane %v20332_v50, 4 }
 0x4d0   :  { %v15670_v0 = vpop.f32.mrb[252].mxu0  ;;  %v15864_v55 = vpop.f32.mrb[252].mxu1  ;;  %v9751_v59 = vmax.f32 %v9750_v38, %v15667_v9  ;;  %v11145_v6 = vmax.f32 %v11144_v40, %v15861_v7  ;;  %v11201_v32 = vrot.slane %v20324_v14, 6  ;;  %v11204_v43 = vrot.slane %v20329_v56, 5 }
 0x4d1   :  { %v9575_v3 = vpop.f32.mrb[253].mxu0  ;;  %v10969_v31 = vpop.f32.mrb[253].mxu1  ;;  %v11200_v17 = vsel %vm11199_vm2, %v11198_v58, %v20342_v26  ;;  %v11213_v7 = vrot.slane %v20339_v15, 2 }
 0x4d2   :  { %v9752_v22 = vmax.f32 %v9751_v59, %v9575_v3  ;;  %v11146_v37 = vmax.f32 %v11145_v6, %v10969_v31  ;;  %v11203_v9 = vsel %vm11202_vm3, %v11201_v32, %v11200_v17 }
 0x4d3   :  { %v11206_v57 = vsel %vm11205_vm4, %v11204_v43, %v11203_v9 }
 0x4d4   :  { %v15673_v23 = vpop.f32.mrb[254].mxu0  ;;  %v15867_v5 = vpop.f32.mrb[254].mxu1  ;;  %v9753_v18 = vmax.f32 %v9752_v22, %v15670_v0  ;;  %v11147_v29 = vmax.f32 %v11146_v37, %v15864_v55  ;;  %v11209_v27 = vsel %vm11208_vm5, %v11207_v60, %v11206_v57 }
 0x4d5   :  { %v9585_v42 = vpop.f32.mrb[255].mxu0  ;;  %v10979_v36 = vpop.f32.mrb[255].mxu1 }
 0x4d6   :  { %v9754_v48 = vmax.f32 %v9753_v18, %v9585_v42  ;;  %v11148_v47 = vmax.f32 %v11147_v29, %v10979_v36 }
 0x4d8   :  { %v9755_v44 = vmax.f32 %v9754_v48, %v15673_v23  ;;  %v11149_v35 = vmax.f32 %v11148_v47, %v15867_v5 }
 0x4da   :  { %v9756_v51 = vrot.slane %v9755_v44, 4  ;;  %v11150_v1 = vrot.slane %v11149_v35, 4 }
 0x4dc   :  { %v9757_v45 = vmax.f32 %v9755_v44, %v9756_v51  ;;  %v11151_v63 = vmax.f32 %v11149_v35, %v11150_v1 }
 0x4de   :  { %v9758_v20 = vrot.slane %v9757_v45, 2  ;;  %v11152_v34 = vrot.slane %v11151_v63, 2 }
 0x4e0   :  { %v9759_v41 = vmax.f32 %v9757_v45, %v9758_v20  ;;  %v11153_v61 = vmax.f32 %v11151_v63, %v11152_v34 }
 0x4e2   :  { %v9760_v24 = vrot.slane %v9759_v41, 1  ;;  %v11154_v33 = vrot.slane %v11153_v61, 1 }
 0x4e4   :  { %v9761_v62 = vmax.f32 %v9759_v41, %v9760_v24  ;;  %v11155_v28 = vmax.f32 %v11153_v61, %v11154_v33 }
 0x4e6   :  { %v9769_v54 = vmax.f32 %v8375_v2, %v9761_v62  ;;  %v11210_v2 = vrot.slane %v20334_v10, 3 }
 0x4e8   :  { %v11163_v52 = vmax.f32 %v9769_v54, %v11155_v28  ;;  %v11212_v8 = vsel %vm11211_vm6, %v11210_v2, %v11209_v27 }
 0x4e9   :  { %v11215_v40 = vsel %vm11214_vm7, %v11213_v7, %v11212_v8 }
 0x4ea   :  { %v11178_v53 = vadd.f32 %v13283_v39, %v11163_v52 }
 0x4ec   :  { %v20353_v21 = vmax.f32 %v11178_v53, 0.0 }
 0x4ee   :  { %v11216_v38 = vrot.slane %v20353_v21, 1 }
 0x4f0   :  { %v11218_v0 = vsel %vm11217_vm8, %v11216_v38, %v11215_v40 }
 0x4f1   :  { %v11220_v55 = vsel %vm11189_vm9, %v11218_v0, -inf }
 0x4f2   :  { %11221 = vmax.xlane.f32.xlu0 %v11220_v55 }
 0x57f   :  { %v11222_v59 = vpop.xlane.xlu0 %11221 }
 0x580   :  { %v11224_v6 = vrot.slane %v11222_v59, 1  ;;  %v11239_v3 = vsub.f32 %v20342_v26, %v11222_v59  ;;  %v11225_v31 = vrot.slane %v11222_v59, 2  ;;  %v11226_v22 = vrot.slane %v11222_v59, 3 }
 0x581   :  { %v11227_v37 = vrot.slane %v11222_v59, 4  ;;  %v11228_v23 = vrot.slane %v11222_v59, 5  ;;  %v11229_v5 = vrot.slane %v11222_v59, 6  ;;  %v11230_v18 = vrot.slane %v11222_v59, 7 }
 0x582   :  { %v11247_v29 = vmul.f32 1.442695, %v11239_v3  ;;  %v11240_v42 = vsub.f32 %v20316_v16, %v11224_v6  ;;  %v11241_v36 = vsub.f32 %v20324_v14, %v11225_v31  ;;  %v11242_v48 = vsub.f32 %v20329_v56, %v11226_v22 }
 0x583   :  { %v11243_v47 = vsub.f32 %v20332_v50, %v11227_v37  ;;  %v11244_v44 = vsub.f32 %v20334_v10, %v11228_v23  ;;  %v11245_v35 = vsub.f32 %v20339_v15, %v11229_v5  ;;  %v11246_v51 = vsub.f32 %v20353_v21, %v11230_v18 }
 0x584   :  { %v11249_v1 = vmul.f32 1.442695, %v11240_v42  ;;  %v11251_v39 = vmul.f32 1.442695, %v11241_v36  ;;  %v11253_v45 = vmul.f32 1.442695, %v11242_v48  ;;  %15869 = vpow2.f32 %v11247_v29 }
 0x585   :  { %v11255_v63 = vmul.f32 1.442695, %v11243_v47  ;;  %v11257_v25 = vmul.f32 1.442695, %v11244_v44  ;;  %v11259_v20 = vmul.f32 1.442695, %v11245_v35 }
 0x586   :  { %15871 = vpow2.f32 %v11249_v1  ;;  %v11261_v34 = vmul.f32 1.442695, %v11246_v51 }
 0x587   :  { %15873 = vpow2.f32 %v11251_v39 }
 0x588   :  { %15875 = vpow2.f32 %v11253_v45 }
 0x589   :  { %15877 = vpow2.f32 %v11255_v63 }
 0x58a   :  { %15879 = vpow2.f32 %v11257_v25 }
 0x58b   :  { %15881 = vpow2.f32 %v11259_v20 }
 0x58c   :  { %15883 = vpow2.f32 %v11261_v34 }
 0x58e   :  { %v15870_v46 = vpop.eup %15869 }
 0x590   :  { %v15872_v49 = vpop.eup %15871 }
 0x591   :  { %v15874_v41 = vpop.eup %15873  ;;  %v11271_v61 = vrot.slane %v15872_v49, 7 }
 0x592   :  { %v15876_v4 = vpop.eup %15875  ;;  %v11273_v19 = vrot.slane %v15874_v41, 6 }
 0x593   :  { %v15878_v24 = vpop.eup %15877  ;;  %v11272_v33 = vsel %vm11199_vm2, %v11271_v61, %v15870_v46  ;;  %v11275_v30 = vrot.slane %v15876_v4, 5 }
 0x594   :  { %v15880_v12 = vpop.eup %15879  ;;  %v11274_v62 = vsel %vm11202_vm3, %v11273_v19, %v11272_v33  ;;  %v11277_v58 = vrot.slane %v15878_v24, 4 }
 0x595   :  { %v15882_v54 = vpop.eup %15881  ;;  %v11276_v28 = vsel %vm11205_vm4, %v11275_v30, %v11274_v62  ;;  %v11279_v13 = vrot.slane %v15880_v12, 3 }
 0x596   :  { %v15884_v32 = vpop.eup %15883  ;;  %v11278_v52 = vsel %vm11208_vm5, %v11277_v58, %v11276_v28  ;;  %v11281_v43 = vrot.slane %v15882_v54, 2 }
 0x597   :  { %v11280_v60 = vsel %vm11211_vm6, %v11279_v13, %v11278_v52  ;;  %v11283_v53 = vrot.slane %v15884_v32, 1 }
 0x598   :  { %v11282_v17 = vsel %vm11214_vm7, %v11281_v43, %v11280_v60 }
 0x599   :  { %v11284_v2 = vsel %vm11217_vm8, %v11283_v53, %v11282_v17 }
 0x59a   :  { %v11286_v9 = vsel %vm11189_vm9, %v11284_v2, 0.0 }
 0x59b   :  { %11287 = vadd.xlane.f32.xlu0 %v11286_v9 }
 0x628   :  { %v11288_v7 = vpop.xlane.xlu0 %11287 }
 0x629   :  { %15885 = vlog2.f32 %v11288_v7 }
 0x633   :  { %v15886_v57 = vpop.eup %15885 }
 0x634   :  { %v11290_v27 = vmul.f32 0.6931472, %v15886_v57 }
 0x636   :  { %v11291_v8 = vadd.f32 %v11290_v27, %v11222_v59 }
 0x638   :  { %v11293_v38 = vrot.slane %v11291_v8, 1  ;;  %v11294_v40 = vrot.slane %v11291_v8, 2  ;;  %v11295_v0 = vrot.slane %v11291_v8, 3  ;;  %v11296_v55 = vrot.slane %v11291_v8, 4 }
 0x639   :  { %v11297_v6 = vrot.slane %v11291_v8, 5  ;;  %v11298_v3 = vrot.slane %v11291_v8, 6  ;;  %v11299_v31 = vrot.slane %v11291_v8, 7  ;;  %v11308_v18 = vsub.f32 %v20342_v26, %v11291_v8 }
 0x63a   :  { %v11309_v22 = vsub.f32 %v20316_v16, %v11293_v38  ;;  %v11310_v37 = vsub.f32 %v20324_v14, %v11294_v40  ;;  %v11311_v23 = vsub.f32 %v20329_v56, %v11295_v0  ;;  %v11312_v5 = vsub.f32 %v20332_v50, %v11296_v55 }
 0x63b   :  { %v11313_v29 = vsub.f32 %v20334_v10, %v11297_v6  ;;  %v11314_v36 = vsub.f32 %v20339_v15, %v11298_v3  ;;  %v11315_v48 = vsub.f32 %v20353_v21, %v11299_v31 }
 0x63c   :  { %v11324_v59 = vrot.slane %v11309_v22, 7  ;;  %v11326_v42 = vrot.slane %v11310_v37, 6  ;;  %v11328_v44 = vrot.slane %v11311_v23, 5  ;;  %v11330_v14 = vrot.slane %v11312_v5, 4 }
 0x63d   :  { %v11332_v35 = vrot.slane %v11313_v29, 3  ;;  %v11334_v26 = vrot.slane %v11314_v36, 2  ;;  %v11336_v51 = vrot.slane %v11315_v48, 1 }
 0x63e   :  { %v11325_v47 = vsel %vm11199_vm2, %v11324_v59, %v11308_v18 }
 0x63f   :  { %v11327_v16 = vsel %vm11202_vm3, %v11326_v42, %v11325_v47 }
 0x640   :  { %v11329_v56 = vsel %vm11205_vm4, %v11328_v44, %v11327_v16 }
 0x641   :  { %v11331_v50 = vsel %vm11208_vm5, %v11330_v14, %v11329_v56 }
 0x642   :  { %v11333_v10 = vsel %vm11211_vm6, %v11332_v35, %v11331_v50 }
 0x643   :  { %v11335_v15 = vsel %vm11214_vm7, %v11334_v26, %v11333_v10 }
 0x644   :  { %v11337_v21 = vsel %vm11217_vm8, %v11336_v51, %v11335_v15 }
 0x645   :  { %v11339_v1 = vsel %vm11189_vm9, %v11337_v21, 0.0 }
 0x646   :  { %11340 = vst [vmem:[#allocation2] sm:$0xff] %v11339_v1 }
 0x647   :  { %15900 = shalt.err (!%p15897_p4)
}
 0x648   :  { %s15901_s9 = scalar_lea.hbm %s20413_s3, 128 }
 0x649   :  { %p15902_p5 = scmp.ne.s32.totalorder %s20413_s3, %s15901_s9  ;;  %p15905_p6 = scmp.lt.u32.totalorder %s15901_s9, %s20413_s3 }
 0x64b   :  { %p15907_p7 = pnand %p15905_p6, %p15902_p5 }
 0x64d   :  { %15910 = shalt.err (!%p15907_p7)
}
 0x64e   :  { %11350 = dma.vmem_to_hbm [thread:$0]  %s11348_s6, 128, %s20413_s3, [#allocation3]  }
 0x64f   :  { %15911 = dma.done.wait [#allocation3], 128  }
 0x650   :  { %15912 = vsyncadd [#allocation3], 4294967168 }
 0x651   :  { %11354 = vsyncpa [#allocation3], 1 }

</bundles_post_ra>
